<compile_context>
chip_gen: v7x
topology: tpu7x:2x2x1
jax: 0.10.0
libtpu: 0.0.40
codegen_flags: <defaults>
</compile_context>

<pallas_src>
import functools

import numpy as np

import jax
import jax.numpy as jnp
from jax.experimental import pallas as pl
from jax.experimental.pallas import tpu as pltpu


# ---------------------------------------------------------------------------
# Fused Pallas kernel: whole LeNet forward for BB images per grid step.
# ---------------------------------------------------------------------------
def _lenet_kernel(x_ref, c1w_ref, c1b_ref, c2w_ref, c2b_ref,
                  f1w_ref, f1b_ref, f2w_ref, f2b_ref, out_ref, *, bb):
    ksz = 5
    h_in = x_ref.shape[0]                  # 28
    oh1 = h_in - ksz + 1                   # 24
    ph1 = oh1 // 2                         # 12
    oh2 = ph1 - ksz + 1                    # 8
    ph2 = oh2 // 2                         # 4
    n1 = c1b_ref.shape[1]                  # 480 = 24 * 20   (lanes = ow*20 + oc)
    n2 = c2b_ref.shape[1]                  # 160 = 8 * 20
    oc = n1 // oh1                         # 20

    # ----- conv1 (+bias, ReLU): ONE GEMM, K = 5 kernel rows x (W*Cin) lanes --
    lhs1 = jnp.concatenate([x_ref[i:i + oh1, :, :] for i in range(ksz)],
                           axis=-1)                        # (24, BB, 420)
    lhs1 = lhs1.reshape(oh1 * bb, ksz * x_ref.shape[2])    # (24*BB, 420)
    y1 = jnp.dot(lhs1, c1w_ref[...], preferred_element_type=jnp.float32)
    y1 = jnp.maximum(y1 + c1b_ref[...], 0.0)               # (24*BB, 480)

    # ----- pool1 (2x2, stride 2): H via aligned reshape + max, W via
    #       20-lane-shifted max (garbage lanes zero-weighted in conv2 weights).
    y1 = y1.reshape(ph1, 2 * bb, n1)
    y1 = jnp.maximum(y1[:, :bb, :], y1[:, bb:, :])         # (12, BB, 480)
    p1 = jnp.maximum(y1[..., :n1 - oc], y1[..., oc:])      # (12, BB, 460)

    # ----- conv2 (+bias, ReLU): ONE GEMM, K = 5 x 460 ------------------------
    lhs2 = jnp.concatenate([p1[i:i + oh2] for i in range(ksz)],
                           axis=-1)                        # (8, BB, 2300)
    lhs2 = lhs2.reshape(oh2 * bb, ksz * (n1 - oc))         # (8*BB, 2300)
    y2 = jnp.dot(lhs2, c2w_ref[...], preferred_element_type=jnp.float32)
    y2 = jnp.maximum(y2 + c2b_ref[...], 0.0)               # (8*BB, 160)

    # ----- pool2 --------------------------------------------------------------
    y2 = y2.reshape(ph2, 2 * bb, n2)
    y2 = jnp.maximum(y2[:, :bb, :], y2[:, bb:, :])         # (4, BB, 160)
    p2 = jnp.maximum(y2[..., :n2 - oc], y2[..., oc:])      # (4, BB, 140)

    # ----- fc1 (+ReLU) and fc2: single GEMMs with M = BB ---------------------
    flat = jnp.concatenate([p2[h] for h in range(ph2)], axis=-1)   # (BB, 560)
    h1 = jnp.dot(flat, f1w_ref[...], preferred_element_type=jnp.float32)
    h1 = jnp.maximum(h1 + f1b_ref[...], 0.0)               # (BB, 50)
    logits = jnp.dot(h1, f2w_ref[...],
                     preferred_element_type=jnp.float32) + f2b_ref[...]
    out_ref[...] = logits.astype(out_ref.dtype)            # (BB, n_out)


# ---------------------------------------------------------------------------
# Parameter handling
# ---------------------------------------------------------------------------
def init_params(key, input_channels=3, output_size=2):
    """PyTorch-style uniform(-1/sqrt(fan_in), +1/sqrt(fan_in)) init, PyTorch layouts."""
    ks = jax.random.split(key, 8)

    def u(k, shape, fan_in):
        bound = 1.0 / jnp.sqrt(fan_in)
        return jax.random.uniform(k, shape, jnp.float32, -bound, bound)

    return {
        "conv1_w": u(ks[0], (20, input_channels, 5, 5), input_channels * 25),
        "conv1_b": u(ks[1], (20,), input_channels * 25),
        "conv2_w": u(ks[2], (20, 20, 5, 5), 20 * 25),
        "conv2_b": u(ks[3], (20,), 20 * 25),
        "fc1_w": u(ks[4], (50, 320), 320),
        "fc1_b": u(ks[5], (50,), 320),
        "fc2_w": u(ks[6], (output_size, 50), 50),
        "fc2_b": u(ks[7], (output_size,), 50),
    }


def pack_params(params):
    """One-time repack of PyTorch-layout params into kernel-ready GEMM layouts.

    Both convs become block-banded matrices so the whole 5x5xCin tap set lives
    in the GEMM contraction dim; fc1 absorbs the (h, w, c)->(c, h, w) flatten
    permutation and the pool-boundary garbage lanes (zero rows)."""
    w1 = np.asarray(params["conv1_w"], np.float32)      # (OC, Cin, 5, 5)
    w2 = np.asarray(params["conv2_w"], np.float32)      # (OC, OC, 5, 5)
    fc1w = np.asarray(params["fc1_w"], np.float32)      # (50, 320)
    fc2w = np.asarray(params["fc2_w"], np.float32)      # (n_out, 50)
    b1 = np.asarray(params["conv1_b"], np.float32)
    b2 = np.asarray(params["conv2_b"], np.float32)
    oc, cin, ksz, _ = w1.shape
    n_hidden, n_feat = fc1w.shape                       # 50, 320
    ph2 = int(round((n_feat // oc) ** 0.5))             # 4
    oh2 = 2 * ph2                                       # 8
    ph1 = oh2 + ksz - 1                                 # 12
    oh1 = 2 * ph1                                       # 24
    hw = oh1 + ksz - 1                                  # 28 (square input)
    assert ph2 * ph2 * oc == n_feat, "fc1 in_features inconsistent with conv stack"

    # conv1 -> [420, 480]: row = 84*i + cin*w + c, col = 20*ow + oc.
    c1w = np.zeros((ksz, hw, cin, oh1, oc), np.float32)
    for i in range(ksz):
        for j in range(ksz):
            tap = w1[:, :, i, j].T                      # (Cin, OC)
            for ow in range(oh1):
                c1w[i, ow + j, :, ow, :] = tap
    c1w = c1w.reshape(ksz * hw * cin, oh1 * oc)

    # conv2 -> [2300, 160]: row = 460*i + 40*pw + c (pool-boundary lanes stay
    # exactly zero), col = 20*ow + oc.
    k2 = 2 * oc * ph1 - oc                              # 460
    c2w = np.zeros((ksz, k2, oh2 * oc), np.float32)
    for i in range(ksz):
        for j in range(ksz):
            tap = w2[:, :, i, j].T                      # (C_in=OC, OC)
            for ow in range(oh2):
                pw = ow + j
                c2w[i, 2 * oc * pw:2 * oc * pw + oc,
                    oc * ow:oc * (ow + 1)] = tap
    c2w = c2w.reshape(ksz * k2, oh2 * oc)

    # fc1 -> [560, 50]: row = 140*h + 40*w + c maps to PyTorch flatten feature
    # index c*16 + h*4 + w (NCHW flatten order); garbage lanes stay zero.
    k3 = 2 * oc * ph2 - oc                              # 140
    f1w = np.zeros((ph2, k3, n_hidden), np.float32)
    for h in range(ph2):
        for w in range(ph2):
            for c in range(oc):
                f1w[h, 2 * oc * w + c, :] = fc1w[:, c * ph2 * ph2 + h * ph2 + w]
    f1w = f1w.reshape(ph2 * k3, n_hidden)

    return {
        "c1w": jnp.asarray(c1w),
        "c1b": jnp.asarray(np.tile(b1, oh1)[None, :]),          # (1, 480)
        "c2w": jnp.asarray(c2w),
        "c2b": jnp.asarray(np.tile(b2, oh2)[None, :]),          # (1, 160)
        "f1w": jnp.asarray(f1w),
        "f1b": jnp.asarray(params["fc1_b"])[None, :],           # (1, 50)
        "f2w": jnp.asarray(fc2w.T),                             # (50, n_out)
        "f2b": jnp.asarray(params["fc2_b"])[None, :],           # (1, n_out)
    }


# ---------------------------------------------------------------------------
# Forward pass: one fused pallas_call, grid over batch blocks of BB images.
# ---------------------------------------------------------------------------
def lenet_mnist_forward(packed, x, *, block_b=8):
    """x: [B, C, H, W] float32 (NCHW, as in PyTorch).  Returns [B, output_size]."""
    B, C, H, W = x.shape
    assert H == W, "square input expected"
    assert block_b % 8 == 0, "block_b must be a multiple of 8 (f32 sublane tile)"
    n_out = packed["f2w"].shape[1]
    n1 = packed["c1b"].shape[1]
    assert packed["c1w"].shape == (5 * W * C, n1), \
        "input spatial/channel size mismatch with packed weights"

    bb = block_b
    b_pad = ((B + bb - 1) // bb) * bb
    if b_pad != B:
        x = jnp.pad(x, ((0, b_pad - B), (0, 0), (0, 0), (0, 0)))

    # Lane-dense layout (H, B, W*C): contiguous DMA runs, ~16 KB/image in VMEM.
    x_l = jnp.transpose(x, (2, 0, 3, 1)).reshape(H, b_pad, W * C)

    kernel = functools.partial(_lenet_kernel, bb=bb)

    def full(a):  # whole-array (VMEM-resident) block, constant across the grid
        return pl.BlockSpec(a.shape, lambda g, _nd=a.ndim: (0,) * _nd)

    out = pl.pallas_call(
        kernel,
        out_shape=jax.ShapeDtypeStruct((b_pad, n_out), jnp.float32),
        grid=(b_pad // bb,),
        in_specs=[
            pl.BlockSpec((H, bb, W * C), lambda g: (0, g, 0)),   # batch-blocked input
            full(packed["c1w"]), full(packed["c1b"]),
            full(packed["c2w"]), full(packed["c2b"]),
            full(packed["f1w"]), full(packed["f1b"]),
            full(packed["f2w"]), full(packed["f2b"]),
        ],
        out_specs=pl.BlockSpec((bb, n_out), lambda g: (g, 0)),
        compiler_params=pltpu.CompilerParams(
            dimension_semantics=("parallel",),
            # Whole working set (banded weights + activations) is ~6-8 MiB;
            # 32 MiB fits v5e/v6e/v7x scoped VMEM comfortably.
            vmem_limit_bytes=32 * 1024 * 1024),
    )(x_l, packed["c1w"], packed["c1b"], packed["c2w"], packed["c2b"],
      packed["f1w"], packed["f1b"], packed["f2w"], packed["f2b"])
    return out[:B]


# ---------------------------------------------------------------------------
# Pure-JAX reference (matches the PyTorch module) for a self-check.
# ---------------------------------------------------------------------------
def _reference_forward(params, x):
    hp = jax.lax.Precision.HIGHEST

    def conv(x, w, b):
        y = jax.lax.conv_general_dilated(
            x, w, window_strides=(1, 1), padding="VALID",
            dimension_numbers=("NCHW", "OIHW", "NCHW"), precision=hp)
        return y + b.reshape(1, -1, 1, 1)

    def pool(x):
        return jax.lax.reduce_window(
            x, -jnp.inf, jax.lax.max, (1, 1, 2, 2), (1, 1, 2, 2), "VALID")

    x = pool(jax.nn.relu(conv(x, params["conv1_w"], params["conv1_b"])))
    x = pool(jax.nn.relu(conv(x, params["conv2_w"], params["conv2_b"])))
    x = x.reshape(x.shape[0], -1)
    x = jax.nn.relu(jnp.dot(x, params["fc1_w"].T, precision=hp) + params["fc1_b"])
    return jnp.dot(x, params["fc2_w"].T, precision=hp) + params["fc2_b"]


if __name__ == "__main__":
    key = jax.random.PRNGKey(0)
    pkey, xkey = jax.random.split(key)
    params = init_params(pkey, input_channels=3, output_size=2)
    packed = pack_params(params)                         # one-time weight repack

    # 28x28 input makes the 320-dim flatten of the original module work.
    # B=10 exercises batch padding (pads to 16 -> 2 grid steps, good for v7x).
    x = jax.random.normal(xkey, (10, 3, 28, 28), dtype=jnp.float32)

    fwd = jax.jit(functools.partial(lenet_mnist_forward, block_b=8))
    out = jax.block_until_ready(fwd(packed, x))
    assert out.shape == (10, 2) and out.dtype == jnp.float32

    ref = jax.block_until_ready(_reference_forward(params, x))
    if not bool(jnp.allclose(out, ref, atol=1e-3, rtol=1e-3)):
        raise AssertionError("Pallas LeNet output does not match reference")

    print("KERNEL_OK")
</pallas_src>

<mosaic_0001>
module attributes {stable_mosaic.version = 11 : i64} {
  func.func @_lenet_kernel(%arg0: i32, %arg1: memref<28x8x84xf32, #tpu.memory_space<vmem>>, %arg2: memref<420x480xf32, #tpu.memory_space<vmem>>, %arg3: memref<1x480xf32, #tpu.memory_space<vmem>>, %arg4: memref<2300x160xf32, #tpu.memory_space<vmem>>, %arg5: memref<1x160xf32, #tpu.memory_space<vmem>>, %arg6: memref<560x50xf32, #tpu.memory_space<vmem>>, %arg7: memref<1x50xf32, #tpu.memory_space<vmem>>, %arg8: memref<50x2xf32, #tpu.memory_space<vmem>>, %arg9: memref<1x2xf32, #tpu.memory_space<vmem>>, %arg10: memref<8x2xf32, #tpu.memory_space<vmem>>) attributes {dimension_semantics = [#tpu.dimension_semantics<parallel>], iteration_bounds = array<i64: 2>, scalar_prefetch = 0 : i64, scratch_operands = 0 : i64, tpu.core_type = #tpu.core_type<tc>, window_params = [{transform_indices = @transform_0, window_bounds = array<i64: 28, 8, 84>}, {pipeline_mode = #tpu.pipeline_mode<synchronous>, transform_indices = @transform_1, window_bounds = array<i64: 420, 480>}, {pipeline_mode = #tpu.pipeline_mode<synchronous>, transform_indices = @transform_2, window_bounds = array<i64: 1, 480>}, {pipeline_mode = #tpu.pipeline_mode<synchronous>, transform_indices = @transform_3, window_bounds = array<i64: 2300, 160>}, {pipeline_mode = #tpu.pipeline_mode<synchronous>, transform_indices = @transform_4, window_bounds = array<i64: 1, 160>}, {pipeline_mode = #tpu.pipeline_mode<synchronous>, transform_indices = @transform_5, window_bounds = array<i64: 560, 50>}, {pipeline_mode = #tpu.pipeline_mode<synchronous>, transform_indices = @transform_6, window_bounds = array<i64: 1, 50>}, {pipeline_mode = #tpu.pipeline_mode<synchronous>, transform_indices = @transform_7, window_bounds = array<i64: 50, 2>}, {pipeline_mode = #tpu.pipeline_mode<synchronous>, transform_indices = @transform_8, window_bounds = array<i64: 1, 2>}, {transform_indices = @transform_9, window_bounds = array<i64: 8, 2>}]} {
    %c0 = arith.constant 0 : index
    %c0_0 = arith.constant 0 : index
    %c0_1 = arith.constant 0 : index
    %0 = vector.load %arg1[%c0, %c0_0, %c0_1] : memref<28x8x84xf32, #tpu.memory_space<vmem>>, vector<24x8x84xf32>
    %c1 = arith.constant 1 : index
    %c0_2 = arith.constant 0 : index
    %c0_3 = arith.constant 0 : index
    %1 = vector.load %arg1[%c1, %c0_2, %c0_3] : memref<28x8x84xf32, #tpu.memory_space<vmem>>, vector<24x8x84xf32>
    %c2 = arith.constant 2 : index
    %c0_4 = arith.constant 0 : index
    %c0_5 = arith.constant 0 : index
    %2 = vector.load %arg1[%c2, %c0_4, %c0_5] : memref<28x8x84xf32, #tpu.memory_space<vmem>>, vector<24x8x84xf32>
    %c3 = arith.constant 3 : index
    %c0_6 = arith.constant 0 : index
    %c0_7 = arith.constant 0 : index
    %3 = vector.load %arg1[%c3, %c0_6, %c0_7] : memref<28x8x84xf32, #tpu.memory_space<vmem>>, vector<24x8x84xf32>
    %c4 = arith.constant 4 : index
    %c0_8 = arith.constant 0 : index
    %c0_9 = arith.constant 0 : index
    %4 = vector.load %arg1[%c4, %c0_8, %c0_9] : memref<28x8x84xf32, #tpu.memory_space<vmem>>, vector<24x8x84xf32>
    %5 = tpu.concatenate %0, %1, %2, %3, %4 in 2 : vector<24x8x84xf32>, vector<24x8x84xf32>, vector<24x8x84xf32>, vector<24x8x84xf32>, vector<24x8x84xf32> -> vector<24x8x420xf32>
    %6 = vector.shape_cast %5 : vector<24x8x420xf32> to vector<192x420xf32>
    %c0_10 = arith.constant 0 : index
    %c0_11 = arith.constant 0 : index
    %7 = vector.load %arg2[%c0_10, %c0_11] : memref<420x480xf32, #tpu.memory_space<vmem>>, vector<420x480xf32>
    %cst = arith.constant dense<0.000000e+00> : vector<192x480xf32>
    %8 = tpu.matmul %6, %7, %cst {dimension_numbers = #tpu.dot_dimension_numbers<[1], [0], [0], [1], [0, 0, 1, 1], [], []>} : vector<192x420xf32>, vector<420x480xf32>, vector<192x480xf32> -> vector<192x480xf32>
    %c0_12 = arith.constant 0 : index
    %c0_13 = arith.constant 0 : index
    %9 = vector.load %arg3[%c0_12, %c0_13] : memref<1x480xf32, #tpu.memory_space<vmem>>, vector<1x480xf32>
    %10 = vector.broadcast %9 : vector<1x480xf32> to vector<192x480xf32>
    %11 = arith.addf %8, %10 : vector<192x480xf32>
    %cst_14 = arith.constant 0.000000e+00 : f32
    %12 = vector.broadcast %cst_14 : f32 to vector<192x480xf32>
    %13 = arith.maximumf %11, %12 : vector<192x480xf32>
    %14 = vector.shape_cast %13 : vector<192x480xf32> to vector<12x16x480xf32>
    %15 = vector.extract_strided_slice %14 {offsets = [0, 0, 0], sizes = [12, 8, 480], strides = [1, 1, 1]} : vector<12x16x480xf32> to vector<12x8x480xf32>
    %16 = vector.extract_strided_slice %14 {offsets = [0, 8, 0], sizes = [12, 8, 480], strides = [1, 1, 1]} : vector<12x16x480xf32> to vector<12x8x480xf32>
    %17 = arith.maximumf %15, %16 : vector<12x8x480xf32>
    %18 = vector.extract_strided_slice %17 {offsets = [0, 0, 0], sizes = [12, 8, 460], strides = [1, 1, 1]} : vector<12x8x480xf32> to vector<12x8x460xf32>
    %19 = vector.extract_strided_slice %17 {offsets = [0, 0, 20], sizes = [12, 8, 460], strides = [1, 1, 1]} : vector<12x8x480xf32> to vector<12x8x460xf32>
    %20 = arith.maximumf %18, %19 : vector<12x8x460xf32>
    %21 = vector.extract_strided_slice %20 {offsets = [0, 0, 0], sizes = [8, 8, 460], strides = [1, 1, 1]} : vector<12x8x460xf32> to vector<8x8x460xf32>
    %22 = vector.extract_strided_slice %20 {offsets = [1, 0, 0], sizes = [8, 8, 460], strides = [1, 1, 1]} : vector<12x8x460xf32> to vector<8x8x460xf32>
    %23 = vector.extract_strided_slice %20 {offsets = [2, 0, 0], sizes = [8, 8, 460], strides = [1, 1, 1]} : vector<12x8x460xf32> to vector<8x8x460xf32>
    %24 = vector.extract_strided_slice %20 {offsets = [3, 0, 0], sizes = [8, 8, 460], strides = [1, 1, 1]} : vector<12x8x460xf32> to vector<8x8x460xf32>
    %25 = vector.extract_strided_slice %20 {offsets = [4, 0, 0], sizes = [8, 8, 460], strides = [1, 1, 1]} : vector<12x8x460xf32> to vector<8x8x460xf32>
    %26 = tpu.concatenate %21, %22, %23, %24, %25 in 2 : vector<8x8x460xf32>, vector<8x8x460xf32>, vector<8x8x460xf32>, vector<8x8x460xf32>, vector<8x8x460xf32> -> vector<8x8x2300xf32>
    %27 = vector.shape_cast %26 : vector<8x8x2300xf32> to vector<64x2300xf32>
    %c0_15 = arith.constant 0 : index
    %c0_16 = arith.constant 0 : index
    %28 = vector.load %arg4[%c0_15, %c0_16] : memref<2300x160xf32, #tpu.memory_space<vmem>>, vector<2300x160xf32>
    %cst_17 = arith.constant dense<0.000000e+00> : vector<64x160xf32>
    %29 = tpu.matmul %27, %28, %cst_17 {dimension_numbers = #tpu.dot_dimension_numbers<[1], [0], [0], [1], [0, 0, 1, 1], [], []>} : vector<64x2300xf32>, vector<2300x160xf32>, vector<64x160xf32> -> vector<64x160xf32>
    %c0_18 = arith.constant 0 : index
    %c0_19 = arith.constant 0 : index
    %30 = vector.load %arg5[%c0_18, %c0_19] : memref<1x160xf32, #tpu.memory_space<vmem>>, vector<1x160xf32>
    %31 = vector.broadcast %30 : vector<1x160xf32> to vector<64x160xf32>
    %32 = arith.addf %29, %31 : vector<64x160xf32>
    %cst_20 = arith.constant 0.000000e+00 : f32
    %33 = vector.broadcast %cst_20 : f32 to vector<64x160xf32>
    %34 = arith.maximumf %32, %33 : vector<64x160xf32>
    %35 = vector.shape_cast %34 : vector<64x160xf32> to vector<4x16x160xf32>
    %36 = vector.extract_strided_slice %35 {offsets = [0, 0, 0], sizes = [4, 8, 160], strides = [1, 1, 1]} : vector<4x16x160xf32> to vector<4x8x160xf32>
    %37 = vector.extract_strided_slice %35 {offsets = [0, 8, 0], sizes = [4, 8, 160], strides = [1, 1, 1]} : vector<4x16x160xf32> to vector<4x8x160xf32>
    %38 = arith.maximumf %36, %37 : vector<4x8x160xf32>
    %39 = vector.extract_strided_slice %38 {offsets = [0, 0, 0], sizes = [4, 8, 140], strides = [1, 1, 1]} : vector<4x8x160xf32> to vector<4x8x140xf32>
    %40 = vector.extract_strided_slice %38 {offsets = [0, 0, 20], sizes = [4, 8, 140], strides = [1, 1, 1]} : vector<4x8x160xf32> to vector<4x8x140xf32>
    %41 = arith.maximumf %39, %40 : vector<4x8x140xf32>
    %42 = vector.extract_strided_slice %41 {offsets = [0, 0, 0], sizes = [1, 8, 140], strides = [1, 1, 1]} : vector<4x8x140xf32> to vector<1x8x140xf32>
    %43 = vector.shape_cast %42 : vector<1x8x140xf32> to vector<8x140xf32>
    %44 = vector.extract_strided_slice %41 {offsets = [1, 0, 0], sizes = [1, 8, 140], strides = [1, 1, 1]} : vector<4x8x140xf32> to vector<1x8x140xf32>
    %45 = vector.shape_cast %44 : vector<1x8x140xf32> to vector<8x140xf32>
    %46 = vector.extract_strided_slice %41 {offsets = [2, 0, 0], sizes = [1, 8, 140], strides = [1, 1, 1]} : vector<4x8x140xf32> to vector<1x8x140xf32>
    %47 = vector.shape_cast %46 : vector<1x8x140xf32> to vector<8x140xf32>
    %48 = vector.extract_strided_slice %41 {offsets = [3, 0, 0], sizes = [1, 8, 140], strides = [1, 1, 1]} : vector<4x8x140xf32> to vector<1x8x140xf32>
    %49 = vector.shape_cast %48 : vector<1x8x140xf32> to vector<8x140xf32>
    %50 = tpu.concatenate %43, %45, %47, %49 in 1 : vector<8x140xf32>, vector<8x140xf32>, vector<8x140xf32>, vector<8x140xf32> -> vector<8x560xf32>
    %c0_21 = arith.constant 0 : index
    %c0_22 = arith.constant 0 : index
    %51 = vector.load %arg6[%c0_21, %c0_22] : memref<560x50xf32, #tpu.memory_space<vmem>>, vector<560x50xf32>
    %cst_23 = arith.constant dense<0.000000e+00> : vector<8x50xf32>
    %52 = tpu.matmul %50, %51, %cst_23 {dimension_numbers = #tpu.dot_dimension_numbers<[1], [0], [0], [1], [0, 0, 1, 1], [], []>} : vector<8x560xf32>, vector<560x50xf32>, vector<8x50xf32> -> vector<8x50xf32>
    %c0_24 = arith.constant 0 : index
    %c0_25 = arith.constant 0 : index
    %53 = vector.load %arg7[%c0_24, %c0_25] : memref<1x50xf32, #tpu.memory_space<vmem>>, vector<1x50xf32>
    %54 = vector.broadcast %53 : vector<1x50xf32> to vector<8x50xf32>
    %55 = arith.addf %52, %54 : vector<8x50xf32>
    %cst_26 = arith.constant 0.000000e+00 : f32
    %56 = vector.broadcast %cst_26 : f32 to vector<8x50xf32>
    %57 = arith.maximumf %55, %56 : vector<8x50xf32>
    %c0_27 = arith.constant 0 : index
    %c0_28 = arith.constant 0 : index
    %58 = vector.load %arg8[%c0_27, %c0_28] : memref<50x2xf32, #tpu.memory_space<vmem>>, vector<50x2xf32>
    %cst_29 = arith.constant dense<0.000000e+00> : vector<8x2xf32>
    %59 = tpu.matmul %57, %58, %cst_29 {dimension_numbers = #tpu.dot_dimension_numbers<[1], [0], [0], [1], [0, 0, 1, 1], [], []>} : vector<8x50xf32>, vector<50x2xf32>, vector<8x2xf32> -> vector<8x2xf32>
    %c0_30 = arith.constant 0 : index
    %c0_31 = arith.constant 0 : index
    %60 = vector.load %arg9[%c0_30, %c0_31] : memref<1x2xf32, #tpu.memory_space<vmem>>, vector<1x2xf32>
    %61 = vector.broadcast %60 : vector<1x2xf32> to vector<8x2xf32>
    %62 = arith.addf %59, %61 : vector<8x2xf32>
    %c0_32 = arith.constant 0 : index
    %c0_33 = arith.constant 0 : index
    %63 = vector.load %arg10[%c0_32, %c0_33] : memref<8x2xf32, #tpu.memory_space<vmem>>, vector<8x2xf32>
    tpu.vector_store %arg10[%c0_32, %c0_33], %62 {strides = array<i32>} : memref<8x2xf32, #tpu.memory_space<vmem>>, vector<8x2xf32>,
    return
  }
  func.func @transform_0(%arg0: i32) -> (i32, i32, i32) {
    %c0_i32 = arith.constant 0 : i32
    %c0_i32_0 = arith.constant 0 : i32
    %c0_i32_1 = arith.constant 0 : i32
    return %c0_i32, %arg0, %c0_i32_0 : i32, i32, i32
  }
  func.func @transform_1(%arg0: i32) -> (i32, i32) {
    %c0_i32 = arith.constant 0 : i32
    %c0_i32_0 = arith.constant 0 : i32
    %c0_i32_1 = arith.constant 0 : i32
    return %c0_i32, %c0_i32_0 : i32, i32
  }
  func.func @transform_2(%arg0: i32) -> (i32, i32) {
    %c0_i32 = arith.constant 0 : i32
    %c0_i32_0 = arith.constant 0 : i32
    %c0_i32_1 = arith.constant 0 : i32
    return %c0_i32, %c0_i32_0 : i32, i32
  }
  func.func @transform_3(%arg0: i32) -> (i32, i32) {
    %c0_i32 = arith.constant 0 : i32
    %c0_i32_0 = arith.constant 0 : i32
    %c0_i32_1 = arith.constant 0 : i32
    return %c0_i32, %c0_i32_0 : i32, i32
  }
  func.func @transform_4(%arg0: i32) -> (i32, i32) {
    %c0_i32 = arith.constant 0 : i32
    %c0_i32_0 = arith.constant 0 : i32
    %c0_i32_1 = arith.constant 0 : i32
    return %c0_i32, %c0_i32_0 : i32, i32
  }
  func.func @transform_5(%arg0: i32) -> (i32, i32) {
    %c0_i32 = arith.constant 0 : i32
    %c0_i32_0 = arith.constant 0 : i32
    %c0_i32_1 = arith.constant 0 : i32
    return %c0_i32, %c0_i32_0 : i32, i32
  }
  func.func @transform_6(%arg0: i32) -> (i32, i32) {
    %c0_i32 = arith.constant 0 : i32
    %c0_i32_0 = arith.constant 0 : i32
    %c0_i32_1 = arith.constant 0 : i32
    return %c0_i32, %c0_i32_0 : i32, i32
  }
  func.func @transform_7(%arg0: i32) -> (i32, i32) {
    %c0_i32 = arith.constant 0 : i32
    %c0_i32_0 = arith.constant 0 : i32
    %c0_i32_1 = arith.constant 0 : i32
    return %c0_i32, %c0_i32_0 : i32, i32
  }
  func.func @transform_8(%arg0: i32) -> (i32, i32) {
    %c0_i32 = arith.constant 0 : i32
    %c0_i32_0 = arith.constant 0 : i32
    %c0_i32_1 = arith.constant 0 : i32
    return %c0_i32, %c0_i32_0 : i32, i32
  }
  func.func @transform_9(%arg0: i32) -> (i32, i32) {
    %c0_i32 = arith.constant 0 : i32
    %c0_i32_0 = arith.constant 0 : i32
    return %arg0, %c0_i32 : i32, i32
  }
}

</mosaic_0001>

<bundles_post_ra>
// kernel: lenet_mnist_forward.1
= control target key start
LH: loop header
LB: loop body
LE: loop exit
PB: predicated region body
PF: predicated region fallthrough
CT: control target
= control target key end

     0   :  { %s7523_s30 = smov 0   ;;  %s7525_s10 = smov 0   ;;  %s12731_s0 = inlined_call_operand.vmem [shape: f32[28,16,84], index: 0, kind: input, shape index: {}]   ;;  %s12732_s1 = inlined_call_operand.vmem [shape: f32[420,480], index: 1, kind: input, shape index: {}]   ;;  %s12733_s2 = inlined_call_operand.vmem [shape: f32[1,480], index: 2, kind: input, shape index: {}]   ;;  %s12734_s3 = inlined_call_operand.vmem [shape: f32[2300,160], index: 3, kind: input, shape index: {}]   ;;  %s12735_s4 = inlined_call_operand.vmem [shape: f32[1,160], index: 4, kind: input, shape index: {}]   ;;  %s12736_s5 = inlined_call_operand.vmem [shape: f32[560,50], index: 5, kind: input, shape index: {}]   ;;  %s12737_s6 = inlined_call_operand.vmem [shape: f32[1,50], index: 6, kind: input, shape index: {}]   ;;  %s12738_s7 = inlined_call_operand.vmem [shape: f32[50,2], index: 7, kind: input, shape index: {}]   ;;  %s12739_s8 = inlined_call_operand.vmem [shape: f32[1,2], index: 8, kind: input, shape index: {}]   ;;  %s12740_s9 = inlined_call_operand.vmem [shape: f32[16,2], index: 9, kind: output, shape index: {}]  }
   0x1   :  { %s7527_s11 = smov 0  }
   0x2 LB: > { %s5370_s12 = sadd.s32 4294967295, %s7456_s11   ;;  %s7540_s13 = sadd.s32 1, %s7456_s11   ;;  %s7456_s11 = sphi %s7527_s11, %s13060_s11   ;;  %s7452_s10 = sphi %s7525_s10, %s13059_s10   ;;  %s7448_s30 = sphi %s7523_s30, %s13058_s30  }
   0x3   : > { %s23_s14 = ssub.s32 %s7456_s11, %s7540_s13  ;;  %s26_s15 = sadd.s32 1, %s7452_s10 }
   0x4   : > { %p24_p0 = scmp.eq.s32.totalorder %s23_s14, 0  ;;  %p33_p1 = scmp.ne.s32.totalorder %s7452_s10, %s7448_s30 }
   0x5   : > { %p34_p2 = scmp.eq.s32.totalorder %s7456_s11, 0  ;;  %p5373_p4 = scmp.ge.s32.totalorder %s7456_s11, 2 }
   0x6   : > { %s7549_s16 = scalar_select %p24_p0, %s7452_s10, %s26_s15  }
   0x7   : > { %p35_p3 = por %p34_p2, %p33_p1  ;;  %277 = sbr.rel (%p5373_p4) target bundleno = 32 (0x20), region = 48 }
   0xe   : > { %280 = sbr.rel (!%p35_p3) target bundleno = 32 (0x20), region = 52  ;;  %s282_s17 = sand.u32 (%p35_p3), 1, %s7452_s10  }
   0xf   : > { %s5374_s18 = sshll.u32 (%p35_p3), %s7456_s11, 3  ;;  %s6863_s19 = smul.u32 (%p35_p3), 224, %s282_s17 }
  0x10   : > { %s7557_s22 = scalar_lea.vmem (%p35_p3), %s12731_s0, %s5374_s18 }
  0x11   : > { %v368_v0 = vld [vmem:[%s7557_s22] sm:$0xff] (%p35_p3)  ;;  %v370_v1 = vld [vmem:[%s7557_s22 + $0x10] sm:$0xff] (%p35_p3)  ;;  %s7565_s23 = scalar_lea.vmem (%p35_p3), [#allocation2], %s6863_s19 }
  0x12   : > { %v372_v2 = vld [vmem:[%s7557_s22 + $0x20] sm:$0xff] (%p35_p3)  ;;  %v374_v3 = vld [vmem:[%s7557_s22 + $0x30] sm:$0xff] (%p35_p3)  ;;  %369 = vst [vmem:[%s7565_s23] sm:$0xff] (%p35_p3), %v368_v0  ;;  %371 = vst [vmem:[%s7565_s23 + $0x8] sm:$0xff] (%p35_p3), %v370_v1 }
  0x13   : > { %v376_v4 = vld [vmem:[%s7557_s22 + $0x40] sm:$0xff] (%p35_p3)  ;;  %v378_v5 = vld [vmem:[%s7557_s22 + $0x50] sm:$0xff] (%p35_p3)  ;;  %373 = vst [vmem:[%s7565_s23 + $0x10] sm:$0xff] (%p35_p3), %v372_v2  ;;  %375 = vst [vmem:[%s7565_s23 + $0x18] sm:$0xff] (%p35_p3), %v374_v3 }
  0x14   : > { %377 = vst [vmem:[%s7565_s23 + $0x20] sm:$0xff] (%p35_p3), %v376_v4  ;;  %379 = vst [vmem:[%s7565_s23 + $0x28] sm:$0xff] (%p35_p3), %v378_v5  ;;  %v380_v6 = vld [vmem:[%s7557_s22 + $0x60] sm:$0xff] (%p35_p3)  ;;  %v382_v7 = vld [vmem:[%s7557_s22 + $0x70] sm:$0xff] (%p35_p3) }
  0x15   : > { %v384_v8 = vld [vmem:[%s7557_s22 + $0x80] sm:$0xff]  ;;  %381 = vst [vmem:[%s7565_s23 + $0x30] sm:$0xff] %v380_v6  ;;  %383 = vst [vmem:[%s7565_s23 + $0x38] sm:$0xff] %v382_v7  ;;  %v386_v9 = vld [vmem:[%s7557_s22 + $0x90] sm:$0xff] }
  0x16   : > { %385 = vst [vmem:[%s7565_s23 + $0x40] sm:$0xff] %v384_v8  ;;  %v388_v10 = vld [vmem:[%s7557_s22 + $0xa0] sm:$0xff]  ;;  %v390_v11 = vld [vmem:[%s7557_s22 + $0xb0] sm:$0xff]  ;;  %387 = vst [vmem:[%s7565_s23 + $0x48] sm:$0xff] %v386_v9 }
  0x17   : > { %389 = vst [vmem:[%s7565_s23 + $0x50] sm:$0xff] %v388_v10  ;;  %391 = vst [vmem:[%s7565_s23 + $0x58] sm:$0xff] %v390_v11  ;;  %v392_v12 = vld [vmem:[%s7557_s22 + $0xc0] sm:$0xff]  ;;  %v394_v13 = vld [vmem:[%s7557_s22 + $0xd0] sm:$0xff] }
  0x18   : > { %v396_v14 = vld [vmem:[%s7557_s22 + $0xe0] sm:$0xff]  ;;  %393 = vst [vmem:[%s7565_s23 + $0x60] sm:$0xff] %v392_v12  ;;  %395 = vst [vmem:[%s7565_s23 + $0x68] sm:$0xff] %v394_v13  ;;  %v398_v15 = vld [vmem:[%s7557_s22 + $0xf0] sm:$0xff] }
  0x19   : > { %397 = vst [vmem:[%s7565_s23 + $0x70] sm:$0xff] %v396_v14  ;;  %v400_v16 = vld [vmem:[%s7557_s22 + $0x100] sm:$0xff]  ;;  %v402_v17 = vld [vmem:[%s7557_s22 + $0x110] sm:$0xff]  ;;  %399 = vst [vmem:[%s7565_s23 + $0x78] sm:$0xff] %v398_v15 }
  0x1a   : > { %401 = vst [vmem:[%s7565_s23 + $0x80] sm:$0xff] %v400_v16  ;;  %403 = vst [vmem:[%s7565_s23 + $0x88] sm:$0xff] %v402_v17  ;;  %v404_v18 = vld [vmem:[%s7557_s22 + $0x120] sm:$0xff]  ;;  %v406_v19 = vld [vmem:[%s7557_s22 + $0x130] sm:$0xff] }
  0x1b   : > { %v408_v20 = vld [vmem:[%s7557_s22 + $0x140] sm:$0xff]  ;;  %405 = vst [vmem:[%s7565_s23 + $0x90] sm:$0xff] %v404_v18  ;;  %407 = vst [vmem:[%s7565_s23 + $0x98] sm:$0xff] %v406_v19  ;;  %v410_v21 = vld [vmem:[%s7557_s22 + $0x150] sm:$0xff] }
  0x1c   : > { %409 = vst [vmem:[%s7565_s23 + $0xa0] sm:$0xff] %v408_v20  ;;  %v412_v22 = vld [vmem:[%s7557_s22 + $0x160] sm:$0xff]  ;;  %v414_v23 = vld [vmem:[%s7557_s22 + $0x170] sm:$0xff]  ;;  %411 = vst [vmem:[%s7565_s23 + $0xa8] sm:$0xff] %v410_v21 }
  0x1d   : > { %413 = vst [vmem:[%s7565_s23 + $0xb0] sm:$0xff] %v412_v22  ;;  %415 = vst [vmem:[%s7565_s23 + $0xb8] sm:$0xff] %v414_v23  ;;  %v416_v24 = vld [vmem:[%s7557_s22 + $0x180] sm:$0xff]  ;;  %v418_v25 = vld [vmem:[%s7557_s22 + $0x190] sm:$0xff] }
  0x1e   : > { %v420_v26 = vld [vmem:[%s7557_s22 + $0x1a0] sm:$0xff]  ;;  %417 = vst [vmem:[%s7565_s23 + $0xc0] sm:$0xff] %v416_v24  ;;  %419 = vst [vmem:[%s7565_s23 + $0xc8] sm:$0xff] %v418_v25  ;;  %v422_v27 = vld [vmem:[%s7557_s22 + $0x1b0] sm:$0xff] }
  0x1f   : > { %421 = vst [vmem:[%s7565_s23 + $0xd0] sm:$0xff] %v420_v26  ;;  %423 = vst [vmem:[%s7565_s23 + $0xd8] sm:$0xff] %v422_v27 }
  0x20 PF: > { %p5375_p5 = scmp.ge.s32.totalorder %s7456_s11, 1  ;;  %p428_p6 = scmp.lt.s32.totalorder %s7456_s11, 3 }
  0x22   : > { %p429_p7 = pnand %p5375_p5, %p428_p6 }
  0x24   : > { %432 = sbr.rel (%p429_p7) target bundleno = 2451 (0x993), region = 90 }
  0x2b   : > { %s435_s24 = sand.u32 1, %s7448_s30   ;;  %v1082_v28 = vld [vmem:[%s12732_s1 + $0x8] sm:$0xff]  ;;  %v1081_v30 = vld [vmem:[%s12732_s1] sm:$0xff]  ;;  %s7458_s30 = smov 124   ;;  %vm1006_vm0 = vcmask 326656   ;;  %vm1031_vm1 = vcmask 1014784  }
  0x2c   : > { %v1086_v29 = vld [vmem:[%s12732_s1 + $0x28] sm:$0xff]  ;;  %s6864_s15 = smul.u32 224, %s435_s24  ;;  %v1085_v32 = vld [vmem:[%s12732_s1 + $0x20] sm:$0xff]  ;;  %s7459_s20 = smov 84   ;;  %vm981_vm2 = vcmask 687104   ;;  %vm1364_vm3 = vcmask 1043456  }
  0x2d   : > { %v5659_v31 = vpack.c.bf16 %v1086_v29, %v1082_v28  ;;  %v1090_v33 = vld [vmem:[%s12732_s1 + $0x48] sm:$0xff]  ;;  %v5661_v35 = vpack.c.bf16 %v1085_v32, %v1081_v30  ;;  %v1089_v37 = vld [vmem:[%s12732_s1 + $0x40] sm:$0xff]  ;;  %s7460_s21 = smov 40   ;;  %s7461_s22 = smov 80   ;;  %vm1315_vm4 = vcmask 293888   ;;  %vm1056_vm5 = vcmask 654336  }
  0x2e   : > { %v1094_v34 = vld [vmem:[%s12732_s1 + $0x68] sm:$0xff]  ;;  %v1093_v38 = vld [vmem:[%s12732_s1 + $0x60] sm:$0xff]  ;;  %s7650_s14 = scalar_lea.vmem [#allocation2], %s6864_s15  ;;  %s7462_s17 = smov 108   ;;  %vm2501_vm6 = vcmask 883712   ;;  %vm2730_vm7 = vcmask 621568  }
  0x2f   : > { %v5663_v36 = vpack.c.bf16 %v1094_v34, %v1090_v33  ;;  %v1098_v39 = vld [vmem:[%s12732_s1 + $0x88] sm:$0xff]  ;;  %5660 = vmatprep.subr.bf16.mxu1 %v5659_v31  ;;  %v7653_v41 = vld [vmem:[%s7650_s14 + $0x18] sm:$0xff]  ;;  %v7656_v42 = vld [vmem:[%s7650_s14 + $0x20] sm:$0xff]  ;;  %v5665_v44 = vpack.c.bf16 %v1093_v38, %v1089_v37  ;;  %s7463_s24 = smov 76   ;;  %s7464_s18 = smov 24   ;;  %vm2863_vm8 = vcmask 195584  }
  0x30   : > { %v1102_v40 = vld [vmem:[%s12732_s1 + $0xa8] sm:$0xff]  ;;  %5662 = vmatpush1.bf16.msra.mxu1 %v5661_v35  ;;  %v6914_v45 = vpack.i.bf16 %v7656_v42, %v7653_v41  ;;  %v7664_v46 = vld [vmem:[%s7650_s14 + $0x10] sm:$0xff]  ;;  %v1097_v48 = vld [vmem:[%s12732_s1 + $0x80] sm:$0xff]  ;;  %vm2988_vm9 = vcmask 818176   ;;  %vm3121_vm10 = vcmask 392192   ;;  %vm7467_vm11 = vmmov 1  }
  0x31   : > { %v7659_v43 = vld [vmem:[%s7650_s14 + $0x8] sm:$0xff]  ;;  %5664 = vmatprep.subr.bf16.mxu1 %v5663_v36  ;;  %v5667_v47 = vpack.c.bf16 %v1102_v40, %v1098_v39  ;;  %v1101_v49 = vld [vmem:[%s12732_s1 + $0xa0] sm:$0xff]  ;;  %v6909_v51 = vpack.i.bf16 %v7653_v41, %v7664_v46  ;;  %v7682_v53 = vld [vmem:[%s7650_s14 + $0x30] sm:$0xff]  ;;  %s7468_s15 = smov 12   ;;  %s7469_s19 = smov 36   ;;  %vm4903_vm13 = vcmask 97280  }
  0x32   : > { %v6904_v50 = vpack.i.bf16 %v7664_v46, %v7659_v43  ;;  %6915 = vrot.lane.b32.xlu1 %v6914_v45, %s7458_s30  ;;  %v7679_v52 = vld [vmem:[%s7650_s14 + $0x28] sm:$0xff]  ;;  %v5669_v54 = vpack.c.bf16 %v1101_v49, %v1097_v48  ;;  %v7691_v57 = vld [vmem:[%s7650_s14 + $0x38] sm:$0xff]  ;;  %v1105_v61 = vld [vmem:[%s12732_s1 + $0xc0] sm:$0xff]  ;;  %vm7471_vm14 = vmmov 0   ;;  %vm5235_vm15 = vcmask 1041408   ;;  %p469_p8 = scmp.lt.s32.totalorder %s5370_s12, 1 }
  0x33   : > { %v6929_v55 = vpack.i.bf16 %v7682_v53, %v7679_v52  ;;  %v6924_v56 = vpack.i.bf16 %v7679_v52, %v7656_v42  ;;  %v1106_v58 = vld [vmem:[%s12732_s1 + $0xc8] sm:$0xff]  ;;  %v1109_v62 = vld [vmem:[%s12732_s1 + $0xe0] sm:$0xff]  ;;  %v6939_v3 = vpack.i.bf16 %v7691_v57, %v7682_v53  ;;  %v7750_v17 = vld [vmem:[%s7650_s14 + $0x50] sm:$0xff] }
  0x34   : > { %6905 = vrot.lane.b32.xlu0 %v6904_v50, %s7459_s20  ;;  %5666 = vmatpush1.bf16.msra.mxu1 %v5665_v44  ;;  %v1110_v59 = vld [vmem:[%s12732_s1 + $0xe8] sm:$0xff]  ;;  %v5673_v63 = vpack.c.bf16 %v1109_v62, %v1105_v61  ;;  %v1113_v2 = vld [vmem:[%s12732_s1 + $0x100] sm:$0xff]  ;;  %v7771_v26 = vld [vmem:[%s7650_s14 + $0x58] sm:$0xff]  ;;  %s13062_s12 = smov (!%p469_p8, %s5370_s12), 1 }
  0x35   : > { %5668 = vmatprep.subr.bf16.mxu1 %v5667_v47  ;;  %v5671_v60 = vpack.c.bf16 %v1110_v59, %v1106_v58  ;;  %v1114_v0 = vld [vmem:[%s12732_s1 + $0x108] sm:$0xff]  ;;  %v1117_v5 = vld [vmem:[%s12732_s1 + $0x120] sm:$0xff]  ;;  %v6969_v33 = vpack.i.bf16 %v7771_v26, %v7750_v17  ;;  %v7812_v47 = vld [vmem:[%s7650_s14 + $0x70] sm:$0xff] }
  0x36   : > { %6920 = vrot.lane.b32.xlu1 %v6914_v45, %s7459_s20  ;;  %v1118_v1 = vld [vmem:[%s12732_s1 + $0x128] sm:$0xff]  ;;  %v7728_v8 = vld [vmem:[%s7650_s14 + $0x40] sm:$0xff]  ;;  %v5677_v9 = vpack.c.bf16 %v1117_v5, %v1113_v2  ;;  %v7833_v59 = vld [vmem:[%s7650_s14 + $0x78] sm:$0xff] }
  0x37   : > { %v5675_v4 = vpack.c.bf16 %v1118_v1, %v1114_v0  ;;  %v1122_v6 = vld [vmem:[%s12732_s1 + $0x148] sm:$0xff]  ;;  %v1121_v11 = vld [vmem:[%s12732_s1 + $0x140] sm:$0xff]  ;;  %v6949_v15 = vpack.i.bf16 %v7728_v8, %v7691_v57  ;;  %v6999_v2 = vpack.i.bf16 %v7833_v59, %v7812_v47  ;;  %vm6440_vm12 = vmpackc.low %vm1364_vm3, %vm7467_vm11 }
  0x38   : > { %6910 = vrot.lane.b32.xlu0 %v6909_v51, %s7460_s21  ;;  %5670 = vmatpush1.bf16.msra.mxu1 %v5669_v54  ;;  %v1126_v7 = vld [vmem:[%s12732_s1 + $0x168] sm:$0xff]  ;;  %v1125_v12 = vld [vmem:[%s12732_s1 + $0x160] sm:$0xff] }
  0x39   : > { %5672 = vmatprep.subr.bf16.mxu1 %v5671_v60  ;;  %v5679_v10 = vpack.c.bf16 %v1126_v7, %v1122_v6  ;;  %v1130_v13 = vld [vmem:[%s12732_s1 + $0x188] sm:$0xff]  ;;  %v5681_v18 = vpack.c.bf16 %v1125_v12, %v1121_v11  ;;  %v1129_v20 = vld [vmem:[%s12732_s1 + $0x180] sm:$0xff] }
  0x3a   : > { %6930 = vrot.lane.b32.xlu1 %v6929_v55, %s7458_s30  ;;  %v1134_v14 = vld [vmem:[%s12732_s1 + $0x1a8] sm:$0xff]  ;;  %v1133_v21 = vld [vmem:[%s12732_s1 + $0x1a0] sm:$0xff] }
  0x3b   : > { %v7747_v16 = vld [vmem:[%s7650_s14 + $0x48] sm:$0xff]  ;;  %v5683_v19 = vpack.c.bf16 %v1134_v14, %v1130_v13  ;;  %v5685_v27 = vpack.c.bf16 %v1133_v21, %v1129_v20  ;;  %v1137_v29 = vld [vmem:[%s12732_s1 + $0x1c0] sm:$0xff]  ;;  %v7874_v13 = vld [vmem:[%s7650_s14 + $0x90] sm:$0xff] }
  0x3c   : > { %6925 = vrot.lane.b32.xlu0 %v6924_v56, %s7460_s21  ;;  %5674 = vmatpush1.bf16.msra.mxu1 %v5673_v63  ;;  %v1138_v22 = vld [vmem:[%s12732_s1 + $0x1c8] sm:$0xff]  ;;  %v6959_v24 = vpack.i.bf16 %v7750_v17, %v7747_v16  ;;  %v6954_v25 = vpack.i.bf16 %v7747_v16, %v7728_v8  ;;  %v1141_v30 = vld [vmem:[%s12732_s1 + $0x1e0] sm:$0xff] }
  0x3d   : > { %5676 = vmatprep.subr.bf16.mxu1 %v5675_v4  ;;  %v1142_v23 = vld [vmem:[%s12732_s1 + $0x1e8] sm:$0xff]  ;;  %v7790_v34 = vld [vmem:[%s7650_s14 + $0x60] sm:$0xff]  ;;  %v5689_v35 = vpack.c.bf16 %v1141_v30, %v1137_v29 }
  0x3e   : > { %6940 = vrot.lane.b32.xlu1 %v6939_v3, %s7460_s21  ;;  %v5687_v28 = vpack.c.bf16 %v1142_v23, %v1138_v22  ;;  %v1146_v31 = vld [vmem:[%s12732_s1 + $0x208] sm:$0xff]  ;;  %v1145_v37 = vld [vmem:[%s12732_s1 + $0x200] sm:$0xff]  ;;  %v6979_v44 = vpack.i.bf16 %v7790_v34, %v7771_v26 }
  0x3f   : > { %v1150_v32 = vld [vmem:[%s12732_s1 + $0x228] sm:$0xff]  ;;  %v1149_v38 = vld [vmem:[%s12732_s1 + $0x220] sm:$0xff] }
  0x40   : > { %6935 = vrot.lane.b32.xlu0 %v6929_v55, %s7459_s20  ;;  %5678 = vmatpush1.bf16.msra.mxu1 %v5677_v9  ;;  %v5691_v36 = vpack.c.bf16 %v1150_v32, %v1146_v31  ;;  %v1154_v39 = vld [vmem:[%s12732_s1 + $0x248] sm:$0xff]  ;;  %v5693_v48 = vpack.c.bf16 %v1149_v38, %v1145_v37  ;;  %v1153_v50 = vld [vmem:[%s12732_s1 + $0x240] sm:$0xff] }
  0x41   : > { %5680 = vmatprep.subr.bf16.mxu1 %v5679_v10  ;;  %v1158_v40 = vld [vmem:[%s12732_s1 + $0x268] sm:$0xff]  ;;  %v1157_v51 = vld [vmem:[%s12732_s1 + $0x260] sm:$0xff] }
  0x42   : > { %6950 = vrot.lane.b32.xlu1 %v6949_v15, %s7459_s20  ;;  %v7809_v45 = vld [vmem:[%s7650_s14 + $0x68] sm:$0xff]  ;;  %v5695_v49 = vpack.c.bf16 %v1158_v40, %v1154_v39  ;;  %v5697_v60 = vpack.c.bf16 %v1157_v51, %v1153_v50  ;;  %v1161_v62 = vld [vmem:[%s12732_s1 + $0x280] sm:$0xff] }
  0x43   : > { %v1162_v54 = vld [vmem:[%s12732_s1 + $0x288] sm:$0xff]  ;;  %v6989_v56 = vpack.i.bf16 %v7812_v47, %v7809_v45  ;;  %v6984_v58 = vpack.i.bf16 %v7809_v45, %v7790_v34  ;;  %v1165_v63 = vld [vmem:[%s12732_s1 + $0x2a0] sm:$0xff] }
  0x44   : > { %6945 = vrot.lane.b32.xlu0 %v6949_v15, %s7458_s30  ;;  %5682 = vmatpush1.bf16.msra.mxu1 %v5681_v18  ;;  %v1166_v55 = vld [vmem:[%s12732_s1 + $0x2a8] sm:$0xff]  ;;  %v7852_v3 = vld [vmem:[%s7650_s14 + $0x80] sm:$0xff]  ;;  %v5701_v4 = vpack.c.bf16 %v1165_v63, %v1161_v62  ;;  %v5422_v62 = vld [vmem:[%s7650_s14 + $0xb8] sm:$0xff] }
  0x45   : > { %5684 = vmatprep.subr.bf16.mxu1 %v5683_v19  ;;  %v5699_v61 = vpack.c.bf16 %v1166_v55, %v1162_v54  ;;  %v1170_v0 = vld [vmem:[%s12732_s1 + $0x2c8] sm:$0xff]  ;;  %v1169_v6 = vld [vmem:[%s12732_s1 + $0x2c0] sm:$0xff]  ;;  %v7009_v11 = vpack.i.bf16 %v7852_v3, %v7833_v59 }
  0x46   : > { %6960 = vrot.lane.b32.xlu1 %v6959_v24, %s7458_s30  ;;  %v1174_v1 = vld [vmem:[%s12732_s1 + $0x2e8] sm:$0xff]  ;;  %v1173_v7 = vld [vmem:[%s12732_s1 + $0x2e0] sm:$0xff] }
  0x47   : > { %v5703_v5 = vpack.c.bf16 %v1174_v1, %v1170_v0  ;;  %v1178_v9 = vld [vmem:[%s12732_s1 + $0x308] sm:$0xff]  ;;  %v5705_v14 = vpack.c.bf16 %v1173_v7, %v1169_v6  ;;  %v1177_v18 = vld [vmem:[%s12732_s1 + $0x300] sm:$0xff]  ;;  %v5448_v6 = vld [vmem:[%s7650_s14 + $0xd0] sm:$0xff] }
  0x48   : > { %6955 = vrot.lane.b32.xlu0 %v6954_v25, %s7460_s21  ;;  %5686 = vmatpush1.bf16.msra.mxu1 %v5685_v27  ;;  %v1182_v10 = vld [vmem:[%s12732_s1 + $0x328] sm:$0xff]  ;;  %v1181_v19 = vld [vmem:[%s12732_s1 + $0x320] sm:$0xff] }
  0x49   : > { %5688 = vmatprep.subr.bf16.mxu1 %v5687_v28  ;;  %v7871_v12 = vld [vmem:[%s7650_s14 + $0x88] sm:$0xff]  ;;  %v5707_v15 = vpack.c.bf16 %v1182_v10, %v1178_v9  ;;  %v5709_v25 = vpack.c.bf16 %v1181_v19, %v1177_v18  ;;  %v1185_v28 = vld [vmem:[%s12732_s1 + $0x340] sm:$0xff] }
  0x4a   : > { %6970 = vrot.lane.b32.xlu1 %v6969_v33, %s7460_s21  ;;  %v1186_v20 = vld [vmem:[%s12732_s1 + $0x348] sm:$0xff]  ;;  %v7019_v22 = vpack.i.bf16 %v7874_v13, %v7871_v12  ;;  %v7014_v23 = vpack.i.bf16 %v7871_v12, %v7852_v3  ;;  %v1189_v29 = vld [vmem:[%s12732_s1 + $0x360] sm:$0xff] }
  0x4b   : > { %v1190_v21 = vld [vmem:[%s12732_s1 + $0x368] sm:$0xff]  ;;  %v7914_v33 = vld [vmem:[%s7650_s14 + $0xa0] sm:$0xff] }
  0x4c   : > { %6965 = vrot.lane.b32.xlu0 %v6959_v24, %s7459_s20  ;;  %5690 = vmatpush1.bf16.msra.mxu1 %v5689_v35  ;;  %v7895_v24 = vld [vmem:[%s7650_s14 + $0x98] sm:$0xff]  ;;  %v5711_v27 = vpack.c.bf16 %v1190_v21, %v1186_v20  ;;  %v1194_v30 = vld [vmem:[%s12732_s1 + $0x388] sm:$0xff]  ;;  %v5713_v35 = vpack.c.bf16 %v1189_v29, %v1185_v28  ;;  %v1193_v37 = vld [vmem:[%s12732_s1 + $0x380] sm:$0xff] }
  0x4d   : > { %5692 = vmatprep.subr.bf16.mxu1 %v5691_v36  ;;  %v1198_v31 = vld [vmem:[%s12732_s1 + $0x3a8] sm:$0xff]  ;;  %v7029_v32 = vpack.i.bf16 %v7895_v24, %v7874_v13  ;;  %v1197_v38 = vld [vmem:[%s12732_s1 + $0x3a0] sm:$0xff] }
  0x4e   : > { %6980 = vrot.lane.b32.xlu1 %v6979_v44, %s7459_s20  ;;  %v5715_v36 = vpack.c.bf16 %v1198_v31, %v1194_v30  ;;  %v1202_v39 = vld [vmem:[%s12732_s1 + $0x3c8] sm:$0xff]  ;;  %v5717_v50 = vpack.c.bf16 %v1197_v38, %v1193_v37  ;;  %v1201_v54 = vld [vmem:[%s12732_s1 + $0x3c0] sm:$0xff] }
  0x4f   : > { %v1206_v40 = vld [vmem:[%s12732_s1 + $0x3e8] sm:$0xff]  ;;  %v1205_v55 = vld [vmem:[%s12732_s1 + $0x3e0] sm:$0xff] }
  0x50   : > { %6975 = vrot.lane.b32.xlu0 %v6979_v44, %s7458_s30  ;;  %5694 = vmatpush1.bf16.msra.mxu1 %v5693_v48  ;;  %v7039_v44 = vpack.i.bf16 %v7914_v33, %v7895_v24  ;;  %v5443_v48 = vld [vmem:[%s7650_s14 + $0xa8] sm:$0xff]  ;;  %v5719_v51 = vpack.c.bf16 %v1206_v40, %v1202_v39  ;;  %v5721_v63 = vpack.c.bf16 %v1205_v55, %v1201_v54  ;;  %v1221_v37 = vld [vmem:[%s12732_s1 + $0x460] sm:$0xff] }
  0x51   : > { %5696 = vmatprep.subr.bf16.mxu1 %v5695_v49  ;;  %v5444_v49 = vld [vmem:[%s7650_s14 + $0xb0] sm:$0xff]  ;;  %v1218_v21 = vld [vmem:[%s12732_s1 + $0x448] sm:$0xff] }
  0x52   : > { %6990 = vrot.lane.b32.xlu1 %v6989_v56, %s7458_s30  ;;  %v7059_v1 = vpack.i.bf16 %v5422_v62, %v5444_v49  ;;  %v1226_v40 = vld [vmem:[%s12732_s1 + $0x488] sm:$0xff] }
  0x54   : > { %6985 = vrot.lane.b32.xlu0 %v6984_v58, %s7460_s21  ;;  %5698 = vmatpush1.bf16.msra.mxu1 %v5697_v60  ;;  %v1214_v58 = vld [vmem:[%s12732_s1 + $0x428] sm:$0xff]  ;;  %v7049_v60 = vpack.i.bf16 %v5444_v49, %v5443_v48 }
  0x55   : > { %5700 = vmatprep.subr.bf16.mxu1 %v5699_v61  ;;  %v7044_v61 = vpack.i.bf16 %v5443_v48, %v7914_v33 }
  0x56   : > { %7000 = vrot.lane.b32.xlu1 %v6999_v2, %s7460_s21  ;;  %v5400_v2 = vld [vmem:[%s7650_s14 + $0xc0] sm:$0xff] }
  0x58   : > { %6995 = vrot.lane.b32.xlu0 %v6989_v56, %s7459_s20  ;;  %5702 = vmatpush1.bf16.msra.mxu1 %v5701_v4  ;;  %v1210_v56 = vld [vmem:[%s12732_s1 + $0x408] sm:$0xff]  ;;  %v7069_v4 = vpack.i.bf16 %v5400_v2, %v5422_v62 }
  0x59   : > { %5704 = vmatprep.subr.bf16.mxu1 %v5703_v5  ;;  %v5723_v0 = vpack.c.bf16 %v1214_v58, %v1210_v56  ;;  %v5447_v5 = vld [vmem:[%s7650_s14 + $0xc8] sm:$0xff] }
  0x5a   : > { %7010 = vrot.lane.b32.xlu1 %v7009_v11, %s7459_s20 }
  0x5c   : > { %7005 = vrot.lane.b32.xlu0 %v7009_v11, %s7458_s30  ;;  %5706 = vmatpush1.bf16.msra.mxu1 %v5705_v14  ;;  %v1213_v14 = vld [vmem:[%s12732_s1 + $0x420] sm:$0xff] }
  0x5d   : > { %5708 = vmatprep.subr.bf16.mxu1 %v5707_v15 }
  0x5e   : > { %7020 = vrot.lane.b32.xlu1 %v7019_v22, %s7458_s30 }
  0x60   : > { %7015 = vrot.lane.b32.xlu0 %v7014_v23, %s7460_s21  ;;  %5710 = vmatpush1.bf16.msra.mxu1 %v5709_v25 }
  0x61   : > { %5712 = vmatprep.subr.bf16.mxu1 %v5711_v27 }
  0x62   : > { %7030 = vrot.lane.b32.xlu1 %v7029_v32, %s7460_s21 }
  0x64   : > { %7025 = vrot.lane.b32.xlu0 %v7019_v22, %s7459_s20  ;;  %5714 = vmatpush1.bf16.msra.mxu1 %v5713_v35  ;;  %v1222_v22 = vld [vmem:[%s12732_s1 + $0x468] sm:$0xff] }
  0x65   : > { %5716 = vmatprep.subr.bf16.mxu1 %v5715_v36  ;;  %v5727_v35 = vpack.c.bf16 %v1222_v22, %v1218_v21  ;;  %v1217_v36 = vld [vmem:[%s12732_s1 + $0x440] sm:$0xff] }
  0x66   : > { %7040 = vrot.lane.b32.xlu1 %v7039_v44, %s7459_s20  ;;  %v5729_v55 = vpack.c.bf16 %v1221_v37, %v1217_v36 }
  0x68   : > { %7035 = vrot.lane.b32.xlu0 %v7039_v44, %s7458_s30  ;;  %5718 = vmatpush1.bf16.msra.mxu1 %v5717_v50  ;;  %v1230_v44 = vld [vmem:[%s12732_s1 + $0x4a8] sm:$0xff] }
  0x69   : > { %5720 = vmatprep.subr.bf16.mxu1 %v5719_v51 }
  0x6a   : > { %7050 = vrot.lane.b32.xlu1 %v7049_v60, %s7458_s30 }
  0x6c   : > { %7045 = vrot.lane.b32.xlu0 %v7044_v61, %s7460_s21  ;;  %5722 = vmatpush1.bf16.msra.mxu1 %v5721_v63  ;;  %v1225_v61 = vld [vmem:[%s12732_s1 + $0x480] sm:$0xff] }
  0x6d   : > { %5724 = vmatprep.subr.bf16.mxu1 %v5723_v0 }
  0x6e   : > { %7060 = vrot.lane.b32.xlu1 %v7059_v1, %s7460_s21 }
  0x70   : > { %7055 = vrot.lane.b32.xlu0 %v7049_v60, %s7459_s20  ;;  %v5731_v60 = vpack.c.bf16 %v1230_v44, %v1226_v40  ;;  %v1250_v40 = vld [vmem:[%s12732_s1 + $0x548] sm:$0xff] }
  0x71   : > { %v1254_v44 = vld [vmem:[%s12732_s1 + $0x568] sm:$0xff] }
  0x72   : > { %7070 = vrot.lane.b32.xlu1 %v7069_v4, %s7459_s20  ;;  %s7466_s20 = smov 48  }
  0x74   : > { %7065 = vrot.lane.b32.xlu0 %v7069_v4, %s7458_s30  ;;  %v1238_v4 = vld [vmem:[%s12732_s1 + $0x4e8] sm:$0xff] }
  0x76   : > { %857 = vrot.lane.b32.xlu1 %v5447_v5, %s7458_s30 }
  0x78   : > { %761 = vrot.lane.b32.xlu0 %v5400_v2, %s7460_s21 }
  0x7a   : > { %859 = vrot.lane.b32.xlu1 %v5448_v6, %s7458_s30 }
  0x7c   : > { %763 = vrot.lane.b32.xlu0 %v5447_v5, %s7460_s21 }
  0x7e   : > { %911 = vrot.lane.b32.xlu1 %v7679_v52, %s7461_s22 }
  0x80   : > { %909 = vrot.lane.b32.xlu0 %v7656_v42, %s7461_s22 }
  0x82   : > { %915 = vrot.lane.b32.xlu1 %v7691_v57, %s7461_s22 }
  0x84   : > { %913 = vrot.lane.b32.xlu0 %v7682_v53, %s7461_s22 }
  0x86   : > { %919 = vrot.lane.b32.xlu1 %v7747_v16, %s7461_s22 }
  0x88   : > { %917 = vrot.lane.b32.xlu0 %v7728_v8, %s7461_s22 }
  0x8a   : > { %923 = vrot.lane.b32.xlu1 %v7771_v26, %s7461_s22 }
  0x8c   : > { %921 = vrot.lane.b32.xlu0 %v7750_v17, %s7461_s22 }
  0x8e   : > { %927 = vrot.lane.b32.xlu1 %v7809_v45, %s7461_s22 }
  0x90   : > { %925 = vrot.lane.b32.xlu0 %v7790_v34, %s7461_s22 }
  0x92   : > { %931 = vrot.lane.b32.xlu1 %v7833_v59, %s7461_s22 }
  0x94   : > { %929 = vrot.lane.b32.xlu0 %v7812_v47, %s7461_s22 }
  0x96   : > { %935 = vrot.lane.b32.xlu1 %v7871_v12, %s7461_s22 }
  0x98   : > { %933 = vrot.lane.b32.xlu0 %v7852_v3, %s7461_s22  ;;  %v5472_v3 = vld [vmem:[%s7650_s14 + $0xd8] sm:$0xff] }
  0x9a   : > { %939 = vrot.lane.b32.xlu1 %v7895_v24, %s7461_s22  ;;  %v473_v24 = vld [vmem:[%s7650_s14] sm:$0xff] }
  0x9c   : > { %937 = vrot.lane.b32.xlu0 %v7874_v13, %s7461_s22  ;;  %v1209_v13 = vld [vmem:[%s12732_s1 + $0x400] sm:$0xff] }
  0x9d   : > { %v5725_v29 = vpack.c.bf16 %v1213_v14, %v1209_v13  ;;  %v1237_v13 = vld [vmem:[%s12732_s1 + $0x4e0] sm:$0xff] }
  0x9e   : > { %943 = vrot.lane.b32.xlu1 %v5443_v48, %s7461_s22 }
  0xa0   : > { %941 = vrot.lane.b32.xlu0 %v7914_v33, %s7461_s22 }
  0xa2   : > { %947 = vrot.lane.b32.xlu1 %v5422_v62, %s7461_s22  ;;  %v1229_v62 = vld [vmem:[%s12732_s1 + $0x4a0] sm:$0xff] }
  0xa4   : > { %945 = vrot.lane.b32.xlu0 %v5444_v49, %s7461_s22  ;;  %v8000_v7 = vpop.permute.xlu1 %6915 }
  0xa5   : > { %v12757_v11 = vunpack.i.l.bf16 %v8000_v7  ;;  %v12754_v23 = vunpack.i.h.bf16 %v8000_v7 }
  0xa6   : > { %v6906_v9 = vpop.permute.xlu0 %6905  ;;  %951 = vrot.lane.b32.xlu1 %v5447_v5, %s7461_s22 }
  0xa7   : > { %v6908_v15 = vunpack.i.h.bf16 %v6906_v9  ;;  %v6907_v18 = vunpack.i.l.bf16 %v6906_v9 }
  0xa8   : > { %949 = vrot.lane.b32.xlu0 %v5400_v2, %s7461_s22  ;;  %v8005_v10 = vpop.permute.xlu1 %6920  ;;  %v1234_v2 = vld [vmem:[%s12732_s1 + $0x4c8] sm:$0xff] }
  0xa9   : > { %v6922_v25 = vunpack.i.l.bf16 %v8005_v10  ;;  %v8043_v39 = vsel %vm981_vm2, %v473_v24, %v6907_v18  ;;  %v6923_v49 = vunpack.i.h.bf16 %v8005_v10  ;;  %v8076_v1 = vsel %vm981_vm2, %v7659_v43, %v6908_v15 }
  0xaa   : > { %v6911_v12 = vpop.permute.xlu0 %6910  ;;  %955 = vrot.lane.b32.xlu1 %v5472_v3, %s7461_s22  ;;  %v5733_v43 = vpack.c.bf16 %v1229_v62, %v1225_v61  ;;  %v5735_v10 = vpack.c.bf16 %v1238_v4, %v1234_v2  ;;  %v1253_v61 = vld [vmem:[%s12732_s1 + $0x560] sm:$0xff]  ;;  %v1258_v2 = vld [vmem:[%s12732_s1 + $0x588] sm:$0xff] }
  0xab   : > { %v6913_v19 = vunpack.i.h.bf16 %v6911_v12  ;;  %v6912_v20 = vunpack.i.l.bf16 %v6911_v12  ;;  %v1233_v12 = vld [vmem:[%s12732_s1 + $0x4c0] sm:$0xff]  ;;  %v1262_v4 = vld [vmem:[%s12732_s1 + $0x5a8] sm:$0xff] }
  0xac   : > { %953 = vrot.lane.b32.xlu0 %v5448_v6, %s7461_s22  ;;  %v8025_v27 = vpop.permute.xlu1 %6930 }
  0xad   : > { %v1007_v28 = vsel %vm1006_vm0, %v6907_v18, %v6912_v20  ;;  %v1008_v30 = vsel %vm1006_vm0, %v6908_v15, %v6913_v19  ;;  %v12753_v31 = vunpack.i.l.bf16 %v8025_v27  ;;  %v12752_v5 = vunpack.i.h.bf16 %v8025_v27  ;;  %v1242_v19 = vld [vmem:[%s12732_s1 + $0x508] sm:$0xff] }
  0xae   : > { %v6926_v32 = vpop.permute.xlu0 %6925  ;;  %v8033_v33 = vsel %vm1031_vm1, %v1007_v28, %v12757_v11  ;;  %v8055_v48 = vsel %vm1031_vm1, %v1008_v30, %v12754_v23  ;;  %v8101_v15 = vsel %vm981_vm2, %v7664_v46, %v6922_v25  ;;  %v1246_v20 = vld [vmem:[%s12732_s1 + $0x528] sm:$0xff] }
  0xaf   : > { %v6927_v38 = vunpack.i.l.bf16 %v6926_v32  ;;  %1441 = vmatprep.mubr.f32.mxu1 %v8033_v33  ;;  %v6928_v50 = vunpack.i.h.bf16 %v6926_v32  ;;  %v5739_v30 = vpack.c.bf16 %v1246_v20, %v1242_v19  ;;  %v1241_v32 = vld [vmem:[%s12732_s1 + $0x500] sm:$0xff] }
  0xb0   : > { %1442 = vmatmul.mubr.f32.vlgmr.msra.gmra.mrb[0].mxu1 %v8043_v39  ;;  %v6941_v51 = vpop.permute.xlu1 %6940  ;;  %v1261_v19 = vld [vmem:[%s12732_s1 + $0x5a0] sm:$0xff] }
  0xb1   : > { %5726 = vmatpush1.bf16.msra.mxu1 %v5725_v29  ;;  %1447 = vmatprep.mubr.f32.mxu1 %v8055_v48  ;;  %v1009_v54 = vsel %vm1006_vm0, %v6922_v25, %v6927_v38  ;;  %v6942_v63 = vunpack.i.l.bf16 %v6941_v51  ;;  %v1010_v9 = vsel %vm1006_vm0, %v6923_v49, %v6928_v50  ;;  %v6943_v22 = vunpack.i.h.bf16 %v6941_v51 }
  0xb2   : > { %v8060_v56 = vpop.permute.xlu0 %6935  ;;  %v8065_v58 = vsel %vm1031_vm1, %v1009_v54, %v12753_v31  ;;  %5728 = vmatprep.subr.bf16.mxu1 %v5727_v35  ;;  %v8114_v21 = vsel %vm1031_vm1, %v1010_v9, %v12752_v5  ;;  %v5737_v25 = vpack.c.bf16 %v1237_v13, %v1233_v12  ;;  %v1245_v35 = vld [vmem:[%s12732_s1 + $0x520] sm:$0xff]  ;;  %v8134_v38 = vsel %vm981_vm2, %v7653_v41, %v6923_v49 }
  0xb3   : > { %v6937_v0 = vunpack.i.l.bf16 %v8060_v56  ;;  %v6938_v46 = vunpack.i.h.bf16 %v8060_v56  ;;  %v5741_v41 = vpack.c.bf16 %v1245_v35, %v1241_v32  ;;  %v5743_v56 = vpack.c.bf16 %v1254_v44, %v1250_v40 }
  0xb4   : > { %1448 = vmatmul.mubr.f32.gmra.mrb[2].mxu1 %v8076_v1  ;;  %v8087_v6 = vpop.permute.xlu1 %6950 }
  0xb5   : > { %1453 = vmatprep.mubr.f32.mxu1 %v8065_v58  ;;  %5730 = vmatpush1.bf16.msra.mxu1 %v5729_v55  ;;  %v1011_v18 = vsel %vm1006_vm0, %v6937_v0, %v6942_v63  ;;  %v6952_v36 = vunpack.i.l.bf16 %v8087_v6  ;;  %v1012_v54 = vsel %vm1006_vm0, %v6938_v46, %v6943_v22  ;;  %v8159_v62 = vsel %vm981_vm2, %v7656_v42, %v6937_v0 }
  0xb6   : > { %v8090_v3 = vpop.permute.xlu0 %6945  ;;  %5732 = vmatprep.subr.bf16.mxu1 %v5731_v60  ;;  %v1249_v60 = vld [vmem:[%s12732_s1 + $0x540] sm:$0xff]  ;;  %v6953_v42 = vunpack.i.h.bf16 %v8087_v6 }
  0xb7   : > { %v12751_v14 = vunpack.i.l.bf16 %v8090_v3  ;;  %v12748_v50 = vunpack.i.h.bf16 %v8090_v3  ;;  %v1257_v6 = vld [vmem:[%s12732_s1 + $0x580] sm:$0xff] }
  0xb8   : > { %1454 = vmatmul.mubr.f32.gmra.mrb[4].mxu1 %v8101_v15  ;;  %v8118_v24 = vpop.permute.xlu1 %6960 }
  0xb9   : > { %1459 = vmatprep.mubr.f32.mxu1 %v8114_v21  ;;  %5734 = vmatpush1.bf16.msra.mxu1 %v5733_v43  ;;  %v8123_v29 = vsel %vm1031_vm1, %v1011_v18, %v12751_v14  ;;  %v12747_v49 = vunpack.i.l.bf16 %v8118_v24  ;;  %v8172_v9 = vsel %vm1031_vm1, %v1012_v54, %v12748_v50  ;;  %v5747_v18 = vpack.c.bf16 %v1262_v4, %v1258_v2 }
  0xba   : > { %v6956_v28 = vpop.permute.xlu0 %6955  ;;  %5736 = vmatprep.subr.bf16.mxu1 %v5735_v10  ;;  %v5745_v10 = vpack.c.bf16 %v1253_v61, %v1249_v60  ;;  %v12744_v32 = vunpack.i.h.bf16 %v8118_v24  ;;  %v8214_v54 = vsel %vm981_vm2, %v7682_v53, %v6952_v36  ;;  %v1269_v60 = vld [vmem:[%s12732_s1 + $0x5e0] sm:$0xff]  ;;  %v1274_v53 = vld [vmem:[%s12732_s1 + $0x608] sm:$0xff] }
  0xbb   : > { %v6957_v37 = vunpack.i.l.bf16 %v6956_v28  ;;  %v6958_v0 = vunpack.i.h.bf16 %v6956_v28  ;;  %v1266_v28 = vld [vmem:[%s12732_s1 + $0x5c8] sm:$0xff] }
  0xbc   : > { %1460 = vmatmul.mubr.f32.gmra.mrb[6].mxu1 %v8134_v38  ;;  %v8145_v51 = vpop.permute.xlu1 %6970 }
  0xbd   : > { %1465 = vmatprep.mubr.f32.mxu1 %v8123_v29  ;;  %5738 = vmatpush1.bf16.msra.mxu1 %v5737_v25  ;;  %v1013_v63 = vsel %vm1006_vm0, %v6952_v36, %v6957_v37  ;;  %v6972_v20 = vunpack.i.l.bf16 %v8145_v51  ;;  %v8195_v25 = vsel %vm981_vm2, %v7679_v52, %v6938_v46  ;;  %v1014_v37 = vsel %vm1006_vm0, %v6953_v42, %v6958_v0  ;;  %v1278_v36 = vld [vmem:[%s12732_s1 + $0x628] sm:$0xff] }
  0xbe   : > { %v8149_v55 = vpop.permute.xlu0 %6965  ;;  %5740 = vmatprep.subr.bf16.mxu1 %v5739_v30  ;;  %v8183_v13 = vsel %vm1031_vm1, %v1013_v63, %v12747_v49  ;;  %v1270_v30 = vld [vmem:[%s12732_s1 + $0x5e8] sm:$0xff]  ;;  %v5749_v52 = vpack.c.bf16 %v1261_v19, %v1257_v6  ;;  %v8227_v61 = vsel %vm1031_vm1, %v1014_v37, %v12744_v32  ;;  %v6973_v63 = vunpack.i.h.bf16 %v8145_v51 }
  0xbf   : > { %v6967_v22 = vunpack.i.l.bf16 %v8149_v55  ;;  %v5751_v44 = vpack.c.bf16 %v1270_v30, %v1266_v28  ;;  %v6968_v2 = vunpack.i.h.bf16 %v8149_v55  ;;  %v8251_v55 = vsel %vm981_vm2, %v7691_v57, %v6953_v42  ;;  %v1277_v28 = vld [vmem:[%s12732_s1 + $0x620] sm:$0xff]  ;;  %v1282_v37 = vld [vmem:[%s12732_s1 + $0x648] sm:$0xff] }
  0xc0   : > { %1466 = vmatmul.mubr.f32.gmra.mrb[8].mxu1 %v8159_v62  ;;  %v8176_v43 = vpop.permute.xlu1 %6980  ;;  %v5755_v19 = vpack.c.bf16 %v1278_v36, %v1274_v53  ;;  %v1286_v57 = vld [vmem:[%s12732_s1 + $0x668] sm:$0xff] }
  0xc1   : > { %1471 = vmatprep.mubr.f32.mxu1 %v8172_v9  ;;  %5742 = vmatpush1.bf16.msra.mxu1 %v5741_v41  ;;  %v1015_v41 = vsel %vm1006_vm0, %v6967_v22, %v6972_v20  ;;  %v6982_v6 = vunpack.i.l.bf16 %v8176_v43  ;;  %v1273_v20 = vld [vmem:[%s12732_s1 + $0x600] sm:$0xff]  ;;  %v5759_v36 = vpack.c.bf16 %v1286_v57, %v1282_v37 }
  0xc2   : > { %v8178_v12 = vpop.permute.xlu0 %6975  ;;  %5744 = vmatprep.subr.bf16.mxu1 %v5743_v56  ;;  %v1265_v56 = vld [vmem:[%s12732_s1 + $0x5c0] sm:$0xff] }
  0xc3   : > { %v12741_v46 = vunpack.i.l.bf16 %v8178_v12  ;;  %v12743_v30 = vunpack.i.h.bf16 %v8178_v12 }
  0xc4   : > { %1472 = vmatmul.mubr.f32.gmra.mrb[10].mxu1 %v8195_v25  ;;  %v8206_v35 = vpop.permute.xlu1 %6990 }
  0xc5   : > { %1477 = vmatprep.mubr.f32.mxu1 %v8183_v13  ;;  %5746 = vmatpush1.bf16.msra.mxu1 %v5745_v10  ;;  %v8245_v10 = vsel %vm1031_vm1, %v1015_v41, %v12741_v46  ;;  %v1281_v46 = vld [vmem:[%s12732_s1 + $0x640] sm:$0xff] }
  0xc6   : > { %v8210_v40 = vpop.permute.xlu0 %6985  ;;  %5748 = vmatprep.subr.bf16.mxu1 %v5747_v18  ;;  %v5753_v18 = vpack.c.bf16 %v1269_v60, %v1265_v56  ;;  %v5757_v56 = vpack.c.bf16 %v1277_v28, %v1273_v20  ;;  %v8276_v60 = vsel %vm981_vm2, %v7728_v8, %v6967_v22  ;;  %v6983_v8 = vunpack.i.h.bf16 %v8176_v43 }
  0xc7   : > { %v6987_v51 = vunpack.i.l.bf16 %v8210_v40  ;;  %v6988_v22 = vunpack.i.h.bf16 %v8210_v40  ;;  %v8307_v43 = vsel %vm981_vm2, %v7747_v16, %v6968_v2  ;;  %v12746_v40 = vunpack.i.h.bf16 %v8206_v35 }
  0xc8   : > { %1478 = vmatmul.mubr.f32.gmra.mrb[12].mxu1 %v8214_v54  ;;  %v8238_v4 = vpop.permute.xlu1 %7000  ;;  %12865 = vst [vmem:[#allocation4_spill] sm:$0xff] %v8307_v43 }
  0xc9   : > { %1483 = vmatprep.mubr.f32.mxu1 %v8227_v61  ;;  %5750 = vmatpush1.bf16.msra.mxu1 %v5749_v52  ;;  %v1016_v52 = vsel %vm1006_vm0, %v6968_v2, %v6973_v63  ;;  %v1017_v53 = vsel %vm1006_vm0, %v6982_v6, %v6987_v51  ;;  %v1285_v63 = vld [vmem:[%s12732_s1 + $0x660] sm:$0xff]  ;;  %v7002_v37 = vunpack.i.l.bf16 %v8238_v4  ;;  %v1018_v2 = vsel %vm1006_vm0, %v6983_v8, %v6988_v22 }
  0xca   : > { %v8240_v0 = vpop.permute.xlu0 %6995  ;;  %5752 = vmatprep.subr.bf16.mxu1 %v5751_v44  ;;  %v12742_v44 = vunpack.i.l.bf16 %v8206_v35  ;;  %v5761_v28 = vpack.c.bf16 %v1285_v63, %v1281_v46  ;;  %v1084_v46 = vld [vmem:[%s12732_s1 + $0x18] sm:$0xff]  ;;  %v8329_v63 = vsel %vm981_vm2, %v7750_v17, %v6982_v6  ;;  %v8340_v22 = vsel %vm1031_vm1, %v1018_v2, %v12746_v40 }
  0xcb   : > { %v6997_v57 = vunpack.i.l.bf16 %v8240_v0  ;;  %12866 = vst [vmem:[#allocation5_spill] sm:$0xff] %v8329_v63  ;;  %12867 = vst [vmem:[#allocation6_spill] sm:$0xff] %v8340_v22  ;;  %v6998_v17 = vunpack.i.h.bf16 %v8240_v0 }
  0xcc   : > { %1484 = vmatmul.mubr.f32.gmra.mrb[14].mxu1 %v8251_v55  ;;  %v8268_v42 = vpop.permute.xlu1 %7010  ;;  %v8301_v20 = vsel %vm1031_vm1, %v1017_v53, %v12742_v44 }
  0xcd   : > { %1489 = vmatprep.mubr.f32.mxu1 %v8245_v10  ;;  %5754 = vmatpush1.bf16.msra.mxu1 %v5753_v18  ;;  %v8289_v18 = vsel %vm1031_vm1, %v1016_v52, %v12743_v30  ;;  %12864 = vst [vmem:[#allocation3_spill] sm:$0xff] %v8301_v20  ;;  %v1290_v52 = vld [vmem:[%s12732_s1 + $0x688] sm:$0xf]  ;;  %v1019_v44 = vsel %vm1006_vm0, %v6997_v57, %v7002_v37  ;;  %v1289_v30 = vld [vmem:[%s12732_s1 + $0x680] sm:$0xf] }
  0xce   : > { %v8272_v41 = vpop.permute.xlu0 %7005  ;;  %5756 = vmatprep.subr.bf16.mxu1 %v5755_v19  ;;  %v8372_v40 = vsel %vm981_vm2, %v7790_v34, %v6997_v57 }
  0xcf   : > { %v12745_v53 = vunpack.i.l.bf16 %v8272_v41  ;;  %v12749_v0 = vunpack.i.h.bf16 %v8272_v41  ;;  %12870 = vst [vmem:[#allocation9_spill] sm:$0xff] %v8372_v40 }
  0xd0   : > { %1490 = vmatmul.mubr.f32.gmra.mrb[16].mxu1 %v8276_v60  ;;  %v8294_v51 = vpop.permute.xlu1 %7020 }
  0xd1   : > { %1495 = vmatprep.mubr.f32.mxu1 %v8289_v18  ;;  %5758 = vmatpush1.bf16.msra.mxu1 %v5757_v56  ;;  %v1088_v56 = vld [vmem:[%s12732_s1 + $0x38] sm:$0xff] }
  0xd2   : > { %v8296_v19 = vpop.permute.xlu0 %7015  ;;  %5760 = vmatprep.subr.bf16.mxu1 %v5759_v36  ;;  %v5763_v32 = vpack.c.bf16 %v1088_v56, %v1084_v46  ;;  %v7012_v46 = vunpack.i.l.bf16 %v8268_v42 }
  0xd3   : > { %v7017_v56 = vunpack.i.l.bf16 %v8296_v19 }
  0xd4   : > { %1496 = vmatmul.mubr.f32.gmra.mrb[18].mxu1 %v8307_v43  ;;  %v8321_v16 = vpop.permute.xlu1 %7030  ;;  %v8410_v14 = vsel %vm981_vm2, %v7812_v47, %v7012_v46 }
  0xd5   : > { %1501 = vmatprep.mubr.f32.mxu1 %v8301_v20  ;;  %5762 = vmatpush1.bf16.msra.mxu1 %v5761_v28  ;;  %v7003_v28 = vunpack.i.h.bf16 %v8238_v4  ;;  %v8359_v4 = vsel %vm981_vm2, %v7771_v26, %v6983_v8  ;;  %v1021_v26 = vsel %vm1006_vm0, %v7012_v46, %v7017_v56  ;;  %v7013_v8 = vunpack.i.h.bf16 %v8268_v42  ;;  %12874 = vst [vmem:[#allocation13_spill] sm:$0xff] %v8410_v14 }
  0xd6   : > { %v8325_v36 = vpop.permute.xlu0 %7025  ;;  %5473 = vmatprep.subr.msk.mxu1 %vm1364_vm3, %v1290_v52  ;;  %v8352_v52 = vsel %vm1031_vm1, %v1019_v44, %v12745_v53  ;;  %12869 = vst [vmem:[#allocation8_spill] sm:$0xff] %v8359_v4  ;;  %v7032_v57 = vunpack.i.l.bf16 %v8321_v16  ;;  %v8397_v42 = vsel %vm981_vm2, %v7809_v45, %v6998_v17 }
  0xd7   : > { %12868 = vst [vmem:[#allocation7_spill] sm:$0xff] %v8352_v52  ;;  %v1020_v44 = vsel %vm1006_vm0, %v6998_v17, %v7003_v28  ;;  %v7018_v28 = vunpack.i.h.bf16 %v8296_v19  ;;  %v7027_v56 = vunpack.i.l.bf16 %v8325_v36  ;;  %12873 = vst [vmem:[#allocation12_spill] sm:$0xff] %v8397_v42  ;;  %v12755_v19 = vunpack.i.h.bf16 %v8294_v51 }
  0xd8   : > { %1502 = vmatmul.mubr.f32.gmra.mrb[20].mxu1 %v8329_v63  ;;  %v8345_v6 = vpop.permute.xlu1 %7040  ;;  %v7028_v5 = vunpack.i.h.bf16 %v8325_v36 }
  0xd9   : > { %1507 = vmatprep.mubr.f32.mxu1 %v8340_v22  ;;  %5474 = vmatpush1.msk.msra.mxu1 %vm1364_vm3, %v1289_v30  ;;  %v12750_v30 = vunpack.i.l.bf16 %v8294_v51  ;;  %v1023_v45 = vsel %vm1006_vm0, %v7027_v56, %v7032_v57  ;;  %v7042_v46 = vunpack.i.l.bf16 %v8345_v6  ;;  %v489_v57 = vld [vmem:[%s7650_s14 + $0x80] sm:$0xff] }
  0xda   : > { %v8347_v37 = vpop.permute.xlu0 %7035  ;;  %5764 = vmatprep.subr.bf16.mxu1 %v5763_v32  ;;  %v8379_v32 = vsel %vm1031_vm1, %v1020_v44, %v12749_v0  ;;  %v1022_v0 = vsel %vm1006_vm0, %v7013_v8, %v7018_v28  ;;  %v7033_v28 = vunpack.i.h.bf16 %v8321_v16  ;;  %v8433_v16 = vsel %vm981_vm2, %v7833_v59, %v7013_v8 }
  0xdb   : > { %12871 = vst [vmem:[#allocation10_spill] sm:$0xff] %v8379_v32  ;;  %v8391_v34 = vsel %vm1031_vm1, %v1021_v26, %v12750_v30  ;;  %v12756_v26 = vunpack.i.l.bf16 %v8347_v37  ;;  %v8417_v17 = vsel %vm1031_vm1, %v1022_v0, %v12755_v19  ;;  %12877 = vst [vmem:[#allocation16_spill] sm:$0xff] %v8433_v16  ;;  %v12761_v36 = vunpack.i.h.bf16 %v8347_v37 }
  0xdc   : > { %1508 = vmatmul.mubr.f32.gmra.mrb[22].mxu1 %v8359_v4  ;;  %v8364_v2 = vpop.permute.xlu1 %7050  ;;  %12872 = vst [vmem:[#allocation11_spill] sm:$0xff] %v8391_v34  ;;  %12875 = vst [vmem:[#allocation14_spill] sm:$0xff] %v8417_v17  ;;  %v1103_v4 = vld [vmem:[%s12732_s1 + $0xb0] sm:$0xff] }
  0xdd   : > { %1513 = vmatprep.mubr.f32.mxu1 %v8352_v52  ;;  %v8427_v47 = vsel %vm1031_vm1, %v1023_v45, %v12756_v26  ;;  %v1024_v45 = vsel %vm1006_vm0, %v7028_v5, %v7033_v28 }
  0xde   : > { %v8368_v53 = vpop.permute.xlu0 %7045  ;;  %12876 = vst [vmem:[#allocation15_spill] sm:$0xff] %v8427_v47  ;;  %v8451_v8 = vsel %vm1031_vm1, %v1024_v45, %v12761_v36 }
  0xdf   : > { %v7047_v0 = vunpack.i.l.bf16 %v8368_v53  ;;  %12879 = vst [vmem:[#allocation18_spill] sm:$0xff] %v8451_v8  ;;  %v7048_v28 = vunpack.i.h.bf16 %v8368_v53  ;;  %v12768_v53 = vunpack.i.h.bf16 %v8364_v2 }
  0xe0   : > { %1514 = vmatmul.mubr.f32.gmra.mrb[24].mxu1 %v8372_v40  ;;  %v8384_v49 = vpop.permute.xlu1 %7060 }
  0xe1   : > { %1519 = vmatprep.mubr.f32.mxu1 %v8379_v32  ;;  %v1025_v59 = vsel %vm1006_vm0, %v7042_v46, %v7047_v0  ;;  %v12882_v0 = vunpack.i.l.bf16 %v8364_v2  ;;  %v7062_v45 = vunpack.i.l.bf16 %v8384_v49  ;;  %v1095_v32 = vld [vmem:[%s12732_s1 + $0x70] sm:$0xff] }
  0xe2   : > { %v8386_v50 = vpop.permute.xlu0 %7055 }
  0xe3   : > { %v7057_v36 = vunpack.i.l.bf16 %v8386_v50 }
  0xe4   : > { %1520 = vmatmul.mubr.f32.gmra.mrb[26].mxu1 %v8397_v42  ;;  %v8402_v44 = vpop.permute.xlu1 %7070 }
  0xe5   : > { %1525 = vmatprep.mubr.f32.mxu1 %v8391_v34 }
  0xe6   : > { %v8406_v30 = vpop.permute.xlu0 %7065 }
  0xe8   : > { %1526 = vmatmul.mubr.f32.gmra.mrb[28].mxu1 %v8410_v14  ;;  %v8422_v31 = vpop.permute.xlu1 %857 }
  0xe9   : > { %1531 = vmatprep.mubr.f32.mxu1 %v8417_v17  ;;  %v8444_v17 = vsel %vm981_vm2, %v489_v57, %v7027_v56  ;;  %v8464_v57 = vsel %vm1031_vm1, %v1025_v59, %v12882_v0  ;;  %v7058_v0 = vunpack.i.h.bf16 %v8386_v50  ;;  %v493_v50 = vld [vmem:[%s7650_s14 + $0xa0] sm:$0xff] }
  0xea   : > { %v762_v23 = vpop.permute.xlu0 %761  ;;  %12878 = vst [vmem:[#allocation17_spill] sm:$0xff] %v8444_v17  ;;  %12883 = vst [vmem:[#allocation21_spill] sm:$0xff] %v8464_v57 }
  0xec   : > { %1532 = vmatmul.mubr.f32.gmra.mrb[30].mxu1 %v8433_v16  ;;  %v8439_v19 = vpop.permute.xlu1 %859  ;;  %v7043_v16 = vunpack.i.h.bf16 %v8345_v6 }
  0xed   : > { %1537 = vmatprep.mubr.f32.mxu1 %v8427_v47  ;;  %v490_v47 = vld [vmem:[%s7650_s14 + $0x88] sm:$0xff] }
  0xee   : > { %v764_v11 = vpop.permute.xlu0 %763  ;;  %v8469_v6 = vsel %vm981_vm2, %v490_v47, %v7028_v5  ;;  %v1026_v59 = vsel %vm1006_vm0, %v7043_v16, %v7048_v28  ;;  %v1027_v5 = vsel %vm1006_vm0, %v7057_v36, %v7062_v45  ;;  %v7063_v28 = vunpack.i.h.bf16 %v8384_v49 }
  0xef   : > { %12884 = vst [vmem:[#allocation22_spill] sm:$0xff] %v8469_v6  ;;  %v8489_v47 = vsel %vm1031_vm1, %v1026_v59, %v12768_v53  ;;  %v7072_v59 = vunpack.i.l.bf16 %v8402_v44  ;;  %v12774_v49 = vunpack.i.h.bf16 %v8406_v30 }
  0xf0   : > { %1538 = vmatmul.mubr.f32.gmra.mrb[32].mxu1 %v8444_v17  ;;  %v8457_v26 = vpop.permute.xlu1 %911  ;;  %12887 = vst [vmem:[#allocation25_spill] sm:$0xff] %v8489_v47 }
  0xf1   : > { %1543 = vmatprep.mubr.f32.mxu1 %v8451_v8  ;;  %12880 = vst [vmem:[#allocation19_spill] sm:$0xff] %v8457_v26  ;;  %v491_v8 = vld [vmem:[%s7650_s14 + $0x90] sm:$0xff] }
  0xf2   : > { %v8459_v56 = vpop.permute.xlu0 %909  ;;  %v8482_v34 = vsel %vm981_vm2, %v491_v8, %v7042_v46  ;;  %v12888_v8 = vunpack.i.l.bf16 %v8406_v30 }
  0xf3   : > { %12881 = vst [vmem:[#allocation20_spill] sm:$0xff] %v8459_v56  ;;  %12886 = vst [vmem:[#allocation24_spill] sm:$0xff] %v8482_v34 }
  0xf4   : > { %1544 = vmatmul.mubr.f32.gmra.mrb[34].mxu1 %v8469_v6  ;;  %v8475_v17 = vpop.permute.xlu1 %915  ;;  %v8502_v45 = vsel %vm1031_vm1, %v1027_v5, %v12888_v8  ;;  %v1029_v5 = vsel %vm1006_vm0, %v7072_v59, %v762_v23  ;;  %v8519_v8 = vsel %vm981_vm2, %v493_v50, %v7057_v36 }
  0xf5   : > { %1549 = vmatprep.mubr.f32.mxu1 %v8464_v57  ;;  %v492_v57 = vld [vmem:[%s7650_s14 + $0x98] sm:$0xff]  ;;  %12889 = vst [vmem:[#allocation26_spill] sm:$0xff] %v8502_v45  ;;  %12891 = vst [vmem:[#allocation28_spill] sm:$0xff] %v8519_v8  ;;  %v8536_v23 = vsel %vm1031_vm1, %v1029_v5, %v8422_v31 }
  0xf6   : > { %v8479_v14 = vpop.permute.xlu0 %913  ;;  %v8506_v53 = vsel %vm981_vm2, %v492_v57, %v7043_v16  ;;  %v494_v57 = vld [vmem:[%s7650_s14 + $0xa8] sm:$0xff]  ;;  %12893 = vst [vmem:[#allocation30_spill] sm:$0xff] %v8536_v23  ;;  %v496_v5 = vld [vmem:[%s7650_s14 + $0xb8] sm:$0xff] }
  0xf7   : > { %12885 = vst [vmem:[#allocation23_spill] sm:$0xff] %v8479_v14  ;;  %12890 = vst [vmem:[#allocation27_spill] sm:$0xff] %v8506_v53  ;;  %v8539_v36 = vsel %vm981_vm2, %v494_v57, %v7058_v0 }
  0xf8   : > { %1550 = vmatmul.mubr.f32.gmra.mrb[36].mxu1 %v8482_v34  ;;  %v8495_v6 = vpop.permute.xlu1 %919  ;;  %v1028_v34 = vsel %vm1006_vm0, %v7058_v0, %v7063_v28  ;;  %12894 = vst [vmem:[#allocation31_spill] sm:$0xff] %v8539_v36 }
  0xf9   : > { %1555 = vmatprep.mubr.f32.mxu1 %v8489_v47  ;;  %v8525_v16 = vsel %vm1031_vm1, %v1028_v34, %v12774_v49  ;;  %v495_v34 = vld [vmem:[%s7650_s14 + $0xb0] sm:$0xff] }
  0xfa   : > { %v8497_v46 = vpop.permute.xlu0 %917  ;;  %12892 = vst [vmem:[#allocation29_spill] sm:$0xff] %v8525_v16 }
  0xfc   : > { %1556 = vmatmul.mubr.f32.gmra.mrb[38].mxu1 %v8506_v53  ;;  %v8512_v47 = vpop.permute.xlu1 %923 }
  0xfd   : > { %1561 = vmatprep.mubr.f32.mxu1 %v8502_v45  ;;  %v7073_v45 = vunpack.i.h.bf16 %v8402_v44 }
  0xfe   : > { %v8515_v42 = vpop.permute.xlu0 %921 }
  0xff   : > { %v1030_v50 = vsel %vm1006_vm0, %v7073_v45, %v764_v11  ;;  %vm5231_vm0 = vcmask 408576  }
 0x100   : > { %1562 = vmatmul.mubr.f32.gmra.mrb[40].mxu1 %v8519_v8  ;;  %v8530_v28 = vpop.permute.xlu1 %927  ;;  %v8555_v0 = vsel %vm1031_vm1, %v1030_v50, %v8439_v19  ;;  %v1092_v50 = vld [vmem:[%s12732_s1 + $0x58] sm:$0xff] }
 0x101   : > { %1567 = vmatprep.mubr.f32.mxu1 %v8525_v16  ;;  %v8550_v16 = vsel %vm981_vm2, %v495_v34, %v7072_v59  ;;  %12896 = vst [vmem:[#allocation33_spill] sm:$0xff] %v8555_v0  ;;  %v1087_v59 = vld [vmem:[%s12732_s1 + $0x30] sm:$0xff]  ;;  %v8570_v34 = vsel %vm981_vm2, %v496_v5, %v7073_v45 }
 0x102   : > { %v8532_v53 = vpop.permute.xlu0 %925  ;;  %12895 = vst [vmem:[#allocation32_spill] sm:$0xff] %v8550_v16  ;;  %12897 = vst [vmem:[#allocation34_spill] sm:$0xff] %v8570_v34  ;;  %v1091_v5 = vld [vmem:[%s12732_s1 + $0x50] sm:$0xff] }
 0x104   : > { %1568 = vmatmul.mubr.f32.gmra.mrb[42].mxu1 %v8539_v36  ;;  %v8544_v49 = vpop.permute.xlu1 %931 }
 0x105   : > { %1573 = vmatprep.mubr.f32.mxu1 %v8536_v23  ;;  %v1083_v23 = vld [vmem:[%s12732_s1 + $0x10] sm:$0xff] }
 0x106   : > { %v8547_v44 = vpop.permute.xlu0 %929  ;;  %v5765_v36 = vpack.c.bf16 %v1087_v59, %v1083_v23  ;;  %v1100_v23 = vld [vmem:[%s12732_s1 + $0x98] sm:$0xff] }
 0x108   : > { %1574 = vmatmul.mubr.f32.gmra.mrb[44].mxu1 %v8550_v16  ;;  %v8559_v57 = vpop.permute.xlu1 %935 }
 0x109   : > { %1579 = vmatprep.mubr.f32.mxu1 %v8555_v0  ;;  %v1096_v0 = vld [vmem:[%s12732_s1 + $0x78] sm:$0xff] }
 0x10a   : > { %v8561_v11 = vpop.permute.xlu0 %933  ;;  %v5767_v45 = vpack.c.bf16 %v1096_v0, %v1092_v50  ;;  %v1104_v0 = vld [vmem:[%s12732_s1 + $0xb8] sm:$0xff]  ;;  %v5769_v50 = vpack.c.bf16 %v1095_v32, %v1091_v5  ;;  %v12901_v32 = vunpack.i.h.bf16 %v8000_v7 }
 0x10b   : > { %v1108_v5 = vld [vmem:[%s12732_s1 + $0xd8] sm:$0xff] }
 0x10c   : > { %1580 = vmatmul.mubr.f32.gmra.mrb[46].mxu1 %v8570_v34  ;;  %v8579_v16 = vpop.permute.xlu1 %939  ;;  %v12898_v34 = vunpack.i.l.bf16 %v8000_v7 }
 0x10d   : > { %5475 = vmatprep.mubr.msk.f32.mxu1 %vm1315_vm4, %v8459_v56 }
 0x10e   : > { %v8583_v8 = vpop.permute.xlu0 %937  ;;  %v8595_v40 = vsel %vm1056_vm5, %v12898_v34, %v8459_v56  ;;  %v5771_v34 = vpack.c.bf16 %v1104_v0, %v1100_v23  ;;  %v1099_v56 = vld [vmem:[%s12732_s1 + $0x90] sm:$0xff]  ;;  %v1112_v23 = vld [vmem:[%s12732_s1 + $0xf8] sm:$0xff]  ;;  %v12903_v0 = vunpack.i.l.bf16 %v8347_v37 }
 0x10f   : > { %12899 = vst [vmem:[#allocation35_spill] sm:$0xff] %v8595_v40  ;;  %v5775_v22 = vpack.c.bf16 %v1112_v23, %v1108_v5  ;;  %v1120_v5 = vld [vmem:[%s12732_s1 + $0x138] sm:$0xff]  ;;  %v12907_v23 = vunpack.i.l.bf16 %v8364_v2 }
 0x110   : > { %1651 = vmatmul.mubr.f32.vlgmr.msra.gmra.mrb[0].mxu1 %v8595_v40  ;;  %v8604_v59 = vpop.permute.xlu1 %943 }
 0x111   : > { %5766 = vmatpush1.bf16.msra.mxu1 %v5765_v36  ;;  %5476 = vmatprep.mubr.msk.f32.mxu1 %vm1315_vm4, %v8457_v26  ;;  %v12900_v36 = vunpack.i.h.bf16 %v8347_v37  ;;  %v1107_v37 = vld [vmem:[%s12732_s1 + $0xd0] sm:$0xff] }
 0x112   : > { %v8608_v52 = vpop.permute.xlu0 %941  ;;  %5768 = vmatprep.subr.bf16.mxu1 %v5767_v45  ;;  %v8626_v45 = vsel %vm1056_vm5, %v12901_v32, %v8457_v26  ;;  %v5773_v32 = vpack.c.bf16 %v1103_v4, %v1099_v56  ;;  %v12905_v4 = vunpack.i.l.bf16 %v8025_v27 }
 0x113   : > { %v8620_v40 = vsel %vm1056_vm5, %v12900_v36, %v8604_v59  ;;  %12902 = vst [vmem:[#allocation36_spill] sm:$0xff] %v8626_v45  ;;  %v8638_v36 = vsel %vm1056_vm5, %v12903_v0, %v8608_v52  ;;  %v1111_v0 = vld [vmem:[%s12732_s1 + $0xf0] sm:$0xff] }
 0x114   : > { %1657 = vmatmul.mubr.f32.gmra.mrb[2].mxu1 %v8626_v45  ;;  %v8641_v7 = vpop.permute.xlu1 %947  ;;  %v12904_v45 = vunpack.i.h.bf16 %v8364_v2  ;;  %v8663_v56 = vsel %vm1056_vm5, %v12905_v4, %v8479_v14  ;;  %v5777_v4 = vpack.c.bf16 %v1111_v0, %v1107_v37  ;;  %v1115_v2 = vld [vmem:[%s12732_s1 + $0x110] sm:$0xff]  ;;  %v1124_v37 = vld [vmem:[%s12732_s1 + $0x158] sm:$0xff] }
 0x115   : > { %5770 = vmatpush1.bf16.msra.mxu1 %v5769_v50  ;;  %5477 = vmatprep.mubr.msk.f32.mxu1 %vm1315_vm4, %v8479_v14  ;;  %12906 = vst [vmem:[#allocation37_spill] sm:$0xff] %v8663_v56  ;;  %v1128_v0 = vld [vmem:[%s12732_s1 + $0x178] sm:$0xff] }
 0x116   : > { %v8645_v26 = vpop.permute.xlu0 %945  ;;  %5772 = vmatprep.subr.bf16.mxu1 %v5771_v34  ;;  %v8657_v50 = vsel %vm1056_vm5, %v12904_v45, %v8641_v7  ;;  %v1116_v34 = vld [vmem:[%s12732_s1 + $0x118] sm:$0xff] }
 0x117   : > { %v8675_v45 = vsel %vm1056_vm5, %v12907_v23, %v8645_v26  ;;  %v5779_v20 = vpack.c.bf16 %v1120_v5, %v1116_v34  ;;  %v1119_v23 = vld [vmem:[%s12732_s1 + $0x130] sm:$0xff]  ;;  %v12911_v34 = vunpack.i.l.bf16 %v8406_v30  ;;  %v5783_v5 = vpack.c.bf16 %v1128_v0, %v1124_v37 }
 0x118   : > { %1663 = vmatmul.mubr.f32.gmra.mrb[4].mxu1 %v8663_v56  ;;  %v8678_v63 = vpop.permute.xlu1 %951  ;;  %v12908_v56 = vunpack.i.h.bf16 %v8406_v30  ;;  %v1127_v30 = vld [vmem:[%s12732_s1 + $0x170] sm:$0xff] }
 0x119   : > { %5478 = vmatprep.mubr.msk.f32.mxu1 %vm1315_vm4, %v8475_v17  ;;  %5774 = vmatpush1.bf16.msra.mxu1 %v5773_v32  ;;  %v12909_v32 = vunpack.i.h.bf16 %v8025_v27  ;;  %v5781_v27 = vpack.c.bf16 %v1119_v23, %v1115_v2  ;;  %v1131_v37 = vld [vmem:[%s12732_s1 + $0x190] sm:$0xff] }
 0x11a   : > { %v8682_v14 = vpop.permute.xlu0 %949  ;;  %5776 = vmatprep.subr.bf16.mxu1 %v5775_v22  ;;  %v8694_v43 = vsel %vm1056_vm5, %v12908_v56, %v8678_v63  ;;  %v1135_v0 = vld [vmem:[%s12732_s1 + $0x1b0] sm:$0xff] }
 0x11b   : > { %v8700_v22 = vsel %vm1056_vm5, %v12909_v32, %v8475_v17  ;;  %v8712_v56 = vsel %vm1056_vm5, %v12911_v34, %v8682_v14  ;;  %v1123_v32 = vld [vmem:[%s12732_s1 + $0x150] sm:$0xff]  ;;  %v12912_v34 = vunpack.i.l.bf16 %v8090_v3 }
 0x11c   : > { %12910 = vst [vmem:[#allocation38_spill] sm:$0xff] %v8700_v22  ;;  %1669 = vmatmul.mubr.f32.gmra.mrb[6].mxu1 %v8700_v22  ;;  %v5785_v2 = vpack.c.bf16 %v1127_v30, %v1123_v32  ;;  %v5789_v32 = vpack.c.bf16 %v1135_v0, %v1131_v37  ;;  %v1139_v30 = vld [vmem:[%s12732_s1 + $0x1d0] sm:$0xff] }
 0x11d   : > { %5479 = vmatprep.mubr.msk.f32.mxu1 %vm1315_vm4, %v8497_v46  ;;  %5778 = vmatpush1.bf16.msra.mxu1 %v5777_v4  ;;  %v8727_v22 = vsel %vm1056_vm5, %v12912_v34, %v8497_v46  ;;  %v1132_v4 = vld [vmem:[%s12732_s1 + $0x198] sm:$0xff]  ;;  %v12914_v34 = vunpack.i.h.bf16 %v8090_v3 }
 0x11e   : > { %5780 = vmatprep.subr.bf16.mxu1 %v5779_v20  ;;  %12913 = vst [vmem:[#allocation39_spill] sm:$0xff] %v8727_v22  ;;  %v1136_v20 = vld [vmem:[%s12732_s1 + $0x1b8] sm:$0xff] }
 0x11f   : > { %v5787_v23 = vpack.c.bf16 %v1136_v20, %v1132_v4  ;;  %v1143_v4 = vld [vmem:[%s12732_s1 + $0x1f0] sm:$0xff]  ;;  %v12915_v20 = vunpack.i.l.bf16 %v8118_v24 }
 0x120   : > { %1675 = vmatmul.mubr.f32.gmra.mrb[8].mxu1 %v8727_v22  ;;  %v8748_v22 = vsel %vm1056_vm5, %v12914_v34, %v8495_v6  ;;  %v5793_v37 = vpack.c.bf16 %v1143_v4, %v1139_v30  ;;  %v1155_v4 = vld [vmem:[%s12732_s1 + $0x250] sm:$0xff] }
 0x121   : > { %5480 = vmatprep.mubr.msk.f32.mxu1 %vm1315_vm4, %v8495_v6  ;;  %5782 = vmatpush1.bf16.msra.mxu1 %v5781_v27  ;;  %v1140_v27 = vld [vmem:[%s12732_s1 + $0x1d8] sm:$0xff]  ;;  %v8769_v34 = vsel %vm1056_vm5, %v12915_v20, %v8515_v42  ;;  %v12917_v20 = vunpack.i.h.bf16 %v8118_v24 }
 0x122   : > { %5784 = vmatprep.subr.bf16.mxu1 %v5783_v5  ;;  %v1144_v5 = vld [vmem:[%s12732_s1 + $0x1f8] sm:$0xff]  ;;  %12916 = vst [vmem:[#allocation40_spill] sm:$0xff] %v8769_v34 }
 0x123   : > { %v5791_v3 = vpack.c.bf16 %v1144_v5, %v1140_v27  ;;  %v1147_v27 = vld [vmem:[%s12732_s1 + $0x210] sm:$0xff] }
 0x124   : > { %1681 = vmatmul.mubr.f32.gmra.mrb[10].mxu1 %v8748_v22  ;;  %v1151_v5 = vld [vmem:[%s12732_s1 + $0x230] sm:$0xff] }
 0x125   : > { %5481 = vmatprep.mubr.msk.f32.mxu1 %vm1315_vm4, %v8515_v42  ;;  %5786 = vmatpush1.bf16.msra.mxu1 %v5785_v2  ;;  %v1148_v2 = vld [vmem:[%s12732_s1 + $0x218] sm:$0xff]  ;;  %v5797_v30 = vpack.c.bf16 %v1151_v5, %v1147_v27 }
 0x126   : > { %5788 = vmatprep.subr.bf16.mxu1 %v5787_v23  ;;  %v1152_v23 = vld [vmem:[%s12732_s1 + $0x238] sm:$0xff] }
 0x127   : > { %v5795_v0 = vpack.c.bf16 %v1152_v23, %v1148_v2  ;;  %v1159_v2 = vld [vmem:[%s12732_s1 + $0x270] sm:$0xff]  ;;  %v12918_v23 = vunpack.i.l.bf16 %v8178_v12 }
 0x128   : > { %1687 = vmatmul.mubr.f32.gmra.mrb[12].mxu1 %v8769_v34  ;;  %v8790_v34 = vsel %vm1056_vm5, %v12917_v20, %v8512_v47  ;;  %v5801_v27 = vpack.c.bf16 %v1159_v2, %v1155_v4  ;;  %v1171_v2 = vld [vmem:[%s12732_s1 + $0x2d0] sm:$0xff] }
 0x129   : > { %5482 = vmatprep.mubr.msk.f32.mxu1 %vm1315_vm4, %v8512_v47  ;;  %5790 = vmatpush1.bf16.msra.mxu1 %v5789_v32  ;;  %v1156_v32 = vld [vmem:[%s12732_s1 + $0x258] sm:$0xff]  ;;  %v8811_v20 = vsel %vm1056_vm5, %v12918_v23, %v8532_v53  ;;  %v12920_v23 = vunpack.i.h.bf16 %v8178_v12 }
 0x12a   : > { %5792 = vmatprep.subr.bf16.mxu1 %v5791_v3  ;;  %v1160_v3 = vld [vmem:[%s12732_s1 + $0x278] sm:$0xff]  ;;  %12919 = vst [vmem:[#allocation41_spill] sm:$0xff] %v8811_v20 }
 0x12b   : > { %v5799_v24 = vpack.c.bf16 %v1160_v3, %v1156_v32  ;;  %v1163_v32 = vld [vmem:[%s12732_s1 + $0x290] sm:$0xff] }
 0x12c   : > { %1693 = vmatmul.mubr.f32.gmra.mrb[14].mxu1 %v8790_v34  ;;  %v1167_v3 = vld [vmem:[%s12732_s1 + $0x2b0] sm:$0xff] }
 0x12d   : > { %5483 = vmatprep.mubr.msk.f32.mxu1 %vm1315_vm4, %v8532_v53  ;;  %5794 = vmatpush1.bf16.msra.mxu1 %v5793_v37  ;;  %v1164_v37 = vld [vmem:[%s12732_s1 + $0x298] sm:$0xff]  ;;  %v5805_v4 = vpack.c.bf16 %v1167_v3, %v1163_v32 }
 0x12e   : > { %5796 = vmatprep.subr.bf16.mxu1 %v5795_v0  ;;  %v1168_v0 = vld [vmem:[%s12732_s1 + $0x2b8] sm:$0xff] }
 0x12f   : > { %v5803_v5 = vpack.c.bf16 %v1168_v0, %v1164_v37  ;;  %v1175_v37 = vld [vmem:[%s12732_s1 + $0x2f0] sm:$0xff]  ;;  %v12921_v0 = vunpack.i.l.bf16 %v8206_v35 }
 0x130   : > { %1699 = vmatmul.mubr.f32.gmra.mrb[16].mxu1 %v8811_v20  ;;  %v8832_v20 = vsel %vm1056_vm5, %v12920_v23, %v8530_v28  ;;  %v5809_v32 = vpack.c.bf16 %v1175_v37, %v1171_v2  ;;  %v1187_v37 = vld [vmem:[%s12732_s1 + $0x350] sm:$0xff] }
 0x131   : > { %5484 = vmatprep.mubr.msk.f32.mxu1 %vm1315_vm4, %v8530_v28  ;;  %5798 = vmatpush1.bf16.msra.mxu1 %v5797_v30  ;;  %v1172_v30 = vld [vmem:[%s12732_s1 + $0x2d8] sm:$0xff]  ;;  %v8853_v23 = vsel %vm1056_vm5, %v12921_v0, %v8547_v44  ;;  %v12923_v0 = vunpack.i.h.bf16 %v8206_v35 }
 0x132   : > { %5800 = vmatprep.subr.bf16.mxu1 %v5799_v24  ;;  %v1176_v24 = vld [vmem:[%s12732_s1 + $0x2f8] sm:$0xff]  ;;  %12922 = vst [vmem:[#allocation42_spill] sm:$0xff] %v8853_v23 }
 0x133   : > { %v5807_v12 = vpack.c.bf16 %v1176_v24, %v1172_v30  ;;  %v1179_v30 = vld [vmem:[%s12732_s1 + $0x310] sm:$0xff] }
 0x134   : > { %1705 = vmatmul.mubr.f32.gmra.mrb[18].mxu1 %v8832_v20  ;;  %v1183_v24 = vld [vmem:[%s12732_s1 + $0x330] sm:$0xff] }
 0x135   : > { %5485 = vmatprep.mubr.msk.f32.mxu1 %vm1315_vm4, %v8547_v44  ;;  %5802 = vmatpush1.bf16.msra.mxu1 %v5801_v27  ;;  %v1180_v27 = vld [vmem:[%s12732_s1 + $0x318] sm:$0xff]  ;;  %v5813_v2 = vpack.c.bf16 %v1183_v24, %v1179_v30 }
 0x136   : > { %5804 = vmatprep.subr.bf16.mxu1 %v5803_v5  ;;  %v1184_v5 = vld [vmem:[%s12732_s1 + $0x338] sm:$0xff] }
 0x137   : > { %v5811_v3 = vpack.c.bf16 %v1184_v5, %v1180_v27  ;;  %v1191_v27 = vld [vmem:[%s12732_s1 + $0x370] sm:$0xff]  ;;  %v12924_v5 = vunpack.i.l.bf16 %v8272_v41 }
 0x138   : > { %1711 = vmatmul.mubr.f32.gmra.mrb[20].mxu1 %v8853_v23  ;;  %v8874_v23 = vsel %vm1056_vm5, %v12923_v0, %v8544_v49  ;;  %v5817_v30 = vpack.c.bf16 %v1191_v27, %v1187_v37  ;;  %v1203_v27 = vld [vmem:[%s12732_s1 + $0x3d0] sm:$0xff] }
 0x139   : > { %5486 = vmatprep.mubr.msk.f32.mxu1 %vm1315_vm4, %v8544_v49  ;;  %5806 = vmatpush1.bf16.msra.mxu1 %v5805_v4  ;;  %v1188_v4 = vld [vmem:[%s12732_s1 + $0x358] sm:$0xff]  ;;  %v8895_v0 = vsel %vm1056_vm5, %v12924_v5, %v8561_v11  ;;  %v12926_v5 = vunpack.i.h.bf16 %v8272_v41 }
 0x13a   : > { %5808 = vmatprep.subr.bf16.mxu1 %v5807_v12  ;;  %v1192_v12 = vld [vmem:[%s12732_s1 + $0x378] sm:$0xff]  ;;  %12925 = vst [vmem:[#allocation43_spill] sm:$0xff] %v8895_v0 }
 0x13b   : > { %v5815_v35 = vpack.c.bf16 %v1192_v12, %v1188_v4  ;;  %v1195_v4 = vld [vmem:[%s12732_s1 + $0x390] sm:$0xff] }
 0x13c   : > { %1717 = vmatmul.mubr.f32.gmra.mrb[22].mxu1 %v8874_v23  ;;  %v1199_v12 = vld [vmem:[%s12732_s1 + $0x3b0] sm:$0xff] }
 0x13d   : > { %5487 = vmatprep.mubr.msk.f32.mxu1 %vm1315_vm4, %v8561_v11  ;;  %5810 = vmatpush1.bf16.msra.mxu1 %v5809_v32  ;;  %v1196_v32 = vld [vmem:[%s12732_s1 + $0x398] sm:$0xff]  ;;  %v5821_v37 = vpack.c.bf16 %v1199_v12, %v1195_v4 }
 0x13e   : > { %5812 = vmatprep.subr.bf16.mxu1 %v5811_v3  ;;  %v1200_v3 = vld [vmem:[%s12732_s1 + $0x3b8] sm:$0xff] }
 0x13f   : > { %v5819_v24 = vpack.c.bf16 %v1200_v3, %v1196_v32  ;;  %v1207_v32 = vld [vmem:[%s12732_s1 + $0x3f0] sm:$0xff]  ;;  %v12927_v3 = vunpack.i.l.bf16 %v8294_v51 }
 0x140   : > { %1723 = vmatmul.mubr.f32.gmra.mrb[24].mxu1 %v8895_v0  ;;  %v8916_v0 = vsel %vm1056_vm5, %v12926_v5, %v8559_v57  ;;  %v5825_v4 = vpack.c.bf16 %v1207_v32, %v1203_v27  ;;  %v1211_v27 = vld [vmem:[%s12732_s1 + $0x410] sm:$0xff] }
 0x141   : > { %5488 = vmatprep.mubr.msk.f32.mxu1 %vm1315_vm4, %v8559_v57  ;;  %5814 = vmatpush1.bf16.msra.mxu1 %v5813_v2  ;;  %v1204_v2 = vld [vmem:[%s12732_s1 + $0x3d8] sm:$0xff]  ;;  %v8937_v5 = vsel %vm1056_vm5, %v12927_v3, %v8583_v8  ;;  %v1215_v32 = vld [vmem:[%s12732_s1 + $0x430] sm:$0xff] }
 0x142   : > { %5816 = vmatprep.subr.bf16.mxu1 %v5815_v35  ;;  %v1208_v35 = vld [vmem:[%s12732_s1 + $0x3f8] sm:$0xff] }
 0x143   : > { %v5823_v41 = vpack.c.bf16 %v1208_v35, %v1204_v2  ;;  %v12928_v2 = vunpack.i.h.bf16 %v8294_v51  ;;  %v8972_v51 = vpop.permute.xlu0 %953  ;;  %v1220_v3 = vld [vmem:[%s12732_s1 + $0x458] sm:$0xff] }
 0x144   : > { %1729 = vmatmul.mubr.f32.gmra.mrb[26].mxu1 %v8916_v0 }
 0x145   : > { %5489 = vmatprep.mubr.msk.f32.mxu1 %vm1315_vm4, %v8583_v8  ;;  %5818 = vmatpush1.bf16.msra.mxu1 %v5817_v30  ;;  %v1212_v30 = vld [vmem:[%s12732_s1 + $0x418] sm:$0xff]  ;;  %v8952_v35 = vsel %vm1056_vm5, %v12928_v2, %v8579_v16 }
 0x146   : > { %5820 = vmatprep.subr.bf16.mxu1 %v5819_v24  ;;  %v1216_v24 = vld [vmem:[%s12732_s1 + $0x438] sm:$0xff] }
 0x147   : > { %v5827_v12 = vpack.c.bf16 %v1216_v24, %v1212_v30  ;;  %v1224_v30 = vld [vmem:[%s12732_s1 + $0x478] sm:$0xff]  ;;  %v5829_v24 = vpack.c.bf16 %v1215_v32, %v1211_v27  ;;  %v1227_v32 = vld [vmem:[%s12732_s1 + $0x490] sm:$0xff] }
 0x148   : > { %1735 = vmatmul.mubr.f32.gmra.mrb[28].mxu1 %v8937_v5  ;;  %v1228_v2 = vld [vmem:[%s12732_s1 + $0x498] sm:$0xff] }
 0x149   : > { %5490 = vmatprep.mubr.msk.f32.mxu1 %vm1315_vm4, %v8579_v16  ;;  %5822 = vmatpush1.bf16.msra.mxu1 %v5821_v37  ;;  %v8980_v37 = vsel %vm1056_vm5, %v8422_v31, %v8972_v51 }
 0x14a   : > { %5824 = vmatprep.subr.bf16.mxu1 %v5823_v41  ;;  %v8982_v41 = vpop.permute.xlu1 %955 }
 0x14b   : > { %v8996_v31 = vsel %vm1056_vm5, %v8439_v19, %v8982_v41  ;;  %v1223_v19 = vld [vmem:[%s12732_s1 + $0x470] sm:$0xff] }
 0x14c   : > { %1741 = vmatmul.mubr.f32.gmra.mrb[30].mxu1 %v8952_v35  ;;  %12929 = vst [vmem:[#allocation44_spill] sm:$0xff] %v8996_v31 }
 0x14d   : > { %5491 = vmatprep.mubr.msk.f32.mxu1 %vm1315_vm4, %v8608_v52  ;;  %5826 = vmatpush1.bf16.msra.mxu1 %v5825_v4  ;;  %v5831_v4 = vpack.c.bf16 %v1224_v30, %v1220_v3  ;;  %v1231_v3 = vld [vmem:[%s12732_s1 + $0x4b0] sm:$0xff]  ;;  %v1236_v30 = vld [vmem:[%s12732_s1 + $0x4d8] sm:$0xff] }
 0x14e   : > { %5828 = vmatprep.subr.bf16.mxu1 %v5827_v12  ;;  %v1219_v12 = vld [vmem:[%s12732_s1 + $0x450] sm:$0xff] }
 0x150   : > { %1747 = vmatmul.mubr.f32.gmra.mrb[32].mxu1 %v8638_v36 }
 0x151   : > { %5492 = vmatprep.mubr.msk.f32.mxu1 %vm1315_vm4, %v8604_v59 }
 0x154   : > { %1753 = vmatmul.mubr.f32.gmra.mrb[34].mxu1 %v8620_v40 }
 0x155   : > { %5493 = vmatprep.mubr.msk.f32.mxu1 %vm1315_vm4, %v8645_v26 }
 0x158   : > { %1759 = vmatmul.mubr.f32.gmra.mrb[36].mxu1 %v8675_v45 }
 0x159   : > { %5494 = vmatprep.mubr.msk.f32.mxu1 %vm1315_vm4, %v8641_v7 }
 0x15c   : > { %1765 = vmatmul.mubr.f32.gmra.mrb[38].mxu1 %v8657_v50 }
 0x15d   : > { %5495 = vmatprep.mubr.msk.f32.mxu1 %vm1315_vm4, %v8682_v14 }
 0x160   : > { %1771 = vmatmul.mubr.f32.gmra.mrb[40].mxu1 %v8712_v56 }
 0x161   : > { %5496 = vmatprep.mubr.msk.f32.mxu1 %vm1315_vm4, %v8678_v63 }
 0x164   : > { %1777 = vmatmul.mubr.f32.gmra.mrb[42].mxu1 %v8694_v43 }
 0x165   : > { %5497 = vmatprep.mubr.msk.f32.mxu1 %vm1315_vm4, %v8972_v51 }
 0x168   : > { %1783 = vmatmul.mubr.f32.gmra.mrb[44].mxu1 %v8980_v37 }
 0x169   : > { %5498 = vmatprep.mubr.msk.f32.mxu1 %vm1315_vm4, %v8982_v41 }
 0x16c   : > { %1789 = vmatmul.mubr.f32.gmra.mrb[46].mxu1 %v8996_v31  ;;  %v1232_v31 = vld [vmem:[%s12732_s1 + $0x4b8] sm:$0xff] }
 0x16d   : > { %1859 = vmatprep.mubr.f32.mxu1 %v8033_v33  ;;  %v5833_v33 = vpack.c.bf16 %v1223_v19, %v1219_v12  ;;  %v5835_v27 = vpack.c.bf16 %v1232_v31, %v1228_v2  ;;  %v1244_v12 = vld [vmem:[%s12732_s1 + $0x518] sm:$0xff]  ;;  %v1243_v2 = vld [vmem:[%s12732_s1 + $0x510] sm:$0xff] }
 0x170   : > { %1860 = vmatmul.mubr.f32.vlgmr.msra.gmra.mrb[48].mxu1 %v8043_v39  ;;  %v1240_v39 = vld [vmem:[%s12732_s1 + $0x4f8] sm:$0xff] }
 0x171   : > { %5830 = vmatpush1.bf16.msra.mxu1 %v5829_v24  ;;  %1865 = vmatprep.mubr.f32.mxu1 %v8055_v48  ;;  %v5837_v48 = vpack.c.bf16 %v1231_v3, %v1227_v32  ;;  %v5839_v31 = vpack.c.bf16 %v1240_v39, %v1236_v30  ;;  %v1235_v24 = vld [vmem:[%s12732_s1 + $0x4d0] sm:$0xff]  ;;  %v1260_v39 = vld [vmem:[%s12732_s1 + $0x598] sm:$0xff] }
 0x172   : > { %5832 = vmatprep.subr.bf16.mxu1 %v5831_v4  ;;  %v1239_v4 = vld [vmem:[%s12732_s1 + $0x4f0] sm:$0xff] }
 0x173   : > { %v1251_v3 = vld [vmem:[%s12732_s1 + $0x550] sm:$0xff] }
 0x174   : > { %1866 = vmatmul.mubr.f32.gmra.mrb[50].mxu1 %v8076_v1  ;;  %v5841_v1 = vpack.c.bf16 %v1239_v4, %v1235_v24  ;;  %v1255_v30 = vld [vmem:[%s12732_s1 + $0x570] sm:$0xff]  ;;  %v1268_v4 = vld [vmem:[%s12732_s1 + $0x5d8] sm:$0xff] }
 0x175   : > { %1871 = vmatprep.mubr.f32.mxu1 %v8065_v58  ;;  %5834 = vmatpush1.bf16.msra.mxu1 %v5833_v33  ;;  %v1248_v58 = vld [vmem:[%s12732_s1 + $0x538] sm:$0xff]  ;;  %v1247_v33 = vld [vmem:[%s12732_s1 + $0x530] sm:$0xff] }
 0x176   : > { %5836 = vmatprep.subr.bf16.mxu1 %v5835_v27  ;;  %v5843_v19 = vpack.c.bf16 %v1248_v58, %v1244_v12  ;;  %v1252_v27 = vld [vmem:[%s12732_s1 + $0x558] sm:$0xff]  ;;  %v1263_v24 = vld [vmem:[%s12732_s1 + $0x5b0] sm:$0xff] }
 0x177   : > { %v1267_v58 = vld [vmem:[%s12732_s1 + $0x5d0] sm:$0xff] }
 0x178   : > { %1872 = vmatmul.mubr.f32.gmra.mrb[52].mxu1 %v8101_v15  ;;  %v1256_v15 = vld [vmem:[%s12732_s1 + $0x578] sm:$0xff] }
 0x179   : > { %1877 = vmatprep.mubr.f32.mxu1 %v8114_v21  ;;  %5838 = vmatpush1.bf16.msra.mxu1 %v5837_v48  ;;  %v5845_v21 = vpack.c.bf16 %v1247_v33, %v1243_v2  ;;  %v5847_v32 = vpack.c.bf16 %v1256_v15, %v1252_v27  ;;  %v1275_v33 = vld [vmem:[%s12732_s1 + $0x610] sm:$0xff]  ;;  %v1284_v15 = vld [vmem:[%s12732_s1 + $0x658] sm:$0xff] }
 0x17a   : > { %5840 = vmatprep.subr.bf16.mxu1 %v5839_v31  ;;  %v1259_v31 = vld [vmem:[%s12732_s1 + $0x590] sm:$0xff] }
 0x17b   : > { %v1279_v27 = vld [vmem:[%s12732_s1 + $0x630] sm:$0xff] }
 0x17c   : > { %1878 = vmatmul.mubr.f32.gmra.mrb[54].mxu1 %v8134_v38  ;;  %v5849_v38 = vpack.c.bf16 %v1255_v30, %v1251_v3  ;;  %v1287_v3 = vld [vmem:[%s12732_s1 + $0x670] sm:$0xff]  ;;  %v12930_v30 = vld [vmem:[#allocation4_spill] sm:$0xff] }
 0x17d   : > { %1883 = vmatprep.mubr.f32.mxu1 %v8123_v29  ;;  %5842 = vmatpush1.bf16.msra.mxu1 %v5841_v1  ;;  %v1264_v29 = vld [vmem:[%s12732_s1 + $0x5b8] sm:$0xff]  ;;  %v1271_v1 = vld [vmem:[%s12732_s1 + $0x5f0] sm:$0xff] }
 0x17e   : > { %5844 = vmatprep.subr.bf16.mxu1 %v5843_v19  ;;  %v5851_v48 = vpack.c.bf16 %v1264_v29, %v1260_v39  ;;  %v1276_v19 = vld [vmem:[%s12732_s1 + $0x618] sm:$0xff]  ;;  %v12931_v39 = vld [vmem:[#allocation3_spill] sm:$0xff]  ;;  %v12932_v29 = vld [vmem:[#allocation5_spill] sm:$0xff] }
 0x180   : > { %1884 = vmatmul.mubr.f32.gmra.mrb[56].mxu1 %v8159_v62  ;;  %v1272_v62 = vld [vmem:[%s12732_s1 + $0x5f8] sm:$0xff] }
 0x181   : > { %1889 = vmatprep.mubr.f32.mxu1 %v8172_v9  ;;  %5846 = vmatpush1.bf16.msra.mxu1 %v5845_v21  ;;  %v5853_v9 = vpack.c.bf16 %v1263_v24, %v1259_v31  ;;  %v5855_v12 = vpack.c.bf16 %v1272_v62, %v1268_v4  ;;  %v12936_v31 = vld [vmem:[#allocation9_spill] sm:$0xff]  ;;  %v12937_v24 = vld [vmem:[#allocation10_spill] sm:$0xff]  ;;  %v12938_v4 = vld [vmem:[#allocation12_spill] sm:$0xff] }
 0x182   : > { %5848 = vmatprep.subr.bf16.mxu1 %v5847_v32  ;;  %v1283_v32 = vld [vmem:[%s12732_s1 + $0x650] sm:$0xff]  ;;  %v12939_v62 = vld [vmem:[#allocation11_spill] sm:$0xff] }
 0x184   : > { %1890 = vmatmul.mubr.f32.gmra.mrb[58].mxu1 %v8195_v25  ;;  %v5857_v25 = vpack.c.bf16 %v1271_v1, %v1267_v58  ;;  %v12942_v58 = vld [vmem:[#allocation16_spill] sm:$0xff]  ;;  %v12943_v1 = vld [vmem:[#allocation15_spill] sm:$0xff] }
 0x185   : > { %1895 = vmatprep.mubr.f32.mxu1 %v8183_v13  ;;  %5850 = vmatpush1.bf16.msra.mxu1 %v5849_v38  ;;  %v1280_v13 = vld [vmem:[%s12732_s1 + $0x638] sm:$0xff]  ;;  %v12934_v38 = vld [vmem:[#allocation8_spill] sm:$0xff] }
 0x186   : > { %5852 = vmatprep.subr.bf16.mxu1 %v5851_v48  ;;  %v5859_v2 = vpack.c.bf16 %v1280_v13, %v1276_v19  ;;  %v12935_v48 = vld [vmem:[#allocation7_spill] sm:$0xff]  ;;  %v12944_v19 = vld [vmem:[#allocation17_spill] sm:$0xff]  ;;  %v12945_v13 = vld [vmem:[#allocation18_spill] sm:$0xff] }
 0x188   : > { %1896 = vmatmul.mubr.f32.gmra.mrb[60].mxu1 %v8214_v54  ;;  %v1288_v54 = vld [vmem:[%s12732_s1 + $0x678] sm:$0xff] }
 0x189   : > { %1901 = vmatprep.mubr.f32.mxu1 %v8227_v61  ;;  %5854 = vmatpush1.bf16.msra.mxu1 %v5853_v9  ;;  %v5861_v61 = vpack.c.bf16 %v1279_v27, %v1275_v33  ;;  %v5863_v21 = vpack.c.bf16 %v1288_v54, %v1284_v15  ;;  %v12940_v9 = vld [vmem:[#allocation13_spill] sm:$0xff]  ;;  %v12948_v33 = vld [vmem:[#allocation24_spill] sm:$0xff]  ;;  %v12950_v15 = vld [vmem:[#allocation27_spill] sm:$0xff] }
 0x18a   : > { %5856 = vmatprep.subr.bf16.mxu1 %v5855_v12  ;;  %v12941_v12 = vld [vmem:[#allocation14_spill] sm:$0xff]  ;;  %v12949_v27 = vld [vmem:[#allocation25_spill] sm:$0xff] }
 0x18b   : > { %v12951_v54 = vld [vmem:[#allocation26_spill] sm:$0xff] }
 0x18c   : > { %1902 = vmatmul.mubr.f32.gmra.mrb[62].mxu1 %v8251_v55  ;;  %v5865_v55 = vpack.c.bf16 %v1287_v3, %v1283_v32  ;;  %v12954_v32 = vld [vmem:[#allocation31_spill] sm:$0xff]  ;;  %v12955_v3 = vld [vmem:[#allocation30_spill] sm:$0xff] }
 0x18d   : > { %1907 = vmatprep.mubr.f32.mxu1 %v8245_v10  ;;  %5858 = vmatpush1.bf16.msra.mxu1 %v5857_v25  ;;  %v1292_v10 = vld [vmem:[%s12732_s1 + $0x698] sm:$0xf] }
 0x18e   : > { %5860 = vmatprep.subr.bf16.mxu1 %v5859_v2  ;;  %v12946_v25 = vld [vmem:[#allocation22_spill] sm:$0xff]  ;;  %v12947_v2 = vld [vmem:[#allocation21_spill] sm:$0xff] }
 0x190   : > { %1908 = vmatmul.mubr.f32.gmra.mrb[64].mxu1 %v8276_v60  ;;  %v1291_v60 = vld [vmem:[%s12732_s1 + $0x690] sm:$0xf] }
 0x191   : > { %1913 = vmatprep.mubr.f32.mxu1 %v8289_v18  ;;  %5862 = vmatpush1.bf16.msra.mxu1 %v5861_v61  ;;  %v12933_v18 = vld [vmem:[#allocation6_spill] sm:$0xff]  ;;  %v12952_v61 = vld [vmem:[#allocation28_spill] sm:$0xff] }
 0x192   : > { %5864 = vmatprep.subr.bf16.mxu1 %v5863_v21  ;;  %v12953_v21 = vld [vmem:[#allocation29_spill] sm:$0xff] }
 0x194   : > { %1914 = vmatmul.mubr.f32.gmra.mrb[66].mxu1 %v12930_v30  ;;  %v12958_v30 = vld [vmem:[#allocation34_spill] sm:$0xff] }
 0x195   : > { %1919 = vmatprep.mubr.f32.mxu1 %v12931_v39  ;;  %5866 = vmatpush1.bf16.msra.mxu1 %v5865_v55  ;;  %v12956_v55 = vld [vmem:[#allocation32_spill] sm:$0xff] }
 0x196   : > { %5499 = vmatprep.subr.msk.mxu1 %vm1364_vm3, %v1292_v10  ;;  %v12957_v10 = vld [vmem:[#allocation33_spill] sm:$0xff]  ;;  %v12959_v39 = vld [vmem:[#allocation20_spill] sm:$0xff] }
 0x198   : > { %1920 = vmatmul.mubr.f32.gmra.mrb[68].mxu1 %v12932_v29  ;;  %v12961_v29 = vld [vmem:[#allocation19_spill] sm:$0xff] }
 0x199   : > { %1925 = vmatprep.mubr.f32.mxu1 %v12933_v18  ;;  %5500 = vmatpush1.msk.msra.mxu1 %vm1364_vm3, %v1291_v60  ;;  %v12960_v60 = vld [vmem:[#allocation35_spill] sm:$0xff]  ;;  %v12962_v18 = vld [vmem:[#allocation36_spill] sm:$0xff] }
 0x19c   : > { %1926 = vmatmul.mubr.f32.gmra.mrb[70].mxu1 %v12934_v38  ;;  %v12963_v38 = vld [vmem:[#allocation23_spill] sm:$0xff] }
 0x19d   : > { %1931 = vmatprep.mubr.f32.mxu1 %v12935_v48  ;;  %v1295_v48 = vlaneseq }
 0x1a0   : > { %1932 = vmatmul.mubr.f32.gmra.mrb[72].mxu1 %v12936_v31  ;;  %v12964_v31 = vld [vmem:[#allocation37_spill] sm:$0xff] }
 0x1a1   : > { %1937 = vmatprep.mubr.f32.mxu1 %v12937_v24  ;;  %v9174_v24 = vshrl.u32 %v1295_v48, 7 }
 0x1a3   : > { %12965 = vst [vmem:[#allocation4_spill] sm:$0xff] %v9174_v24 }
 0x1a4   : > { %1938 = vmatmul.mubr.f32.gmra.mrb[74].mxu1 %v12938_v4  ;;  %v12966_v4 = vld [vmem:[#allocation38_spill] sm:$0xff] }
 0x1a5   : > { %1943 = vmatprep.mubr.f32.mxu1 %v12939_v62  ;;  %v12804_v62 = vsub.s32 0, %v9174_v24 }
 0x1a8   : > { %1944 = vmatmul.mubr.f32.gmra.mrb[76].mxu1 %v12940_v9  ;;  %v9183_v9 = vld [vmem:[%s12733_s2] sm:$0xf] }
 0x1a9   : > { %1949 = vmatprep.mubr.f32.mxu1 %v12941_v12  ;;  %v12803_v12 = vsub.s32 1, %v9174_v24 }
 0x1ac   : > { %1950 = vmatmul.mubr.f32.gmra.mrb[78].mxu1 %v12942_v58  ;;  %v12967_v58 = vld [vmem:[#allocation39_spill] sm:$0xff] }
 0x1ad   : > { %1955 = vmatprep.mubr.f32.mxu1 %v12943_v1  ;;  %v9197_v1 = vrot.slane %v9183_v9, %v12803_v12 }
 0x1b0   : > { %1956 = vmatmul.mubr.f32.gmra.mrb[80].mxu1 %v12944_v19 }
 0x1b1   : > { %1961 = vmatprep.mubr.f32.mxu1 %v12945_v13 }
 0x1b4   : > { %1962 = vmatmul.mubr.f32.gmra.mrb[82].mxu1 %v12946_v25 }
 0x1b5   : > { %1967 = vmatprep.mubr.f32.mxu1 %v12947_v2 }
 0x1b8   : > { %1968 = vmatmul.mubr.f32.gmra.mrb[84].mxu1 %v12948_v33 }
 0x1b9   : > { %1973 = vmatprep.mubr.f32.mxu1 %v12949_v27  ;;  %v12968_v27 = vld [vmem:[#allocation40_spill] sm:$0xff] }
 0x1bc   : > { %1974 = vmatmul.mubr.f32.gmra.mrb[86].mxu1 %v12950_v15 }
 0x1bd   : > { %1979 = vmatprep.mubr.f32.mxu1 %v12951_v54 }
 0x1c0   : > { %1980 = vmatmul.mubr.f32.gmra.mrb[88].mxu1 %v12952_v61 }
 0x1c1   : > { %1985 = vmatprep.mubr.f32.mxu1 %v12953_v21 }
 0x1c4   : > { %1986 = vmatmul.mubr.f32.gmra.mrb[90].mxu1 %v12954_v32 }
 0x1c5   : > { %1991 = vmatprep.mubr.f32.mxu1 %v12955_v3 }
 0x1c8   : > { %1992 = vmatmul.mubr.f32.gmra.mrb[92].mxu1 %v12956_v55 }
 0x1c9   : > { %1997 = vmatprep.mubr.f32.mxu1 %v12957_v10 }
 0x1cc   : > { %1998 = vmatmul.mubr.f32.gmra.mrb[94].mxu1 %v12958_v30 }
 0x1cd   : > { %5501 = vmatprep.mubr.msk.f32.mxu1 %vm1315_vm4, %v12959_v39 }
 0x1d0   : > { %2069 = vmatmul.mubr.f32.vlgmr.msra.gmra.mrb[48].mxu1 %v12960_v60 }
 0x1d1   : > { %5502 = vmatprep.mubr.msk.f32.mxu1 %vm1315_vm4, %v12961_v29  ;;  %v12971_v29 = vld [vmem:[#allocation41_spill] sm:$0xff] }
 0x1d4   : > { %2075 = vmatmul.mubr.f32.gmra.mrb[50].mxu1 %v12962_v18 }
 0x1d5   : > { %5503 = vmatprep.mubr.msk.f32.mxu1 %vm1315_vm4, %v12963_v38 }
 0x1d8   : > { %2081 = vmatmul.mubr.f32.gmra.mrb[52].mxu1 %v12964_v31 }
 0x1d9   : > { %5504 = vmatprep.mubr.msk.f32.mxu1 %vm1315_vm4, %v8475_v17  ;;  %v9192_v17 = vrot.slane %v9183_v9, %v12804_v62 }
 0x1dc   : > { %2087 = vmatmul.mubr.f32.gmra.mrb[54].mxu1 %v12966_v4 }
 0x1dd   : > { %5505 = vmatprep.mubr.msk.f32.mxu1 %vm1315_vm4, %v8497_v46 }
 0x1e0   : > { %2093 = vmatmul.mubr.f32.gmra.mrb[56].mxu1 %v12967_v58 }
 0x1e1   : > { %5506 = vmatprep.mubr.msk.f32.mxu1 %vm1315_vm4, %v8495_v6 }
 0x1e3   : > { %v1652_v46 = vpop.f32.mrb[0].mxu1 }
 0x1e4   : > { %v1654_v19 = vpop.f32.mrb[1].mxu1  ;;  %2099 = vmatmul.mubr.f32.gmra.mrb[58].mxu1 %v8748_v22  ;;  %v6527_v13 = vadd.f32 %v1652_v46, %v9192_v17 }
 0x1e5   : > { %5507 = vmatprep.mubr.msk.f32.mxu1 %vm1315_vm4, %v8515_v42  ;;  %v6528_v6 = vadd.f32 %v1654_v19, %v9197_v1 }
 0x1e6   : > { %v2213_v54 = vmax.f32 %v6527_v13, 0.0 }
 0x1e7   : > { %v1658_v25 = vpop.f32.mrb[2].mxu1  ;;  %v2214_v61 = vmax.f32 %v6528_v6, 0.0 }
 0x1e8   : > { %v6529_v2 = vadd.f32 %v1658_v25, %v9192_v17  ;;  %v1660_v33 = vpop.f32.mrb[3].mxu1  ;;  %2105 = vmatmul.mubr.f32.gmra.mrb[60].mxu1 %v12968_v27 }
 0x1e9   : > { %v6530_v15 = vadd.f32 %v1660_v33, %v9197_v1  ;;  %5508 = vmatprep.mubr.msk.f32.mxu1 %vm1315_vm4, %v8512_v47  ;;  %v12972_v33 = vld [vmem:[#allocation42_spill] sm:$0xff] }
 0x1ea   : > { %v2217_v22 = vmax.f32 %v6529_v2, 0.0 }
 0x1eb   : > { %v2218_v21 = vmax.f32 %v6530_v15, 0.0  ;;  %v1664_v42 = vpop.f32.mrb[4].mxu1 }
 0x1ec   : > { %v9209_v32 = vmax.f32 %v2213_v54, %v2217_v22  ;;  %v1666_v3 = vpop.f32.mrb[5].mxu1  ;;  %2111 = vmatmul.mubr.f32.gmra.mrb[62].mxu1 %v8790_v34  ;;  %v6531_v10 = vadd.f32 %v1664_v42, %v9192_v17 }
 0x1ed   : > { %v9212_v55 = vmax.f32 %v2214_v61, %v2218_v21  ;;  %5509 = vmatprep.mubr.msk.f32.mxu1 %vm1315_vm4, %v8532_v53  ;;  %v6532_v30 = vadd.f32 %v1666_v3, %v9197_v1 }
 0x1ee   : > { %12969 = vst [vmem:[#allocation3_spill] sm:$0xff] %v9209_v32  ;;  %v2221_v34 = vmax.f32 %v6531_v10, 0.0 }
 0x1ef   : > { %12970 = vst [vmem:[#allocation5_spill] sm:$0xff] %v9212_v55  ;;  %v1670_v47 = vpop.f32.mrb[6].mxu1  ;;  %v2222_v48 = vmax.f32 %v6532_v30, 0.0 }
 0x1f0   : > { %v6533_v39 = vadd.f32 %v1670_v47, %v9192_v17  ;;  %v1672_v60 = vpop.f32.mrb[7].mxu1  ;;  %2117 = vmatmul.mubr.f32.gmra.mrb[64].mxu1 %v12971_v29 }
 0x1f1   : > { %v6534_v18 = vadd.f32 %v1672_v60, %v9197_v1  ;;  %5510 = vmatprep.mubr.msk.f32.mxu1 %vm1315_vm4, %v8530_v28  ;;  %v12973_v60 = vld [vmem:[#allocation43_spill] sm:$0xff] }
 0x1f2   : > { %v2225_v38 = vmax.f32 %v6533_v39, 0.0 }
 0x1f3   : > { %v2226_v31 = vmax.f32 %v6534_v18, 0.0  ;;  %v1676_v53 = vpop.f32.mrb[8].mxu1 }
 0x1f4   : > { %v9223_v4 = vmax.f32 %v2221_v34, %v2225_v38  ;;  %v1678_v58 = vpop.f32.mrb[9].mxu1  ;;  %2123 = vmatmul.mubr.f32.gmra.mrb[66].mxu1 %v8832_v20  ;;  %v6535_v19 = vadd.f32 %v1676_v53, %v9192_v17 }
 0x1f5   : > { %v9226_v46 = vmax.f32 %v2222_v48, %v2226_v31  ;;  %5511 = vmatprep.mubr.msk.f32.mxu1 %vm1315_vm4, %v8547_v44  ;;  %v6536_v13 = vadd.f32 %v1678_v58, %v9197_v1 }
 0x1f6   : > { %v2229_v44 = vmax.f32 %v6535_v19, 0.0 }
 0x1f7   : > { %v1682_v28 = vpop.f32.mrb[10].mxu1  ;;  %v7074_v6 = vpack.i.bf16 %v9226_v46, %v9223_v4  ;;  %v2230_v15 = vmax.f32 %v6536_v13, 0.0 }
 0x1f8   : > { %v6537_v25 = vadd.f32 %v1682_v28, %v9192_v17  ;;  %v1684_v2 = vpop.f32.mrb[11].mxu1  ;;  %2129 = vmatmul.mubr.f32.gmra.mrb[68].mxu1 %v12972_v33 }
 0x1f9   : > { %v6538_v20 = vadd.f32 %v1684_v2, %v9197_v1  ;;  %5512 = vmatprep.mubr.msk.f32.mxu1 %vm1315_vm4, %v8544_v49  ;;  %7075 = vrot.lane.b32.xlu0 %v7074_v6, %s7462_s17 }
 0x1fa   : > { %v2233_v27 = vmax.f32 %v6537_v25, 0.0 }
 0x1fb   : > { %v2234_v54 = vmax.f32 %v6538_v20, 0.0  ;;  %v1688_v22 = vpop.f32.mrb[12].mxu1 }
 0x1fc   : > { %v9240_v61 = vmax.f32 %v2229_v44, %v2233_v27  ;;  %v1690_v21 = vpop.f32.mrb[13].mxu1  ;;  %2135 = vmatmul.mubr.f32.gmra.mrb[70].mxu1 %v8874_v23  ;;  %v6539_v49 = vadd.f32 %v1688_v22, %v9192_v17 }
 0x1fd   : > { %v9243_v42 = vmax.f32 %v2230_v15, %v2234_v54  ;;  %5513 = vmatprep.mubr.msk.f32.mxu1 %vm1315_vm4, %v8561_v11  ;;  %v6540_v3 = vadd.f32 %v1690_v21, %v9197_v1 }
 0x1fe   : > { %v2237_v11 = vmax.f32 %v6539_v49, 0.0 }
 0x1ff   : > { %v1694_v10 = vpop.f32.mrb[14].mxu1  ;;  %v7079_v30 = vpack.i.bf16 %v9243_v42, %v9240_v61  ;;  %v2238_v18 = vmax.f32 %v6540_v3, 0.0 }
 0x200   : > { %v6541_v47 = vadd.f32 %v1694_v10, %v9192_v17  ;;  %v1696_v39 = vpop.f32.mrb[15].mxu1  ;;  %2141 = vmatmul.mubr.f32.gmra.mrb[72].mxu1 %v12973_v60 }
 0x201   : > { %v6542_v23 = vadd.f32 %v1696_v39, %v9197_v1  ;;  %5514 = vmatprep.mubr.msk.f32.mxu1 %vm1315_vm4, %v8559_v57  ;;  %7080 = vrot.lane.b32.xlu1 %v7079_v30, %s7462_s17 }
 0x202   : > { %v2241_v29 = vmax.f32 %v6541_v47, 0.0 }
 0x203   : > { %v2242_v34 = vmax.f32 %v6542_v23, 0.0  ;;  %v1700_v38 = vpop.f32.mrb[16].mxu1 }
 0x204   : > { %v9257_v48 = vmax.f32 %v2237_v11, %v2241_v29  ;;  %v1702_v31 = vpop.f32.mrb[17].mxu1  ;;  %2147 = vmatmul.mubr.f32.gmra.mrb[74].mxu1 %v8916_v0  ;;  %v6543_v58 = vadd.f32 %v1700_v38, %v9192_v17 }
 0x205   : > { %v9260_v53 = vmax.f32 %v2238_v18, %v2242_v34  ;;  %5515 = vmatprep.mubr.msk.f32.mxu1 %vm1315_vm4, %v8583_v8  ;;  %v6544_v57 = vadd.f32 %v1702_v31, %v9197_v1 }
 0x206   : > { %v2245_v8 = vmax.f32 %v6543_v58, 0.0 }
 0x207   : > { %v1706_v19 = vpop.f32.mrb[18].mxu1  ;;  %v7084_v13 = vpack.i.bf16 %v9260_v53, %v9257_v48  ;;  %v2246_v2 = vmax.f32 %v6544_v57, 0.0 }
 0x208   : > { %v6545_v28 = vadd.f32 %v1706_v19, %v9192_v17  ;;  %v1708_v6 = vpop.f32.mrb[19].mxu1  ;;  %2153 = vmatmul.mubr.f32.gmra.mrb[76].mxu1 %v8937_v5 }
 0x209   : > { %v6546_v0 = vadd.f32 %v1708_v6, %v9197_v1  ;;  %5516 = vmatprep.mubr.msk.f32.mxu1 %vm1315_vm4, %v8579_v16  ;;  %7085 = vrot.lane.b32.xlu0 %v7084_v13, %s7462_s17 }
 0x20a   : > { %v2249_v25 = vmax.f32 %v6545_v28, 0.0 }
 0x20b   : > { %v2250_v33 = vmax.f32 %v6546_v0, 0.0  ;;  %v1712_v20 = vpop.f32.mrb[20].mxu1 }
 0x20c   : > { %v9274_v44 = vmax.f32 %v2245_v8, %v2249_v25  ;;  %v1714_v27 = vpop.f32.mrb[21].mxu1  ;;  %2159 = vmatmul.mubr.f32.gmra.mrb[78].mxu1 %v8952_v35  ;;  %v6547_v5 = vadd.f32 %v1712_v20, %v9192_v17 }
 0x20d   : > { %v9277_v15 = vmax.f32 %v2246_v2, %v2250_v33  ;;  %5517 = vmatprep.mubr.msk.f32.mxu1 %vm1315_vm4, %v8608_v52  ;;  %v6548_v16 = vadd.f32 %v1714_v27, %v9197_v1 }
 0x20e   : > { %v2253_v52 = vmax.f32 %v6547_v5, 0.0 }
 0x20f   : > { %v1718_v54 = vpop.f32.mrb[22].mxu1  ;;  %v7089_v22 = vpack.i.bf16 %v9277_v15, %v9274_v44  ;;  %v2254_v10 = vmax.f32 %v6548_v16, 0.0 }
 0x210   : > { %v6549_v21 = vadd.f32 %v1718_v54, %v9192_v17  ;;  %v1720_v49 = vpop.f32.mrb[23].mxu1  ;;  %2165 = vmatmul.mubr.f32.gmra.mrb[80].mxu1 %v8638_v36 }
 0x211   : > { %v6550_v35 = vadd.f32 %v1720_v49, %v9197_v1  ;;  %5518 = vmatprep.mubr.msk.f32.mxu1 %vm1315_vm4, %v8604_v59  ;;  %7090 = vrot.lane.b32.xlu1 %v7089_v22, %s7462_s17 }
 0x212   : > { %v2257_v3 = vmax.f32 %v6549_v21, 0.0 }
 0x213   : > { %v2258_v30 = vmax.f32 %v6550_v35, 0.0  ;;  %v1724_v47 = vpop.f32.mrb[24].mxu1 }
 0x214   : > { %v9291_v39 = vmax.f32 %v2253_v52, %v2257_v3  ;;  %v1726_v60 = vpop.f32.mrb[25].mxu1  ;;  %2171 = vmatmul.mubr.f32.gmra.mrb[82].mxu1 %v8620_v40  ;;  %v6551_v36 = vadd.f32 %v1724_v47, %v9192_v17 }
 0x215   : > { %v9294_v23 = vmax.f32 %v2254_v10, %v2258_v30  ;;  %5519 = vmatprep.mubr.msk.f32.mxu1 %vm1315_vm4, %v8645_v26  ;;  %v6552_v59 = vadd.f32 %v1726_v60, %v9197_v1 }
 0x216   : > { %v2261_v26 = vmax.f32 %v6551_v36, 0.0  ;;  %v12974_v36 = vld [vmem:[#allocation44_spill] sm:$0xff] }
 0x217   : > { %v1730_v11 = vpop.f32.mrb[26].mxu1  ;;  %v7094_v29 = vpack.i.bf16 %v9294_v23, %v9291_v39  ;;  %v2262_v31 = vmax.f32 %v6552_v59, 0.0 }
 0x218   : > { %v6553_v18 = vadd.f32 %v1730_v11, %v9192_v17  ;;  %v1732_v34 = vpop.f32.mrb[27].mxu1  ;;  %2177 = vmatmul.mubr.f32.gmra.mrb[84].mxu1 %v8675_v45 }
 0x219   : > { %v6554_v40 = vadd.f32 %v1732_v34, %v9197_v1  ;;  %5520 = vmatprep.mubr.msk.f32.mxu1 %vm1315_vm4, %v8641_v7  ;;  %7095 = vrot.lane.b32.xlu0 %v7094_v29, %s7462_s17 }
 0x21a   : > { %v2265_v38 = vmax.f32 %v6553_v18, 0.0 }
 0x21b   : > { %v2266_v58 = vmax.f32 %v6554_v40, 0.0  ;;  %v1736_v57 = vpop.f32.mrb[28].mxu1 }
 0x21c   : > { %v9308_v19 = vmax.f32 %v2261_v26, %v2265_v38  ;;  %v1738_v13 = vpop.f32.mrb[29].mxu1  ;;  %2183 = vmatmul.mubr.f32.gmra.mrb[86].mxu1 %v8657_v50  ;;  %v6555_v45 = vadd.f32 %v1736_v57, %v9192_v17 }
 0x21d   : > { %v9311_v28 = vmax.f32 %v2262_v31, %v2266_v58  ;;  %5521 = vmatprep.mubr.msk.f32.mxu1 %vm1315_vm4, %v8682_v14  ;;  %v6556_v7 = vadd.f32 %v1738_v13, %v9197_v1 }
 0x21e   : > { %v2269_v14 = vmax.f32 %v6555_v45, 0.0 }
 0x21f   : > { %v1742_v6 = vpop.f32.mrb[30].mxu1  ;;  %v7099_v0 = vpack.i.bf16 %v9311_v28, %v9308_v19  ;;  %v2270_v33 = vmax.f32 %v6556_v7, 0.0 }
 0x220   : > { %v6557_v8 = vadd.f32 %v1742_v6, %v9192_v17  ;;  %v1744_v25 = vpop.f32.mrb[31].mxu1  ;;  %2189 = vmatmul.mubr.f32.gmra.mrb[88].mxu1 %v8712_v56 }
 0x221   : > { %v6558_v50 = vadd.f32 %v1744_v25, %v9197_v1  ;;  %5522 = vmatprep.mubr.msk.f32.mxu1 %vm1315_vm4, %v8678_v63  ;;  %7100 = vrot.lane.b32.xlu1 %v7099_v0, %s7462_s17 }
 0x222   : > { %v2273_v2 = vmax.f32 %v6557_v8, 0.0 }
 0x223   : > { %v2274_v20 = vmax.f32 %v6558_v50, 0.0  ;;  %v1748_v27 = vpop.f32.mrb[32].mxu1 }
 0x224   : > { %v9325_v5 = vmax.f32 %v2269_v14, %v2273_v2  ;;  %v1750_v16 = vpop.f32.mrb[33].mxu1  ;;  %2195 = vmatmul.mubr.f32.gmra.mrb[90].mxu1 %v8694_v43  ;;  %v6559_v56 = vadd.f32 %v1748_v27, %v9192_v17 }
 0x225   : > { %v9328_v54 = vmax.f32 %v2270_v33, %v2274_v20  ;;  %5523 = vmatprep.mubr.msk.f32.mxu1 %vm1315_vm4, %v8972_v51  ;;  %v6560_v63 = vadd.f32 %v1750_v16, %v9197_v1 }
 0x226   : > { %v2277_v51 = vmax.f32 %v6559_v56, 0.0 }
 0x227   : > { %v1754_v22 = vpop.f32.mrb[34].mxu1  ;;  %v7104_v21 = vpack.i.bf16 %v9328_v54, %v9325_v5  ;;  %v2278_v3 = vmax.f32 %v6560_v63, 0.0 }
 0x228   : > { %v6561_v49 = vadd.f32 %v1754_v22, %v9192_v17  ;;  %v1756_v35 = vpop.f32.mrb[35].mxu1  ;;  %2201 = vmatmul.mubr.f32.gmra.mrb[92].mxu1 %v8980_v37 }
 0x229   : > { %v6562_v43 = vadd.f32 %v1756_v35, %v9197_v1  ;;  %5524 = vmatprep.mubr.msk.f32.mxu1 %vm1315_vm4, %v8982_v41  ;;  %7105 = vrot.lane.b32.xlu0 %v7104_v21, %s7462_s17 }
 0x22a   : > { %v2281_v52 = vmax.f32 %v6561_v49, 0.0 }
 0x22b   : > { %v2282_v10 = vmax.f32 %v6562_v43, 0.0  ;;  %v1760_v30 = vpop.f32.mrb[36].mxu1 }
 0x22c   : > { %v9342_v47 = vmax.f32 %v2277_v51, %v2281_v52  ;;  %v1762_v60 = vpop.f32.mrb[37].mxu1  ;;  %2207 = vmatmul.mubr.f32.gmra.mrb[94].mxu1 %v12974_v36  ;;  %v6563_v37 = vadd.f32 %v1760_v30, %v9192_v17 }
 0x22d   : > { %v9345_v59 = vmax.f32 %v2278_v3, %v2282_v10  ;;  %v6564_v11 = vadd.f32 %v1762_v60, %v9197_v1 }
 0x22e   : > { %v2285_v26 = vmax.f32 %v6563_v37, 0.0 }
 0x22f   : > { %v1766_v29 = vpop.f32.mrb[38].mxu1  ;;  %v7109_v41 = vpack.i.bf16 %v9345_v59, %v9342_v47  ;;  %v2286_v31 = vmax.f32 %v6564_v11, 0.0  ;;  %v3267_v11 = vld [vmem:[%s12734_s3 + $0x208] sm:$0xff] }
 0x230   : > { %v6565_v18 = vadd.f32 %v1766_v29, %v9192_v17  ;;  %v1768_v34 = vpop.f32.mrb[39].mxu1  ;;  %v3269_v29 = vld [vmem:[%s12734_s3 + $0x218] sm:$0xff] }
 0x231   : > { %v6566_v40 = vadd.f32 %v1768_v34, %v9197_v1  ;;  %7110 = vrot.lane.b32.xlu0 %v7109_v41, %s7462_s17  ;;  %v3268_v41 = vld [vmem:[%s12734_s3 + $0x210] sm:$0xff]  ;;  %v3271_v34 = vld [vmem:[%s12734_s3 + $0x228] sm:$0xff] }
 0x232   : > { %v2289_v38 = vmax.f32 %v6565_v18, 0.0 }
 0x233   : > { %v2290_v58 = vmax.f32 %v6566_v40, 0.0  ;;  %v1772_v57 = vpop.f32.mrb[40].mxu1  ;;  %v3273_v40 = vld [vmem:[%s12734_s3 + $0x238] sm:$0xff] }
 0x234   : > { %v9354_v13 = vmax.f32 %v2285_v26, %v2289_v38  ;;  %v1774_v45 = vpop.f32.mrb[41].mxu1  ;;  %v6567_v6 = vadd.f32 %v1772_v57, %v9192_v17  ;;  %v5935_v26 = vpack.c.bf16 %v3273_v40, %v3271_v34  ;;  %v3270_v38 = vld [vmem:[%s12734_s3 + $0x220] sm:$0xff]  ;;  %v3275_v57 = vld [vmem:[%s12734_s3 + $0x248] sm:$0xff]  ;;  %v3297_v40 = vld [vmem:[%s12734_s3 + $0x2f8] sm:$0xff] }
 0x235   : > { %v9356_v7 = vmax.f32 %v2286_v31, %v2290_v58  ;;  %v6568_v0 = vadd.f32 %v1774_v45, %v9197_v1  ;;  %v3272_v31 = vld [vmem:[%s12734_s3 + $0x230] sm:$0xff]  ;;  %v3277_v45 = vld [vmem:[%s12734_s3 + $0x258] sm:$0xff]  ;;  %v3295_v34 = vld [vmem:[%s12734_s3 + $0x2e8] sm:$0xff] }
 0x236   : > { %v2293_v2 = vmax.f32 %v6567_v6, 0.0  ;;  %v5937_v58 = vpack.c.bf16 %v3272_v31, %v3270_v38  ;;  %v5939_v6 = vpack.c.bf16 %v3277_v45, %v3275_v57  ;;  %v3294_v38 = vld [vmem:[%s12734_s3 + $0x2e0] sm:$0xff]  ;;  %v3296_v31 = vld [vmem:[%s12734_s3 + $0x2f0] sm:$0xff]  ;;  %v3299_v57 = vld [vmem:[%s12734_s3 + $0x308] sm:$0xff] }
 0x237   : > { %v1778_v8 = vpop.f32.mrb[42].mxu1  ;;  %v2294_v20 = vmax.f32 %v6568_v0, 0.0  ;;  %v3274_v0 = vld [vmem:[%s12734_s3 + $0x240] sm:$0xff]  ;;  %v3301_v45 = vld [vmem:[%s12734_s3 + $0x318] sm:$0xff] }
 0x238   : > { %v6569_v25 = vadd.f32 %v1778_v8, %v9192_v17  ;;  %v1780_v50 = vpop.f32.mrb[43].mxu1  ;;  %v3276_v8 = vld [vmem:[%s12734_s3 + $0x250] sm:$0xff] }
 0x239   : > { %v6570_v14 = vadd.f32 %v1780_v50, %v9197_v1  ;;  %v3279_v50 = vld [vmem:[%s12734_s3 + $0x268] sm:$0xff] }
 0x23a   : > { %v2297_v33 = vmax.f32 %v6569_v25, 0.0  ;;  %v5941_v25 = vpack.c.bf16 %v3276_v8, %v3274_v0  ;;  %v5963_v0 = vpack.c.bf16 %v3301_v45, %v3299_v57  ;;  %v3300_v8 = vld [vmem:[%s12734_s3 + $0x310] sm:$0xff]  ;;  %v3325_v57 = vld [vmem:[%s12734_s3 + $0x3d8] sm:$0xff] }
 0x23b   : > { %v2298_v27 = vmax.f32 %v6570_v14, 0.0  ;;  %v1784_v16 = vpop.f32.mrb[44].mxu1  ;;  %v3281_v14 = vld [vmem:[%s12734_s3 + $0x278] sm:$0xff] }
 0x23c   : > { %v9362_v56 = vmax.f32 %v2293_v2, %v2297_v33  ;;  %v1786_v63 = vpop.f32.mrb[45].mxu1  ;;  %v6571_v21 = vadd.f32 %v1784_v16, %v9192_v17  ;;  %v5943_v2 = vpack.c.bf16 %v3281_v14, %v3279_v50  ;;  %v3278_v33 = vld [vmem:[%s12734_s3 + $0x260] sm:$0xff]  ;;  %v3283_v16 = vld [vmem:[%s12734_s3 + $0x288] sm:$0xff]  ;;  %v3305_v50 = vld [vmem:[%s12734_s3 + $0x338] sm:$0xff] }
 0x23d   : > { %v9364_v22 = vmax.f32 %v2294_v20, %v2298_v27  ;;  %v6572_v49 = vadd.f32 %v1786_v63, %v9197_v1  ;;  %v3280_v20 = vld [vmem:[%s12734_s3 + $0x270] sm:$0xff]  ;;  %v3285_v63 = vld [vmem:[%s12734_s3 + $0x298] sm:$0xff] }
 0x23e   : > { %12975 = vst [vmem:[#allocation6_spill] sm:$0xff] %v9362_v56  ;;  %v2301_v3 = vmax.f32 %v6571_v21, 0.0  ;;  %v5945_v27 = vpack.c.bf16 %v3280_v20, %v3278_v33  ;;  %v5947_v21 = vpack.c.bf16 %v3285_v63, %v3283_v16  ;;  %v3302_v33 = vld [vmem:[%s12734_s3 + $0x320] sm:$0xff]  ;;  %v3304_v20 = vld [vmem:[%s12734_s3 + $0x330] sm:$0xff]  ;;  %v3309_v16 = vld [vmem:[%s12734_s3 + $0x358] sm:$0xff] }
 0x23f   : > { %12976 = vst [vmem:[#allocation8_spill] sm:$0xff] %v9364_v22  ;;  %v1790_v35 = vpop.f32.mrb[46].mxu1  ;;  %v2302_v30 = vmax.f32 %v6572_v49, 0.0  ;;  %v3282_v49 = vld [vmem:[%s12734_s3 + $0x280] sm:$0xff]  ;;  %v5969_v63 = vpack.c.bf16 %v3304_v20, %v3302_v33 }
 0x240   : > { %v6573_v43 = vadd.f32 %v1790_v35, %v9192_v17  ;;  %v1792_v51 = vpop.f32.mrb[47].mxu1  ;;  %v5931_v17 = vpack.c.bf16 %v3269_v29, %v3267_v11  ;;  %v3284_v35 = vld [vmem:[%s12734_s3 + $0x290] sm:$0xff]  ;;  %v3291_v11 = vld [vmem:[%s12734_s3 + $0x2c8] sm:$0xff]  ;;  %v3293_v29 = vld [vmem:[%s12734_s3 + $0x2d8] sm:$0xff] }
 0x241   : > { %v6574_v52 = vadd.f32 %v1792_v51, %v9197_v1  ;;  %v3266_v1 = vld [vmem:[%s12734_s3 + $0x200] sm:$0xff]  ;;  %v3287_v51 = vld [vmem:[%s12734_s3 + $0x2a8] sm:$0xff] }
 0x242   : > { %v2305_v10 = vmax.f32 %v6573_v43, 0.0  ;;  %v5933_v18 = vpack.c.bf16 %v3268_v41, %v3266_v1  ;;  %5932 = vmatprep.subr.bf16.mxu0 %v5931_v17  ;;  %v5949_v43 = vpack.c.bf16 %v3284_v35, %v3282_v49  ;;  %v5955_v17 = vpack.c.bf16 %v3293_v29, %v3291_v11  ;;  %v3290_v1 = vld [vmem:[%s12734_s3 + $0x2c0] sm:$0xff]  ;;  %v3292_v41 = vld [vmem:[%s12734_s3 + $0x2d0] sm:$0xff]  ;;  %v3317_v11 = vld [vmem:[%s12734_s3 + $0x398] sm:$0xff] }
 0x243   : > { %v2306_v60 = vmax.f32 %v6574_v52, 0.0  ;;  %v3289_v52 = vld [vmem:[%s12734_s3 + $0x2b8] sm:$0xff]  ;;  %v3306_v49 = vld [vmem:[%s12734_s3 + $0x340] sm:$0xff]  ;;  %v3308_v35 = vld [vmem:[%s12734_s3 + $0x350] sm:$0xff] }
 0x244   : > { %v9370_v36 = vmax.f32 %v2301_v3, %v2305_v10  ;;  %5934 = vmatpush1.bf16.msra.mxu0 %v5933_v18  ;;  %v5951_v3 = vpack.c.bf16 %v3289_v52, %v3287_v51  ;;  %v3286_v10 = vld [vmem:[%s12734_s3 + $0x2a0] sm:$0xff]  ;;  %v5957_v18 = vpack.c.bf16 %v3292_v41, %v3290_v1  ;;  %v3313_v51 = vld [vmem:[%s12734_s3 + $0x378] sm:$0xff]  ;;  %v5973_v52 = vpack.c.bf16 %v3308_v35, %v3306_v49  ;;  %v3316_v41 = vld [vmem:[%s12734_s3 + $0x390] sm:$0xff] }
 0x245   : > { %v9372_v37 = vmax.f32 %v2302_v30, %v2306_v60  ;;  %5936 = vmatprep.subr.bf16.mxu0 %v5935_v26  ;;  %v3288_v30 = vld [vmem:[%s12734_s3 + $0x2b0] sm:$0xff]  ;;  %v5959_v26 = vpack.c.bf16 %v3297_v40, %v3295_v34  ;;  %v3314_v1 = vld [vmem:[%s12734_s3 + $0x380] sm:$0xff]  ;;  %v3321_v34 = vld [vmem:[%s12734_s3 + $0x3b8] sm:$0xff] }
 0x246   : > { %12977 = vst [vmem:[#allocation7_spill] sm:$0xff] %v9370_v36  ;;  %v5953_v60 = vpack.c.bf16 %v3288_v30, %v3286_v10  ;;  %v3310_v10 = vld [vmem:[%s12734_s3 + $0x360] sm:$0xff]  ;;  %v3312_v30 = vld [vmem:[%s12734_s3 + $0x370] sm:$0xff]  ;;  %v5981_v40 = vpack.c.bf16 %v3316_v41, %v3314_v1 }
 0x247   : > { %12978 = vst [vmem:[#allocation9_spill] sm:$0xff] %v9372_v37  ;;  %v5977_v29 = vpack.c.bf16 %v3312_v30, %v3310_v10  ;;  %v3326_v35 = vld [vmem:[%s12734_s3 + $0x3e0] sm:$0xff] }
 0x248   : > { %5938 = vmatpush1.bf16.msra.mxu0 %v5937_v58  ;;  %v5961_v58 = vpack.c.bf16 %v3296_v31, %v3294_v38  ;;  %v3318_v38 = vld [vmem:[%s12734_s3 + $0x3a0] sm:$0xff]  ;;  %v3320_v31 = vld [vmem:[%s12734_s3 + $0x3b0] sm:$0xff] }
 0x249   : > { %5940 = vmatprep.subr.bf16.mxu0 %v5939_v6  ;;  %v3298_v6 = vld [vmem:[%s12734_s3 + $0x300] sm:$0xff]  ;;  %v5985_v45 = vpack.c.bf16 %v3320_v31, %v3318_v38 }
 0x24a   : > { %v5965_v14 = vpack.c.bf16 %v3300_v8, %v3298_v6  ;;  %v3324_v8 = vld [vmem:[%s12734_s3 + $0x3d0] sm:$0xff] }
 0x24c   : > { %5942 = vmatpush1.bf16.msra.mxu0 %v5941_v25  ;;  %v3303_v25 = vld [vmem:[%s12734_s3 + $0x328] sm:$0xff] }
 0x24d   : > { %5944 = vmatprep.subr.bf16.mxu0 %v5943_v2  ;;  %v5967_v2 = vpack.c.bf16 %v3305_v50, %v3303_v25  ;;  %v1305_v25 = vsub.s32 2, %v9174_v24  ;;  %v1309_v50 = vsub.s32 3, %v9174_v24 }
 0x24f   : > { %v9559_v33 = vrot.slane %v9183_v9, %v1305_v25 }
 0x250   : > { %5946 = vmatpush1.bf16.msra.mxu0 %v5945_v27  ;;  %v3307_v27 = vld [vmem:[%s12734_s3 + $0x348] sm:$0xff] }
 0x251   : > { %5948 = vmatprep.subr.bf16.mxu0 %v5947_v21  ;;  %v5971_v21 = vpack.c.bf16 %v3309_v16, %v3307_v27  ;;  %v9562_v27 = vrot.slane %v9183_v9, %v1309_v50  ;;  %v3327_v16 = vld [vmem:[%s12734_s3 + $0x3e8] sm:$0xff]  ;;  %v3328_v9 = vld [vmem:[%s12734_s3 + $0x3f0] sm:$0xff] }
 0x254   : > { %5950 = vmatpush1.bf16.msra.mxu0 %v5949_v43  ;;  %v3311_v43 = vld [vmem:[%s12734_s3 + $0x368] sm:$0xff] }
 0x255   : > { %5952 = vmatprep.subr.bf16.mxu0 %v5951_v3  ;;  %v5975_v3 = vpack.c.bf16 %v3313_v51, %v3311_v43  ;;  %v5993_v51 = vpack.c.bf16 %v3328_v9, %v3326_v35 }
 0x258   : > { %5954 = vmatpush1.bf16.msra.mxu0 %v5953_v60  ;;  %v3315_v60 = vld [vmem:[%s12734_s3 + $0x388] sm:$0xff] }
 0x259   : > { %5956 = vmatprep.subr.bf16.mxu0 %v5955_v17  ;;  %v5979_v17 = vpack.c.bf16 %v3317_v11, %v3315_v60 }
 0x25c   : > { %5958 = vmatpush1.bf16.msra.mxu0 %v5957_v18  ;;  %v3319_v18 = vld [vmem:[%s12734_s3 + $0x3a8] sm:$0xff] }
 0x25d   : > { %5960 = vmatprep.subr.bf16.mxu0 %v5959_v26  ;;  %v5983_v26 = vpack.c.bf16 %v3321_v34, %v3319_v18 }
 0x260   : > { %5962 = vmatpush1.bf16.msra.mxu0 %v5961_v58  ;;  %v3323_v58 = vld [vmem:[%s12734_s3 + $0x3c8] sm:$0xff] }
 0x261   : > { %5964 = vmatprep.subr.bf16.mxu0 %v5963_v0  ;;  %v5987_v6 = vpack.c.bf16 %v3325_v57, %v3323_v58  ;;  %v3322_v0 = vld [vmem:[%s12734_s3 + $0x3c0] sm:$0xff] }
 0x264   : > { %5966 = vmatpush1.bf16.msra.mxu0 %v5965_v14  ;;  %v5989_v14 = vpack.c.bf16 %v3324_v8, %v3322_v0 }
 0x265   : > { %5968 = vmatprep.subr.bf16.mxu0 %v5967_v2 }
 0x268   : > { %5970 = vmatpush1.bf16.msra.mxu0 %v5969_v63  ;;  %v3329_v63 = vld [vmem:[%s12734_s3 + $0x3f8] sm:$0xff] }
 0x269   : > { %5972 = vmatprep.subr.bf16.mxu0 %v5971_v21  ;;  %v5991_v49 = vpack.c.bf16 %v3329_v63, %v3327_v16 }
 0x26b   : > { %v9556_v2 = vpop.permute.xlu0 %7075 }
 0x26c   : > { %5974 = vmatpush1.bf16.msra.mxu0 %v5973_v52  ;;  %v12811_v18 = vunpack.i.h.bf16 %v9556_v2  ;;  %v7077_v34 = vunpack.i.l.bf16 %v9556_v2 }
 0x26d   : > { %5976 = vmatprep.subr.bf16.mxu0 %v5975_v3 }
 0x270   : > { %5978 = vmatpush1.bf16.msra.mxu0 %v5977_v29 }
 0x271   : > { %5980 = vmatprep.subr.bf16.mxu0 %v5979_v17 }
 0x273   : > { %v9579_v3 = vpop.permute.xlu1 %7080 }
 0x274   : > { %5982 = vmatpush1.bf16.msra.mxu0 %v5981_v40  ;;  %v12810_v0 = vunpack.i.h.bf16 %v9579_v3  ;;  %v7082_v8 = vunpack.i.l.bf16 %v9579_v3 }
 0x275   : > { %5984 = vmatprep.subr.bf16.mxu0 %v5983_v26 }
 0x278   : > { %5986 = vmatpush1.bf16.msra.mxu0 %v5985_v45 }
 0x279   : > { %5988 = vmatprep.subr.bf16.mxu0 %v5987_v6 }
 0x27b   : > { %v9576_v43 = vpop.permute.xlu0 %7085 }
 0x27c   : > { %5990 = vmatpush1.bf16.msra.mxu0 %v5989_v14  ;;  %v12809_v58 = vunpack.i.h.bf16 %v9576_v43  ;;  %v7087_v57 = vunpack.i.l.bf16 %v9576_v43 }
 0x27d   : > { %5992 = vmatprep.subr.bf16.mxu0 %v5991_v49  ;;  %v2505_v49 = vsel %vm2501_vm6, %v7077_v34, %v12811_v18 }
 0x27e   : > { %v2511_v35 = vsel %vm2501_vm6, %v7087_v57, %v12809_v58  ;;  %v9626_v57 = vmax.f32 %v9223_v4, %v2505_v49 }
 0x27f   : > { %v9623_v34 = vmax.f32 %v9257_v48, %v2511_v35 }
 0x280   : > { %5994 = vmatpush1.bf16.msra.mxu0 %v5993_v51  ;;  %12980 = vst [vmem:[#allocation12_spill] sm:$0xff] %v9626_v57 }
 0x281   : > { %12979 = vst [vmem:[#allocation10_spill] sm:$0xff] %v9623_v34 }
 0x283   : > { %v9588_v40 = vpop.permute.xlu1 %7090 }
 0x28b   : > { %v9583_v29 = vpop.permute.xlu0 %7095 }
 0x29b   : > { %v9596_v25 = vpop.permute.xlu0 %7105 }
 0x29c   : > { %v12805_v9 = vunpack.i.h.bf16 %v9596_v25  ;;  %v7107_v51 = vunpack.i.l.bf16 %v9596_v25 }
 0x2a3   : > { %v2070_v20 = vpop.f32.mrb[48].mxu1  ;;  %v9734_v58 = vpop.permute.xlu0 %7110 }
 0x2a4   : > { %v2072_v21 = vpop.f32.mrb[49].mxu1  ;;  %v6575_v52 = vadd.f32 %v2070_v20, %v9559_v33  ;;  %v9601_v20 = vpop.permute.xlu1 %7100 }
 0x2a5   : > { %v6576_v10 = vadd.f32 %v2072_v21, %v9562_v27 }
 0x2a6   : > { %v2215_v1 = vmax.f32 %v6575_v52, 0.0 }
 0x2a7   : > { %v2076_v30 = vpop.f32.mrb[50].mxu1  ;;  %v2216_v26 = vmax.f32 %v6576_v10, 0.0 }
 0x2a8   : > { %v6577_v60 = vadd.f32 %v2076_v30, %v9559_v33  ;;  %v2078_v11 = vpop.f32.mrb[51].mxu1  ;;  %v2508_v30 = vsel %vm2501_vm6, %v7082_v8, %v12810_v0 }
 0x2a9   : > { %v6578_v17 = vadd.f32 %v2078_v11, %v9562_v27  ;;  %v12806_v11 = vunpack.i.h.bf16 %v9601_v20  ;;  %v9638_v48 = vmax.f32 %v9240_v61, %v2508_v30  ;;  %v12807_v61 = vunpack.i.h.bf16 %v9583_v29 }
 0x2aa   : > { %v2219_v41 = vmax.f32 %v6577_v60, 0.0 }
 0x2ab   : > { %v2220_v38 = vmax.f32 %v6578_v17, 0.0  ;;  %v2082_v31 = vpop.f32.mrb[52].mxu1  ;;  %v7102_v17 = vunpack.i.l.bf16 %v9601_v20  ;;  %12981 = vst [vmem:[#allocation11_spill] sm:$0xff] %v9638_v48 }
 0x2ac   : > { %v9592_v45 = vmax.f32 %v2215_v1, %v2219_v41  ;;  %v2084_v6 = vpop.f32.mrb[53].mxu1  ;;  %v6579_v14 = vadd.f32 %v2082_v31, %v9559_v33 }
 0x2ad   : > { %v9598_v50 = vmax.f32 %v2216_v26, %v2220_v38  ;;  %v6580_v16 = vadd.f32 %v2084_v6, %v9562_v27  ;;  %v2523_v6 = vsel %vm2501_vm6, %v7107_v51, %v12805_v9  ;;  %v2520_v4 = vsel %vm2501_vm6, %v7102_v17, %v12806_v11 }
 0x2ae   : > { %v2223_v1 = vmax.f32 %v6579_v14, 0.0  ;;  %v9656_v17 = vmax.f32 %v9308_v19, %v2520_v4 }
 0x2af   : > { %v2088_v63 = vpop.f32.mrb[54].mxu1  ;;  %v7114_v21 = vpack.i.bf16 %v9592_v45, %v9598_v50  ;;  %v2224_v26 = vmax.f32 %v6580_v16, 0.0  ;;  %v9645_v16 = vmax.f32 %v9325_v5, %v2523_v6 }
 0x2b0   : > { %v6581_v52 = vadd.f32 %v2088_v63, %v9559_v33  ;;  %v2090_v10 = vpop.f32.mrb[55].mxu1  ;;  %12982 = vst [vmem:[#allocation13_spill] sm:$0xff] %v9656_v17 }
 0x2b1   : > { %v6582_v60 = vadd.f32 %v2090_v10, %v9562_v27  ;;  %7115 = vrot.lane.b32.xlu1 %v7114_v21, %s7462_s17  ;;  %v7097_v10 = vunpack.i.l.bf16 %v9583_v29 }
 0x2b2   : > { %v2227_v41 = vmax.f32 %v6581_v52, 0.0  ;;  %v7124_v52 = vpack.i.bf16 %v9623_v34, %v9638_v48 }
 0x2b3   : > { %v2228_v38 = vmax.f32 %v6582_v60, 0.0  ;;  %v2094_v31 = vpop.f32.mrb[56].mxu1  ;;  %v2517_v19 = vsel %vm2501_vm6, %v7097_v10, %v12807_v61 }
 0x2b4   : > { %v9631_v8 = vmax.f32 %v2223_v1, %v2227_v41  ;;  %v2096_v63 = vpop.f32.mrb[57].mxu1  ;;  %v6583_v14 = vadd.f32 %v2094_v31, %v9559_v33  ;;  %v12808_v1 = vunpack.i.h.bf16 %v9588_v40  ;;  %v7092_v41 = vunpack.i.l.bf16 %v9588_v40 }
 0x2b5   : > { %v9633_v21 = vmax.f32 %v2224_v26, %v2228_v38  ;;  %2666 = vrot.lane.b32.xlu1 %v9626_v57, %s7463_s24  ;;  %v6584_v49 = vadd.f32 %v2096_v63, %v9562_v27 }
 0x2b6   : > { %v2231_v26 = vmax.f32 %v6583_v14, 0.0  ;;  %v2514_v14 = vsel %vm2501_vm6, %v7092_v41, %v12808_v1 }
 0x2b7   : > { %v2100_v35 = vpop.f32.mrb[58].mxu1  ;;  %v7119_v51 = vpack.i.bf16 %v9633_v21, %v9631_v8  ;;  %v2232_v31 = vmax.f32 %v6584_v49, 0.0 }
 0x2b8   : > { %v6585_v30 = vadd.f32 %v2100_v35, %v9559_v33  ;;  %v2102_v60 = vpop.f32.mrb[59].mxu1  ;;  %v7139_v35 = vpack.i.bf16 %v9645_v16, %v9656_v17 }
 0x2b9   : > { %v6586_v5 = vadd.f32 %v2102_v60, %v9562_v27  ;;  %7120 = vrot.lane.b32.xlu0 %v7119_v51, %s7462_s17  ;;  %7125 = vrot.lane.b32.xlu1 %v7124_v52, %s7463_s24 }
 0x2ba   : > { %v2235_v38 = vmax.f32 %v6585_v30, 0.0  ;;  %v9678_v30 = vmax.f32 %v9291_v39, %v2517_v19 }
 0x2bb   : > { %v2236_v6 = vmax.f32 %v6586_v5, 0.0  ;;  %v2106_v63 = vpop.f32.mrb[60].mxu1 }
 0x2bc   : > { %v9668_v4 = vmax.f32 %v2231_v26, %v2235_v38  ;;  %v2108_v51 = vpop.f32.mrb[61].mxu1  ;;  %v6587_v49 = vadd.f32 %v2106_v63, %v9559_v33  ;;  %12983 = vst [vmem:[#allocation14_spill] sm:$0xff] %v9678_v30 }
 0x2bd   : > { %v9670_v52 = vmax.f32 %v2232_v31, %v2236_v6  ;;  %7140 = vrot.lane.b32.xlu1 %v7139_v35, %s7463_s24  ;;  %v6588_v60 = vadd.f32 %v2108_v51, %v9562_v27  ;;  %v9685_v31 = vmax.f32 %v9274_v44, %v2514_v14 }
 0x2be   : > { %v2239_v41 = vmax.f32 %v6587_v49, 0.0 }
 0x2bf   : > { %v2112_v5 = vpop.f32.mrb[62].mxu1  ;;  %v7129_v10 = vpack.i.bf16 %v9668_v4, %v9670_v52  ;;  %12984 = vst [vmem:[#allocation16_spill] sm:$0xff] %v9685_v31  ;;  %v2240_v39 = vmax.f32 %v6588_v60, 0.0  ;;  %v7134_v51 = vpack.i.bf16 %v9678_v30, %v9685_v31 }
 0x2c0   : > { %v6589_v26 = vadd.f32 %v2112_v5, %v9559_v33  ;;  %v2114_v38 = vpop.f32.mrb[63].mxu1 }
 0x2c1   : > { %v6590_v6 = vadd.f32 %v2114_v38, %v9562_v27  ;;  %7130 = vrot.lane.b32.xlu0 %v7129_v10, %s7462_s17 }
 0x2c2   : > { %v2243_v63 = vmax.f32 %v6589_v26, 0.0 }
 0x2c3   : > { %v2244_v35 = vmax.f32 %v6590_v6, 0.0  ;;  %v2118_v19 = vpop.f32.mrb[64].mxu1 }
 0x2c4   : > { %v9691_v12 = vmax.f32 %v2239_v41, %v2243_v63  ;;  %v2120_v62 = vpop.f32.mrb[65].mxu1  ;;  %v6591_v44 = vadd.f32 %v2118_v19, %v9559_v33 }
 0x2c5   : > { %v9693_v5 = vmax.f32 %v2240_v39, %v2244_v35  ;;  %7135 = vrot.lane.b32.xlu0 %v7134_v51, %s7463_s24  ;;  %v6592_v14 = vadd.f32 %v2120_v62, %v9562_v27 }
 0x2c6   : > { %v2247_v6 = vmax.f32 %v6591_v44, 0.0 }
 0x2c7   : > { %v2124_v10 = vpop.f32.mrb[66].mxu1  ;;  %v7144_v49 = vpack.i.bf16 %v9691_v12, %v9693_v5  ;;  %v2248_v63 = vmax.f32 %v6592_v14, 0.0 }
 0x2c8   : > { %v6593_v60 = vadd.f32 %v2124_v10, %v9559_v33  ;;  %v2126_v26 = vpop.f32.mrb[67].mxu1 }
 0x2c9   : > { %v6594_v38 = vadd.f32 %v2126_v26, %v9562_v27  ;;  %7145 = vrot.lane.b32.xlu1 %v7144_v49, %s7462_s17 }
 0x2ca   : > { %v2251_v41 = vmax.f32 %v6593_v60, 0.0 }
 0x2cb   : > { %v2252_v39 = vmax.f32 %v6594_v38, 0.0  ;;  %v2130_v35 = vpop.f32.mrb[68].mxu1 }
 0x2cc   : > { %v9703_v51 = vmax.f32 %v2247_v6, %v2251_v41  ;;  %v2132_v19 = vpop.f32.mrb[69].mxu1  ;;  %v6595_v9 = vadd.f32 %v2130_v35, %v9559_v33 }
 0x2cd   : > { %v9705_v62 = vmax.f32 %v2248_v63, %v2252_v39  ;;  %v6596_v10 = vadd.f32 %v2132_v19, %v9562_v27 }
 0x2ce   : > { %2441 = vrot.lane.b32.xlu0 %v9703_v51, %s7462_s17  ;;  %v2255_v60 = vmax.f32 %v6595_v9, 0.0 }
 0x2cf   : > { %v2136_v26 = vpop.f32.mrb[70].mxu1  ;;  %2443 = vrot.lane.b32.xlu1 %v9705_v62, %s7462_s17  ;;  %v2256_v6 = vmax.f32 %v6596_v10, 0.0 }
 0x2d0   : > { %v6597_v44 = vadd.f32 %v2136_v26, %v9559_v33  ;;  %v2138_v14 = vpop.f32.mrb[71].mxu1 }
 0x2d1   : > { %v6598_v49 = vadd.f32 %v2138_v14, %v9562_v27 }
 0x2d2   : > { %v2259_v38 = vmax.f32 %v6597_v44, 0.0 }
 0x2d3   : > { %v2260_v41 = vmax.f32 %v6598_v49, 0.0  ;;  %v2142_v63 = vpop.f32.mrb[72].mxu1 }
 0x2d4   : > { %v9715_v39 = vmax.f32 %v2255_v60, %v2259_v38  ;;  %v2144_v35 = vpop.f32.mrb[73].mxu1  ;;  %v6599_v19 = vadd.f32 %v2142_v63, %v9559_v33 }
 0x2d5   : > { %v9717_v11 = vmax.f32 %v2256_v6, %v2260_v41  ;;  %v6600_v26 = vadd.f32 %v2144_v35, %v9562_v27 }
 0x2d6   : > { %2449 = vrot.lane.b32.xlu0 %v9715_v39, %s7462_s17  ;;  %v2263_v14 = vmax.f32 %v6599_v19, 0.0 }
 0x2d7   : > { %v2148_v61 = vpop.f32.mrb[74].mxu1  ;;  %2451 = vrot.lane.b32.xlu1 %v9717_v11, %s7462_s17  ;;  %v2264_v60 = vmax.f32 %v6600_v26, 0.0 }
 0x2d8   : > { %v6601_v9 = vadd.f32 %v2148_v61, %v9559_v33  ;;  %v2150_v10 = vpop.f32.mrb[75].mxu1 }
 0x2d9   : > { %v6602_v44 = vadd.f32 %v2150_v10, %v9562_v27 }
 0x2da   : > { %v2267_v49 = vmax.f32 %v6601_v9, 0.0 }
 0x2db   : > { %v2268_v38 = vmax.f32 %v6602_v44, 0.0  ;;  %v2154_v6 = vpop.f32.mrb[76].mxu1  ;;  %v12814_v44 = vunpack.i.h.bf16 %v9734_v58 }
 0x2dc   : > { %v9727_v41 = vmax.f32 %v2263_v14, %v2267_v49  ;;  %v2156_v63 = vpop.f32.mrb[77].mxu1  ;;  %v6603_v35 = vadd.f32 %v2154_v6, %v9559_v33  ;;  %v7112_v14 = vunpack.i.l.bf16 %v9734_v58 }
 0x2dd   : > { %v9729_v1 = vmax.f32 %v2264_v60, %v2268_v38  ;;  %v6604_v61 = vadd.f32 %v2156_v63, %v9562_v27 }
 0x2de   : > { %2457 = vrot.lane.b32.xlu1 %v9727_v41, %s7462_s17  ;;  %v2271_v49 = vmax.f32 %v6603_v35, 0.0  ;;  %v3331_v35 = vld [vmem:[%s12734_s3 + $0x408] sm:$0xff] }
 0x2df   : > { %v2160_v10 = vpop.f32.mrb[78].mxu1  ;;  %2459 = vrot.lane.b32.xlu0 %v9729_v1, %s7462_s17  ;;  %v2272_v38 = vmax.f32 %v6604_v61, 0.0  ;;  %v3333_v61 = vld [vmem:[%s12734_s3 + $0x418] sm:$0xff] }
 0x2e0   : > { %v6605_v19 = vadd.f32 %v2160_v10, %v9559_v33  ;;  %v2162_v26 = vpop.f32.mrb[79].mxu1  ;;  %v2526_v10 = vsel %vm2501_vm6, %v7112_v14, %v12814_v44  ;;  %v5995_v14 = vpack.c.bf16 %v3333_v61, %v3331_v35 }
 0x2e1   : > { %v6606_v9 = vadd.f32 %v2162_v26, %v9562_v27 }
 0x2e2   : > { %v2275_v60 = vmax.f32 %v6605_v19, 0.0  ;;  %5996 = vmatprep.subr.bf16.mxu0 %v5995_v14 }
 0x2e3   : > { %v2276_v6 = vmax.f32 %v6606_v9, 0.0  ;;  %v2166_v0 = vpop.f32.mrb[80].mxu1 }
 0x2e4   : > { %v9743_v18 = vmax.f32 %v2271_v49, %v2275_v60  ;;  %v2168_v63 = vpop.f32.mrb[81].mxu1  ;;  %v6607_v26 = vadd.f32 %v2166_v0, %v9559_v33 }
 0x2e5   : > { %v9745_v24 = vmax.f32 %v2272_v38, %v2276_v6  ;;  %v6608_v19 = vadd.f32 %v2168_v63, %v9562_v27  ;;  %v9765_v38 = vmax.f32 %v9342_v47, %v2526_v10 }
 0x2e6   : > { %2465 = vrot.lane.b32.xlu1 %v9743_v18, %s7462_s17  ;;  %v2279_v6 = vmax.f32 %v6607_v26, 0.0 }
 0x2e7   : > { %v2172_v9 = vpop.f32.mrb[82].mxu1  ;;  %2467 = vrot.lane.b32.xlu0 %v9745_v24, %s7462_s17  ;;  %v2280_v57 = vmax.f32 %v6608_v19, 0.0 }
 0x2e8   : > { %v6609_v0 = vadd.f32 %v2172_v9, %v9559_v33  ;;  %v2174_v49 = vpop.f32.mrb[83].mxu1 }
 0x2e9   : > { %v6610_v60 = vadd.f32 %v2174_v49, %v9562_v27 }
 0x2ea   : > { %v2283_v44 = vmax.f32 %v6609_v0, 0.0 }
 0x2eb   : > { %v2284_v32 = vmax.f32 %v6610_v60, 0.0  ;;  %v2178_v55 = vpop.f32.mrb[84].mxu1  ;;  %2722 = vrot.lane.b32.xlu0 %v9765_v38, %s7463_s24 }
 0x2ec   : > { %v9769_v63 = vmax.f32 %v2279_v6, %v2283_v44  ;;  %v2180_v35 = vpop.f32.mrb[85].mxu1  ;;  %v6611_v9 = vadd.f32 %v2178_v55, %v9559_v33 }
 0x2ed   : > { %v9771_v61 = vmax.f32 %v2280_v57, %v2284_v32  ;;  %v6612_v47 = vadd.f32 %v2180_v35, %v9562_v27 }
 0x2ee   : > { %2473 = vrot.lane.b32.xlu1 %v9769_v63, %s7462_s17  ;;  %v2287_v14 = vmax.f32 %v6611_v9, 0.0 }
 0x2ef   : > { %v2184_v10 = vpop.f32.mrb[86].mxu1  ;;  %2475 = vrot.lane.b32.xlu0 %v9771_v61, %s7462_s17  ;;  %v2288_v32 = vmax.f32 %v6612_v47, 0.0 }
 0x2f0   : > { %v6613_v26 = vadd.f32 %v2184_v10, %v9559_v33  ;;  %v2186_v19 = vpop.f32.mrb[87].mxu1 }
 0x2f1   : > { %v6614_v44 = vadd.f32 %v2186_v19, %v9562_v27 }
 0x2f2   : > { %v2291_v0 = vmax.f32 %v6613_v26, 0.0 }
 0x2f3   : > { %v2292_v57 = vmax.f32 %v6614_v44, 0.0  ;;  %v2190_v49 = vpop.f32.mrb[88].mxu1 }
 0x2f4   : > { %v9781_v55 = vmax.f32 %v2287_v14, %v2291_v0  ;;  %v2192_v60 = vpop.f32.mrb[89].mxu1  ;;  %v6615_v35 = vadd.f32 %v2190_v49, %v9559_v33 }
 0x2f5   : > { %v9783_v6 = vmax.f32 %v2288_v32, %v2292_v57  ;;  %v6616_v37 = vadd.f32 %v2192_v60, %v9562_v27 }
 0x2f6   : > { %12985 = vst [vmem:[#allocation15_spill] sm:$0xff] %v9781_v55  ;;  %v2295_v9 = vmax.f32 %v6615_v35, 0.0 }
 0x2f7   : > { %12986 = vst [vmem:[#allocation17_spill] sm:$0xff] %v9783_v6  ;;  %v2196_v36 = vpop.f32.mrb[90].mxu1  ;;  %v2296_v47 = vmax.f32 %v6616_v37, 0.0 }
 0x2f8   : > { %v6617_v10 = vadd.f32 %v2196_v36, %v9559_v33  ;;  %v2198_v22 = vpop.f32.mrb[91].mxu1 }
 0x2f9   : > { %v6618_v19 = vadd.f32 %v2198_v22, %v9562_v27 }
 0x2fa   : > { %v2299_v26 = vmax.f32 %v6617_v10, 0.0 }
 0x2fb   : > { %v2300_v44 = vmax.f32 %v6618_v19, 0.0  ;;  %v2202_v56 = vpop.f32.mrb[92].mxu1 }
 0x2fc   : > { %v9789_v14 = vmax.f32 %v2295_v9, %v2299_v26  ;;  %v2204_v0 = vpop.f32.mrb[93].mxu1  ;;  %v6619_v57 = vadd.f32 %v2202_v56, %v9559_v33 }
 0x2fd   : > { %v9791_v32 = vmax.f32 %v2296_v47, %v2300_v44  ;;  %v6620_v49 = vadd.f32 %v2204_v0, %v9562_v27  ;;  %v3337_v44 = vld [vmem:[%s12734_s3 + $0x438] sm:$0xff] }
 0x2fe   : > { %v2303_v35 = vmax.f32 %v6619_v57, 0.0 }
 0x2ff   : > { %v2208_v60 = vpop.f32.mrb[94].mxu1  ;;  %v2304_v37 = vmax.f32 %v6620_v49, 0.0 }
 0x300   : > { %v6621_v36 = vadd.f32 %v2208_v60, %v9559_v33  ;;  %v2210_v6 = vpop.f32.mrb[95].mxu1  ;;  %v3330_v33 = vld [vmem:[%s12734_s3 + $0x400] sm:$0xff] }
 0x301   : > { %v6622_v22 = vadd.f32 %v2210_v6, %v9562_v27  ;;  %v3332_v27 = vld [vmem:[%s12734_s3 + $0x410] sm:$0xff]  ;;  %v3335_v6 = vld [vmem:[%s12734_s3 + $0x428] sm:$0xff] }
 0x302   : > { %v2307_v10 = vmax.f32 %v6621_v36, 0.0  ;;  %v5997_v36 = vpack.c.bf16 %v3332_v27, %v3330_v33 }
 0x303   : > { %v2308_v19 = vmax.f32 %v6622_v22, 0.0 }
 0x304   : > { %v9797_v55 = vmax.f32 %v2303_v35, %v2307_v10  ;;  %v5999_v35 = vpack.c.bf16 %v3337_v44, %v3335_v6  ;;  %v3334_v10 = vld [vmem:[%s12734_s3 + $0x420] sm:$0xff] }
 0x305   : > { %v9799_v9 = vmax.f32 %v2304_v37, %v2308_v19  ;;  %v3339_v37 = vld [vmem:[%s12734_s3 + $0x448] sm:$0xff] }
 0x323   : > { %v9801_v26 = vpop.permute.xlu1 %7115 }
 0x324   : > { %12987 = vst [vmem:[#allocation18_spill] sm:$0xff] %v9801_v26  ;;  %v12824_v56 = vunpack.i.h.bf16 %v9801_v26  ;;  %v7117_v47 = vunpack.i.l.bf16 %v9801_v26 }
 0x326   : > { %v2589_v0 = vmax.f32 %v9598_v50, %v7117_v47  ;;  %v2504_v57 = vsel %vm2501_vm6, %v12824_v56, %v7117_v47  ;;  %v3336_v50 = vld [vmem:[%s12734_s3 + $0x430] sm:$0xff] }
 0x327   : > { %v9821_v49 = vpop.permute.xlu1 %2666  ;;  %v2588_v60 = vmax.f32 %v9592_v45, %v2504_v57  ;;  %v3341_v45 = vld [vmem:[%s12734_s3 + $0x458] sm:$0xff]  ;;  %v6001_v33 = vpack.c.bf16 %v3336_v50, %v3334_v10  ;;  %v3340_v57 = vld [vmem:[%s12734_s3 + $0x450] sm:$0xff]  ;;  %v12988_v50 = vunpack.i.h.bf16 %v9556_v2  ;;  %v3342_v2 = vld [vmem:[%s12734_s3 + $0x460] sm:$0xff] }
 0x328   : > { %v3170_v22 = vsel %vm2730_vm7, %v2589_v0, %v9821_v49  ;;  %v6003_v44 = vpack.c.bf16 %v3341_v45, %v3339_v37  ;;  %v3338_v0 = vld [vmem:[%s12734_s3 + $0x440] sm:$0xff] }
 0x329   : > { %3989 = vmatprep.mubr.f32.mxu0 %v3170_v22  ;;  %v6005_v56 = vpack.c.bf16 %v3340_v57, %v3338_v0 }
 0x32a   : > { %3990 = vmatmul.mubr.f32.vlgmr.msra.gmra.mrb[0].mxu0 %v2588_v60  ;;  %v3343_v60 = vld [vmem:[%s12734_s3 + $0x468] sm:$0xff] }
 0x32b   : > { %v7121_v19 = vpop.permute.xlu0 %7120  ;;  %v9838_v47 = vpop.permute.xlu1 %7125  ;;  %5998 = vmatpush1.bf16.msra.mxu0 %v5997_v36  ;;  %v3345_v36 = vld [vmem:[%s12734_s3 + $0x478] sm:$0xff] }
 0x32c   : > { %v7123_v27 = vunpack.i.h.bf16 %v7121_v19  ;;  %v7122_v6 = vunpack.i.l.bf16 %v7121_v19  ;;  %6000 = vmatprep.subr.bf16.mxu0 %v5999_v35  ;;  %v7127_v35 = vunpack.i.l.bf16 %v9838_v47  ;;  %v6007_v26 = vpack.c.bf16 %v3345_v36, %v3343_v60  ;;  %v3346_v36 = vld [vmem:[%s12734_s3 + $0x480] sm:$0xff] }
 0x32e   : > { %v9853_v22 = vmax.f32 %v9633_v21, %v7123_v27  ;;  %v2507_v10 = vsel %vm2501_vm6, %v7122_v6, %v7123_v27  ;;  %v2506_v37 = vsel %vm2501_vm6, %v12988_v50, %v7122_v6  ;;  %v3349_v27 = vld [vmem:[%s12734_s3 + $0x498] sm:$0xff]  ;;  %v3351_v50 = vld [vmem:[%s12734_s3 + $0x4a8] sm:$0xff] }
 0x32f   : > { %v2592_v45 = vmax.f32 %v9631_v8, %v2507_v10  ;;  %v9862_v19 = vmax.f32 %v9226_v46, %v2506_v37  ;;  %6002 = vmatpush1.bf16.msra.mxu0 %v6001_v33  ;;  %v3344_v8 = vld [vmem:[%s12734_s3 + $0x470] sm:$0xff]  ;;  %v3347_v33 = vld [vmem:[%s12734_s3 + $0x488] sm:$0xff]  ;;  %v12826_v37 = vunpack.i.h.bf16 %v9838_v47 }
 0x330   : > { %v3171_v21 = vsel %vm2730_vm7, %v9853_v22, %v7127_v35  ;;  %6004 = vmatprep.subr.bf16.mxu0 %v6003_v44  ;;  %v6009_v44 = vpack.c.bf16 %v3344_v8, %v3342_v2  ;;  %v6011_v60 = vpack.c.bf16 %v3349_v27, %v3347_v33  ;;  %v3348_v10 = vld [vmem:[%s12734_s3 + $0x490] sm:$0xff]  ;;  %v9902_v8 = vpop.permute.xlu1 %7140 }
 0x331   : > { %3995 = vmatprep.mubr.f32.mxu0 %v3171_v21  ;;  %v7149_v46 = vpack.i.bf16 %v2592_v45, %v9862_v19  ;;  %v6013_v27 = vpack.c.bf16 %v3348_v10, %v3346_v36 }
 0x332   : > { %3996 = vmatmul.mubr.f32.gmra.mrb[2].mxu0 %v2592_v45 }
 0x333   : > { %v7131_v6 = vpop.permute.xlu0 %7130  ;;  %7150 = vrot.lane.b32.xlu1 %v7149_v46, %s7463_s24  ;;  %6006 = vmatpush1.bf16.msra.mxu0 %v6005_v56  ;;  %v3353_v56 = vld [vmem:[%s12734_s3 + $0x4b8] sm:$0xff] }
 0x334   : > { %v7133_v0 = vunpack.i.h.bf16 %v7131_v6  ;;  %v7132_v57 = vunpack.i.l.bf16 %v7131_v6  ;;  %6008 = vmatprep.subr.bf16.mxu0 %v6007_v26  ;;  %v12989_v26 = vunpack.i.h.bf16 %v9579_v3  ;;  %v6015_v6 = vpack.c.bf16 %v3353_v56, %v3351_v50 }
 0x336   : > { %v2509_v45 = vsel %vm2501_vm6, %v12989_v26, %v7133_v0  ;;  %v9899_v21 = vmax.f32 %v9670_v52, %v7132_v57  ;;  %v2510_v2 = vsel %vm2501_vm6, %v7133_v0, %v7132_v57  ;;  %v3350_v52 = vld [vmem:[%s12734_s3 + $0x4a0] sm:$0xff]  ;;  %v3357_v0 = vld [vmem:[%s12734_s3 + $0x4d8] sm:$0xff] }
 0x337   : > { %v2596_v46 = vmax.f32 %v9668_v4, %v2510_v2  ;;  %v9906_v33 = vmax.f32 %v9243_v42, %v2509_v45  ;;  %6010 = vmatpush1.bf16.msra.mxu0 %v6009_v44  ;;  %v3352_v4 = vld [vmem:[%s12734_s3 + $0x4b0] sm:$0xff]  ;;  %v3355_v44 = vld [vmem:[%s12734_s3 + $0x4c8] sm:$0xff]  ;;  %v9927_v57 = vpop.permute.xlu0 %7135  ;;  %v3354_v26 = vld [vmem:[%s12734_s3 + $0x4c0] sm:$0xff] }
 0x338   : > { %v3172_v3 = vsel %vm2730_vm7, %v9899_v21, %v12826_v37  ;;  %6012 = vmatprep.subr.bf16.mxu0 %v6011_v60  ;;  %v6017_v36 = vpack.c.bf16 %v3352_v4, %v3350_v52  ;;  %v6019_v56 = vpack.c.bf16 %v3357_v0, %v3355_v44  ;;  %v3356_v45 = vld [vmem:[%s12734_s3 + $0x4d0] sm:$0xff]  ;;  %v3359_v2 = vld [vmem:[%s12734_s3 + $0x4e8] sm:$0xff] }
 0x339   : > { %12990 = vst [vmem:[#allocation22_spill] sm:$0xff] %v9906_v33  ;;  %4001 = vmatprep.mubr.f32.mxu0 %v3172_v3  ;;  %v9919_v42 = vpack.i.bf16 %v2596_v46, %v9906_v33  ;;  %v12991_v3 = vunpack.i.h.bf16 %v9576_v43 }
 0x33a   : > { %4002 = vmatmul.mubr.f32.gmra.mrb[4].mxu0 %v2596_v46  ;;  %v3361_v46 = vld [vmem:[%s12734_s3 + $0x4f8] sm:$0xff] }
 0x33b   : > { %7155 = vrot.lane.b32.xlu0 %v9919_v42, %s7463_s24  ;;  %v7146_v60 = vpop.permute.xlu1 %7145  ;;  %6014 = vmatpush1.bf16.msra.mxu0 %v6013_v27  ;;  %v12830_v27 = vunpack.i.l.bf16 %v9927_v57 }
 0x33c   : > { %v7148_v10 = vunpack.i.h.bf16 %v7146_v60  ;;  %v7147_v50 = vunpack.i.l.bf16 %v7146_v60  ;;  %6016 = vmatprep.subr.bf16.mxu0 %v6015_v6  ;;  %v6021_v60 = vpack.c.bf16 %v3356_v45, %v3354_v26  ;;  %v3365_v26 = vld [vmem:[%s12734_s3 + $0x518] sm:$0xff]  ;;  %v12827_v45 = vunpack.i.h.bf16 %v9927_v57 }
 0x33e   : > { %v2512_v6 = vsel %vm2501_vm6, %v12991_v3, %v7148_v10  ;;  %v2513_v52 = vsel %vm2501_vm6, %v7148_v10, %v7147_v50  ;;  %v9949_v4 = vmax.f32 %v9693_v5, %v7147_v50  ;;  %v6023_v3 = vpack.c.bf16 %v3361_v46, %v3359_v2  ;;  %v3358_v5 = vld [vmem:[%s12734_s3 + $0x4e0] sm:$0xff] }
 0x33f   : > { %v9952_v44 = vmax.f32 %v9260_v53, %v2512_v6  ;;  %v9955_v0 = vmax.f32 %v9691_v12, %v2513_v52  ;;  %6018 = vmatpush1.bf16.msra.mxu0 %v6017_v36  ;;  %v3360_v53 = vld [vmem:[%s12734_s3 + $0x4f0] sm:$0xff]  ;;  %v12993_v12 = vunpack.i.h.bf16 %v9588_v40 }
 0x340   : > { %v2442_v37 = vpop.permute.xlu0 %2441  ;;  %v3173_v43 = vsel %vm2730_vm7, %v9949_v4, %v12830_v27  ;;  %6020 = vmatprep.subr.bf16.mxu0 %v6019_v56  ;;  %v3363_v56 = vld [vmem:[%s12734_s3 + $0x508] sm:$0xff]  ;;  %v6025_v52 = vpack.c.bf16 %v3360_v53, %v3358_v5  ;;  %v3390_v27 = vld [vmem:[%s12734_s3 + $0x5e0] sm:$0xff] }
 0x341   : > { %12992 = vst [vmem:[#allocation21_spill] sm:$0xff] %v9952_v44  ;;  %v2515_v36 = vsel %vm2501_vm6, %v12993_v12, %v2442_v37  ;;  %v2444_v10 = vpop.permute.xlu1 %2443  ;;  %4007 = vmatprep.mubr.f32.mxu0 %v3173_v43  ;;  %v9972_v50 = vpack.i.bf16 %v9955_v0, %v9952_v44  ;;  %v3367_v5 = vld [vmem:[%s12734_s3 + $0x528] sm:$0xff] }
 0x342   : > { %v9982_v40 = vmax.f32 %v9277_v15, %v2515_v36  ;;  %v2516_v2 = vsel %vm2501_vm6, %v2442_v37, %v2444_v10  ;;  %v9986_v46 = vmax.f32 %v9705_v62, %v2444_v10  ;;  %4008 = vmatmul.mubr.f32.gmra.mrb[6].mxu0 %v9955_v0  ;;  %v6027_v62 = vpack.c.bf16 %v3365_v26, %v3363_v56  ;;  %v3364_v37 = vld [vmem:[%s12734_s3 + $0x510] sm:$0xff]  ;;  %v3366_v10 = vld [vmem:[%s12734_s3 + $0x520] sm:$0xff] }
 0x343   : > { %v9990_v6 = vmax.f32 %v9703_v51, %v2516_v2  ;;  %7160 = vrot.lane.b32.xlu1 %v9972_v50, %s7463_s24  ;;  %6022 = vmatpush1.bf16.msra.mxu0 %v6021_v60  ;;  %v3362_v51 = vld [vmem:[%s12734_s3 + $0x500] sm:$0xff]  ;;  %v3368_v56 = vld [vmem:[%s12734_s3 + $0x530] sm:$0xff]  ;;  %v12995_v26 = vunpack.i.h.bf16 %v9583_v29 }
 0x344   : > { %12994 = vst [vmem:[#allocation24_spill] sm:$0xff] %v9982_v40  ;;  %v3174_v15 = vsel %vm2730_vm7, %v9986_v46, %v12827_v45  ;;  %6024 = vmatprep.subr.bf16.mxu0 %v6023_v3  ;;  %v3369_v3 = vld [vmem:[%s12734_s3 + $0x538] sm:$0xff]  ;;  %v6029_v53 = vpack.c.bf16 %v3364_v37, %v3362_v51  ;;  %v12828_v51 = vunpack.i.l.bf16 %v9902_v8 }
 0x345   : > { %4013 = vmatprep.mubr.f32.mxu0 %v3174_v15  ;;  %v10008_v60 = vpack.i.bf16 %v9990_v6, %v9982_v40  ;;  %v6031_v36 = vpack.c.bf16 %v3369_v3, %v3367_v5 }
 0x346   : > { %4014 = vmatmul.mubr.f32.gmra.mrb[8].mxu0 %v9990_v6 }
 0x347   : > { %7165 = vrot.lane.b32.xlu0 %v10008_v60, %s7463_s24  ;;  %6026 = vmatpush1.bf16.msra.mxu0 %v6025_v52  ;;  %v3371_v52 = vld [vmem:[%s12734_s3 + $0x548] sm:$0xff] }
 0x348   : > { %v2450_v12 = vpop.permute.xlu0 %2449  ;;  %6028 = vmatprep.subr.bf16.mxu0 %v6027_v62  ;;  %v3373_v62 = vld [vmem:[%s12734_s3 + $0x558] sm:$0xff] }
 0x349   : > { %v2518_v2 = vsel %vm2501_vm6, %v12995_v26, %v2450_v12  ;;  %v2452_v15 = vpop.permute.xlu1 %2451  ;;  %v6033_v26 = vpack.c.bf16 %v3368_v56, %v3366_v10  ;;  %v6035_v45 = vpack.c.bf16 %v3373_v62, %v3371_v52  ;;  %v3374_v56 = vld [vmem:[%s12734_s3 + $0x560] sm:$0xff] }
 0x34a   : > { %v10036_v37 = vmax.f32 %v9294_v23, %v2518_v2  ;;  %v2519_v5 = vsel %vm2501_vm6, %v2450_v12, %v2452_v15  ;;  %v10040_v29 = vmax.f32 %v9717_v11, %v2452_v15  ;;  %v3370_v23 = vld [vmem:[%s12734_s3 + $0x540] sm:$0xff]  ;;  %v3372_v11 = vld [vmem:[%s12734_s3 + $0x550] sm:$0xff]  ;;  %v3377_v12 = vld [vmem:[%s12734_s3 + $0x578] sm:$0xff]  ;;  %v12997_v15 = vunpack.i.h.bf16 %v9601_v20 }
 0x34b   : > { %v10043_v3 = vmax.f32 %v9715_v39, %v2519_v5  ;;  %6030 = vmatpush1.bf16.msra.mxu0 %v6029_v53  ;;  %v3375_v53 = vld [vmem:[%s12734_s3 + $0x568] sm:$0xff]  ;;  %v3376_v2 = vld [vmem:[%s12734_s3 + $0x570] sm:$0xff] }
 0x34c   : > { %12996 = vst [vmem:[#allocation25_spill] sm:$0xff] %v10036_v37  ;;  %v3175_v43 = vsel %vm2730_vm7, %v10040_v29, %v12828_v51  ;;  %6032 = vmatprep.subr.bf16.mxu0 %v6031_v36  ;;  %v6037_v36 = vpack.c.bf16 %v3372_v11, %v3370_v23  ;;  %v6039_v10 = vpack.c.bf16 %v3377_v12, %v3375_v53  ;;  %v3379_v5 = vld [vmem:[%s12734_s3 + $0x588] sm:$0xff] }
 0x34d   : > { %4019 = vmatprep.mubr.f32.mxu0 %v3175_v43  ;;  %v10057_v39 = vpack.i.bf16 %v10043_v3, %v10036_v37  ;;  %v6041_v12 = vpack.c.bf16 %v3376_v2, %v3374_v56 }
 0x34e   : > { %4020 = vmatmul.mubr.f32.gmra.mrb[10].mxu0 %v10043_v3 }
 0x34f   : > { %7170 = vrot.lane.b32.xlu1 %v10057_v39, %s7463_s24  ;;  %6034 = vmatpush1.bf16.msra.mxu0 %v6033_v26  ;;  %v12829_v26 = vunpack.i.h.bf16 %v9902_v8 }
 0x350   : > { %v2458_v43 = vpop.permute.xlu1 %2457  ;;  %6036 = vmatprep.subr.bf16.mxu0 %v6035_v45  ;;  %v3381_v45 = vld [vmem:[%s12734_s3 + $0x598] sm:$0xff] }
 0x351   : > { %v2521_v52 = vsel %vm2501_vm6, %v12997_v15, %v2458_v43  ;;  %v2460_v62 = vpop.permute.xlu0 %2459  ;;  %v6043_v51 = vpack.c.bf16 %v3381_v45, %v3379_v5 }
 0x352   : > { %v10085_v23 = vmax.f32 %v9311_v28, %v2521_v52  ;;  %v2522_v11 = vsel %vm2501_vm6, %v2458_v43, %v2460_v62  ;;  %v10089_v20 = vmax.f32 %v9729_v1, %v2460_v62  ;;  %v3378_v28 = vld [vmem:[%s12734_s3 + $0x580] sm:$0xff]  ;;  %v3380_v1 = vld [vmem:[%s12734_s3 + $0x590] sm:$0xff]  ;;  %v3385_v43 = vld [vmem:[%s12734_s3 + $0x5b8] sm:$0xff]  ;;  %v12999_v52 = vunpack.i.h.bf16 %v9596_v25 }
 0x353   : > { %v10092_v53 = vmax.f32 %v9727_v41, %v2522_v11  ;;  %6038 = vmatpush1.bf16.msra.mxu0 %v6037_v36  ;;  %v3383_v36 = vld [vmem:[%s12734_s3 + $0x5a8] sm:$0xff] }
 0x354   : > { %12998 = vst [vmem:[#allocation27_spill] sm:$0xff] %v10085_v23  ;;  %v3176_v15 = vsel %vm2730_vm7, %v10089_v20, %v12829_v26  ;;  %6040 = vmatprep.subr.bf16.mxu0 %v6039_v10  ;;  %v6045_v10 = vpack.c.bf16 %v3380_v1, %v3378_v28  ;;  %v6047_v2 = vpack.c.bf16 %v3385_v43, %v3383_v36  ;;  %v3387_v25 = vld [vmem:[%s12734_s3 + $0x5c8] sm:$0xff] }
 0x355   : > { %4025 = vmatprep.mubr.f32.mxu0 %v3176_v15  ;;  %v10106_v41 = vpack.i.bf16 %v10092_v53, %v10085_v23  ;;  %v3382_v15 = vld [vmem:[%s12734_s3 + $0x5a0] sm:$0xff] }
 0x356   : > { %4026 = vmatmul.mubr.f32.gmra.mrb[12].mxu0 %v10092_v53 }
 0x357   : > { %7175 = vrot.lane.b32.xlu0 %v10106_v41, %s7463_s24  ;;  %6042 = vmatpush1.bf16.msra.mxu0 %v6041_v12  ;;  %v3384_v12 = vld [vmem:[%s12734_s3 + $0x5b0] sm:$0xff] }
 0x358   : > { %v2466_v56 = vpop.permute.xlu1 %2465  ;;  %6044 = vmatprep.subr.bf16.mxu0 %v6043_v51 }
 0x359   : > { %v2524_v62 = vsel %vm2501_vm6, %v12999_v52, %v2466_v56  ;;  %v2468_v5 = vpop.permute.xlu0 %2467  ;;  %v3393_v52 = vld [vmem:[%s12734_s3 + $0x5f8] sm:$0xff] }
 0x35a   : > { %v10121_v45 = vmax.f32 %v9328_v54, %v2524_v62  ;;  %v2525_v11 = vsel %vm2501_vm6, %v2466_v56, %v2468_v5  ;;  %v3389_v54 = vld [vmem:[%s12734_s3 + $0x5d8] sm:$0xff]  ;;  %v10140_v28 = vmax.f32 %v9745_v24, %v2468_v5  ;;  %v3386_v56 = vld [vmem:[%s12734_s3 + $0x5c0] sm:$0xff]  ;;  %v3388_v24 = vld [vmem:[%s12734_s3 + $0x5d0] sm:$0xff]  ;;  %v13000_v5 = vunpack.i.h.bf16 %v9734_v58 }
 0x35b   : > { %v10131_v51 = vmax.f32 %v9743_v18, %v2525_v11  ;;  %6046 = vmatpush1.bf16.msra.mxu0 %v6045_v10  ;;  %v6049_v18 = vpack.c.bf16 %v3384_v12, %v3382_v15  ;;  %v6051_v10 = vpack.c.bf16 %v3389_v54, %v3387_v25  ;;  %v7184_v12 = vpack.i.bf16 %v9356_v7, %v9354_v13  ;;  %v3392_v58 = vld [vmem:[%s12734_s3 + $0x5f0] sm:$0xff] }
 0x35c   : > { %6048 = vmatprep.subr.bf16.mxu0 %v6047_v2  ;;  %v3391_v2 = vld [vmem:[%s12734_s3 + $0x5e8] sm:$0xff]  ;;  %v6053_v25 = vpack.c.bf16 %v3388_v24, %v3386_v56  ;;  %v6057_v56 = vpack.c.bf16 %v3392_v58, %v3390_v27  ;;  %v7194_v27 = vpack.i.bf16 %v9949_v4, %v9899_v21 }
 0x35d   : > { %v10142_v1 = vpop.permute.xlu0 %2722  ;;  %v10146_v36 = vpack.i.bf16 %v10131_v51, %v10121_v45  ;;  %v6055_v26 = vpack.c.bf16 %v3393_v52, %v3391_v2  ;;  %v7204_v2 = vpack.i.bf16 %v10040_v29, %v9986_v46  ;;  %v7219_v52 = vpack.i.bf16 %v9765_v38, %v9645_v16 }
 0x35e   : > { %v3177_v43 = vsel %vm2730_vm7, %v10140_v28, %v10142_v1 }
 0x35f   : > { %7180 = vrot.lane.b32.xlu1 %v10146_v36, %s7463_s24  ;;  %4031 = vmatprep.mubr.f32.mxu0 %v3177_v43 }
 0x360   : > { %v2474_v62 = vpop.permute.xlu1 %2473  ;;  %4032 = vmatmul.mubr.f32.gmra.mrb[14].mxu0 %v10131_v51 }
 0x361   : > { %v2527_v11 = vsel %vm2501_vm6, %v13000_v5, %v2474_v62  ;;  %v2476_v15 = vpop.permute.xlu0 %2475  ;;  %6050 = vmatpush1.bf16.msra.mxu0 %v6049_v18  ;;  %v3397_v18 = vld [vmem:[%s12734_s3 + $0x618] sm:$0xff] }
 0x362   : > { %v10172_v54 = vmax.f32 %v9345_v59, %v2527_v11  ;;  %v2528_v43 = vsel %vm2501_vm6, %v2474_v62, %v2476_v15  ;;  %6052 = vmatprep.subr.bf16.mxu0 %v6051_v10  ;;  %v3395_v59 = vld [vmem:[%s12734_s3 + $0x608] sm:$0xff]  ;;  %v10217_v62 = vmax.f32 %v9771_v61, %v2476_v15  ;;  %v13001_v11 = vld [vmem:[#allocation15_spill] sm:$0xff] }
 0x363   : > { %v10182_v5 = vmax.f32 %v9769_v63, %v2528_v43  ;;  %7185 = vrot.lane.b32.xlu1 %v7184_v12, %s7462_s17  ;;  %v6059_v24 = vpack.c.bf16 %v3397_v18, %v3395_v59  ;;  %v7199_v63 = vpack.i.bf16 %v9685_v31, %v9623_v34  ;;  %v13002_v12 = vld [vmem:[#allocation6_spill] sm:$0xff]  ;;  %v13003_v61 = vld [vmem:[#allocation8_spill] sm:$0xff] }
 0x364   : > { %v7259_v15 = vpack.i.bf16 %v13003_v61, %v13002_v12  ;;  %v7304_v58 = vpack.i.bf16 %v10217_v62, %v10140_v28  ;;  %v3399_v59 = vld [vmem:[%s12734_s3 + $0x628] sm:$0xff]  ;;  %v3401_v18 = vld [vmem:[%s12734_s3 + $0x638] sm:$0xff] }
 0x365   : > { %v7189_v10 = vpack.i.bf16 %v10182_v5, %v10172_v54  ;;  %6054 = vmatpush1.bf16.msra.mxu0 %v6053_v25  ;;  %v7274_v25 = vpack.i.bf16 %v9986_v46, %v9949_v4 }
 0x366   : > { %6056 = vmatprep.subr.bf16.mxu0 %v6055_v26  ;;  %v7209_v26 = vpack.i.bf16 %v9656_v17, %v9678_v30 }
 0x367   : > { %7190 = vrot.lane.b32.xlu0 %v7189_v10, %s7463_s24  ;;  %2799 = vrot.lane.b32.xlu1 %v9638_v48, %s7464_s18  ;;  %v3462_v48 = vld [vmem:[%s12734_s3 + $0x820] sm:$0xff] }
 0x369   : > { %6058 = vmatpush1.bf16.msra.mxu0 %v6057_v56 }
 0x36a   : > { %6060 = vmatprep.subr.bf16.mxu0 %v6059_v24 }
 0x36b   : > { %2672 = vrot.lane.b32.xlu0 %v9853_v22, %s7463_s24  ;;  %7200 = vrot.lane.b32.xlu1 %v7199_v63, %s7464_s18  ;;  %v7214_v22 = vpack.i.bf16 %v10140_v28, %v10089_v20 }
 0x36f   : > { %7195 = vrot.lane.b32.xlu0 %v7194_v27, %s7463_s24  ;;  %7210 = vrot.lane.b32.xlu1 %v7209_v26, %s7464_s18  ;;  %v6063_v26 = vpack.c.bf16 %v3401_v18, %v3399_v59  ;;  %v3407_v59 = vld [vmem:[%s12734_s3 + $0x668] sm:$0xff]  ;;  %v3409_v18 = vld [vmem:[%s12734_s3 + $0x678] sm:$0xff] }
 0x373   : > { %7205 = vrot.lane.b32.xlu0 %v7204_v2, %s7463_s24  ;;  %7220 = vrot.lane.b32.xlu1 %v7219_v52, %s7464_s18  ;;  %v3398_v2 = vld [vmem:[%s12734_s3 + $0x620] sm:$0xff]  ;;  %v3400_v52 = vld [vmem:[%s12734_s3 + $0x630] sm:$0xff] }
 0x377   : > { %7215 = vrot.lane.b32.xlu0 %v7214_v22, %s7463_s24  ;;  %v3403_v22 = vld [vmem:[%s12734_s3 + $0x648] sm:$0xff] }
 0x37b   : > { %2728 = vrot.lane.b32.xlu0 %v10217_v62, %s7463_s24  ;;  %s7465_s24 = smov 100  }
 0x37f   : > { %2481 = vrot.lane.b32.xlu0 %v13001_v11, %s7462_s17 }
 0x383   : > { %7225 = vrot.lane.b32.xlu0 %v9919_v42, %s7464_s18  ;;  %v10240_v42 = vpack.i.bf16 %v10036_v37, %v9678_v30 }
 0x387   : > { %7235 = vrot.lane.b32.xlu0 %v10008_v60, %s7464_s18  ;;  %v10246_v60 = vpack.i.bf16 %v10085_v23, %v9656_v17  ;;  %v3444_v17 = vld [vmem:[%s12734_s3 + $0x790] sm:$0xff] }
 0x388   : > { %v3460_v23 = vld [vmem:[%s12734_s3 + $0x810] sm:$0xff] }
 0x38b   : > { %7245 = vrot.lane.b32.xlu0 %v10106_v41, %s7464_s18  ;;  %v3396_v41 = vld [vmem:[%s12734_s3 + $0x610] sm:$0xff] }
 0x38f   : > { %7255 = vrot.lane.b32.xlu0 %v7189_v10, %s7464_s18 }
 0x393   : > { %7260 = vrot.lane.b32.xlu0 %v7259_v15, %s7462_s17  ;;  %v3405_v15 = vld [vmem:[%s12734_s3 + $0x658] sm:$0xff] }
 0x397   : > { %2805 = vrot.lane.b32.xlu0 %v9899_v21, %s7464_s18  ;;  %v3394_v21 = vld [vmem:[%s12734_s3 + $0x600] sm:$0xff] }
 0x398   : > { %v6061_v24 = vpack.c.bf16 %v3396_v41, %v3394_v21  ;;  %v3402_v21 = vld [vmem:[%s12734_s3 + $0x640] sm:$0xff]  ;;  %v3404_v41 = vld [vmem:[%s12734_s3 + $0x650] sm:$0xff] }
 0x39b   : > { %7275 = vrot.lane.b32.xlu0 %v7274_v25, %s7464_s18  ;;  %v6067_v25 = vpack.c.bf16 %v3405_v15, %v3403_v22  ;;  %v3408_v22 = vld [vmem:[%s12734_s3 + $0x670] sm:$0xff]  ;;  %v3411_v15 = vld [vmem:[%s12734_s3 + $0x688] sm:$0xff] }
 0x39f   : > { %7285 = vrot.lane.b32.xlu0 %v10240_v42, %s7465_s24 }
 0x3a3   : > { %7295 = vrot.lane.b32.xlu0 %v10246_v60, %s7465_s24 }
 0x3a5   : > { %v10256_v43 = vpop.permute.xlu1 %7150 }
 0x3a6   : > { %v12834_v10 = vunpack.i.h.bf16 %v10256_v43  ;;  %v7152_v56 = vunpack.i.l.bf16 %v10256_v43 }
 0x3a7   : > { %7305 = vrot.lane.b32.xlu0 %v7304_v58, %s7464_s18 }
 0x3a8   : > { %v2732_v63 = vsel %vm2730_vm7, %v7152_v56, %v12834_v10  ;;  %v2731_v27 = vsel %vm2730_vm7, %v9821_v49, %v7152_v56  ;;  %v6065_v49 = vpack.c.bf16 %v3400_v52, %v3398_v2  ;;  %v6071_v2 = vpack.c.bf16 %v3409_v18, %v3407_v59  ;;  %v3406_v52 = vld [vmem:[%s12734_s3 + $0x660] sm:$0xff]  ;;  %v3415_v18 = vld [vmem:[%s12734_s3 + $0x6a8] sm:$0xff]  ;;  %v3428_v10 = vld [vmem:[%s12734_s3 + $0x710] sm:$0xff] }
 0x3a9   : > { %4102 = vmatprep.mubr.f32.mxu0 %v2732_v63  ;;  %v6069_v63 = vpack.c.bf16 %v3404_v41, %v3402_v21  ;;  %v3410_v21 = vld [vmem:[%s12734_s3 + $0x680] sm:$0xff]  ;;  %v3412_v41 = vld [vmem:[%s12734_s3 + $0x690] sm:$0xff] }
 0x3aa   : > { %4103 = vmatmul.mubr.f32.vlgmr.msra.gmra.mrb[0].mxu0 %v2731_v27 }
 0x3ab   : > { %6062 = vmatpush1.bf16.msra.mxu0 %v6061_v24 }
 0x3ac   : > { %6064 = vmatprep.subr.bf16.mxu0 %v6063_v26 }
 0x3ad   : > { %v10292_v58 = vpop.permute.xlu0 %7155 }
 0x3ae   : > { %v12831_v56 = vunpack.i.h.bf16 %v10292_v58  ;;  %v7157_v24 = vunpack.i.l.bf16 %v10292_v58 }
 0x3af   : > { %6066 = vmatpush1.bf16.msra.mxu0 %v6065_v49  ;;  %v3413_v49 = vld [vmem:[%s12734_s3 + $0x698] sm:$0xff] }
 0x3b0   : > { %v2735_v27 = vsel %vm2730_vm7, %v7157_v24, %v12831_v56  ;;  %6068 = vmatprep.subr.bf16.mxu0 %v6067_v25  ;;  %v2734_v26 = vsel %vm2730_vm7, %v7127_v35, %v7157_v24  ;;  %v6073_v35 = vpack.c.bf16 %v3408_v22, %v3406_v52  ;;  %v6075_v25 = vpack.c.bf16 %v3413_v49, %v3411_v15  ;;  %v3417_v24 = vld [vmem:[%s12734_s3 + $0x6b8] sm:$0xff]  ;;  %v3414_v49 = vld [vmem:[%s12734_s3 + $0x6a0] sm:$0xff]  ;;  %v3416_v56 = vld [vmem:[%s12734_s3 + $0x6b0] sm:$0xff] }
 0x3b1   : > { %4108 = vmatprep.mubr.f32.mxu0 %v2735_v27  ;;  %v13004_v52 = vunpack.i.h.bf16 %v9838_v47  ;;  %v6079_v15 = vpack.c.bf16 %v3417_v24, %v3415_v18  ;;  %v3421_v47 = vld [vmem:[%s12734_s3 + $0x6d8] sm:$0xff]  ;;  %v6081_v18 = vpack.c.bf16 %v3416_v56, %v3414_v49  ;;  %v3423_v56 = vld [vmem:[%s12734_s3 + $0x6e8] sm:$0xff] }
 0x3b2   : > { %4109 = vmatmul.mubr.f32.gmra.mrb[2].mxu0 %v2734_v26  ;;  %v6077_v26 = vpack.c.bf16 %v3412_v41, %v3410_v21 }
 0x3b3   : > { %6070 = vmatpush1.bf16.msra.mxu0 %v6069_v63 }
 0x3b4   : > { %6072 = vmatprep.subr.bf16.mxu0 %v6071_v2 }
 0x3b5   : > { %v10326_v59 = vpop.permute.xlu1 %7160 }
 0x3b6   : > { %v12832_v63 = vunpack.i.h.bf16 %v10326_v59  ;;  %v7162_v27 = vunpack.i.l.bf16 %v10326_v59 }
 0x3b7   : > { %6074 = vmatpush1.bf16.msra.mxu0 %v6073_v35 }
 0x3b8   : > { %v2738_v2 = vsel %vm2730_vm7, %v7162_v27, %v12832_v63  ;;  %6076 = vmatprep.subr.bf16.mxu0 %v6075_v25  ;;  %v2737_v22 = vsel %vm2730_vm7, %v13004_v52, %v7162_v27  ;;  %v3419_v25 = vld [vmem:[%s12734_s3 + $0x6c8] sm:$0xff]  ;;  %v13005_v27 = vunpack.i.l.bf16 %v9927_v57  ;;  %v3418_v63 = vld [vmem:[%s12734_s3 + $0x6c0] sm:$0xff] }
 0x3b9   : > { %v10348_v35 = vpop.permute.xlu0 %7165  ;;  %4114 = vmatprep.mubr.f32.mxu0 %v2738_v2  ;;  %v6083_v52 = vpack.c.bf16 %v3421_v47, %v3419_v25  ;;  %v3422_v25 = vld [vmem:[%s12734_s3 + $0x6e0] sm:$0xff]  ;;  %v3424_v47 = vld [vmem:[%s12734_s3 + $0x6f0] sm:$0xff] }
 0x3ba   : > { %v12833_v21 = vunpack.i.h.bf16 %v10348_v35  ;;  %v7167_v41 = vunpack.i.l.bf16 %v10348_v35  ;;  %4115 = vmatmul.mubr.f32.gmra.mrb[4].mxu0 %v2737_v22  ;;  %v3420_v22 = vld [vmem:[%s12734_s3 + $0x6d0] sm:$0xff] }
 0x3bb   : > { %6078 = vmatpush1.bf16.msra.mxu0 %v6077_v26  ;;  %v3425_v26 = vld [vmem:[%s12734_s3 + $0x6f8] sm:$0xff] }
 0x3bc   : > { %v2741_v24 = vsel %vm2730_vm7, %v7167_v41, %v12833_v21  ;;  %6080 = vmatprep.subr.bf16.mxu0 %v6079_v15  ;;  %v2740_v2 = vsel %vm2730_vm7, %v13005_v27, %v7167_v41  ;;  %v6085_v15 = vpack.c.bf16 %v3420_v22, %v3418_v63  ;;  %v6087_v49 = vpack.c.bf16 %v3425_v26, %v3423_v56  ;;  %v3429_v63 = vld [vmem:[%s12734_s3 + $0x718] sm:$0xff]  ;;  %v3426_v21 = vld [vmem:[%s12734_s3 + $0x700] sm:$0xff] }
 0x3bd   : > { %4120 = vmatprep.mubr.f32.mxu0 %v2741_v24  ;;  %v3427_v24 = vld [vmem:[%s12734_s3 + $0x708] sm:$0xff]  ;;  %v13006_v22 = vunpack.i.h.bf16 %v9927_v57  ;;  %v3433_v57 = vld [vmem:[%s12734_s3 + $0x738] sm:$0xff] }
 0x3be   : > { %4121 = vmatmul.mubr.f32.gmra.mrb[6].mxu0 %v2740_v2  ;;  %v6089_v2 = vpack.c.bf16 %v3424_v47, %v3422_v25  ;;  %v6091_v26 = vpack.c.bf16 %v3429_v63, %v3427_v24  ;;  %v3430_v47 = vld [vmem:[%s12734_s3 + $0x720] sm:$0xff]  ;;  %v3432_v24 = vld [vmem:[%s12734_s3 + $0x730] sm:$0xff] }
 0x3bf   : > { %6082 = vmatpush1.bf16.msra.mxu0 %v6081_v18 }
 0x3c0   : > { %6084 = vmatprep.subr.bf16.mxu0 %v6083_v52 }
 0x3c1   : > { %v10382_v41 = vpop.permute.xlu1 %7170 }
 0x3c2   : > { %v12835_v18 = vunpack.i.h.bf16 %v10382_v41  ;;  %v7172_v27 = vunpack.i.l.bf16 %v10382_v41 }
 0x3c3   : > { %6086 = vmatpush1.bf16.msra.mxu0 %v6085_v15  ;;  %v3431_v15 = vld [vmem:[%s12734_s3 + $0x728] sm:$0xff] }
 0x3c4   : > { %v2744_v52 = vsel %vm2730_vm7, %v7172_v27, %v12835_v18  ;;  %6088 = vmatprep.subr.bf16.mxu0 %v6087_v49  ;;  %v2743_v56 = vsel %vm2730_vm7, %v13006_v22, %v7172_v27  ;;  %v6093_v49 = vpack.c.bf16 %v3428_v10, %v3426_v21  ;;  %v6095_v25 = vpack.c.bf16 %v3433_v57, %v3431_v15  ;;  %v3435_v27 = vld [vmem:[%s12734_s3 + $0x748] sm:$0xff]  ;;  %v3437_v10 = vld [vmem:[%s12734_s3 + $0x758] sm:$0xff]  ;;  %v3434_v57 = vld [vmem:[%s12734_s3 + $0x740] sm:$0xff] }
 0x3c5   : > { %4126 = vmatprep.mubr.f32.mxu0 %v2744_v52  ;;  %v6097_v52 = vpack.c.bf16 %v3432_v24, %v3430_v47  ;;  %v6099_v15 = vpack.c.bf16 %v3437_v10, %v3435_v27  ;;  %v3436_v18 = vld [vmem:[%s12734_s3 + $0x750] sm:$0xff]  ;;  %v3438_v27 = vld [vmem:[%s12734_s3 + $0x760] sm:$0xff] }
 0x3c6   : > { %4127 = vmatmul.mubr.f32.gmra.mrb[8].mxu0 %v2743_v56  ;;  %v13007_v56 = vunpack.i.l.bf16 %v9902_v8  ;;  %v6101_v47 = vpack.c.bf16 %v3436_v18, %v3434_v57  ;;  %v3440_v10 = vld [vmem:[%s12734_s3 + $0x770] sm:$0xff]  ;;  %v3445_v18 = vld [vmem:[%s12734_s3 + $0x798] sm:$0xff]  ;;  %v13008_v57 = vunpack.i.h.bf16 %v9902_v8 }
 0x3c7   : > { %6090 = vmatpush1.bf16.msra.mxu0 %v6089_v2  ;;  %v3449_v8 = vld [vmem:[%s12734_s3 + $0x7b8] sm:$0xff] }
 0x3c8   : > { %6092 = vmatprep.subr.bf16.mxu0 %v6091_v26 }
 0x3c9   : > { %v10416_v63 = vpop.permute.xlu0 %7175 }
 0x3ca   : > { %v12836_v21 = vunpack.i.h.bf16 %v10416_v63  ;;  %v7177_v2 = vunpack.i.l.bf16 %v10416_v63 }
 0x3cb   : > { %6094 = vmatpush1.bf16.msra.mxu0 %v6093_v49  ;;  %v3439_v49 = vld [vmem:[%s12734_s3 + $0x768] sm:$0xff] }
 0x3cc   : > { %v2747_v22 = vsel %vm2730_vm7, %v7177_v2, %v12836_v21  ;;  %6096 = vmatprep.subr.bf16.mxu0 %v6095_v25  ;;  %v2746_v26 = vsel %vm2730_vm7, %v13007_v56, %v7177_v2  ;;  %v3441_v25 = vld [vmem:[%s12734_s3 + $0x778] sm:$0xff]  ;;  %v3442_v21 = vld [vmem:[%s12734_s3 + $0x780] sm:$0xff] }
 0x3cd   : > { %4132 = vmatprep.mubr.f32.mxu0 %v2747_v22  ;;  %v6103_v24 = vpack.c.bf16 %v3441_v25, %v3439_v49  ;;  %v3443_v22 = vld [vmem:[%s12734_s3 + $0x788] sm:$0xff] }
 0x3ce   : > { %4133 = vmatmul.mubr.f32.gmra.mrb[10].mxu0 %v2746_v26  ;;  %v6105_v26 = vpack.c.bf16 %v3440_v10, %v3438_v27  ;;  %v6107_v25 = vpack.c.bf16 %v3445_v18, %v3443_v22  ;;  %v6109_v22 = vpack.c.bf16 %v3444_v17, %v3442_v21  ;;  %v3451_v17 = vld [vmem:[%s12734_s3 + $0x7c8] sm:$0xff]  ;;  %v3453_v21 = vld [vmem:[%s12734_s3 + $0x7d8] sm:$0xff] }
 0x3cf   : > { %6098 = vmatpush1.bf16.msra.mxu0 %v6097_v52 }
 0x3d0   : > { %6100 = vmatprep.subr.bf16.mxu0 %v6099_v15 }
 0x3d1   : > { %v10450_v2 = vpop.permute.xlu1 %7180 }
 0x3d2   : > { %v12838_v52 = vunpack.i.h.bf16 %v10450_v2  ;;  %v7182_v56 = vunpack.i.l.bf16 %v10450_v2 }
 0x3d3   : > { %6102 = vmatpush1.bf16.msra.mxu0 %v6101_v47 }
 0x3d4   : > { %v2750_v15 = vsel %vm2730_vm7, %v7182_v56, %v12838_v52  ;;  %6104 = vmatprep.subr.bf16.mxu0 %v6103_v24  ;;  %v2749_v49 = vsel %vm2730_vm7, %v13008_v57, %v7182_v56  ;;  %v3447_v24 = vld [vmem:[%s12734_s3 + $0x7a8] sm:$0xff]  ;;  %v3448_v57 = vld [vmem:[%s12734_s3 + $0x7b0] sm:$0xff] }
 0x3d5   : > { %v10472_v47 = vpop.permute.xlu1 %7185  ;;  %4138 = vmatprep.mubr.f32.mxu0 %v2750_v15  ;;  %v6111_v56 = vpack.c.bf16 %v3449_v8, %v3447_v24  ;;  %v3446_v15 = vld [vmem:[%s12734_s3 + $0x7a0] sm:$0xff] }
 0x3d6   : > { %v12839_v27 = vunpack.i.h.bf16 %v10472_v47  ;;  %v7187_v10 = vunpack.i.l.bf16 %v10472_v47  ;;  %4139 = vmatmul.mubr.f32.gmra.mrb[12].mxu0 %v2749_v49 }
 0x3d7   : > { %6106 = vmatpush1.bf16.msra.mxu0 %v6105_v26 }
 0x3d8   : > { %v2529_v18 = vsel %vm2501_vm6, %v7187_v10, %v12839_v27  ;;  %6108 = vmatprep.subr.bf16.mxu0 %v6107_v25  ;;  %v6115_v10 = vpack.c.bf16 %v3453_v21, %v3451_v17  ;;  %v13009_v17 = vld [vmem:[#allocation17_spill] sm:$0xff] }
 0x3d9   : > { %v10492_v52 = vmax.f32 %v9354_v13, %v2529_v18  ;;  %v10494_v49 = vpop.permute.xlu0 %7190  ;;  %v6113_v13 = vpack.c.bf16 %v3448_v57, %v3446_v15  ;;  %v3450_v18 = vld [vmem:[%s12734_s3 + $0x7c0] sm:$0xff]  ;;  %v10517_v27 = vpop.permute.xlu1 %2799 }
 0x3da   : > { %v12840_v26 = vunpack.i.h.bf16 %v10494_v49  ;;  %v7192_v25 = vunpack.i.l.bf16 %v10494_v49 }
 0x3db   : > { %6110 = vmatpush1.bf16.msra.mxu0 %v6109_v22  ;;  %2855 = vrot.lane.b32.xlu1 %v10492_v52, %s7464_s18  ;;  %v3452_v22 = vld [vmem:[%s12734_s3 + $0x7d0] sm:$0xff] }
 0x3dc   : > { %v2753_v24 = vsel %vm2730_vm7, %v7192_v25, %v12840_v26  ;;  %6112 = vmatprep.subr.bf16.mxu0 %v6111_v56  ;;  %v2752_v8 = vsel %vm2730_vm7, %v10142_v1, %v7192_v25  ;;  %v3455_v56 = vld [vmem:[%s12734_s3 + $0x7e8] sm:$0xff]  ;;  %v3457_v1 = vld [vmem:[%s12734_s3 + $0x7f8] sm:$0xff]  ;;  %v6117_v21 = vpack.c.bf16 %v3452_v22, %v3450_v18  ;;  %v3456_v26 = vld [vmem:[%s12734_s3 + $0x7f0] sm:$0xff] }
 0x3dd   : > { %v2673_v15 = vpop.permute.xlu0 %2672  ;;  %4144 = vmatprep.mubr.f32.mxu0 %v2753_v24  ;;  %v6119_v25 = vpack.c.bf16 %v3457_v1, %v3455_v56  ;;  %v3454_v24 = vld [vmem:[%s12734_s3 + $0x7e0] sm:$0xff]  ;;  %v3461_v18 = vld [vmem:[%s12734_s3 + $0x818] sm:$0xff]  ;;  %v10543_v56 = vpop.permute.xlu1 %7200 }
 0x3de   : > { %4145 = vmatmul.mubr.f32.gmra.mrb[14].mxu0 %v2752_v8  ;;  %v3178_v57 = vsel %vm2863_vm8, %v2673_v15, %v10517_v27 }
 0x3df   : > { %6114 = vmatpush1.bf16.msra.mxu0 %v6113_v13  ;;  %2483 = vrot.lane.b32.xlu1 %v13009_v17, %s7462_s17  ;;  %v3459_v13 = vld [vmem:[%s12734_s3 + $0x808] sm:$0xff] }
 0x3e0   : > { %4215 = vmatprep.mubr.f32.mxu0 %v3178_v57  ;;  %6116 = vmatprep.subr.bf16.mxu0 %v6115_v10  ;;  %v6121_v10 = vpack.c.bf16 %v3456_v26, %v3454_v24  ;;  %v6123_v22 = vpack.c.bf16 %v3461_v18, %v3459_v13  ;;  %v3458_v57 = vld [vmem:[%s12734_s3 + $0x800] sm:$0xff]  ;;  %v3465_v26 = vld [vmem:[%s12734_s3 + $0x838] sm:$0xff]  ;;  %v13010_v24 = vunpack.i.h.bf16 %v10256_v43  ;;  %v3467_v43 = vld [vmem:[%s12734_s3 + $0x848] sm:$0xff] }
 0x3e1   : > { %v7196_v8 = vpop.permute.xlu0 %7195 }
 0x3e2   : > { %v7197_v30 = vunpack.i.l.bf16 %v7196_v8  ;;  %v2733_v13 = vsel %vm2730_vm7, %v13010_v24, %v2673_v15  ;;  %v3469_v15 = vld [vmem:[%s12734_s3 + $0x858] sm:$0xff] }
 0x3e3   : > { %6118 = vmatpush1.bf16.msra.mxu0 %v6117_v21  ;;  %7230 = vrot.lane.b32.xlu1 %v9972_v50, %s7464_s18  ;;  %v3463_v50 = vld [vmem:[%s12734_s3 + $0x828] sm:$0xff]  ;;  %v12846_v21 = vunpack.i.l.bf16 %v10543_v56 }
 0x3e4   : > { %6120 = vmatprep.subr.bf16.mxu0 %v6119_v25  ;;  %v6125_v25 = vpack.c.bf16 %v3460_v23, %v3458_v57  ;;  %v6127_v37 = vpack.c.bf16 %v3465_v26, %v3463_v50  ;;  %v10585_v57 = vpop.permute.xlu1 %7210  ;;  %v13011_v26 = vunpack.i.h.bf16 %v10292_v58 }
 0x3e5   : > { %v10545_v1 = vpop.permute.xlu0 %7205  ;;  %v3179_v23 = vsel %vm2863_vm8, %v7197_v30, %v12846_v21  ;;  %v12851_v58 = vunpack.i.l.bf16 %v10585_v57 }
 0x3e6   : > { %v2736_v24 = vsel %vm2730_vm7, %v13011_v26, %v7197_v30  ;;  %v3471_v30 = vld [vmem:[%s12734_s3 + $0x868] sm:$0xff]  ;;  %v7208_v21 = vunpack.i.h.bf16 %v10545_v1 }
 0x3e7   : > { %6122 = vmatpush1.bf16.msra.mxu0 %v6121_v10  ;;  %7240 = vrot.lane.b32.xlu1 %v10057_v39, %s7464_s18  ;;  %v3464_v10 = vld [vmem:[%s12734_s3 + $0x830] sm:$0xff]  ;;  %v7198_v39 = vunpack.i.h.bf16 %v7196_v8 }
 0x3e8   : > { %6124 = vmatprep.subr.bf16.mxu0 %v6123_v22  ;;  %v12845_v22 = vunpack.i.h.bf16 %v10543_v56  ;;  %v6129_v8 = vpack.c.bf16 %v3464_v10, %v3462_v48  ;;  %v7207_v48 = vunpack.i.l.bf16 %v10545_v1 }
 0x3e9   : > { %v10565_v18 = vpop.permute.xlu0 %7215 }
 0x3ea   : > { %4216 = vmatmul.mubr.f32.vlgmr.msra.gmra.mrb[0].mxu0 %v2733_v13  ;;  %v6131_v13 = vpack.c.bf16 %v3469_v15, %v3467_v43  ;;  %v13012_v15 = vunpack.i.h.bf16 %v10326_v59  ;;  %v3181_v59 = vsel %vm2863_vm8, %v7207_v48, %v12851_v58  ;;  %v7269_v58 = vpack.i.bf16 %v9952_v44, %v9623_v34 }
 0x3eb   : > { %4221 = vmatprep.mubr.f32.mxu0 %v3179_v23  ;;  %7250 = vrot.lane.b32.xlu1 %v10146_v36, %s7464_s18  ;;  %v3466_v23 = vld [vmem:[%s12734_s3 + $0x840] sm:$0xff]  ;;  %v3468_v36 = vld [vmem:[%s12734_s3 + $0x850] sm:$0xff] }
 0x3ec   : > { %6126 = vmatpush1.bf16.msra.mxu0 %v6125_v25  ;;  %v3180_v25 = vsel %vm2863_vm8, %v7198_v39, %v12845_v22  ;;  %v6133_v10 = vpack.c.bf16 %v3468_v36, %v3466_v23  ;;  %v2739_v26 = vsel %vm2730_vm7, %v13012_v15, %v7198_v39  ;;  %v3470_v22 = vld [vmem:[%s12734_s3 + $0x860] sm:$0xff]  ;;  %v3475_v39 = vld [vmem:[%s12734_s3 + $0x888] sm:$0xff]  ;;  %v13014_v15 = vunpack.i.h.bf16 %v10348_v35 }
 0x3ed   : > { %v10587_v50 = vpop.permute.xlu0 %2728  ;;  %6128 = vmatprep.subr.bf16.mxu0 %v6127_v37  ;;  %v3473_v37 = vld [vmem:[%s12734_s3 + $0x878] sm:$0xff]  ;;  %v3479_v35 = vld [vmem:[%s12734_s3 + $0x8a8] sm:$0xff] }
 0x3ee   : > { %4222 = vmatmul.mubr.f32.gmra.mrb[2].mxu0 %v2736_v24  ;;  %v6135_v24 = vpack.c.bf16 %v3473_v37, %v3471_v30  ;;  %v10640_v30 = vpop.permute.xlu1 %7220 }
 0x3ef   : > { %4227 = vmatprep.mubr.f32.mxu0 %v3180_v25  ;;  %2489 = vrot.lane.b32.xlu1 %v9789_v14, %s7462_s17  ;;  %v3472_v25 = vld [vmem:[%s12734_s3 + $0x870] sm:$0xff] }
 0x3f0   : > { %6130 = vmatpush1.bf16.msra.mxu0 %v6129_v8  ;;  %v13013_v8 = vunpack.i.h.bf16 %v10472_v47  ;;  %v12850_v47 = vunpack.i.h.bf16 %v10585_v57  ;;  %v6137_v36 = vpack.c.bf16 %v3472_v25, %v3470_v22  ;;  %v3476_v22 = vld [vmem:[%s12734_s3 + $0x890] sm:$0xff] }
 0x3f1   : > { %v10611_v43 = vpop.permute.xlu0 %2481  ;;  %6132 = vmatprep.subr.bf16.mxu0 %v6131_v13  ;;  %v3477_v13 = vld [vmem:[%s12734_s3 + $0x898] sm:$0xff] }
 0x3f2   : > { %v2530_v23 = vsel %vm2501_vm6, %v13013_v8, %v10611_v43  ;;  %4228 = vmatmul.mubr.f32.gmra.mrb[4].mxu0 %v2739_v26  ;;  %v2742_v26 = vsel %vm2730_vm7, %v13014_v15, %v7207_v48  ;;  %v6139_v8 = vpack.c.bf16 %v3477_v13, %v3475_v39  ;;  %v3481_v48 = vld [vmem:[%s12734_s3 + $0x8b8] sm:$0xff]  ;;  %v3478_v13 = vld [vmem:[%s12734_s3 + $0x8a0] sm:$0xff]  ;;  %v3480_v15 = vld [vmem:[%s12734_s3 + $0x8b0] sm:$0xff] }
 0x3f3   : > { %v10637_v1 = vmax.f32 %v9356_v7, %v2530_v23  ;;  %4233 = vmatprep.mubr.f32.mxu0 %v3181_v59  ;;  %v3474_v7 = vld [vmem:[%s12734_s3 + $0x880] sm:$0xff]  ;;  %v13015_v23 = vunpack.i.h.bf16 %v10382_v41  ;;  %v6143_v39 = vpack.c.bf16 %v3481_v48, %v3479_v35  ;;  %v3483_v41 = vld [vmem:[%s12734_s3 + $0x8c8] sm:$0xff]  ;;  %v3484_v48 = vld [vmem:[%s12734_s3 + $0x8d0] sm:$0xff] }
 0x3f4   : > { %6134 = vmatpush1.bf16.msra.mxu0 %v6133_v10  ;;  %v7217_v10 = vunpack.i.l.bf16 %v10565_v18  ;;  %v6141_v25 = vpack.c.bf16 %v3476_v22, %v3474_v7  ;;  %v6145_v7 = vpack.c.bf16 %v3480_v15, %v3478_v13  ;;  %v3482_v35 = vld [vmem:[%s12734_s3 + $0x8c0] sm:$0xff] }
 0x3f5   : > { %v10644_v37 = vpack.i.bf16 %v10637_v1, %v10492_v52  ;;  %6136 = vmatprep.subr.bf16.mxu0 %v6135_v24  ;;  %v3182_v52 = vsel %vm2863_vm8, %v7208_v21, %v12850_v47  ;;  %v12849_v24 = vunpack.i.l.bf16 %v10640_v30  ;;  %v2745_v59 = vsel %vm2730_vm7, %v13015_v23, %v7208_v21  ;;  %v3485_v21 = vld [vmem:[%s12734_s3 + $0x8d8] sm:$0xff]  ;;  %v3486_v15 = vld [vmem:[%s12734_s3 + $0x8e0] sm:$0xff] }
 0x3f6   : > { %4234 = vmatmul.mubr.f32.gmra.mrb[6].mxu0 %v2742_v26  ;;  %v7218_v26 = vunpack.i.h.bf16 %v10565_v18  ;;  %v13016_v18 = vunpack.i.h.bf16 %v10416_v63  ;;  %v3487_v63 = vld [vmem:[%s12734_s3 + $0x8e8] sm:$0xff]  ;;  %v6149_v23 = vpack.c.bf16 %v3484_v48, %v3482_v35 }
 0x3f7   : > { %4239 = vmatprep.mubr.f32.mxu0 %v3182_v52  ;;  %7315 = vrot.lane.b32.xlu0 %v10644_v37, %s7465_s24  ;;  %v6147_v52 = vpack.c.bf16 %v3485_v21, %v3483_v41  ;;  %v3491_v41 = vld [vmem:[%s12734_s3 + $0x908] sm:$0xff] }
 0x3f8   : > { %6138 = vmatpush1.bf16.msra.mxu0 %v6137_v36  ;;  %v3183_v36 = vsel %vm2863_vm8, %v7217_v10, %v12849_v24  ;;  %v2748_v22 = vsel %vm2730_vm7, %v13016_v18, %v7217_v10  ;;  %v3489_v10 = vld [vmem:[%s12734_s3 + $0x8f8] sm:$0xff]  ;;  %v3492_v18 = vld [vmem:[%s12734_s3 + $0x910] sm:$0xff] }
 0x3f9   : > { %6140 = vmatprep.subr.bf16.mxu0 %v6139_v8  ;;  %v12848_v8 = vunpack.i.h.bf16 %v10640_v30  ;;  %v6151_v13 = vpack.c.bf16 %v3489_v10, %v3487_v63  ;;  %v3496_v63 = vld [vmem:[%s12734_s3 + $0x930] sm:$0xff]  ;;  %v3499_v10 = vld [vmem:[%s12734_s3 + $0x948] sm:$0xff] }
 0x3fa   : > { %4240 = vmatmul.mubr.f32.gmra.mrb[8].mxu0 %v2745_v59  ;;  %v13017_v59 = vunpack.i.h.bf16 %v10450_v2  ;;  %v3493_v2 = vld [vmem:[%s12734_s3 + $0x918] sm:$0xff] }
 0x3fb   : > { %4245 = vmatprep.mubr.f32.mxu0 %v3183_v36  ;;  %v3488_v36 = vld [vmem:[%s12734_s3 + $0x8f0] sm:$0xff]  ;;  %v6155_v21 = vpack.c.bf16 %v3493_v2, %v3491_v41  ;;  %v3505_v41 = vld [vmem:[%s12734_s3 + $0x978] sm:$0xff] }
 0x3fc   : > { %6142 = vmatpush1.bf16.msra.mxu0 %v6141_v25  ;;  %v3184_v25 = vsel %vm2863_vm8, %v7218_v26, %v12848_v8 }
 0x3fd   : > { %6144 = vmatprep.subr.bf16.mxu0 %v6143_v39  ;;  %v2751_v39 = vsel %vm2730_vm7, %v13017_v59, %v7218_v26  ;;  %v6153_v26 = vpack.c.bf16 %v3488_v36, %v3486_v15  ;;  %v3500_v15 = vld [vmem:[%s12734_s3 + $0x950] sm:$0xff]  ;;  %v3503_v36 = vld [vmem:[%s12734_s3 + $0x968] sm:$0xff] }
 0x3fe   : > { %4246 = vmatmul.mubr.f32.gmra.mrb[10].mxu0 %v2748_v22  ;;  %v3495_v22 = vld [vmem:[%s12734_s3 + $0x928] sm:$0xff] }
 0x3ff   : > { %4251 = vmatprep.mubr.f32.mxu0 %v3184_v25  ;;  %v3494_v25 = vld [vmem:[%s12734_s3 + $0x920] sm:$0xff] }
 0x400   : > { %6146 = vmatpush1.bf16.msra.mxu0 %v6145_v7  ;;  %v3490_v7 = vld [vmem:[%s12734_s3 + $0x900] sm:$0xff]  ;;  %v6161_v59 = vpack.c.bf16 %v3496_v63, %v3494_v25  ;;  %v3508_v25 = vld [vmem:[%s12734_s3 + $0x990] sm:$0xff]  ;;  %v3511_v63 = vld [vmem:[%s12734_s3 + $0x9a8] sm:$0xff] }
 0x401   : > { %6148 = vmatprep.subr.bf16.mxu0 %v6147_v52  ;;  %v3497_v52 = vld [vmem:[%s12734_s3 + $0x938] sm:$0xff]  ;;  %v6157_v35 = vpack.c.bf16 %v3492_v18, %v3490_v7  ;;  %v3504_v7 = vld [vmem:[%s12734_s3 + $0x970] sm:$0xff]  ;;  %v3507_v18 = vld [vmem:[%s12734_s3 + $0x988] sm:$0xff] }
 0x402   : > { %4252 = vmatmul.mubr.f32.gmra.mrb[12].mxu0 %v2751_v39  ;;  %v6159_v48 = vpack.c.bf16 %v3497_v52, %v3495_v22  ;;  %v3509_v22 = vld [vmem:[%s12734_s3 + $0x998] sm:$0xff] }
 0x404   : > { %6150 = vmatpush1.bf16.msra.mxu0 %v6149_v23  ;;  %v3501_v23 = vld [vmem:[%s12734_s3 + $0x958] sm:$0xff] }
 0x405   : > { %6152 = vmatprep.subr.bf16.mxu0 %v6151_v13  ;;  %v6163_v39 = vpack.c.bf16 %v3501_v23, %v3499_v10  ;;  %v3498_v13 = vld [vmem:[%s12734_s3 + $0x940] sm:$0xff]  ;;  %v3513_v10 = vld [vmem:[%s12734_s3 + $0x9b8] sm:$0xff] }
 0x406   : > { %v6165_v2 = vpack.c.bf16 %v3500_v15, %v3498_v13  ;;  %v3512_v13 = vld [vmem:[%s12734_s3 + $0x9b0] sm:$0xff]  ;;  %v3515_v15 = vld [vmem:[%s12734_s3 + $0x9c8] sm:$0xff] }
 0x408   : > { %6154 = vmatpush1.bf16.msra.mxu0 %v6153_v26  ;;  %v6167_v26 = vpack.c.bf16 %v3505_v41, %v3503_v36  ;;  %v3517_v36 = vld [vmem:[%s12734_s3 + $0x9d8] sm:$0xff] }
 0x409   : > { %6156 = vmatprep.subr.bf16.mxu0 %v6155_v21  ;;  %v3502_v21 = vld [vmem:[%s12734_s3 + $0x960] sm:$0xff] }
 0x40a   : > { %v6169_v52 = vpack.c.bf16 %v3504_v7, %v3502_v21  ;;  %v3516_v21 = vld [vmem:[%s12734_s3 + $0x9d0] sm:$0xff]  ;;  %v3519_v7 = vld [vmem:[%s12734_s3 + $0x9e8] sm:$0xff] }
 0x40c   : > { %6158 = vmatpush1.bf16.msra.mxu0 %v6157_v35  ;;  %v6171_v35 = vpack.c.bf16 %v3509_v22, %v3507_v18  ;;  %v3521_v18 = vld [vmem:[%s12734_s3 + $0x9f8] sm:$0xff] }
 0x40d   : > { %6160 = vmatprep.subr.bf16.mxu0 %v6159_v48  ;;  %v3506_v48 = vld [vmem:[%s12734_s3 + $0x980] sm:$0xff] }
 0x40e   : > { %v6173_v23 = vpack.c.bf16 %v3508_v25, %v3506_v48  ;;  %v3520_v48 = vld [vmem:[%s12734_s3 + $0x9f0] sm:$0xff]  ;;  %v3523_v25 = vld [vmem:[%s12734_s3 + $0xa08] sm:$0xff] }
 0x410   : > { %6162 = vmatpush1.bf16.msra.mxu0 %v6161_v59  ;;  %v6175_v59 = vpack.c.bf16 %v3513_v10, %v3511_v63  ;;  %v3525_v63 = vld [vmem:[%s12734_s3 + $0xa18] sm:$0xff] }
 0x411   : > { %6164 = vmatprep.subr.bf16.mxu0 %v6163_v39  ;;  %v3510_v39 = vld [vmem:[%s12734_s3 + $0x9a0] sm:$0xff] }
 0x412   : > { %v6177_v41 = vpack.c.bf16 %v3512_v13, %v3510_v39  ;;  %v3205_v39 = vld [vmem:[%s12734_s3 + $0x18] sm:$0xff]  ;;  %v3202_v13 = vld [vmem:[%s12734_s3] sm:$0xff] }
 0x414   : > { %6166 = vmatpush1.bf16.msra.mxu0 %v6165_v2  ;;  %v6179_v2 = vpack.c.bf16 %v3517_v36, %v3515_v15  ;;  %v3204_v15 = vld [vmem:[%s12734_s3 + $0x10] sm:$0xff] }
 0x415   : > { %6168 = vmatprep.subr.bf16.mxu0 %v6167_v26  ;;  %v3514_v26 = vld [vmem:[%s12734_s3 + $0x9c0] sm:$0xff] }
 0x416   : > { %v6181_v22 = vpack.c.bf16 %v3516_v21, %v3514_v26  ;;  %v3207_v21 = vld [vmem:[%s12734_s3 + $0x28] sm:$0xff] }
 0x418   : > { %6170 = vmatpush1.bf16.msra.mxu0 %v6169_v52  ;;  %v6183_v52 = vpack.c.bf16 %v3521_v18, %v3519_v7  ;;  %v3209_v7 = vld [vmem:[%s12734_s3 + $0x38] sm:$0xff]  ;;  %v3206_v18 = vld [vmem:[%s12734_s3 + $0x20] sm:$0xff] }
 0x419   : > { %6172 = vmatprep.subr.bf16.mxu0 %v6171_v35  ;;  %v3518_v35 = vld [vmem:[%s12734_s3 + $0x9e0] sm:$0xff] }
 0x41a   : > { %v6185_v10 = vpack.c.bf16 %v3520_v48, %v3518_v35 }
 0x41c   : > { %6174 = vmatpush1.bf16.msra.mxu0 %v6173_v23  ;;  %v6187_v23 = vpack.c.bf16 %v3525_v63, %v3523_v25 }
 0x41d   : > { %6176 = vmatprep.subr.bf16.mxu0 %v6175_v59  ;;  %v3203_v59 = vld [vmem:[%s12734_s3 + $0x8] sm:$0xff] }
 0x41e   : > { %v5867_v36 = vpack.c.bf16 %v3205_v39, %v3203_v59  ;;  %v3524_v59 = vld [vmem:[%s12734_s3 + $0xa10] sm:$0xff] }
 0x420   : > { %6178 = vmatpush1.bf16.msra.mxu0 %v6177_v41  ;;  %v5869_v41 = vpack.c.bf16 %v3204_v15, %v3202_v13  ;;  %5868 = vmatprep.subr.bf16.mxu1 %v5867_v36  ;;  %v3211_v13 = vld [vmem:[%s12734_s3 + $0x48] sm:$0xff]  ;;  %v3213_v15 = vld [vmem:[%s12734_s3 + $0x58] sm:$0xff]  ;;  %v3210_v36 = vld [vmem:[%s12734_s3 + $0x40] sm:$0xff] }
 0x421   : > { %6180 = vmatprep.subr.bf16.mxu0 %v6179_v2  ;;  %v10829_v2 = vpop.permute.xlu0 %7225 }
 0x422   : > { %5870 = vmatpush1.bf16.msra.mxu1 %v5869_v41  ;;  %v12847_v35 = vunpack.i.h.bf16 %v10829_v2  ;;  %v7227_v48 = vunpack.i.l.bf16 %v10829_v2  ;;  %v13018_v41 = vunpack.i.h.bf16 %v10494_v49 }
 0x424   : > { %6182 = vmatpush1.bf16.msra.mxu0 %v6181_v22  ;;  %v5871_v22 = vpack.c.bf16 %v3209_v7, %v3207_v21  ;;  %v2754_v21 = vsel %vm2730_vm7, %v13018_v41, %v10587_v50  ;;  %v3527_v7 = vld [vmem:[%s12734_s3 + $0xa28] sm:$0xff]  ;;  %v2865_v49 = vsel %vm2863_vm8, %v7227_v48, %v12847_v35  ;;  %v3526_v41 = vld [vmem:[%s12734_s3 + $0xa20] sm:$0xff] }
 0x425   : > { %6184 = vmatprep.subr.bf16.mxu0 %v6183_v52  ;;  %v10831_v26 = vpop.permute.xlu0 %7235  ;;  %v3208_v52 = vld [vmem:[%s12734_s3 + $0x30] sm:$0xff]  ;;  %v3530_v35 = vld [vmem:[%s12734_s3 + $0xa40] sm:$0xff] }
 0x426   : > { %v5873_v25 = vpack.c.bf16 %v3208_v52, %v3206_v18  ;;  %5872 = vmatprep.subr.bf16.mxu1 %v5871_v22  ;;  %v3529_v18 = vld [vmem:[%s12734_s3 + $0xa38] sm:$0xff]  ;;  %v5875_v22 = vpack.c.bf16 %v3213_v15, %v3211_v13  ;;  %v3212_v52 = vld [vmem:[%s12734_s3 + $0x50] sm:$0xff] }
 0x427   : > { %v6191_v15 = vpack.c.bf16 %v3529_v18, %v3527_v7  ;;  %v3215_v7 = vld [vmem:[%s12734_s3 + $0x68] sm:$0xff]  ;;  %v3217_v18 = vld [vmem:[%s12734_s3 + $0x78] sm:$0xff] }
 0x428   : > { %6186 = vmatpush1.bf16.msra.mxu0 %v6185_v10  ;;  %5874 = vmatpush1.bf16.msra.mxu1 %v5873_v25  ;;  %v5877_v25 = vpack.c.bf16 %v3212_v52, %v3210_v36  ;;  %v3531_v36 = vld [vmem:[%s12734_s3 + $0xa48] sm:$0xff]  ;;  %v3214_v52 = vld [vmem:[%s12734_s3 + $0x60] sm:$0xff] }
 0x429   : > { %6188 = vmatprep.subr.bf16.mxu0 %v6187_v23  ;;  %v10847_v63 = vpop.permute.xlu0 %7245  ;;  %v3522_v23 = vld [vmem:[%s12734_s3 + $0xa00] sm:$0xff]  ;;  %5876 = vmatprep.subr.bf16.mxu1 %v5875_v22 }
 0x42c   : > { %5878 = vmatpush1.bf16.msra.mxu1 %v5877_v25 }
 0x44d   : > { %v10849_v10 = vpop.permute.xlu1 %2855 }
 0x44e   : > { %v3185_v39 = vsel %vm2863_vm8, %v10587_v50, %v10849_v10 }
 0x44f   : > { %4257 = vmatprep.mubr.f32.mxu0 %v3185_v39  ;;  %v6189_v39 = vpack.c.bf16 %v3524_v59, %v3522_v23  ;;  %v3533_v23 = vld [vmem:[%s12734_s3 + $0xa58] sm:$0xff]  ;;  %v10902_v59 = vpop.permute.xlu0 %7255 }
 0x450   : > { %4258 = vmatmul.mubr.f32.gmra.mrb[14].mxu0 %v2754_v21  ;;  %v3528_v21 = vld [vmem:[%s12734_s3 + $0xa30] sm:$0xff]  ;;  %v6195_v24 = vpack.c.bf16 %v3533_v23, %v3531_v36  ;;  %v3218_v36 = vld [vmem:[%s12734_s3 + $0x80] sm:$0xff] }
 0x451   : > { %v10885_v50 = vpop.permute.xlu1 %2483  ;;  %4328 = vmatprep.mubr.f32.mxu0 %v2865_v49  ;;  %v5879_v49 = vpack.c.bf16 %v3217_v18, %v3215_v7 }
 0x452   : > { %v2531_v13 = vsel %vm2501_vm6, %v10611_v43, %v10885_v50  ;;  %v2864_v43 = vsel %vm2863_vm8, %v10517_v27, %v7227_v48 }
 0x453   : > { %v10905_v22 = vmax.f32 %v13001_v11, %v2531_v13  ;;  %v3216_v11 = vld [vmem:[%s12734_s3 + $0x70] sm:$0xff]  ;;  %v6193_v13 = vpack.c.bf16 %v3528_v21, %v3526_v41  ;;  %v3537_v41 = vld [vmem:[%s12734_s3 + $0xa78] sm:$0xff]  ;;  %5880 = vmatprep.subr.bf16.mxu1 %v5879_v49 }
 0x454   : > { %4329 = vmatmul.mubr.f32.vlgmr.msra.gmra.mrb[0].mxu0 %v2864_v43  ;;  %v5881_v8 = vpack.c.bf16 %v3216_v11, %v3214_v52  ;;  %v7237_v43 = vunpack.i.l.bf16 %v10831_v26  ;;  %v3221_v21 = vld [vmem:[%s12734_s3 + $0x98] sm:$0xff]  ;;  %v13019_v52 = vunpack.i.l.bf16 %v10543_v56  ;;  %v3220_v11 = vld [vmem:[%s12734_s3 + $0x90] sm:$0xff] }
 0x455   : > { %v7264_v48 = vpack.i.bf16 %v10905_v22, %v10637_v1  ;;  %v10924_v25 = vpop.permute.xlu1 %7230  ;;  %6190 = vmatpush1.bf16.msra.mxu0 %v6189_v39  ;;  %v3532_v1 = vld [vmem:[%s12734_s3 + $0xa50] sm:$0xff]  ;;  %v3535_v39 = vld [vmem:[%s12734_s3 + $0xa68] sm:$0xff] }
 0x456   : > { %v12852_v7 = vunpack.i.h.bf16 %v10924_v25  ;;  %v7232_v18 = vunpack.i.l.bf16 %v10924_v25  ;;  %6192 = vmatprep.subr.bf16.mxu0 %v6191_v15  ;;  %5882 = vmatpush1.bf16.msra.mxu1 %v5881_v8  ;;  %v3219_v15 = vld [vmem:[%s12734_s3 + $0x88] sm:$0xff]  ;;  %v6197_v27 = vpack.c.bf16 %v3532_v1, %v3530_v35  ;;  %v3536_v35 = vld [vmem:[%s12734_s3 + $0xa70] sm:$0xff]  ;;  %v3541_v1 = vld [vmem:[%s12734_s3 + $0xa98] sm:$0xff] }
 0x457   : > { %7265 = vrot.lane.b32.xlu1 %v7264_v48, %s7464_s18  ;;  %v5883_v49 = vpack.c.bf16 %v3221_v21, %v3219_v15  ;;  %v10960_v48 = vpop.permute.xlu0 %7260  ;;  %v13021_v15 = vunpack.i.h.bf16 %v10543_v56 }
 0x458   : > { %v2868_v23 = vsel %vm2863_vm8, %v7232_v18, %v12852_v7  ;;  %v2867_v8 = vsel %vm2863_vm8, %v13019_v52, %v7232_v18  ;;  %v3534_v7 = vld [vmem:[%s12734_s3 + $0xa60] sm:$0xff]  ;;  %v5885_v18 = vpack.c.bf16 %v3220_v11, %v3218_v36  ;;  %v13020_v52 = vunpack.i.h.bf16 %v10831_v26  ;;  %v3224_v11 = vld [vmem:[%s12734_s3 + $0xb0] sm:$0xff] }
 0x459   : > { %v10962_v47 = vpop.permute.xlu1 %7240  ;;  %4334 = vmatprep.mubr.f32.mxu0 %v2868_v23  ;;  %6194 = vmatpush1.bf16.msra.mxu0 %v6193_v13  ;;  %v6199_v23 = vpack.c.bf16 %v3537_v41, %v3535_v39  ;;  %v3539_v13 = vld [vmem:[%s12734_s3 + $0xa88] sm:$0xff]  ;;  %v3225_v39 = vld [vmem:[%s12734_s3 + $0xb8] sm:$0xff]  ;;  %v3222_v41 = vld [vmem:[%s12734_s3 + $0xa0] sm:$0xff]  ;;  %v7263_v36 = vunpack.i.h.bf16 %v10960_v48  ;;  %v2870_v34 = vsel %vm2863_vm8, %v13021_v15, %v7237_v43  ;;  %v6201_v44 = vpack.c.bf16 %v3536_v35, %v3534_v7 }
 0x45a   : > { %v7242_v21 = vunpack.i.l.bf16 %v10962_v47  ;;  %4335 = vmatmul.mubr.f32.gmra.mrb[2].mxu0 %v2867_v8  ;;  %v2871_v33 = vsel %vm2863_vm8, %v7237_v43, %v13020_v52  ;;  %6196 = vmatprep.subr.bf16.mxu0 %v6195_v24  ;;  %v3223_v24 = vld [vmem:[%s12734_s3 + $0xa8] sm:$0xff]  ;;  %v7262_v8 = vunpack.i.l.bf16 %v10960_v48  ;;  %v3538_v48 = vld [vmem:[%s12734_s3 + $0xa80] sm:$0xff]  ;;  %v6203_v56 = vpack.c.bf16 %v3541_v1, %v3539_v13  ;;  %v3545_v7 = vld [vmem:[%s12734_s3 + $0xab8] sm:$0xff] }
 0x45b   : > { %7270 = vrot.lane.b32.xlu1 %v7269_v58, %s7465_s24  ;;  %4340 = vmatprep.mubr.f32.mxu0 %v2871_v33  ;;  %v10997_v58 = vpack.i.bf16 %v9982_v40, %v9685_v31  ;;  %v5887_v33 = vpack.c.bf16 %v3225_v39, %v3223_v24  ;;  %v5889_v31 = vpack.c.bf16 %v3224_v11, %v3222_v41  ;;  %v7247_v24 = vunpack.i.l.bf16 %v10847_v63  ;;  %v3543_v43 = vld [vmem:[%s12734_s3 + $0xaa8] sm:$0xff]  ;;  %v3226_v15 = vld [vmem:[%s12734_s3 + $0xc0] sm:$0xff] }
 0x45c   : > { %5884 = vmatprep.subr.bf16.mxu1 %v5883_v49  ;;  %v7248_v49 = vunpack.i.h.bf16 %v10847_v63  ;;  %v13022_v39 = vunpack.i.h.bf16 %v10962_v47  ;;  %v7289_v35 = vpack.i.bf16 %v10089_v20, %v10040_v29  ;;  %v13023_v41 = vunpack.i.l.bf16 %v10585_v57  ;;  %v3611_v63 = vld [vmem:[%s12734_s3 + $0xcc8] sm:$0xff] }
 0x45d   : > { %v11002_v52 = vpop.permute.xlu1 %7250  ;;  %6198 = vmatpush1.bf16.msra.mxu0 %v6197_v27  ;;  %5886 = vmatpush1.bf16.msra.mxu1 %v5885_v18  ;;  %v3540_v27 = vld [vmem:[%s12734_s3 + $0xa90] sm:$0xff]  ;;  %v3229_v18 = vld [vmem:[%s12734_s3 + $0xd8] sm:$0xff] }
 0x45e   : > { %4341 = vmatmul.mubr.f32.gmra.mrb[4].mxu0 %v2870_v34  ;;  %v2874_v40 = vsel %vm2863_vm8, %v7242_v21, %v13022_v39  ;;  %6200 = vmatprep.subr.bf16.mxu0 %v6199_v23  ;;  %v3227_v34 = vld [vmem:[%s12734_s3 + $0xc8] sm:$0xff]  ;;  %v2532_v23 = vsel %vm2501_vm6, %v7262_v8, %v7263_v36  ;;  %v2873_v11 = vsel %vm2863_vm8, %v13023_v41, %v7242_v21  ;;  %v3542_v8 = vld [vmem:[%s12734_s3 + $0xaa0] sm:$0xff]  ;;  %v13024_v41 = vunpack.i.h.bf16 %v10585_v57 }
 0x45f   : > { %7280 = vrot.lane.b32.xlu1 %v10997_v58, %s7465_s24  ;;  %4346 = vmatprep.mubr.f32.mxu0 %v2874_v40  ;;  %v5891_v13 = vpack.c.bf16 %v3229_v18, %v3227_v34  ;;  %v3228_v40 = vld [vmem:[%s12734_s3 + $0xd0] sm:$0xff]  ;;  %v6205_v39 = vpack.c.bf16 %v3540_v27, %v3538_v48  ;;  %v2877_v21 = vsel %vm2863_vm8, %v7247_v24, %v7248_v49  ;;  %v3547_v48 = vld [vmem:[%s12734_s3 + $0xac8] sm:$0xff]  ;;  %v3549_v27 = vld [vmem:[%s12734_s3 + $0xad8] sm:$0xff] }
 0x460   : > { %5888 = vmatprep.subr.bf16.mxu1 %v5887_v33  ;;  %v3544_v33 = vld [vmem:[%s12734_s3 + $0xab0] sm:$0xff]  ;;  %v5893_v34 = vpack.c.bf16 %v3228_v40, %v3226_v15  ;;  %v7252_v15 = vunpack.i.l.bf16 %v11002_v52  ;;  %v3546_v57 = vld [vmem:[%s12734_s3 + $0xac0] sm:$0xff] }
 0x461   : > { %v11041_v1 = vpop.permute.xlu1 %2489  ;;  %6202 = vmatpush1.bf16.msra.mxu0 %v6201_v44  ;;  %5890 = vmatpush1.bf16.msra.mxu1 %v5889_v31  ;;  %v6207_v44 = vpack.c.bf16 %v3545_v7, %v3543_v43  ;;  %v7253_v31 = vunpack.i.h.bf16 %v11002_v52  ;;  %v3233_v43 = vld [vmem:[%s12734_s3 + $0xf8] sm:$0xff]  ;;  %v3230_v7 = vld [vmem:[%s12734_s3 + $0xe0] sm:$0xff]  ;;  %v3615_v52 = vld [vmem:[%s12734_s3 + $0xce8] sm:$0xff] }
 0x462   : > { %v2533_v18 = vsel %vm2501_vm6, %v7263_v36, %v11041_v1  ;;  %4347 = vmatmul.mubr.f32.gmra.mrb[6].mxu0 %v2873_v11  ;;  %6204 = vmatprep.subr.bf16.mxu0 %v6203_v56  ;;  %v2626_v36 = vmax.f32 %v13002_v12, %v2532_v23  ;;  %v3231_v56 = vld [vmem:[%s12734_s3 + $0xe8] sm:$0xff]  ;;  %v2876_v12 = vsel %vm2863_vm8, %v13024_v41, %v7247_v24  ;;  %v3232_v11 = vld [vmem:[%s12734_s3 + $0xf0] sm:$0xff] }
 0x463   : > { %v2627_v40 = vmax.f32 %v13003_v61, %v2533_v18  ;;  %7290 = vrot.lane.b32.xlu1 %v7289_v35, %s7464_s18  ;;  %4352 = vmatprep.mubr.f32.mxu0 %v2877_v21  ;;  %v11082_v61 = vpack.i.bf16 %v10121_v45, %v9645_v16  ;;  %v6209_v23 = vpack.c.bf16 %v3544_v33, %v3542_v8  ;;  %v3551_v8 = vld [vmem:[%s12734_s3 + $0xae8] sm:$0xff]  ;;  %v7258_v33 = vunpack.i.h.bf16 %v10902_v59 }
 0x464   : > { %5892 = vmatprep.subr.bf16.mxu1 %v5891_v13  ;;  %v5895_v35 = vpack.c.bf16 %v3233_v43, %v3231_v56  ;;  %v5897_v24 = vpack.c.bf16 %v3232_v11, %v3230_v7  ;;  %v6211_v21 = vpack.c.bf16 %v3549_v27, %v3547_v48  ;;  %v3548_v13 = vld [vmem:[%s12734_s3 + $0xad0] sm:$0xff]  ;;  %v3235_v48 = vld [vmem:[%s12734_s3 + $0x108] sm:$0xff]  ;;  %v3237_v27 = vld [vmem:[%s12734_s3 + $0x118] sm:$0xff]  ;;  %v13025_v7 = vunpack.i.l.bf16 %v10640_v30 }
 0x465   : > { %v11087_v18 = vpack.i.bf16 %v2627_v40, %v2626_v36  ;;  %6206 = vmatpush1.bf16.msra.mxu0 %v6205_v39  ;;  %5894 = vmatpush1.bf16.msra.mxu1 %v5893_v34  ;;  %v3553_v39 = vld [vmem:[%s12734_s3 + $0xaf8] sm:$0xff]  ;;  %v7257_v34 = vunpack.i.l.bf16 %v10902_v59  ;;  %v11118_v36 = vpack.i.bf16 %v10172_v54, %v9765_v38  ;;  %v5899_v40 = vpack.c.bf16 %v3237_v27, %v3235_v48  ;;  %v3234_v56 = vld [vmem:[%s12734_s3 + $0x100] sm:$0xff]  ;;  %v3236_v43 = vld [vmem:[%s12734_s3 + $0x110] sm:$0xff] }
 0x466   : > { %4353 = vmatmul.mubr.f32.gmra.mrb[8].mxu0 %v2876_v12  ;;  %6208 = vmatprep.subr.bf16.mxu0 %v6207_v44  ;;  %v2880_v44 = vsel %vm2863_vm8, %v7252_v15, %v7253_v31  ;;  %v2879_v41 = vsel %vm2863_vm8, %v13025_v7, %v7252_v15  ;;  %v6213_v12 = vpack.c.bf16 %v3548_v13, %v3546_v57  ;;  %v3550_v38 = vld [vmem:[%s12734_s3 + $0xae0] sm:$0xff]  ;;  %v3552_v11 = vld [vmem:[%s12734_s3 + $0xaf0] sm:$0xff]  ;;  %v3557_v15 = vld [vmem:[%s12734_s3 + $0xb18] sm:$0xff]  ;;  %v13027_v13 = vunpack.i.h.bf16 %v10640_v30 }
 0x467   : > { %7300 = vrot.lane.b32.xlu1 %v11082_v61, %s7465_s24  ;;  %7320 = vrot.lane.b32.xlu0 %v11087_v18, %s7465_s24  ;;  %v5901_v54 = vpack.c.bf16 %v3236_v43, %v3234_v56  ;;  %v2883_v57 = vsel %vm2863_vm8, %v7257_v34, %v7258_v33  ;;  %v3240_v48 = vld [vmem:[%s12734_s3 + $0x130] sm:$0xff]  ;;  %v11169_v27 = vmax.f32 %v13009_v17, %v10885_v50  ;;  %v3559_v17 = vld [vmem:[%s12734_s3 + $0xb28] sm:$0xff] }
 0x468   : > { %4358 = vmatprep.mubr.f32.mxu0 %v2880_v44  ;;  %5896 = vmatprep.subr.bf16.mxu1 %v5895_v35  ;;  %v6215_v35 = vpack.c.bf16 %v3553_v39, %v3551_v8  ;;  %v3555_v44 = vld [vmem:[%s12734_s3 + $0xb08] sm:$0xff]  ;;  %v2882_v8 = vsel %vm2863_vm8, %v13027_v13, %v7257_v34  ;;  %v3238_v39 = vld [vmem:[%s12734_s3 + $0x120] sm:$0xff]  ;;  %v6217_v30 = vpack.c.bf16 %v3552_v11, %v3550_v38  ;;  %v3556_v43 = vld [vmem:[%s12734_s3 + $0xb10] sm:$0xff] }
 0x469   : > { %6210 = vmatpush1.bf16.msra.mxu0 %v6209_v23  ;;  %5898 = vmatpush1.bf16.msra.mxu1 %v5897_v24  ;;  %v13026_v23 = vpack.i.bf16 %v9949_v4, %v9955_v0  ;;  %v3239_v24 = vld [vmem:[%s12734_s3 + $0x128] sm:$0xff]  ;;  %v7334_v4 = vpack.i.bf16 %v10040_v29, %v10043_v3  ;;  %v3554_v34 = vld [vmem:[%s12734_s3 + $0xb00] sm:$0xff]  ;;  %v6219_v56 = vpack.c.bf16 %v3557_v15, %v3555_v44  ;;  %v3561_v50 = vld [vmem:[%s12734_s3 + $0xb38] sm:$0xff] }
 0x46a   : > { %4359 = vmatmul.mubr.f32.gmra.mrb[10].mxu0 %v2879_v41  ;;  %6212 = vmatprep.subr.bf16.mxu0 %v6211_v21  ;;  %v3241_v21 = vld [vmem:[%s12734_s3 + $0x138] sm:$0xff]  ;;  %v3243_v7 = vld [vmem:[%s12734_s3 + $0x148] sm:$0xff]  ;;  %v3242_v38 = vld [vmem:[%s12734_s3 + $0x140] sm:$0xff]  ;;  %v6221_v11 = vpack.c.bf16 %v3556_v43, %v3554_v34 }
 0x46b   : > { %7310 = vrot.lane.b32.xlu1 %v11118_v36, %s7465_s24  ;;  %7325 = vrot.lane.b32.xlu0 %v13026_v23, %s7465_s24  ;;  %v5903_v0 = vpack.c.bf16 %v3241_v21, %v3239_v24  ;;  %v3245_v41 = vld [vmem:[%s12734_s3 + $0x158] sm:$0xff]  ;;  %v3558_v44 = vld [vmem:[%s12734_s3 + $0xb20] sm:$0xff]  ;;  %v6223_v23 = vpack.c.bf16 %v3561_v50, %v3559_v17 }
 0x46c   : > { %4364 = vmatprep.mubr.f32.mxu0 %v2883_v57  ;;  %5900 = vmatprep.subr.bf16.mxu1 %v5899_v40  ;;  %v5905_v40 = vpack.c.bf16 %v3240_v48, %v3238_v39  ;;  %v3560_v57 = vld [vmem:[%s12734_s3 + $0xb30] sm:$0xff]  ;;  %v3563_v24 = vld [vmem:[%s12734_s3 + $0xb48] sm:$0xff]  ;;  %v3565_v21 = vld [vmem:[%s12734_s3 + $0xb58] sm:$0xff] }
 0x46d   : > { %6214 = vmatpush1.bf16.msra.mxu0 %v6213_v12  ;;  %5902 = vmatpush1.bf16.msra.mxu1 %v5901_v54  ;;  %v5907_v12 = vpack.c.bf16 %v3245_v41, %v3243_v7  ;;  %v3244_v54 = vld [vmem:[%s12734_s3 + $0x150] sm:$0xff]  ;;  %v3247_v13 = vld [vmem:[%s12734_s3 + $0x168] sm:$0xff]  ;;  %v3246_v39 = vld [vmem:[%s12734_s3 + $0x160] sm:$0xff]  ;;  %v6225_v34 = vpack.c.bf16 %v3560_v57, %v3558_v44  ;;  %v6227_v43 = vpack.c.bf16 %v3565_v21, %v3563_v24 }
 0x46e   : > { %4365 = vmatmul.mubr.f32.gmra.mrb[12].mxu0 %v2882_v8  ;;  %6216 = vmatprep.subr.bf16.mxu0 %v6215_v35  ;;  %v7344_v35 = vpack.i.bf16 %v10140_v28, %v10131_v51  ;;  %v5909_v15 = vpack.c.bf16 %v3244_v54, %v3242_v38  ;;  %v3249_v8 = vld [vmem:[%s12734_s3 + $0x178] sm:$0xff]  ;;  %v3248_v48 = vld [vmem:[%s12734_s3 + $0x170] sm:$0xff]  ;;  %v3567_v50 = vld [vmem:[%s12734_s3 + $0xb68] sm:$0xff] }
 0x46f   : > { %2861 = vrot.lane.b32.xlu1 %v11169_v27, %s7464_s18  ;;  %7335 = vrot.lane.b32.xlu0 %v7334_v4, %s7465_s24  ;;  %v7329_v4 = vpack.i.bf16 %v9986_v46, %v9990_v6  ;;  %v3564_v17 = vld [vmem:[%s12734_s3 + $0xb50] sm:$0xff]  ;;  %v3569_v7 = vld [vmem:[%s12734_s3 + $0xb78] sm:$0xff]  ;;  %v13028_v38 = vld [vmem:[#allocation7_spill] sm:$0xff] }
 0x470   : > { %5904 = vmatprep.subr.bf16.mxu1 %v5903_v0  ;;  %v5911_v0 = vpack.c.bf16 %v3249_v8, %v3247_v13  ;;  %v3251_v41 = vld [vmem:[%s12734_s3 + $0x188] sm:$0xff]  ;;  %v13029_v54 = vld [vmem:[#allocation9_spill] sm:$0xff]  ;;  %v3250_v44 = vld [vmem:[%s12734_s3 + $0x180] sm:$0xff]  ;;  %v6231_v13 = vpack.c.bf16 %v3569_v7, %v3567_v50 }
 0x471   : > { %6218 = vmatpush1.bf16.msra.mxu0 %v6217_v30  ;;  %5906 = vmatpush1.bf16.msra.mxu1 %v5905_v40  ;;  %v7354_v30 = vpack.i.bf16 %v11169_v27, %v10905_v22  ;;  %v3562_v40 = vld [vmem:[%s12734_s3 + $0xb40] sm:$0xff]  ;;  %v3568_v8 = vld [vmem:[%s12734_s3 + $0xb70] sm:$0xff]  ;;  %v3619_v59 = vld [vmem:[%s12734_s3 + $0xd08] sm:$0xff] }
 0x472   : > { %6220 = vmatprep.subr.bf16.mxu0 %v6219_v56  ;;  %5908 = vmatprep.subr.bf16.mxu1 %v5907_v12  ;;  %v5913_v56 = vpack.c.bf16 %v3248_v48, %v3246_v39  ;;  %v3253_v12 = vld [vmem:[%s12734_s3 + $0x198] sm:$0xff]  ;;  %v6229_v57 = vpack.c.bf16 %v3564_v17, %v3562_v40  ;;  %v3566_v24 = vld [vmem:[%s12734_s3 + $0xb60] sm:$0xff]  ;;  %v3255_v39 = vld [vmem:[%s12734_s3 + $0x1a8] sm:$0xff] }
 0x473   : > { %2491 = vrot.lane.b32.xlu1 %v9791_v32, %s7462_s17  ;;  %7345 = vrot.lane.b32.xlu0 %v7344_v35, %s7465_s24  ;;  %v7359_v35 = vpack.i.bf16 %v13029_v54, %v13028_v38  ;;  %v3257_v48 = vld [vmem:[%s12734_s3 + $0x1b8] sm:$0xff]  ;;  %v3256_v40 = vld [vmem:[%s12734_s3 + $0x1b0] sm:$0xff] }
 0x474   : > { %v3570_v17 = vld [vmem:[%s12734_s3 + $0xb80] sm:$0xff] }
 0x475   : > { %6222 = vmatpush1.bf16.msra.mxu0 %v6221_v11  ;;  %5910 = vmatpush1.bf16.msra.mxu1 %v5909_v15  ;;  %v5915_v11 = vpack.c.bf16 %v3253_v12, %v3251_v41  ;;  %v3252_v15 = vld [vmem:[%s12734_s3 + $0x190] sm:$0xff]  ;;  %v3575_v12 = vld [vmem:[%s12734_s3 + $0xba8] sm:$0xff] }
 0x476   : > { %6224 = vmatprep.subr.bf16.mxu0 %v6223_v23  ;;  %5912 = vmatprep.subr.bf16.mxu1 %v5911_v0  ;;  %v7339_v23 = vpack.i.bf16 %v10089_v20, %v10092_v53  ;;  %v5917_v21 = vpack.c.bf16 %v3252_v15, %v3250_v44  ;;  %v3573_v0 = vld [vmem:[%s12734_s3 + $0xb98] sm:$0xff]  ;;  %v3572_v41 = vld [vmem:[%s12734_s3 + $0xb90] sm:$0xff] }
 0x477   : > { %7330 = vrot.lane.b32.xlu1 %v7329_v4, %s7465_s24  ;;  %7355 = vrot.lane.b32.xlu0 %v7354_v30, %s7465_s24  ;;  %v3571_v4 = vld [vmem:[%s12734_s3 + $0xb88] sm:$0xff]  ;;  %v5919_v30 = vpack.c.bf16 %v3257_v48, %v3255_v39  ;;  %v3261_v44 = vld [vmem:[%s12734_s3 + $0x1d8] sm:$0xff] }
 0x478   : > { %v6235_v7 = vpack.c.bf16 %v3573_v0, %v3571_v4  ;;  %v3579_v4 = vld [vmem:[%s12734_s3 + $0xbc8] sm:$0xff]  ;;  %v3581_v0 = vld [vmem:[%s12734_s3 + $0xbd8] sm:$0xff] }
 0x479   : > { %6226 = vmatpush1.bf16.msra.mxu0 %v6225_v34  ;;  %5914 = vmatpush1.bf16.msra.mxu1 %v5913_v56  ;;  %v3254_v34 = vld [vmem:[%s12734_s3 + $0x1a0] sm:$0xff]  ;;  %v7349_v56 = vpack.i.bf16 %v10217_v62, %v10182_v5  ;;  %v3263_v39 = vld [vmem:[%s12734_s3 + $0x1e8] sm:$0xff]  ;;  %v3265_v48 = vld [vmem:[%s12734_s3 + $0x1f8] sm:$0xff] }
 0x47a   : > { %6228 = vmatprep.subr.bf16.mxu0 %v6227_v43  ;;  %5916 = vmatprep.subr.bf16.mxu1 %v5915_v11  ;;  %v6233_v43 = vpack.c.bf16 %v3568_v8, %v3566_v24  ;;  %v5921_v50 = vpack.c.bf16 %v3256_v40, %v3254_v34  ;;  %v3259_v11 = vld [vmem:[%s12734_s3 + $0x1c8] sm:$0xff]  ;;  %v6237_v24 = vpack.c.bf16 %v3572_v41, %v3570_v17  ;;  %v3576_v8 = vld [vmem:[%s12734_s3 + $0xbb0] sm:$0xff]  ;;  %v3262_v34 = vld [vmem:[%s12734_s3 + $0x1e0] sm:$0xff] }
 0x47b   : > { %7340 = vrot.lane.b32.xlu1 %v7339_v23, %s7465_s24  ;;  %7360 = vrot.lane.b32.xlu0 %v7359_v35, %s7462_s17  ;;  %v3577_v35 = vld [vmem:[%s12734_s3 + $0xbb8] sm:$0xff]  ;;  %v5923_v15 = vpack.c.bf16 %v3261_v44, %v3259_v11  ;;  %v3258_v23 = vld [vmem:[%s12734_s3 + $0x1c0] sm:$0xff] }
 0x47c   : > { %v3578_v17 = vld [vmem:[%s12734_s3 + $0xbc0] sm:$0xff]  ;;  %v3585_v41 = vld [vmem:[%s12734_s3 + $0xbf8] sm:$0xff]  ;;  %v3584_v44 = vld [vmem:[%s12734_s3 + $0xbf0] sm:$0xff] }
 0x47d   : > { %6230 = vmatpush1.bf16.msra.mxu0 %v6229_v57  ;;  %5918 = vmatpush1.bf16.msra.mxu1 %v5917_v21  ;;  %v3260_v57 = vld [vmem:[%s12734_s3 + $0x1d0] sm:$0xff]  ;;  %v6239_v21 = vpack.c.bf16 %v3577_v35, %v3575_v12  ;;  %v3582_v11 = vld [vmem:[%s12734_s3 + $0xbe0] sm:$0xff] }
 0x47e   : > { %6232 = vmatprep.subr.bf16.mxu0 %v6231_v13  ;;  %5920 = vmatprep.subr.bf16.mxu1 %v5919_v30  ;;  %v3574_v13 = vld [vmem:[%s12734_s3 + $0xba0] sm:$0xff]  ;;  %v5927_v30 = vpack.c.bf16 %v3265_v48, %v3263_v39  ;;  %v3588_v39 = vld [vmem:[%s12734_s3 + $0xc10] sm:$0xff] }
 0x47f   : > { %7350 = vrot.lane.b32.xlu1 %v7349_v56, %s7465_s24  ;;  %7370 = vrot.lane.b32.xlu0 %v10997_v58, %s7466_s20  ;;  %v5925_v58 = vpack.c.bf16 %v3260_v57, %v3258_v23  ;;  %v6241_v40 = vpack.c.bf16 %v3576_v8, %v3574_v13  ;;  %v3589_v23 = vld [vmem:[%s12734_s3 + $0xc18] sm:$0xff]  ;;  %v13030_v57 = vld [vmem:[#allocation5_spill] sm:$0xff] }
 0x481   : > { %6234 = vmatpush1.bf16.msra.mxu0 %v6233_v43  ;;  %5922 = vmatpush1.bf16.msra.mxu1 %v5921_v50  ;;  %v6243_v43 = vpack.c.bf16 %v3581_v0, %v3579_v4  ;;  %v3580_v50 = vld [vmem:[%s12734_s3 + $0xbd0] sm:$0xff] }
 0x482   : > { %6236 = vmatprep.subr.bf16.mxu0 %v6235_v7  ;;  %5924 = vmatprep.subr.bf16.mxu1 %v5923_v15  ;;  %v3583_v7 = vld [vmem:[%s12734_s3 + $0xbe8] sm:$0xff]  ;;  %v6245_v12 = vpack.c.bf16 %v3580_v50, %v3578_v17 }
 0x483   : > { %7380 = vrot.lane.b32.xlu0 %v10246_v60, %s7466_s20  ;;  %v3264_v60 = vld [vmem:[%s12734_s3 + $0x1f0] sm:$0xff]  ;;  %v6247_v35 = vpack.c.bf16 %v3585_v41, %v3583_v7  ;;  %v3587_v15 = vld [vmem:[%s12734_s3 + $0xc08] sm:$0xff]  ;;  %v3590_v41 = vld [vmem:[%s12734_s3 + $0xc20] sm:$0xff] }
 0x484   : > { %v5929_v56 = vpack.c.bf16 %v3264_v60, %v3262_v34  ;;  %v6251_v13 = vpack.c.bf16 %v3589_v23, %v3587_v15  ;;  %v3593_v34 = vld [vmem:[%s12734_s3 + $0xc38] sm:$0xff] }
 0x485   : > { %6238 = vmatpush1.bf16.msra.mxu0 %v6237_v24  ;;  %5926 = vmatpush1.bf16.msra.mxu1 %v5925_v58  ;;  %v13031_v24 = vld [vmem:[#allocation3_spill] sm:$0xff]  ;;  %v3597_v15 = vld [vmem:[%s12734_s3 + $0xc58] sm:$0xff] }
 0x486   : > { %6240 = vmatprep.subr.bf16.mxu0 %v6239_v21  ;;  %5928 = vmatprep.subr.bf16.mxu1 %v5927_v30  ;;  %v7404_v58 = vpack.i.bf16 %v13031_v24, %v13030_v57  ;;  %v6249_v21 = vpack.c.bf16 %v3584_v44, %v3582_v11  ;;  %v3591_v30 = vld [vmem:[%s12734_s3 + $0xc28] sm:$0xff] }
 0x487   : > { %2499 = vrot.lane.b32.xlu0 %v9799_v9, %s7462_s17  ;;  %v6255_v7 = vpack.c.bf16 %v3593_v34, %v3591_v30  ;;  %v3595_v44 = vld [vmem:[%s12734_s3 + $0xc48] sm:$0xff]  ;;  %v3594_v34 = vld [vmem:[%s12734_s3 + $0xc40] sm:$0xff] }
 0x488   : > { %v6259_v30 = vpack.c.bf16 %v3597_v15, %v3595_v44  ;;  %v3598_v15 = vld [vmem:[%s12734_s3 + $0xc60] sm:$0xff] }
 0x489   : > { %6242 = vmatpush1.bf16.msra.mxu0 %v6241_v40  ;;  %5930 = vmatpush1.bf16.msra.mxu1 %v5929_v56  ;;  %v13032_v40 = vunpack.i.h.bf16 %v10829_v2 }
 0x48a   : > { %6244 = vmatprep.subr.bf16.mxu0 %v6243_v43 }
 0x48b   : > { %7395 = vrot.lane.b32.xlu0 %v10644_v37, %s7466_s20  ;;  %v2806_v37 = vpop.permute.xlu0 %2805 }
 0x48c   : > { %v2866_v56 = vsel %vm2863_vm8, %v13032_v40, %v2806_v37  ;;  %v13033_v37 = vunpack.i.h.bf16 %v10924_v25  ;;  %v3596_v25 = vld [vmem:[%s12734_s3 + $0xc50] sm:$0xff] }
 0x48d   : > { %6246 = vmatpush1.bf16.msra.mxu0 %v6245_v12  ;;  %v3592_v12 = vld [vmem:[%s12734_s3 + $0xc30] sm:$0xff] }
 0x48e   : > { %6248 = vmatprep.subr.bf16.mxu0 %v6247_v35 }
 0x48f   : > { %7405 = vrot.lane.b32.xlu0 %v7404_v58, %s7462_s17  ;;  %v7276_v8 = vpop.permute.xlu0 %7275 }
 0x490   : > { %v7277_v2 = vunpack.i.l.bf16 %v7276_v8 }
 0x491   : > { %6250 = vmatpush1.bf16.msra.mxu0 %v6249_v21 }
 0x492   : > { %6252 = vmatprep.subr.bf16.mxu0 %v6251_v13 }
 0x493   : > { %3061 = vrot.lane.b32.xlu0 %v9990_v6, %s7466_s20  ;;  %v11385_v4 = vpop.permute.xlu0 %7285 }
 0x494   : > { %v7288_v23 = vunpack.i.h.bf16 %v11385_v4  ;;  %v7287_v58 = vunpack.i.l.bf16 %v11385_v4 }
 0x497   : > { %3069 = vrot.lane.b32.xlu0 %v10043_v3, %s7466_s20 }
 0x49b   : > { %3077 = vrot.lane.b32.xlu0 %v10092_v53, %s7466_s20  ;;  %v11391_v53 = vpop.permute.xlu0 %7295 }
 0x49f   : > { %3085 = vrot.lane.b32.xlu0 %v10131_v51, %s7466_s20  ;;  %v11427_v35 = vpop.permute.xlu0 %7305 }
 0x4a3   : > { %3093 = vrot.lane.b32.xlu0 %v10182_v5, %s7466_s20 }
 0x4a7   : > { %3101 = vrot.lane.b32.xlu0 %v10905_v22, %s7466_s20  ;;  %v3586_v22 = vld [vmem:[%s12734_s3 + $0xc00] sm:$0xff] }
 0x4a8   : > { %v6253_v43 = vpack.c.bf16 %v3588_v39, %v3586_v22 }
 0x4c9   : > { %v11387_v6 = vpop.permute.xlu1 %7265 }
 0x4ca   : > { %v7268_v3 = vunpack.i.h.bf16 %v11387_v6  ;;  %v7267_v0 = vunpack.i.l.bf16 %v11387_v6  ;;  %v3618_v6 = vld [vmem:[%s12734_s3 + $0xd00] sm:$0xff] }
 0x4cc   : > { %v2886_v51 = vsel %vm2863_vm8, %v7267_v0, %v7268_v3  ;;  %v2885_v5 = vsel %vm2863_vm8, %v10849_v10, %v7267_v0  ;;  %v2869_v0 = vsel %vm2863_vm8, %v13033_v37, %v7277_v2 }
 0x4cd   : > { %v11404_v48 = vpop.permute.xlu1 %7270  ;;  %4370 = vmatprep.mubr.f32.mxu0 %v2886_v51  ;;  %v6257_v51 = vpack.c.bf16 %v3592_v12, %v3590_v41  ;;  %v6261_v41 = vpack.c.bf16 %v3596_v25, %v3594_v34  ;;  %v13034_v12 = vunpack.i.h.bf16 %v10831_v26  ;;  %v3603_v26 = vld [vmem:[%s12734_s3 + $0xc88] sm:$0xff]  ;;  %v13035_v34 = vunpack.i.h.bf16 %v10962_v47 }
 0x4ce   : > { %v7273_v10 = vunpack.i.h.bf16 %v11404_v48  ;;  %v7272_v60 = vunpack.i.l.bf16 %v11404_v48  ;;  %4371 = vmatmul.mubr.f32.gmra.mrb[14].mxu0 %v2885_v5  ;;  %v7278_v5 = vunpack.i.h.bf16 %v7276_v8  ;;  %v3599_v8 = vld [vmem:[%s12734_s3 + $0xc68] sm:$0xff] }
 0x4d0   : > { %v2989_v17 = vsel %vm2988_vm9, %v7272_v60, %v7273_v10  ;;  %v3186_v50 = vsel %vm2988_vm9, %v2866_v56, %v7272_v60  ;;  %v11454_v60 = vpop.permute.xlu0 %7315  ;;  %v3601_v56 = vld [vmem:[%s12734_s3 + $0xc78] sm:$0xff]  ;;  %v2872_v2 = vsel %vm2863_vm8, %v13034_v12, %v7278_v5  ;;  %v3604_v12 = vld [vmem:[%s12734_s3 + $0xc90] sm:$0xff] }
 0x4d1   : > { %v11429_v11 = vpop.permute.xlu1 %7280  ;;  %4441 = vmatprep.mubr.f32.mxu0 %v2989_v17  ;;  %v7297_v17 = vunpack.i.l.bf16 %v11391_v53  ;;  %v6263_v44 = vpack.c.bf16 %v3601_v56, %v3599_v8  ;;  %v3605_v5 = vld [vmem:[%s12734_s3 + $0xc98] sm:$0xff] }
 0x4d2   : > { %v7283_v21 = vunpack.i.h.bf16 %v11429_v11  ;;  %v7282_v13 = vunpack.i.l.bf16 %v11429_v11  ;;  %4442 = vmatmul.mubr.f32.vlgmr.msra.gmra.mrb[0].mxu0 %v3186_v50  ;;  %v6267_v56 = vpack.c.bf16 %v3605_v5, %v3603_v26  ;;  %v3606_v5 = vld [vmem:[%s12734_s3 + $0xca0] sm:$0xff] }
 0x4d3   : > { %6254 = vmatpush1.bf16.msra.mxu0 %v6253_v43  ;;  %v7298_v43 = vunpack.i.h.bf16 %v11391_v53 }
 0x4d4   : > { %v2992_v22 = vsel %vm2988_vm9, %v7282_v13, %v7283_v21  ;;  %6256 = vmatprep.subr.bf16.mxu0 %v6255_v7  ;;  %v3187_v39 = vsel %vm2988_vm9, %v2869_v0, %v7282_v13  ;;  %v2995_v7 = vsel %vm2988_vm9, %v7287_v58, %v7288_v23  ;;  %v3600_v13 = vld [vmem:[%s12734_s3 + $0xc70] sm:$0xff] }
 0x4d5   : > { %v7291_v40 = vpop.permute.xlu1 %7290  ;;  %4447 = vmatprep.mubr.f32.mxu0 %v2992_v22  ;;  %v6265_v25 = vpack.c.bf16 %v3600_v13, %v3598_v15 }
 0x4d6   : > { %v7292_v50 = vunpack.i.l.bf16 %v7291_v40  ;;  %4448 = vmatmul.mubr.f32.gmra.mrb[2].mxu0 %v3187_v39  ;;  %v7293_v8 = vunpack.i.h.bf16 %v7291_v40  ;;  %v3607_v40 = vld [vmem:[%s12734_s3 + $0xca8] sm:$0xff] }
 0x4d7   : > { %6258 = vmatpush1.bf16.msra.mxu0 %v6257_v51  ;;  %4453 = vmatprep.mubr.f32.mxu0 %v2995_v7  ;;  %v3188_v51 = vsel %vm2988_vm9, %v2872_v2, %v7287_v58  ;;  %v3602_v7 = vld [vmem:[%s12734_s3 + $0xc80] sm:$0xff] }
 0x4d8   : > { %6260 = vmatprep.subr.bf16.mxu0 %v6259_v30  ;;  %v2998_v30 = vsel %vm2988_vm9, %v7297_v17, %v7298_v43  ;;  %v2875_v58 = vsel %vm2863_vm8, %v13035_v34, %v7292_v50  ;;  %v3609_v50 = vld [vmem:[%s12734_s3 + $0xcb8] sm:$0xff]  ;;  %v2878_v13 = vsel %vm2863_vm8, %v7248_v49, %v7293_v8  ;;  %v7307_v8 = vunpack.i.l.bf16 %v11427_v35 }
 0x4d9   : > { %v11476_v37 = vpop.permute.xlu0 %7320  ;;  %v11478_v0 = vpop.permute.xlu1 %7300  ;;  %v3189_v47 = vsel %vm2988_vm9, %v2875_v58, %v7297_v17  ;;  %v6269_v17 = vpack.c.bf16 %v3604_v12, %v3602_v7  ;;  %v6271_v26 = vpack.c.bf16 %v3609_v50, %v3607_v40  ;;  %v3613_v49 = vld [vmem:[%s12734_s3 + $0xcd8] sm:$0xff]  ;;  %v7317_v7 = vunpack.i.l.bf16 %v11454_v60 }
 0x4da   : > { %v7303_v22 = vunpack.i.h.bf16 %v11478_v0  ;;  %v7302_v39 = vunpack.i.l.bf16 %v11478_v0  ;;  %4454 = vmatmul.mubr.f32.gmra.mrb[4].mxu0 %v3188_v51  ;;  %v2881_v40 = vsel %vm2863_vm8, %v7253_v31, %v7307_v8  ;;  %v6275_v50 = vpack.c.bf16 %v3613_v49, %v3611_v63  ;;  %v3617_v31 = vld [vmem:[%s12734_s3 + $0xcf8] sm:$0xff] }
 0x4db   : > { %6262 = vmatpush1.bf16.msra.mxu0 %v6261_v41  ;;  %4459 = vmatprep.mubr.f32.mxu0 %v2998_v30  ;;  %v3608_v30 = vld [vmem:[%s12734_s3 + $0xcb0] sm:$0xff]  ;;  %v7322_v63 = vunpack.i.l.bf16 %v11476_v37 }
 0x4dc   : > { %6264 = vmatprep.subr.bf16.mxu0 %v6263_v44  ;;  %v3001_v15 = vsel %vm2988_vm9, %v7302_v39, %v7303_v22 }
 0x4dd   : > { %v11501_v2 = vpop.permute.xlu0 %7325  ;;  %v11503_v51 = vpop.permute.xlu1 %7310 }
 0x4de   : > { %v12863_v41 = vunpack.i.h.bf16 %v11503_v51  ;;  %v7312_v44 = vunpack.i.l.bf16 %v11503_v51  ;;  %4460 = vmatmul.mubr.f32.gmra.mrb[6].mxu0 %v3189_v47  ;;  %v7308_v47 = vunpack.i.h.bf16 %v11427_v35 }
 0x4df   : > { %6266 = vmatpush1.bf16.msra.mxu0 %v6265_v25  ;;  %4465 = vmatprep.mubr.f32.mxu0 %v3001_v15  ;;  %v3190_v25 = vsel %vm2988_vm9, %v2878_v13, %v7302_v39  ;;  %v6273_v39 = vpack.c.bf16 %v3608_v30, %v3606_v5  ;;  %v3610_v15 = vld [vmem:[%s12734_s3 + $0xcc0] sm:$0xff]  ;;  %v3612_v13 = vld [vmem:[%s12734_s3 + $0xcd0] sm:$0xff] }
 0x4e0   : > { %6268 = vmatprep.subr.bf16.mxu0 %v6267_v56  ;;  %v12862_v56 = vunpack.i.h.bf16 %v11454_v60  ;;  %v3004_v12 = vsel %vm2988_vm9, %v7312_v44, %v12863_v41  ;;  %v3191_v5 = vsel %vm2988_vm9, %v2881_v40, %v7312_v44  ;;  %v12861_v44 = vunpack.i.h.bf16 %v11476_v37  ;;  %v3616_v40 = vld [vmem:[%s12734_s3 + $0xcf0] sm:$0xff] }
 0x4e1   : > { %v11526_v34 = vpop.permute.xlu0 %7335  ;;  %v2862_v58 = vpop.permute.xlu1 %2861  ;;  %v6277_v8 = vpack.c.bf16 %v3612_v13, %v3610_v15  ;;  %v7327_v15 = vunpack.i.l.bf16 %v11501_v2  ;;  %v3644_v41 = vld [vmem:[%s12734_s3 + $0xdd0] sm:$0xff] }
 0x4e2   : > { %4466 = vmatmul.mubr.f32.gmra.mrb[8].mxu0 %v3190_v25  ;;  %v3007_v30 = vsel %vm2988_vm9, %v7317_v7, %v12862_v56  ;;  %v3642_v56 = vld [vmem:[%s12734_s3 + $0xdc0] sm:$0xff] }
 0x4e3   : > { %6270 = vmatpush1.bf16.msra.mxu0 %v6269_v17  ;;  %4471 = vmatprep.mubr.f32.mxu0 %v3004_v12  ;;  %v3614_v12 = vld [vmem:[%s12734_s3 + $0xce0] sm:$0xff] }
 0x4e4   : > { %6272 = vmatprep.subr.bf16.mxu0 %v6271_v26  ;;  %v6281_v13 = vpack.c.bf16 %v3616_v40, %v3614_v12  ;;  %v3627_v40 = vld [vmem:[%s12734_s3 + $0xd48] sm:$0xff] }
 0x4e5   : > { %v11551_v25 = vpop.permute.xlu0 %7345  ;;  %v2492_v17 = vpop.permute.xlu1 %2491 }
 0x4e6   : > { %v2534_v35 = vsel %vm2501_vm6, %v11041_v1, %v2492_v17  ;;  %v11563_v26 = vmax.f32 %v9791_v32, %v2492_v17  ;;  %4472 = vmatmul.mubr.f32.gmra.mrb[10].mxu0 %v3191_v5  ;;  %v2884_v32 = vsel %vm2863_vm8, %v7258_v33, %v7308_v47  ;;  %v6279_v1 = vpack.c.bf16 %v3617_v31, %v3615_v52  ;;  %v3621_v33 = vld [vmem:[%s12734_s3 + $0xd18] sm:$0xff]  ;;  %v3623_v31 = vld [vmem:[%s12734_s3 + $0xd28] sm:$0xff] }
 0x4e7   : > { %v2628_v49 = vmax.f32 %v9789_v14, %v2534_v35  ;;  %6274 = vmatpush1.bf16.msra.mxu0 %v6273_v39  ;;  %4477 = vmatprep.mubr.f32.mxu0 %v3007_v30  ;;  %v3192_v39 = vsel %vm2988_vm9, %v2884_v32, %v7317_v7  ;;  %v2887_v47 = vsel %vm2863_vm8, %v7268_v3, %v2862_v58  ;;  %v3620_v3 = vld [vmem:[%s12734_s3 + $0xd10] sm:$0xff]  ;;  %v3625_v35 = vld [vmem:[%s12734_s3 + $0xd38] sm:$0xff]  ;;  %v3622_v32 = vld [vmem:[%s12734_s3 + $0xd20] sm:$0xff] }
 0x4e8   : > { %6276 = vmatprep.subr.bf16.mxu0 %v6275_v50  ;;  %v7328_v50 = vunpack.i.h.bf16 %v11501_v2  ;;  %v3010_v7 = vsel %vm2988_vm9, %v7322_v63, %v12861_v44  ;;  %v6283_v5 = vpack.c.bf16 %v3621_v33, %v3619_v59  ;;  %v3193_v52 = vsel %vm2988_vm9, %v2887_v47, %v7322_v63  ;;  %v3626_v47 = vld [vmem:[%s12734_s3 + $0xd40] sm:$0xff] }
 0x4e9   : > { %v7364_v17 = vpack.i.bf16 %v11563_v26, %v2628_v49  ;;  %v11581_v14 = vpop.permute.xlu0 %7355  ;;  %3109 = vrot.lane.b32.xlu0 %v2628_v49, %s7466_s20  ;;  %v11615_v30 = vpop.permute.xlu1 %7330  ;;  %v6285_v63 = vpack.c.bf16 %v3620_v3, %v3618_v6  ;;  %v3633_v3 = vld [vmem:[%s12734_s3 + $0xd78] sm:$0xff] }
 0x4ea   : > { %4478 = vmatmul.mubr.f32.gmra.mrb[12].mxu0 %v3192_v39  ;;  %v2991_v49 = vsel %vm2988_vm9, %v7327_v15, %v7328_v50 }
 0x4eb   : > { %6278 = vmatpush1.bf16.msra.mxu0 %v6277_v8  ;;  %7365 = vrot.lane.b32.xlu1 %v7364_v17, %s7465_s24  ;;  %v6287_v8 = vpack.c.bf16 %v3625_v35, %v3623_v31  ;;  %v3629_v17 = vld [vmem:[%s12734_s3 + $0xd58] sm:$0xff] }
 0x4ec   : > { %4483 = vmatprep.mubr.f32.mxu0 %v3010_v7  ;;  %6280 = vmatprep.subr.bf16.mxu0 %v6279_v1  ;;  %v3624_v1 = vld [vmem:[%s12734_s3 + $0xd30] sm:$0xff]  ;;  %v6291_v33 = vpack.c.bf16 %v3629_v17, %v3627_v40 }
 0x4ed   : > { %v11606_v58 = vpop.permute.xlu0 %7360  ;;  %v6289_v59 = vpack.c.bf16 %v3624_v1, %v3622_v32  ;;  %v3628_v7 = vld [vmem:[%s12734_s3 + $0xd50] sm:$0xff]  ;;  %v3637_v1 = vld [vmem:[%s12734_s3 + $0xd98] sm:$0xff] }
 0x4ee   : > { %4484 = vmatmul.mubr.f32.gmra.mrb[14].mxu0 %v3193_v52  ;;  %v7338_v52 = vunpack.i.h.bf16 %v11526_v34 }
 0x4ef   : > { %6282 = vmatpush1.bf16.msra.mxu0 %v6281_v13  ;;  %2497 = vrot.lane.b32.xlu1 %v9797_v55, %s7462_s17 }
 0x4f0   : > { %4554 = vmatprep.mubr.f32.mxu0 %v2991_v49  ;;  %6284 = vmatprep.subr.bf16.mxu0 %v6283_v5  ;;  %v11650_v5 = vpop.permute.xlu1 %7340  ;;  %v3630_v49 = vld [vmem:[%s12734_s3 + $0xd60] sm:$0xff] }
 0x4f1   : > { %v11628_v12 = vpop.permute.xlu0 %7370 }
 0x4f2   : > { %v12859_v39 = vunpack.i.l.bf16 %v11628_v12 }
 0x4f3   : > { %6286 = vmatpush1.bf16.msra.mxu0 %v6285_v63  ;;  %7375 = vrot.lane.b32.xlu1 %v10240_v42, %s7466_s20  ;;  %v3631_v42 = vld [vmem:[%s12734_s3 + $0xd68] sm:$0xff]  ;;  %v3632_v63 = vld [vmem:[%s12734_s3 + $0xd70] sm:$0xff] }
 0x4f4   : > { %6288 = vmatprep.subr.bf16.mxu0 %v6287_v8  ;;  %v11648_v13 = vsel %vm3121_vm10, %v7328_v50, %v12859_v39  ;;  %v6293_v50 = vpack.c.bf16 %v3628_v7, %v3626_v47  ;;  %v6295_v35 = vpack.c.bf16 %v3633_v3, %v3631_v42  ;;  %v11685_v40 = vpop.permute.xlu1 %7350  ;;  %v6297_v17 = vpack.c.bf16 %v3632_v63, %v3630_v49  ;;  %v3636_v47 = vld [vmem:[%s12734_s3 + $0xd90] sm:$0xff]  ;;  %v3639_v42 = vld [vmem:[%s12734_s3 + $0xda8] sm:$0xff]  ;;  %v3638_v63 = vld [vmem:[%s12734_s3 + $0xda0] sm:$0xff] }
 0x4f5   : > { %v11652_v6 = vpop.permute.xlu0 %7380  ;;  %v7353_v3 = vunpack.i.h.bf16 %v11685_v40 }
 0x4f6   : > { %v12858_v31 = vunpack.i.l.bf16 %v11652_v6 }
 0x4f7   : > { %6290 = vmatpush1.bf16.msra.mxu0 %v6289_v59  ;;  %7385 = vrot.lane.b32.xlu1 %v11082_v61, %s7466_s20  ;;  %v3635_v61 = vld [vmem:[%s12734_s3 + $0xd88] sm:$0xff] }
 0x4f8   : > { %6292 = vmatprep.subr.bf16.mxu0 %v6291_v33  ;;  %v11675_v8 = vsel %vm3121_vm10, %v7338_v52, %v12858_v31  ;;  %v6299_v59 = vpack.c.bf16 %v3637_v1, %v3635_v61  ;;  %v3634_v33 = vld [vmem:[%s12734_s3 + $0xd80] sm:$0xff]  ;;  %v3640_v61 = vld [vmem:[%s12734_s3 + $0xdb0] sm:$0xff]  ;;  %v13036_v31 = vld [vmem:[#allocation18_spill] sm:$0xff] }
 0x4f9   : > { %v11677_v32 = vpop.permute.xlu0 %2499  ;;  %v13037_v39 = vunpack.i.h.bf16 %v13036_v31  ;;  %v6309_v31 = vpack.c.bf16 %v3644_v41, %v3642_v56  ;;  %v3653_v41 = vld [vmem:[%s12734_s3 + $0xe18] sm:$0xff] }
 0x4fb   : > { %6294 = vmatpush1.bf16.msra.mxu0 %v6293_v50  ;;  %7390 = vrot.lane.b32.xlu1 %v11118_v36, %s7466_s20  ;;  %v3641_v36 = vld [vmem:[%s12734_s3 + $0xdb8] sm:$0xff] }
 0x4fc   : > { %6296 = vmatprep.subr.bf16.mxu0 %v6295_v35  ;;  %v6301_v35 = vpack.c.bf16 %v3636_v47, %v3634_v33  ;;  %v6303_v49 = vpack.c.bf16 %v3641_v36, %v3639_v42  ;;  %v6305_v42 = vpack.c.bf16 %v3640_v61, %v3638_v63 }
 0x4fd   : > { %v11695_v7 = vpop.permute.xlu0 %7395 }
 0x4fe   : > { %v12860_v50 = vunpack.i.l.bf16 %v11695_v7 }
 0x4ff   : > { %6298 = vmatpush1.bf16.msra.mxu0 %v6297_v17  ;;  %7400 = vrot.lane.b32.xlu1 %v11087_v18, %s7466_s20  ;;  %v3643_v18 = vld [vmem:[%s12734_s3 + $0xdc8] sm:$0xff] }
 0x500   : > { %6300 = vmatprep.subr.bf16.mxu0 %v6299_v59  ;;  %v11718_v1 = vsel %vm3121_vm10, %v7353_v3, %v12860_v50  ;;  %v3645_v59 = vld [vmem:[%s12734_s3 + $0xdd8] sm:$0xff] }
 0x501   : > { %v7406_v17 = vpop.permute.xlu0 %7405  ;;  %v6307_v44 = vpack.c.bf16 %v3645_v59, %v3643_v18  ;;  %v3650_v18 = vld [vmem:[%s12734_s3 + $0xe00] sm:$0xff]  ;;  %v13039_v59 = vld [vmem:[#allocation22_spill] sm:$0xff] }
 0x502   : > { %v7408_v33 = vunpack.i.h.bf16 %v7406_v17  ;;  %v7407_v47 = vunpack.i.l.bf16 %v7406_v17 }
 0x503   : > { %6302 = vmatpush1.bf16.msra.mxu0 %v6301_v35 }
 0x504   : > { %v2502_v36 = vsel %vm2501_vm6, %v7408_v33, %v7407_v47  ;;  %6304 = vmatprep.subr.bf16.mxu0 %v6303_v49  ;;  %v2503_v50 = vsel %vm2501_vm6, %v7407_v47, %v13037_v39  ;;  %v3647_v49 = vld [vmem:[%s12734_s3 + $0xde8] sm:$0xff]  ;;  %v3649_v39 = vld [vmem:[%s12734_s3 + $0xdf8] sm:$0xff] }
 0x505   : > { %v2586_v17 = vmax.f32 %v13031_v24, %v2502_v36  ;;  %v2587_v35 = vmax.f32 %v13030_v57, %v2503_v50  ;;  %v6311_v63 = vpack.c.bf16 %v3649_v39, %v3647_v49  ;;  %v3646_v24 = vld [vmem:[%s12734_s3 + $0xde0] sm:$0xff]  ;;  %v3648_v57 = vld [vmem:[%s12734_s3 + $0xdf0] sm:$0xff]  ;;  %v3651_v50 = vld [vmem:[%s12734_s3 + $0xe08] sm:$0xff]  ;;  %v7332_v36 = vunpack.i.l.bf16 %v11615_v30 }
 0x506   : > { %v6313_v56 = vpack.c.bf16 %v3648_v57, %v3646_v24  ;;  %v6315_v61 = vpack.c.bf16 %v3653_v41, %v3651_v50  ;;  %v3655_v33 = vld [vmem:[%s12734_s3 + $0xe28] sm:$0xff]  ;;  %v3657_v47 = vld [vmem:[%s12734_s3 + $0xe38] sm:$0xff]  ;;  %v3654_v39 = vld [vmem:[%s12734_s3 + $0xe20] sm:$0xff]  ;;  %v7337_v41 = vunpack.i.l.bf16 %v11526_v34 }
 0x507   : > { %6306 = vmatpush1.bf16.msra.mxu0 %v6305_v42  ;;  %3876 = vmatprep.mubr.f32.mxu1 %v2587_v35  ;;  %v7333_v42 = vunpack.i.h.bf16 %v11615_v30  ;;  %v13040_v35 = vld [vmem:[#allocation11_spill] sm:$0xff]  ;;  %v6319_v49 = vpack.c.bf16 %v3657_v47, %v3655_v33  ;;  %v13041_v24 = vld [vmem:[#allocation21_spill] sm:$0xff]  ;;  %v3659_v57 = vld [vmem:[%s12734_s3 + $0xe48] sm:$0xff]  ;;  %v7343_v33 = vunpack.i.h.bf16 %v11650_v5  ;;  %v7342_v47 = vunpack.i.l.bf16 %v11650_v5 }
 0x508   : > { %3877 = vmatmul.mubr.f32.vlgmr.msra.gmra.mrb[96].mxu1 %v2586_v17  ;;  %6308 = vmatprep.subr.bf16.mxu0 %v6307_v44  ;;  %v13038_v44 = vld [vmem:[#allocation12_spill] sm:$0xff]  ;;  %v3661_v50 = vld [vmem:[%s12734_s3 + $0xe58] sm:$0xff]  ;;  %v2997_v11 = vsel %vm2988_vm9, %v7337_v41, %v7338_v52  ;;  %v2996_v34 = vsel %vm2988_vm9, %v7288_v23, %v7337_v41  ;;  %v13045_v52 = vld [vmem:[#allocation25_spill] sm:$0xff] }
 0x509   : > { %3882 = vmatprep.mubr.f32.mxu1 %v9862_v19  ;;  %v3652_v19 = vld [vmem:[%s12734_s3 + $0xe10] sm:$0xff]  ;;  %v2994_v2 = vsel %vm2988_vm9, %v7332_v36, %v7333_v42  ;;  %v3000_v4 = vsel %vm2988_vm9, %v7342_v47, %v7343_v33  ;;  %v3666_v41 = vld [vmem:[%s12734_s3 + $0xe80] sm:$0xff]  ;;  %v3735_v5 = vld [vmem:[%s12734_s3 + $0x10a8] sm:$0xff] }
 0x50a   : > { %v6317_v17 = vpack.c.bf16 %v3652_v19, %v3650_v18  ;;  %v13043_v18 = vld [vmem:[#allocation24_spill] sm:$0xff] }
 0x50b   : > { %6310 = vmatpush1.bf16.msra.mxu0 %v6309_v31  ;;  %v3656_v31 = vld [vmem:[%s12734_s3 + $0xe30] sm:$0xff]  ;;  %v3663_v19 = vld [vmem:[%s12734_s3 + $0xe68] sm:$0xff] }
 0x50c   : > { %3883 = vmatmul.mubr.f32.gmra.mrb[98].mxu1 %v13038_v44  ;;  %6312 = vmatprep.subr.bf16.mxu0 %v6311_v63  ;;  %v2990_v63 = vsel %vm2988_vm9, %v7273_v10, %v7327_v15  ;;  %v6321_v48 = vpack.c.bf16 %v3656_v31, %v3654_v39  ;;  %v13042_v10 = vld [vmem:[#allocation10_spill] sm:$0xff]  ;;  %v6323_v15 = vpack.c.bf16 %v3661_v50, %v3659_v57  ;;  %v3660_v44 = vld [vmem:[%s12734_s3 + $0xe50] sm:$0xff]  ;;  %v3667_v39 = vld [vmem:[%s12734_s3 + $0xe88] sm:$0xff] }
 0x50d   : > { %3888 = vmatprep.mubr.f32.mxu1 %v13039_v59  ;;  %v3665_v59 = vld [vmem:[%s12734_s3 + $0xe78] sm:$0xff] }
 0x50e   : > { %v3669_v31 = vld [vmem:[%s12734_s3 + $0xe98] sm:$0xff] }
 0x50f   : > { %6314 = vmatpush1.bf16.msra.mxu0 %v6313_v56  ;;  %v3658_v56 = vld [vmem:[%s12734_s3 + $0xe40] sm:$0xff]  ;;  %v13046_v57 = vld [vmem:[#allocation14_spill] sm:$0xff]  ;;  %v6331_v50 = vpack.c.bf16 %v3669_v31, %v3667_v39 }
 0x510   : > { %3889 = vmatmul.mubr.f32.gmra.mrb[100].mxu1 %v13040_v35  ;;  %6316 = vmatprep.subr.bf16.mxu0 %v6315_v61  ;;  %v2993_v61 = vsel %vm2988_vm9, %v7283_v21, %v7332_v36  ;;  %v6325_v21 = vpack.c.bf16 %v3660_v44, %v3658_v56  ;;  %v13044_v36 = vld [vmem:[#allocation16_spill] sm:$0xff]  ;;  %v3662_v35 = vld [vmem:[%s12734_s3 + $0xe60] sm:$0xff]  ;;  %v3673_v56 = vld [vmem:[%s12734_s3 + $0xeb8] sm:$0xff]  ;;  %v7352_v44 = vunpack.i.l.bf16 %v11685_v40 }
 0x511   : > { %3894 = vmatprep.mubr.f32.mxu1 %v13041_v24  ;;  %v7347_v24 = vunpack.i.l.bf16 %v11551_v25  ;;  %v3678_v31 = vld [vmem:[%s12734_s3 + $0xee0] sm:$0xff] }
 0x512   : > { %4555 = vmatmul.mubr.f32.vlgmr.msra.gmra.mrb[0].mxu0 %v2990_v63  ;;  %v7348_v63 = vunpack.i.h.bf16 %v11551_v25  ;;  %v13054_v25 = vunpack.i.l.bf16 %v11695_v7 }
 0x513   : > { %4560 = vmatprep.mubr.f32.mxu0 %v2994_v2  ;;  %6318 = vmatpush1.bf16.msra.mxu0 %v6317_v17  ;;  %v6327_v17 = vpack.c.bf16 %v3665_v59, %v3663_v19  ;;  %v3668_v2 = vld [vmem:[%s12734_s3 + $0xe90] sm:$0xff]  ;;  %v3670_v19 = vld [vmem:[%s12734_s3 + $0xea0] sm:$0xff] }
 0x514   : > { %3895 = vmatmul.mubr.f32.gmra.mrb[102].mxu1 %v13042_v10  ;;  %6320 = vmatprep.subr.bf16.mxu0 %v6319_v49  ;;  %v3664_v49 = vld [vmem:[%s12734_s3 + $0xe70] sm:$0xff]  ;;  %v2999_v10 = vsel %vm2988_vm9, %v7298_v43, %v7342_v47  ;;  %v6333_v53 = vpack.c.bf16 %v3668_v2, %v3666_v41  ;;  %v3002_v47 = vsel %vm2988_vm9, %v7303_v22, %v7347_v24 }
 0x515   : > { %3900 = vmatprep.mubr.f32.mxu1 %v13043_v18  ;;  %v6329_v23 = vpack.c.bf16 %v3664_v49, %v3662_v35  ;;  %v13048_v18 = vld [vmem:[#allocation13_spill] sm:$0xff]  ;;  %v3674_v35 = vld [vmem:[%s12734_s3 + $0xec0] sm:$0xff] }
 0x516   : > { %4561 = vmatmul.mubr.f32.gmra.mrb[2].mxu0 %v2993_v61  ;;  %v3003_v61 = vsel %vm2988_vm9, %v7347_v24, %v7348_v63  ;;  %v3672_v59 = vld [vmem:[%s12734_s3 + $0xeb0] sm:$0xff] }
 0x517   : > { %4566 = vmatprep.mubr.f32.mxu0 %v2997_v11  ;;  %6322 = vmatpush1.bf16.msra.mxu0 %v6321_v48  ;;  %v13047_v48 = vld [vmem:[#allocation27_spill] sm:$0xff]  ;;  %v3675_v11 = vld [vmem:[%s12734_s3 + $0xec8] sm:$0xff]  ;;  %v6337_v0 = vpack.c.bf16 %v3672_v59, %v3670_v19  ;;  %v3676_v49 = vld [vmem:[%s12734_s3 + $0xed0] sm:$0xff] }
 0x518   : > { %3901 = vmatmul.mubr.f32.gmra.mrb[104].mxu1 %v13044_v36  ;;  %6324 = vmatprep.subr.bf16.mxu0 %v6323_v15  ;;  %v3671_v15 = vld [vmem:[%s12734_s3 + $0xea8] sm:$0xff]  ;;  %v7358_v36 = vunpack.i.h.bf16 %v11581_v14  ;;  %v6341_v39 = vpack.c.bf16 %v3676_v49, %v3674_v35  ;;  %v3680_v24 = vld [vmem:[%s12734_s3 + $0xef0] sm:$0xff] }
 0x519   : > { %3906 = vmatprep.mubr.f32.mxu1 %v13045_v52  ;;  %v6335_v43 = vpack.c.bf16 %v3673_v56, %v3671_v15  ;;  %v6345_v41 = vpack.c.bf16 %v3680_v24, %v3678_v31  ;;  %v3689_v15 = vld [vmem:[%s12734_s3 + $0xf38] sm:$0xff]  ;;  %v3696_v35 = vld [vmem:[%s12734_s3 + $0xf70] sm:$0xff]  ;;  %v3699_v49 = vld [vmem:[%s12734_s3 + $0xf88] sm:$0xff] }
 0x51a   : > { %4567 = vmatmul.mubr.f32.gmra.mrb[4].mxu0 %v2996_v34  ;;  %v13049_v34 = vunpack.i.h.bf16 %v11503_v51 }
 0x51b   : > { %4572 = vmatprep.mubr.f32.mxu0 %v3000_v4  ;;  %6326 = vmatpush1.bf16.msra.mxu0 %v6325_v21  ;;  %v3677_v21 = vld [vmem:[%s12734_s3 + $0xed8] sm:$0xff]  ;;  %v13050_v4 = vunpack.i.h.bf16 %v11454_v60  ;;  %v3684_v60 = vld [vmem:[%s12734_s3 + $0xf10] sm:$0xff] }
 0x51c   : > { %3907 = vmatmul.mubr.f32.gmra.mrb[106].mxu1 %v13046_v57  ;;  %6328 = vmatprep.subr.bf16.mxu0 %v6327_v17  ;;  %v7357_v17 = vunpack.i.l.bf16 %v11581_v14  ;;  %v6339_v22 = vpack.c.bf16 %v3677_v21, %v3675_v11  ;;  %v3005_v40 = vsel %vm2988_vm9, %v13049_v34, %v7352_v44  ;;  %v3683_v57 = vld [vmem:[%s12734_s3 + $0xf08] sm:$0xff]  ;;  %v3692_v11 = vld [vmem:[%s12734_s3 + $0xf50] sm:$0xff]  ;;  %v3701_v34 = vld [vmem:[%s12734_s3 + $0xf98] sm:$0xff] }
 0x51d   : > { %3912 = vmatprep.mubr.f32.mxu1 %v13047_v48  ;;  %v3682_v48 = vld [vmem:[%s12734_s3 + $0xf00] sm:$0xff]  ;;  %v3695_v21 = vld [vmem:[%s12734_s3 + $0xf68] sm:$0xff]  ;;  %v3749_v14 = vld [vmem:[%s12734_s3 + $0x1118] sm:$0xff] }
 0x51e   : > { %4573 = vmatmul.mubr.f32.gmra.mrb[6].mxu0 %v2999_v10  ;;  %v3009_v52 = vsel %vm2988_vm9, %v7357_v17, %v7358_v36  ;;  %v3687_v10 = vld [vmem:[%s12734_s3 + $0xf28] sm:$0xff]  ;;  %v6349_v56 = vpack.c.bf16 %v3684_v60, %v3682_v48  ;;  %v3706_v48 = vld [vmem:[%s12734_s3 + $0xfc0] sm:$0xff]  ;;  %v3708_v60 = vld [vmem:[%s12734_s3 + $0xfd0] sm:$0xff] }
 0x51f   : > { %4578 = vmatprep.mubr.f32.mxu0 %v3003_v61  ;;  %6330 = vmatpush1.bf16.msra.mxu0 %v6329_v23  ;;  %v3008_v23 = vsel %vm2988_vm9, %v13050_v4, %v7357_v17  ;;  %v3686_v61 = vld [vmem:[%s12734_s3 + $0xf20] sm:$0xff]  ;;  %v3697_v17 = vld [vmem:[%s12734_s3 + $0xf78] sm:$0xff] }
 0x520   : > { %3913 = vmatmul.mubr.f32.gmra.mrb[108].mxu1 %v13048_v18  ;;  %6332 = vmatprep.subr.bf16.mxu0 %v6331_v50  ;;  %v3685_v50 = vld [vmem:[%s12734_s3 + $0xf18] sm:$0xff]  ;;  %v3691_v18 = vld [vmem:[%s12734_s3 + $0xf48] sm:$0xff]  ;;  %v3702_v4 = vld [vmem:[%s12734_s3 + $0xfa0] sm:$0xff] }
 0x521   : > { %3918 = vmatprep.mubr.f32.mxu1 %v10121_v45  ;;  %v3006_v45 = vsel %vm2988_vm9, %v7352_v44, %v7353_v3  ;;  %v3679_v3 = vld [vmem:[%s12734_s3 + $0xee8] sm:$0xff]  ;;  %v6347_v2 = vpack.c.bf16 %v3685_v50, %v3683_v57  ;;  %v6351_v44 = vpack.c.bf16 %v3689_v15, %v3687_v10  ;;  %v3709_v50 = vld [vmem:[%s12734_s3 + $0xfd8] sm:$0xff] }
 0x522   : > { %4579 = vmatmul.mubr.f32.gmra.mrb[8].mxu0 %v3002_v47  ;;  %v3690_v47 = vld [vmem:[%s12734_s3 + $0xf40] sm:$0xff]  ;;  %v3707_v57 = vld [vmem:[%s12734_s3 + $0xfc8] sm:$0xff]  ;;  %v3713_v15 = vld [vmem:[%s12734_s3 + $0xff8] sm:$0xff] }
 0x523   : > { %4584 = vmatprep.mubr.f32.mxu0 %v3006_v45  ;;  %6334 = vmatpush1.bf16.msra.mxu0 %v6333_v53  ;;  %v3688_v53 = vld [vmem:[%s12734_s3 + $0xf30] sm:$0xff]  ;;  %v6357_v45 = vpack.c.bf16 %v3692_v11, %v3690_v47  ;;  %v3711_v10 = vld [vmem:[%s12734_s3 + $0xfe8] sm:$0xff]  ;;  %v7363_v47 = vunpack.i.h.bf16 %v11606_v58  ;;  %v7362_v11 = vunpack.i.l.bf16 %v11606_v58  ;;  %v3714_v58 = vld [vmem:[%s12734_s3 + $0x1000] sm:$0xff] }
 0x524   : > { %3919 = vmatmul.mubr.f32.gmra.mrb[110].mxu1 %v9645_v16  ;;  %6336 = vmatprep.subr.bf16.mxu0 %v6335_v43  ;;  %v3681_v16 = vld [vmem:[%s12734_s3 + $0xef8] sm:$0xff]  ;;  %v6353_v19 = vpack.c.bf16 %v3688_v53, %v3686_v61  ;;  %v3710_v61 = vld [vmem:[%s12734_s3 + $0xfe0] sm:$0xff]  ;;  %v3712_v53 = vld [vmem:[%s12734_s3 + $0xff0] sm:$0xff] }
 0x525   : > { %v6343_v51 = vpack.c.bf16 %v3681_v16, %v3679_v3  ;;  %v3693_v43 = vld [vmem:[%s12734_s3 + $0xf58] sm:$0xff]  ;;  %v6363_v3 = vpack.c.bf16 %v3701_v34, %v3699_v49  ;;  %v3698_v16 = vld [vmem:[%s12734_s3 + $0xf80] sm:$0xff]  ;;  %v13051_v49 = vunpack.i.h.bf16 %v11476_v37 }
 0x526   : > { %4585 = vmatmul.mubr.f32.gmra.mrb[10].mxu0 %v3005_v40  ;;  %v6355_v59 = vpack.c.bf16 %v3693_v43, %v3691_v18  ;;  %v3715_v18 = vld [vmem:[%s12734_s3 + $0x1008] sm:$0xff]  ;;  %v3717_v43 = vld [vmem:[%s12734_s3 + $0x1018] sm:$0xff] }
 0x527   : > { %4590 = vmatprep.mubr.f32.mxu0 %v3009_v52  ;;  %6338 = vmatpush1.bf16.msra.mxu0 %v6337_v0  ;;  %v6359_v0 = vpack.c.bf16 %v3697_v17, %v3695_v21  ;;  %v3700_v52 = vld [vmem:[%s12734_s3 + $0xf90] sm:$0xff]  ;;  %v7373_v17 = vunpack.i.h.bf16 %v11628_v12  ;;  %v3721_v37 = vld [vmem:[%s12734_s3 + $0x1038] sm:$0xff] }
 0x528   : > { %6340 = vmatprep.subr.bf16.mxu0 %v6339_v22  ;;  %v3694_v22 = vld [vmem:[%s12734_s3 + $0xf60] sm:$0xff]  ;;  %v6365_v31 = vpack.c.bf16 %v3700_v52, %v3698_v16  ;;  %v3719_v16 = vld [vmem:[%s12734_s3 + $0x1028] sm:$0xff] }
 0x529   : > { %v6361_v40 = vpack.c.bf16 %v3696_v35, %v3694_v22  ;;  %v2535_v22 = vsel %vm2501_vm6, %v7362_v11, %v7363_v47  ;;  %v3729_v11 = vld [vmem:[%s12734_s3 + $0x1078] sm:$0xff] }
 0x52a   : > { %4591 = vmatmul.mubr.f32.gmra.mrb[12].mxu0 %v3008_v23  ;;  %v3704_v23 = vld [vmem:[%s12734_s3 + $0xfb0] sm:$0xff] }
 0x52b   : > { %6342 = vmatpush1.bf16.msra.mxu0 %v6341_v39  ;;  %v3703_v39 = vld [vmem:[%s12734_s3 + $0xfa8] sm:$0xff] }
 0x52c   : > { %6344 = vmatprep.subr.bf16.mxu0 %v6343_v51  ;;  %v3705_v51 = vld [vmem:[%s12734_s3 + $0xfb8] sm:$0xff] }
 0x52d   : > { %v6367_v24 = vpack.c.bf16 %v3705_v51, %v3703_v39  ;;  %v13052_v51 = vunpack.i.l.bf16 %v11628_v12 }
 0x52f   : > { %6346 = vmatpush1.bf16.msra.mxu0 %v6345_v41  ;;  %v6369_v41 = vpack.c.bf16 %v3704_v23, %v3702_v4 }
 0x530   : > { %6348 = vmatprep.subr.bf16.mxu0 %v6347_v2  ;;  %v6371_v2 = vpack.c.bf16 %v3709_v50, %v3707_v57  ;;  %v6383_v50 = vpack.c.bf16 %v3721_v37, %v3719_v16  ;;  %v3733_v16 = vld [vmem:[%s12734_s3 + $0x1098] sm:$0xff] }
 0x533   : > { %6350 = vmatpush1.bf16.msra.mxu0 %v6349_v56  ;;  %v6373_v56 = vpack.c.bf16 %v3708_v60, %v3706_v48  ;;  %v3718_v48 = vld [vmem:[%s12734_s3 + $0x1020] sm:$0xff] }
 0x534   : > { %6352 = vmatprep.subr.bf16.mxu0 %v6351_v44  ;;  %v6375_v44 = vpack.c.bf16 %v3713_v15, %v3711_v10  ;;  %v3723_v10 = vld [vmem:[%s12734_s3 + $0x1048] sm:$0xff]  ;;  %v3725_v15 = vld [vmem:[%s12734_s3 + $0x1058] sm:$0xff] }
 0x537   : > { %6354 = vmatpush1.bf16.msra.mxu0 %v6353_v19  ;;  %v6377_v19 = vpack.c.bf16 %v3712_v53, %v3710_v61  ;;  %v6387_v53 = vpack.c.bf16 %v3725_v15, %v3723_v10 }
 0x538   : > { %6356 = vmatprep.subr.bf16.mxu0 %v6355_v59  ;;  %v6379_v59 = vpack.c.bf16 %v3717_v43, %v3715_v18  ;;  %v3722_v18 = vld [vmem:[%s12734_s3 + $0x1040] sm:$0xff]  ;;  %v3724_v43 = vld [vmem:[%s12734_s3 + $0x1050] sm:$0xff] }
 0x53b   : > { %6358 = vmatpush1.bf16.msra.mxu0 %v6357_v45 }
 0x53c   : > { %6360 = vmatprep.subr.bf16.mxu0 %v6359_v0 }
 0x53f   : > { %6362 = vmatpush1.bf16.msra.mxu0 %v6361_v40  ;;  %v3716_v40 = vld [vmem:[%s12734_s3 + $0x1010] sm:$0xff] }
 0x540   : > { %6364 = vmatprep.subr.bf16.mxu0 %v6363_v3  ;;  %v6381_v57 = vpack.c.bf16 %v3716_v40, %v3714_v58 }
 0x543   : > { %6366 = vmatpush1.bf16.msra.mxu0 %v6365_v31  ;;  %v3122_v31 = vsel %vm3121_vm10, %v13052_v51, %v7373_v17  ;;  %v3732_v51 = vld [vmem:[%s12734_s3 + $0x1090] sm:$0xff] }
 0x544   : > { %6368 = vmatprep.subr.bf16.mxu0 %v6367_v24  ;;  %v2630_v24 = vmax.f32 %v13028_v38, %v2535_v22  ;;  %v3720_v38 = vld [vmem:[%s12734_s3 + $0x1030] sm:$0xff] }
 0x547   : > { %6370 = vmatpush1.bf16.msra.mxu0 %v6369_v41 }
 0x548   : > { %6372 = vmatprep.subr.bf16.mxu0 %v6371_v2 }
 0x54b   : > { %6374 = vmatpush1.bf16.msra.mxu0 %v6373_v56 }
 0x54c   : > { %6376 = vmatprep.subr.bf16.mxu0 %v6375_v44 }
 0x54f   : > { %6378 = vmatpush1.bf16.msra.mxu0 %v6377_v19 }
 0x550   : > { %6380 = vmatprep.subr.bf16.mxu0 %v6379_v59 }
 0x55d   : > { %v12015_v21 = vpop.permute.xlu1 %7365 }
 0x55e   : > { %v7368_v45 = vunpack.i.h.bf16 %v12015_v21  ;;  %v7367_v0 = vunpack.i.l.bf16 %v12015_v21 }
 0x560   : > { %v3012_v35 = vsel %vm2988_vm9, %v7367_v0, %v7368_v45  ;;  %v3011_v34 = vsel %vm2988_vm9, %v13051_v49, %v7367_v0  ;;  %v6389_v0 = vpack.c.bf16 %v3724_v43, %v3722_v18  ;;  %v3726_v49 = vld [vmem:[%s12734_s3 + $0x1060] sm:$0xff] }
 0x561   : > { %v2498_v3 = vpop.permute.xlu1 %2497  ;;  %4596 = vmatprep.mubr.f32.mxu0 %v3012_v35 }
 0x562   : > { %v2536_v52 = vsel %vm2501_vm6, %v7363_v47, %v2498_v3  ;;  %v2537_v39 = vsel %vm2501_vm6, %v2498_v3, %v11677_v32  ;;  %4597 = vmatmul.mubr.f32.gmra.mrb[14].mxu0 %v3011_v34  ;;  %v3727_v47 = vld [vmem:[%s12734_s3 + $0x1068] sm:$0xff]  ;;  %v3728_v34 = vld [vmem:[%s12734_s3 + $0x1070] sm:$0xff] }
 0x563   : > { %v2631_v4 = vmax.f32 %v13029_v54, %v2536_v52  ;;  %v2632_v23 = vmax.f32 %v9797_v55, %v2537_v39  ;;  %4667 = vmatprep.mubr.f32.mxu0 %v3122_v31  ;;  %v7383_v54 = vunpack.i.h.bf16 %v11652_v6  ;;  %v6391_v35 = vpack.c.bf16 %v3729_v11, %v3727_v47  ;;  %v3731_v3 = vld [vmem:[%s12734_s3 + $0x1088] sm:$0xff]  ;;  %v3730_v39 = vld [vmem:[%s12734_s3 + $0x1080] sm:$0xff]  ;;  %v3748_v11 = vld [vmem:[%s12734_s3 + $0x1110] sm:$0xff] }
 0x564   : > { %v6393_v37 = vpack.c.bf16 %v3728_v34, %v3726_v49  ;;  %v6395_v52 = vpack.c.bf16 %v3733_v16, %v3731_v3  ;;  %v7398_v31 = vunpack.i.h.bf16 %v11695_v7  ;;  %v3746_v47 = vld [vmem:[%s12734_s3 + $0x1100] sm:$0xff]  ;;  %v2633_v49 = vmax.f32 %v9799_v9, %v11677_v32  ;;  %v3755_v3 = vld [vmem:[%s12734_s3 + $0x1148] sm:$0xff] }
 0x565   : > { %v7409_v41 = vpack.i.bf16 %v2631_v4, %v2630_v24  ;;  %v12050_v2 = vpop.permute.xlu1 %7375  ;;  %3117 = vrot.lane.b32.xlu0 %v2632_v23, %s7466_s20  ;;  %v6397_v4 = vpack.c.bf16 %v3732_v51, %v3730_v39  ;;  %v3754_v16 = vld [vmem:[%s12734_s3 + $0x1140] sm:$0xff] }
 0x566   : > { %v7378_v55 = vunpack.i.h.bf16 %v12050_v2  ;;  %v7377_v60 = vunpack.i.l.bf16 %v12050_v2  ;;  %4668 = vmatmul.mubr.f32.vlgmr.msra.gmra.mrb[0].mxu0 %v11648_v13  ;;  %v6385_v13 = vpack.c.bf16 %v3720_v38, %v3718_v48  ;;  %v3739_v38 = vld [vmem:[%s12734_s3 + $0x10c8] sm:$0xff] }
 0x567   : > { %7410 = vrot.lane.b32.xlu1 %v7409_v41, %s7466_s20  ;;  %6382 = vmatpush1.bf16.msra.mxu0 %v6381_v57  ;;  %v3736_v41 = vld [vmem:[%s12734_s3 + $0x10b0] sm:$0xff] }
 0x568   : > { %v3125_v56 = vsel %vm3121_vm10, %v7377_v60, %v7378_v55  ;;  %v3195_v44 = vsel %vm3121_vm10, %v7333_v42, %v7377_v60  ;;  %6384 = vmatprep.subr.bf16.mxu0 %v6383_v50  ;;  %v13053_v42 = vunpack.i.l.bf16 %v11652_v6  ;;  %v3734_v50 = vld [vmem:[%s12734_s3 + $0x10a0] sm:$0xff]  ;;  %v3741_v60 = vld [vmem:[%s12734_s3 + $0x10d8] sm:$0xff] }
 0x569   : > { %v12076_v61 = vpop.permute.xlu1 %7385  ;;  %4673 = vmatprep.mubr.f32.mxu0 %v3125_v56  ;;  %v6401_v10 = vpack.c.bf16 %v3736_v41, %v3734_v50  ;;  %v6403_v15 = vpack.c.bf16 %v3741_v60, %v3739_v38  ;;  %v3738_v56 = vld [vmem:[%s12734_s3 + $0x10c0] sm:$0xff]  ;;  %v3764_v41 = vld [vmem:[%s12734_s3 + $0x1190] sm:$0xff] }
 0x56a   : > { %v7388_v19 = vunpack.i.h.bf16 %v12076_v61  ;;  %v7387_v30 = vunpack.i.l.bf16 %v12076_v61  ;;  %4674 = vmatmul.mubr.f32.gmra.mrb[2].mxu0 %v3195_v44  ;;  %v3128_v59 = vsel %vm3121_vm10, %v13053_v42, %v7383_v54  ;;  %v3740_v44 = vld [vmem:[%s12734_s3 + $0x10d0] sm:$0xff]  ;;  %v3762_v50 = vld [vmem:[%s12734_s3 + $0x1180] sm:$0xff] }
 0x56b   : > { %3063 = vrot.lane.b32.xlu1 %v9986_v46, %s7466_s20  ;;  %4679 = vmatprep.mubr.f32.mxu0 %v3128_v59  ;;  %v6405_v18 = vpack.c.bf16 %v3740_v44, %v3738_v56  ;;  %v3744_v42 = vld [vmem:[%s12734_s3 + $0x10f0] sm:$0xff]  ;;  %v3766_v60 = vld [vmem:[%s12734_s3 + $0x11a0] sm:$0xff]  ;;  %v3773_v56 = vld [vmem:[%s12734_s3 + $0x11d8] sm:$0xff] }
 0x56c   : > { %6386 = vmatpush1.bf16.msra.mxu0 %v6385_v13  ;;  %v3131_v46 = vsel %vm3121_vm10, %v7387_v30, %v7388_v19 }
 0x56d   : > { %v12099_v22 = vpop.permute.xlu1 %7390  ;;  %6388 = vmatprep.subr.bf16.mxu0 %v6387_v53  ;;  %v3745_v53 = vld [vmem:[%s12734_s3 + $0x10f8] sm:$0xff] }
 0x56e   : > { %v7393_v58 = vunpack.i.h.bf16 %v12099_v22  ;;  %v7392_v40 = vunpack.i.l.bf16 %v12099_v22  ;;  %4680 = vmatmul.mubr.f32.gmra.mrb[4].mxu0 %v11675_v8  ;;  %v3197_v8 = vsel %vm3121_vm10, %v7343_v33, %v7387_v30  ;;  %v3737_v33 = vld [vmem:[%s12734_s3 + $0x10b8] sm:$0xff]  ;;  %v3742_v30 = vld [vmem:[%s12734_s3 + $0x10e0] sm:$0xff] }
 0x56f   : > { %3071 = vrot.lane.b32.xlu1 %v10040_v29, %s7466_s20  ;;  %4685 = vmatprep.mubr.f32.mxu0 %v3131_v46  ;;  %v6399_v57 = vpack.c.bf16 %v3737_v33, %v3735_v5  ;;  %v3752_v46 = vld [vmem:[%s12734_s3 + $0x1130] sm:$0xff]  ;;  %v3763_v33 = vld [vmem:[%s12734_s3 + $0x1188] sm:$0xff] }
 0x570   : > { %6390 = vmatpush1.bf16.msra.mxu0 %v6389_v0  ;;  %v3134_v29 = vsel %vm3121_vm10, %v7392_v40, %v7393_v58  ;;  %v3198_v23 = vsel %vm3121_vm10, %v7348_v63, %v7392_v40  ;;  %v3137_v63 = vsel %vm3121_vm10, %v13054_v25, %v7398_v31  ;;  %v3751_v0 = vld [vmem:[%s12734_s3 + $0x1128] sm:$0xff]  ;;  %v3750_v40 = vld [vmem:[%s12734_s3 + $0x1120] sm:$0xff]  ;;  %v3760_v5 = vld [vmem:[%s12734_s3 + $0x1170] sm:$0xff] }
 0x571   : > { %6392 = vmatprep.subr.bf16.mxu0 %v6391_v35  ;;  %v12140_v24 = vpop.permute.xlu1 %7400  ;;  %v6413_v35 = vpack.c.bf16 %v3748_v11, %v3746_v47  ;;  %v6417_v9 = vpack.c.bf16 %v3752_v46, %v3750_v40  ;;  %v3769_v25 = vld [vmem:[%s12734_s3 + $0x11b8] sm:$0xff] }
 0x572   : > { %4686 = vmatmul.mubr.f32.gmra.mrb[6].mxu0 %v3197_v8  ;;  %v7403_v48 = vunpack.i.h.bf16 %v12140_v24  ;;  %v3759_v8 = vld [vmem:[%s12734_s3 + $0x1168] sm:$0xff] }
 0x573   : > { %3079 = vrot.lane.b32.xlu1 %v10089_v20, %s7466_s20  ;;  %4691 = vmatprep.mubr.f32.mxu0 %v3134_v29  ;;  %v7402_v20 = vunpack.i.l.bf16 %v12140_v24  ;;  %v3758_v29 = vld [vmem:[%s12734_s3 + $0x1160] sm:$0xff] }
 0x574   : > { %6394 = vmatpush1.bf16.msra.mxu0 %v6393_v37  ;;  %v3756_v37 = vld [vmem:[%s12734_s3 + $0x1150] sm:$0xff] }
 0x575   : > { %6396 = vmatprep.subr.bf16.mxu0 %v6395_v52  ;;  %v3140_v13 = vsel %vm3121_vm10, %v7402_v20, %v7403_v48  ;;  %v3761_v52 = vld [vmem:[%s12734_s3 + $0x1178] sm:$0xff]  ;;  %v6421_v39 = vpack.c.bf16 %v3756_v37, %v3754_v16 }
 0x576   : > { %4692 = vmatmul.mubr.f32.gmra.mrb[8].mxu0 %v3198_v23  ;;  %v6423_v51 = vpack.c.bf16 %v3761_v52, %v3759_v8  ;;  %v6425_v23 = vpack.c.bf16 %v3760_v5, %v3758_v29 }
 0x577   : > { %3087 = vrot.lane.b32.xlu1 %v10140_v28, %s7466_s20  ;;  %4697 = vmatprep.mubr.f32.mxu0 %v3137_v63  ;;  %v3743_v28 = vld [vmem:[%s12734_s3 + $0x10e8] sm:$0xff]  ;;  %v6429_v63 = vpack.c.bf16 %v3764_v41, %v3762_v50 }
 0x578   : > { %6398 = vmatpush1.bf16.msra.mxu0 %v6397_v4  ;;  %v6407_v43 = vpack.c.bf16 %v3745_v53, %v3743_v28  ;;  %v3765_v4 = vld [vmem:[%s12734_s3 + $0x1198] sm:$0xff]  ;;  %v3770_v28 = vld [vmem:[%s12734_s3 + $0x11c0] sm:$0xff]  ;;  %v3772_v53 = vld [vmem:[%s12734_s3 + $0x11d0] sm:$0xff] }
 0x579   : > { %6400 = vmatprep.subr.bf16.mxu0 %v6399_v57  ;;  %v6427_v57 = vpack.c.bf16 %v3765_v4, %v3763_v33 }
 0x57a   : > { %4698 = vmatmul.mubr.f32.gmra.mrb[10].mxu0 %v11718_v1  ;;  %v3200_v1 = vsel %vm3121_vm10, %v7358_v36, %v7402_v20  ;;  %v6409_v36 = vpack.c.bf16 %v3744_v42, %v3742_v30  ;;  %v3767_v20 = vld [vmem:[%s12734_s3 + $0x11a8] sm:$0xff]  ;;  %v3774_v42 = vld [vmem:[%s12734_s3 + $0x11e0] sm:$0xff] }
 0x57b   : > { %3095 = vrot.lane.b32.xlu1 %v10217_v62, %s7466_s20  ;;  %4703 = vmatprep.mubr.f32.mxu0 %v3140_v13  ;;  %v3747_v62 = vld [vmem:[%s12734_s3 + $0x1108] sm:$0xff]  ;;  %v6431_v38 = vpack.c.bf16 %v3769_v25, %v3767_v20 }
 0x57c   : > { %6402 = vmatpush1.bf16.msra.mxu0 %v6401_v10  ;;  %v6411_v59 = vpack.c.bf16 %v3749_v14, %v3747_v62  ;;  %v3768_v10 = vld [vmem:[%s12734_s3 + $0x11b0] sm:$0xff] }
 0x57d   : > { %6404 = vmatprep.subr.bf16.mxu0 %v6403_v15  ;;  %v3771_v15 = vld [vmem:[%s12734_s3 + $0x11c8] sm:$0xff]  ;;  %v6433_v44 = vpack.c.bf16 %v3768_v10, %v3766_v60  ;;  %v3776_v62 = vld [vmem:[%s12734_s3 + $0x11f0] sm:$0xf] }
 0x57e   : > { %4704 = vmatmul.mubr.f32.gmra.mrb[12].mxu0 %v3200_v1  ;;  %v6435_v13 = vpack.c.bf16 %v3773_v56, %v3771_v15  ;;  %v3777_v1 = vld [vmem:[%s12734_s3 + $0x11f8] sm:$0xf]  ;;  %v6442_v14 = vpack.c.bf16 %v3776_v62, %v3774_v42 }
 0x57f   : > { %3103 = vrot.lane.b32.xlu1 %v11169_v27, %s7466_s20  ;;  %v3753_v27 = vld [vmem:[%s12734_s3 + $0x1138] sm:$0xff] }
 0x580   : > { %6406 = vmatpush1.bf16.msra.mxu0 %v6405_v18  ;;  %v6415_v34 = vpack.c.bf16 %v3753_v27, %v3751_v0  ;;  %v3775_v18 = vld [vmem:[%s12734_s3 + $0x11e8] sm:$0xff] }
 0x581   : > { %6408 = vmatprep.subr.bf16.mxu0 %v6407_v43  ;;  %v6437_v43 = vpack.c.bf16 %v3772_v53, %v3770_v28  ;;  %v6439_v30 = vpack.c.bf16 %v3777_v1, %v3775_v18  ;;  %v13055_v53 = vld [vmem:[#allocation4_spill] sm:$0xff] }
 0x582   : > { %v13056_v18 = vsub.s32 0, %v13055_v53  ;;  %v13057_v24 = vsub.s32 1, %v13055_v53 }
 0x583   : > { %3111 = vrot.lane.b32.xlu1 %v11563_v26, %s7466_s20  ;;  %v3757_v26 = vld [vmem:[%s12734_s3 + $0x1158] sm:$0xff] }
 0x584   : > { %6410 = vmatpush1.bf16.msra.mxu0 %v6409_v36  ;;  %v6419_v32 = vpack.c.bf16 %v3757_v26, %v3755_v3  ;;  %v3062_v36 = vpop.permute.xlu0 %3061 }
 0x585   : > { %6412 = vmatprep.subr.bf16.mxu0 %v6411_v59 }
 0x587   : > { %3119 = vrot.lane.b32.xlu1 %v2633_v49, %s7466_s20  ;;  %s5376_s20 = sshll.u32 %s13062_s12, 3 }
 0x588   : > { %6414 = vmatpush1.bf16.msra.mxu0 %v6413_v35  ;;  %v3070_v59 = vpop.permute.xlu0 %3069  ;;  %s472_s29 = scalar_lea.vmem %s12740_s9, %s5376_s20 }
 0x589   : > { %6416 = vmatprep.subr.bf16.mxu0 %v6415_v34 }
 0x58c   : > { %6418 = vmatpush1.bf16.msra.mxu0 %v6417_v9  ;;  %v3078_v3 = vpop.permute.xlu0 %3077 }
 0x58d   : > { %6420 = vmatprep.subr.bf16.mxu0 %v6419_v32  ;;  %v3123_v32 = vsel %vm3121_vm10, %v7373_v17, %v3062_v36  ;;  %v3129_v5 = vsel %vm3121_vm10, %v7383_v54, %v3078_v3 }
 0x590   : > { %6422 = vmatpush1.bf16.msra.mxu0 %v6421_v39  ;;  %v3086_v8 = vpop.permute.xlu0 %3085  ;;  %v3126_v39 = vsel %vm3121_vm10, %v7378_v55, %v3070_v59 }
 0x591   : > { %6424 = vmatprep.subr.bf16.mxu0 %v6423_v51 }
 0x594   : > { %6426 = vmatpush1.bf16.msra.mxu0 %v6425_v23  ;;  %v3094_v2 = vpop.permute.xlu0 %3093 }
 0x595   : > { %6428 = vmatprep.subr.bf16.mxu0 %v6427_v57  ;;  %v3132_v57 = vsel %vm3121_vm10, %v7388_v19, %v3086_v8  ;;  %v3135_v25 = vsel %vm3121_vm10, %v7393_v58, %v3094_v2 }
 0x598   : > { %6430 = vmatpush1.bf16.msra.mxu0 %v6429_v63  ;;  %v3102_v41 = vpop.permute.xlu0 %3101 }
 0x599   : > { %6432 = vmatprep.subr.bf16.mxu0 %v6431_v38  ;;  %v3138_v10 = vsel %vm3121_vm10, %v7398_v31, %v3102_v41  ;;  %v3778_v31 = vld [vmem:[%s12735_s4] sm:$0x3] }
 0x59a   : > { %v12386_v1 = vrot.slane %v3778_v31, %v13056_v18 }
 0x59c   : > { %6434 = vmatpush1.bf16.msra.mxu0 %v6433_v44  ;;  %v3110_v38 = vpop.permute.xlu0 %3109 }
 0x59d   : > { %6436 = vmatprep.subr.bf16.mxu0 %v6435_v13  ;;  %v3141_v13 = vsel %vm3121_vm10, %v7403_v48, %v3110_v38  ;;  %v12390_v48 = vrot.slane %v3778_v31, %v13057_v24 }
 0x5a0   : > { %6438 = vmatpush1.bf16.msra.mxu0 %v6437_v43 }
 0x5a1   : > { %6441 = vmatprep.subr.msk.bf16.mxu0 %vm6440_vm12, %v6439_v30 }
 0x5a4   : > { %6444 = vmatpush1.bf16.msk.msra.mxu0 %vm6440_vm12, %v6442_v14 }
 0x5d7   : > { %v3118_v56 = vpop.permute.xlu0 %3117 }
 0x5d9   : > { %v12299_v47 = vpop.permute.xlu1 %7410 }
 0x5da   : > { %v7413_v11 = vunpack.i.h.bf16 %v12299_v47  ;;  %v7412_v0 = vunpack.i.l.bf16 %v12299_v47 }
 0x5db   : > { %v12303_v27 = vpop.f32.mrb[96].mxu1 }
 0x5dc   : > { %v12305_v35 = vpop.f32.mrb[97].mxu1  ;;  %v3143_v49 = vsel %vm3121_vm10, %v7412_v0, %v7413_v11  ;;  %v3201_v34 = vsel %vm3121_vm10, %v7368_v45, %v7412_v0  ;;  %v3144_v7 = vsel %vm3121_vm10, %v7413_v11, %v3118_v56  ;;  %v3879_v43 = vadd.f32 %v12303_v27, %v12386_v1 }
 0x5dd   : > { %v3064_v40 = vpop.permute.xlu1 %3063  ;;  %4709 = vmatprep.mubr.f32.mxu0 %v3143_v49  ;;  %v3881_v30 = vadd.f32 %v12305_v35, %v12390_v48 }
 0x5de   : > { %v3124_v46 = vsel %vm3121_vm10, %v3062_v36, %v3064_v40  ;;  %4710 = vmatmul.mubr.f32.gmra.mrb[14].mxu0 %v3201_v34 }
 0x5df   : > { %v12314_v26 = vpop.f32.mrb[98].mxu1  ;;  %5527 = vmatprep.mubr.msk.f32.mxu0 %vm1031_vm1, %v3124_v46 }
 0x5e0   : > { %v12317_v9 = vpop.f32.mrb[99].mxu1 }
 0x5e1   : > { %v3072_v16 = vpop.permute.xlu1 %3071  ;;  %v3887_v47 = vadd.f32 %v12317_v9, %v12390_v48 }
 0x5e2   : > { %v3127_v21 = vsel %vm3121_vm10, %v3070_v59, %v3072_v16  ;;  %4781 = vmatmul.mubr.f32.vlgmr.msra.gmra.mrb[0].mxu0 %v3123_v32  ;;  %v3885_v59 = vadd.f32 %v12314_v26, %v12386_v1 }
 0x5e3   : > { %v12323_v45 = vpop.f32.mrb[100].mxu1  ;;  %5528 = vmatprep.mubr.msk.f32.mxu0 %vm1031_vm1, %v3127_v21 }
 0x5e4   : > { %v12326_v37 = vpop.f32.mrb[101].mxu1  ;;  %v3891_v27 = vadd.f32 %v12323_v45, %v12386_v1 }
 0x5e5   : > { %v3080_v52 = vpop.permute.xlu1 %3079  ;;  %v3893_v35 = vadd.f32 %v12326_v37, %v12390_v48 }
 0x5e6   : > { %v3130_v12 = vsel %vm3121_vm10, %v3078_v3, %v3080_v52  ;;  %4787 = vmatmul.mubr.f32.gmra.mrb[2].mxu0 %v3126_v39 }
 0x5e7   : > { %v12332_v17 = vpop.f32.mrb[102].mxu1  ;;  %5529 = vmatprep.mubr.msk.f32.mxu0 %vm1031_vm1, %v3130_v12 }
 0x5e8   : > { %v12335_v51 = vpop.f32.mrb[103].mxu1  ;;  %v3897_v39 = vadd.f32 %v12332_v17, %v12386_v1 }
 0x5e9   : > { %v3088_v29 = vpop.permute.xlu1 %3087  ;;  %v3899_v45 = vadd.f32 %v12335_v51, %v12390_v48 }
 0x5ea   : > { %v3133_v33 = vsel %vm3121_vm10, %v3086_v8, %v3088_v29  ;;  %4793 = vmatmul.mubr.f32.gmra.mrb[4].mxu0 %v3129_v5 }
 0x5eb   : > { %v12341_v4 = vpop.f32.mrb[104].mxu1  ;;  %5530 = vmatprep.mubr.msk.f32.mxu0 %vm1031_vm1, %v3133_v33 }
 0x5ec   : > { %v12344_v55 = vpop.f32.mrb[105].mxu1  ;;  %v3903_v33 = vadd.f32 %v12341_v4, %v12386_v1 }
 0x5ed   : > { %v3096_v23 = vpop.permute.xlu1 %3095 }
 0x5ee   : > { %v3136_v50 = vsel %vm3121_vm10, %v3094_v2, %v3096_v23  ;;  %4799 = vmatmul.mubr.f32.gmra.mrb[6].mxu0 %v3132_v57  ;;  %v3905_v57 = vadd.f32 %v12344_v55, %v12390_v48 }
 0x5ef   : > { %v12350_v6 = vpop.f32.mrb[106].mxu1  ;;  %5531 = vmatprep.mubr.msk.f32.mxu0 %vm1031_vm1, %v3136_v50 }
 0x5f0   : > { %v12353_v54 = vpop.f32.mrb[107].mxu1 }
 0x5f1   : > { %v3104_v20 = vpop.permute.xlu1 %3103  ;;  %v3911_v4 = vadd.f32 %v12353_v54, %v12390_v48 }
 0x5f2   : > { %v3139_v63 = vsel %vm3121_vm10, %v3102_v41, %v3104_v20  ;;  %4805 = vmatmul.mubr.f32.gmra.mrb[8].mxu0 %v3135_v25 }
 0x5f3   : > { %v12359_v61 = vpop.f32.mrb[108].mxu1  ;;  %5532 = vmatprep.mubr.msk.f32.mxu0 %vm1031_vm1, %v3139_v63 }
 0x5f4   : > { %v12362_v19 = vpop.f32.mrb[109].mxu1 }
 0x5f5   : > { %v3112_v60 = vpop.permute.xlu1 %3111 }
 0x5f6   : > { %v3142_v15 = vsel %vm3121_vm10, %v3110_v38, %v3112_v60  ;;  %4811 = vmatmul.mubr.f32.gmra.mrb[10].mxu0 %v3138_v10  ;;  %v3909_v60 = vadd.f32 %v12350_v6, %v12386_v1  ;;  %v3917_v6 = vadd.f32 %v12362_v19, %v12390_v48 }
 0x5f7   : > { %v12368_v22 = vpop.f32.mrb[110].mxu1  ;;  %5533 = vmatprep.mubr.msk.f32.mxu0 %vm1031_vm1, %v3142_v15 }
 0x5f8   : > { %v12371_v58 = vpop.f32.mrb[111].mxu1 }
 0x5f9   : > { %v3120_v44 = vpop.permute.xlu1 %3119 }
 0x5fa   : > { %v3145_v28 = vsel %vm3121_vm10, %v3118_v56, %v3120_v44  ;;  %4817 = vmatmul.mubr.f32.gmra.mrb[12].mxu0 %v3141_v13  ;;  %v3915_v13 = vadd.f32 %v12359_v61, %v12386_v1  ;;  %v3923_v61 = vadd.f32 %v12371_v58, %v12390_v48  ;;  %v4928_v48 = vld [vmem:[%s12736_s5 + $0x8] sm:$0xff] }
 0x5fb   : > { %5534 = vmatprep.mubr.msk.f32.mxu0 %vm1031_vm1, %v3145_v28  ;;  %vm5309_vm1 = vcmask 15360  }
 0x5fe   : > { %4823 = vmatmul.mubr.f32.gmra.mrb[14].mxu0 %v3144_v7 }
 0x6b5   : > { %v4782_v42 = vpop.f32.mrb[0].mxu0 }
 0x6b6   : > { %v6624_v62 = vadd.f32 %v4782_v42, %v3879_v43  ;;  %v4784_v14 = vpop.f32.mrb[1].mxu0 }
 0x6b7   : > { %v6626_v36 = vadd.f32 %v4784_v14, %v3881_v30 }
 0x6b8   : > { %v4829_v40 = vmax.f32 %v6624_v62, 0.0  ;;  %v3921_v62 = vadd.f32 %v12368_v22, %v12386_v1  ;;  %v4927_v22 = vld [vmem:[%s12736_s5] sm:$0xff] }
 0x6b9   : > { %v4788_v11 = vpop.f32.mrb[2].mxu0  ;;  %v4830_v3 = vmax.f32 %v6626_v36, 0.0 }
 0x6ba   : > { %v6628_v0 = vadd.f32 %v4788_v11, %v3885_v59  ;;  %v4790_v49 = vpop.f32.mrb[3].mxu0  ;;  %v4944_v11 = vld [vmem:[%s12736_s5 + $0x88] sm:$0xff] }
 0x6bb   : > { %v6630_v34 = vadd.f32 %v4790_v49, %v3887_v47  ;;  %v4943_v47 = vld [vmem:[%s12736_s5 + $0x80] sm:$0xff]  ;;  %v4946_v49 = vld [vmem:[%s12736_s5 + $0x98] sm:$0xff] }
 0x6bc   : > { %v4831_v46 = vmax.f32 %v6628_v0, 0.0  ;;  %v6445_v58 = vpack.c.bf16 %v4944_v11, %v4943_v47  ;;  %v4945_v0 = vld [vmem:[%s12736_s5 + $0x90] sm:$0xff] }
 0x6bd   : > { %v4832_v32 = vmax.f32 %v6630_v34, 0.0  ;;  %v4794_v16 = vpop.f32.mrb[4].mxu0 }
 0x6be   : > { %v12404_v21 = vmax.f32 %v4829_v40, %v4831_v46  ;;  %v6632_v26 = vadd.f32 %v4794_v16, %v3891_v27  ;;  %v4796_v8 = vpop.f32.mrb[5].mxu0  ;;  %v6447_v40 = vpack.c.bf16 %v4928_v48, %v4927_v22  ;;  %v6449_v46 = vpack.c.bf16 %v4946_v49, %v4945_v0  ;;  %6446 = vmatprep.subr.bf16.mxu1 %v6445_v58 }
 0x6bf   : > { %v12406_v9 = vmax.f32 %v4830_v3, %v4832_v32  ;;  %v6634_v52 = vadd.f32 %v4796_v8, %v3893_v35  ;;  %v4929_v35 = vld [vmem:[%s12736_s5 + $0x10] sm:$0xff]  ;;  %v4930_v3 = vld [vmem:[%s12736_s5 + $0x18] sm:$0xff]  ;;  %v4947_v32 = vld [vmem:[%s12736_s5 + $0xa0] sm:$0xff] }
 0x6c0   : > { %v4833_v2 = vmax.f32 %v6632_v26, 0.0  ;;  %v4948_v8 = vld [vmem:[%s12736_s5 + $0xa8] sm:$0xff]  ;;  %6448 = vmatpush3.bf16.msra.mxu1 %v6447_v40 }
 0x6c1   : > { %v4800_v12 = vpop.f32.mrb[6].mxu0  ;;  %v4834_v50 = vmax.f32 %v6634_v52, 0.0  ;;  %6450 = vmatprep.subr.bf16.mxu1 %v6449_v46 }
 0x6c2   : > { %v6636_v29 = vadd.f32 %v4800_v12, %v3897_v39  ;;  %v4802_v5 = vpop.f32.mrb[7].mxu0  ;;  %v6451_v39 = vpack.c.bf16 %v4930_v3, %v4929_v35  ;;  %v6453_v12 = vpack.c.bf16 %v4948_v8, %v4947_v32 }
 0x6c3   : > { %v6638_v37 = vadd.f32 %v4802_v5, %v3899_v45  ;;  %v4932_v5 = vld [vmem:[%s12736_s5 + $0x28] sm:$0xff] }
 0x6c4   : > { %v4835_v23 = vmax.f32 %v6636_v29, 0.0  ;;  %v4931_v29 = vld [vmem:[%s12736_s5 + $0x20] sm:$0xff]  ;;  %6452 = vmatpush3.bf16.msra.mxu1 %v6451_v39 }
 0x6c5   : > { %v4836_v41 = vmax.f32 %v6638_v37, 0.0  ;;  %v4806_v20 = vpop.f32.mrb[8].mxu0  ;;  %v4949_v37 = vld [vmem:[%s12736_s5 + $0xb0] sm:$0xff]  ;;  %6454 = vmatprep.subr.bf16.mxu1 %v6453_v12  ;;  %v4960_v12 = vld [vmem:[%s12736_s5 + $0x108] sm:$0xff] }
 0x6c6   : > { %v12416_v25 = vmax.f32 %v4833_v2, %v4835_v23  ;;  %v6640_v17 = vadd.f32 %v4806_v20, %v3903_v33  ;;  %v4808_v63 = vpop.f32.mrb[9].mxu0  ;;  %v4950_v33 = vld [vmem:[%s12736_s5 + $0xb8] sm:$0xff]  ;;  %v7424_v2 = vpack.i.bf16 %v12404_v21, %v12406_v9  ;;  %v6455_v23 = vpack.c.bf16 %v4932_v5, %v4931_v29  ;;  %v4951_v20 = vld [vmem:[%s12736_s5 + $0xc0] sm:$0xff]  ;;  %v4977_v29 = vld [vmem:[%s12736_s5 + $0x190] sm:$0xff] }
 0x6c7   : > { %v12418_v51 = vmax.f32 %v4834_v50, %v4836_v41  ;;  %v6642_v38 = vadd.f32 %v4808_v63, %v3905_v57  ;;  %v6457_v57 = vpack.c.bf16 %v4950_v33, %v4949_v37  ;;  %v4933_v50 = vld [vmem:[%s12736_s5 + $0x30] sm:$0xff]  ;;  %v4934_v41 = vld [vmem:[%s12736_s5 + $0x38] sm:$0xff] }
 0x6c8   : > { %v4837_v28 = vmax.f32 %v6640_v17, 0.0  ;;  %v4952_v17 = vld [vmem:[%s12736_s5 + $0xc8] sm:$0xff]  ;;  %6456 = vmatpush3.bf16.msra.mxu1 %v6455_v23  ;;  %v6459_v63 = vpack.c.bf16 %v4934_v41, %v4933_v50  ;;  %v4961_v50 = vld [vmem:[%s12736_s5 + $0x110] sm:$0xff]  ;;  %v4962_v41 = vld [vmem:[%s12736_s5 + $0x118] sm:$0xff] }
 0x6c9   : > { %v7414_v10 = vpack.i.bf16 %v12418_v51, %v12416_v25  ;;  %v4812_v55 = vpop.f32.mrb[10].mxu0  ;;  %v4838_v31 = vmax.f32 %v6642_v38, 0.0  ;;  %6458 = vmatprep.subr.bf16.mxu1 %v6457_v57  ;;  %v6461_v38 = vpack.c.bf16 %v4952_v17, %v4951_v20  ;;  %v6483_v20 = vpack.c.bf16 %v4962_v41, %v4961_v50  ;;  %v5220_v41 = vld [vmem:[%s12738_s7 + $0x18] sm:$0xff] }
 0x6ca   : > { %v6644_v15 = vadd.f32 %v4812_v55, %v3909_v60  ;;  %v4814_v56 = vpop.f32.mrb[11].mxu0  ;;  %v4935_v60 = vld [vmem:[%s12736_s5 + $0x40] sm:$0xff]  ;;  %v4954_v55 = vld [vmem:[%s12736_s5 + $0xd8] sm:$0xff] }
 0x6cb   : > { %v6646_v44 = vadd.f32 %v4814_v56, %v3911_v4  ;;  %7415 = vrot.lane.b32.xlu0 %v7414_v10, %s7462_s17  ;;  %v4936_v4 = vld [vmem:[%s12736_s5 + $0x48] sm:$0xff]  ;;  %v4953_v10 = vld [vmem:[%s12736_s5 + $0xd0] sm:$0xff] }
 0x6cc   : > { %v4839_v7 = vmax.f32 %v6644_v15, 0.0  ;;  %6460 = vmatpush3.bf16.msra.mxu1 %v6459_v63  ;;  %v6463_v15 = vpack.c.bf16 %v4936_v4, %v4935_v60  ;;  %v6465_v56 = vpack.c.bf16 %v4954_v55, %v4953_v10  ;;  %v4963_v63 = vld [vmem:[%s12736_s5 + $0x120] sm:$0xff]  ;;  %v4981_v60 = vld [vmem:[%s12736_s5 + $0x1b0] sm:$0xff]  ;;  %v4982_v4 = vld [vmem:[%s12736_s5 + $0x1b8] sm:$0xff] }
 0x6cd   : > { %v4840_v53 = vmax.f32 %v6646_v44, 0.0  ;;  %v4818_v54 = vpop.f32.mrb[12].mxu0  ;;  %6462 = vmatprep.subr.bf16.mxu1 %v6461_v38  ;;  %v4937_v44 = vld [vmem:[%s12736_s5 + $0x50] sm:$0xff]  ;;  %v4964_v38 = vld [vmem:[%s12736_s5 + $0x128] sm:$0xff]  ;;  %v6489_v55 = vpack.c.bf16 %v4982_v4, %v4981_v60 }
 0x6ce   : > { %v12431_v18 = vmax.f32 %v4837_v28, %v4839_v7  ;;  %v6648_v24 = vadd.f32 %v4818_v54, %v3915_v13  ;;  %v4820_v43 = vpop.f32.mrb[13].mxu0  ;;  %v4938_v13 = vld [vmem:[%s12736_s5 + $0x58] sm:$0xff]  ;;  %v4955_v28 = vld [vmem:[%s12736_s5 + $0xe0] sm:$0xff]  ;;  %v4956_v7 = vld [vmem:[%s12736_s5 + $0xe8] sm:$0xff]  ;;  %v6487_v10 = vpack.c.bf16 %v4964_v38, %v4963_v63 }
 0x6cf   : > { %v12433_v30 = vmax.f32 %v4838_v31, %v4840_v53  ;;  %v6650_v42 = vadd.f32 %v4820_v43, %v3917_v6  ;;  %v6467_v6 = vpack.c.bf16 %v4938_v13, %v4937_v44  ;;  %v6469_v31 = vpack.c.bf16 %v4956_v7, %v4955_v28  ;;  %v4939_v53 = vld [vmem:[%s12736_s5 + $0x60] sm:$0xff]  ;;  %v4940_v54 = vld [vmem:[%s12736_s5 + $0x68] sm:$0xff]  ;;  %v4958_v43 = vld [vmem:[%s12736_s5 + $0xf8] sm:$0xff] }
 0x6d0   : > { %v4841_v34 = vmax.f32 %v6648_v24, 0.0  ;;  %6464 = vmatpush3.bf16.msra.mxu1 %v6463_v15  ;;  %v4957_v24 = vld [vmem:[%s12736_s5 + $0xf0] sm:$0xff]  ;;  %v4983_v13 = vld [vmem:[%s12736_s5 + $0x1c0] sm:$0xff]  ;;  %v4984_v28 = vld [vmem:[%s12736_s5 + $0x1c8] sm:$0xff] }
 0x6d1   : > { %v7419_v14 = vpack.i.bf16 %v12433_v30, %v12431_v18  ;;  %v4824_v19 = vpop.f32.mrb[14].mxu0  ;;  %v4842_v16 = vmax.f32 %v6650_v42, 0.0  ;;  %6466 = vmatprep.subr.bf16.mxu1 %v6465_v56  ;;  %v6471_v42 = vpack.c.bf16 %v4940_v54, %v4939_v53  ;;  %v4965_v15 = vld [vmem:[%s12736_s5 + $0x130] sm:$0xff]  ;;  %v4966_v56 = vld [vmem:[%s12736_s5 + $0x138] sm:$0xff]  ;;  %v6493_v54 = vpack.c.bf16 %v4984_v28, %v4983_v13 }
 0x6d2   : > { %v6652_v36 = vadd.f32 %v4824_v19, %v3921_v62  ;;  %v4826_v59 = vpop.f32.mrb[15].mxu0  ;;  %v6473_v62 = vpack.c.bf16 %v4958_v43, %v4957_v24  ;;  %v4967_v24 = vld [vmem:[%s12736_s5 + $0x140] sm:$0xff]  ;;  %v4968_v43 = vld [vmem:[%s12736_s5 + $0x148] sm:$0xff]  ;;  %v5223_v63 = vld [vmem:[%s12738_s7 + $0x30] sm:$0x3] }
 0x6d3   : > { %v6654_v1 = vadd.f32 %v4826_v59, %v3923_v61  ;;  %7420 = vrot.lane.b32.xlu1 %v7419_v14, %s7462_s17  ;;  %v4941_v61 = vld [vmem:[%s12736_s5 + $0x70] sm:$0xff]  ;;  %v4942_v14 = vld [vmem:[%s12736_s5 + $0x78] sm:$0xff]  ;;  %v4976_v59 = vld [vmem:[%s12736_s5 + $0x188] sm:$0xff] }
 0x6d4   : > { %v4843_v27 = vmax.f32 %v6652_v36, 0.0  ;;  %6468 = vmatpush3.bf16.msra.mxu1 %v6467_v6  ;;  %v6475_v19 = vpack.c.bf16 %v4942_v14, %v4941_v61  ;;  %v4975_v36 = vld [vmem:[%s12736_s5 + $0x180] sm:$0xff]  ;;  %v4986_v61 = vld [vmem:[%s12736_s5 + $0x1d8] sm:$0xff] }
 0x6d5   : > { %v4844_v26 = vmax.f32 %v6654_v1, 0.0  ;;  %6470 = vmatprep.subr.bf16.mxu1 %v6469_v31  ;;  %v6477_v47 = vpack.c.bf16 %v4976_v59, %v4975_v36  ;;  %v6491_v31 = vpack.c.bf16 %v4966_v56, %v4965_v15  ;;  %v4969_v59 = vld [vmem:[%s12736_s5 + $0x150] sm:$0xff] }
 0x6d6   : > { %v12472_v52 = vmax.f32 %v4841_v34, %v4843_v27 }
 0x6d7   : > { %v12474_v45 = vmax.f32 %v4842_v16, %v4844_v26 }
 0x6d8   : > { %4873 = vrot.lane.b32.xlu0 %v12472_v52, %s7462_s17  ;;  %6472 = vmatpush3.bf16.msra.mxu1 %v6471_v42 }
 0x6d9   : > { %4875 = vrot.lane.b32.xlu1 %v12474_v45, %s7462_s17  ;;  %6474 = vmatprep.subr.bf16.mxu1 %v6473_v62  ;;  %v4985_v62 = vld [vmem:[%s12736_s5 + $0x1d0] sm:$0xff] }
 0x6da   : > { %v6497_v36 = vpack.c.bf16 %v4986_v61, %v4985_v62 }
 0x6dc   : > { %7425 = vrot.lane.b32.xlu0 %v7424_v2, %s7462_s17  ;;  %6476 = vmatpush3.bf16.msra.mxu1 %v6475_v19  ;;  %v6495_v19 = vpack.c.bf16 %v4968_v43, %v4967_v24 }
 0x6dd   : > { %6478 = vmatprep.subr.bf16.mxu1 %v6477_v47  ;;  %v4970_v47 = vld [vmem:[%s12736_s5 + $0x158] sm:$0xff] }
 0x73d   : > { %v7416_v11 = vpop.permute.xlu0 %7415 }
 0x73e   : > { %v7418_v22 = vunpack.i.h.bf16 %v7416_v11  ;;  %v7417_v1 = vunpack.i.l.bf16 %v7416_v11  ;;  %v4987_v11 = vld [vmem:[%s12736_s5 + $0x1e0] sm:$0xff] }
 0x740   : > { %v4878_v58 = vsel %vm2501_vm6, %v7417_v1, %v7418_v22  ;;  %v4892_v0 = vmax.f32 %v12418_v51, %v7418_v22  ;;  %v4988_v22 = vld [vmem:[%s12736_s5 + $0x1e8] sm:$0xff]  ;;  %v6499_v1 = vpack.c.bf16 %v4970_v47, %v4969_v59 }
 0x741   : > { %v4891_v48 = vmax.f32 %v12416_v25, %v4878_v58  ;;  %v6501_v58 = vpack.c.bf16 %v4988_v22, %v4987_v11 }
 0x743   : > { %4899 = vrot.lane.b32.xlu1 %v4891_v48, %s7468_s15  ;;  %v4971_v48 = vld [vmem:[%s12736_s5 + $0x160] sm:$0xff] }
 0x745   : > { %v7421_v49 = vpop.permute.xlu1 %7420 }
 0x746   : > { %v7423_v34 = vunpack.i.h.bf16 %v7421_v49  ;;  %v7422_v27 = vunpack.i.l.bf16 %v7421_v49  ;;  %v4989_v49 = vld [vmem:[%s12736_s5 + $0x1f0] sm:$0xff] }
 0x747   : > { %4901 = vrot.lane.b32.xlu1 %v4892_v0, %s7468_s15  ;;  %v4972_v0 = vld [vmem:[%s12736_s5 + $0x168] sm:$0xff] }
 0x748   : > { %v4894_v40 = vmax.f32 %v12433_v30, %v7423_v34  ;;  %v4879_v46 = vsel %vm2501_vm6, %v7422_v27, %v7423_v34  ;;  %v4990_v34 = vld [vmem:[%s12736_s5 + $0x1f8] sm:$0xff]  ;;  %v6503_v27 = vpack.c.bf16 %v4972_v0, %v4971_v48 }
 0x749   : > { %v4893_v35 = vmax.f32 %v12431_v18, %v4879_v46  ;;  %v4959_v18 = vld [vmem:[%s12736_s5 + $0x100] sm:$0xff]  ;;  %v4973_v46 = vld [vmem:[%s12736_s5 + $0x170] sm:$0xff] }
 0x74a   : > { %v4874_v3 = vpop.permute.xlu0 %4873  ;;  %v6479_v33 = vpack.c.bf16 %v4960_v12, %v4959_v18 }
 0x74b   : > { %v7429_v32 = vpack.i.bf16 %v4894_v40, %v4893_v35  ;;  %v4876_v16 = vpop.permute.xlu1 %4875  ;;  %v6505_v40 = vpack.c.bf16 %v4990_v34, %v4989_v49  ;;  %v4974_v35 = vld [vmem:[%s12736_s5 + $0x178] sm:$0xff] }
 0x74c   : > { %v4880_v26 = vsel %vm2501_vm6, %v4874_v3, %v4876_v16  ;;  %v4896_v25 = vmax.f32 %v12474_v45, %v4876_v16  ;;  %v6507_v3 = vpack.c.bf16 %v4974_v35, %v4973_v46  ;;  %v4992_v16 = vld [vmem:[%s12736_s5 + $0x208] sm:$0xff] }
 0x74d   : > { %7430 = vrot.lane.b32.xlu0 %v7429_v32, %s7464_s18  ;;  %v4895_v51 = vmax.f32 %v12472_v52, %v4880_v26  ;;  %v4978_v52 = vld [vmem:[%s12736_s5 + $0x198] sm:$0xff]  ;;  %v4991_v32 = vld [vmem:[%s12736_s5 + $0x200] sm:$0xff] }
 0x74e   : > { %4920 = vrot.lane.b32.xlu1 %v4896_v25, %s7469_s19  ;;  %v7426_v8 = vpop.permute.xlu0 %7425  ;;  %v6481_v57 = vpack.c.bf16 %v4978_v52, %v4977_v29  ;;  %v6510_v25 = vpack.c.bf16 %v4992_v16, %v4991_v32  ;;  %v4995_v29 = vld [vmem:[%s12736_s5 + $0x220] sm:$0xff]  ;;  %v4996_v52 = vld [vmem:[%s12736_s5 + $0x228] sm:$0xff] }
 0x74f   : > { %v7428_v30 = vunpack.i.h.bf16 %v7426_v8  ;;  %v7427_v39 = vunpack.i.l.bf16 %v7426_v8  ;;  %v7470_v8 = vmov 0.0|0.0  }
 0x751   : > { %4918 = vrot.lane.b32.xlu0 %v4895_v51, %s7469_s19  ;;  %v4877_v45 = vsel %vm2501_vm6, %v7428_v30, %v7427_v39  ;;  %v4890_v5 = vmax.f32 %v12406_v9, %v7427_v39  ;;  %v4979_v9 = vld [vmem:[%s12736_s5 + $0x1a0] sm:$0xff]  ;;  %v4993_v30 = vld [vmem:[%s12736_s5 + $0x210] sm:$0xff]  ;;  %v4994_v39 = vld [vmem:[%s12736_s5 + $0x218] sm:$0xff] }
 0x752   : > { %v4889_v2 = vmax.f32 %v12404_v21, %v4877_v45  ;;  %v4980_v21 = vld [vmem:[%s12736_s5 + $0x1a8] sm:$0xff]  ;;  %v6513_v12 = vpack.c.bf16 %v4994_v39, %v4993_v30  ;;  %v7472_v45 = vmov 0.0  }
 0x753   : > { %v6485_v17 = vpack.c.bf16 %v4980_v21, %v4979_v9  ;;  %v5221_v21 = vld [vmem:[%s12738_s7 + $0x20] sm:$0xff] }
 0x7b5   : > { %v12579_v37 = vpop.permute.xlu1 %4899 }
 0x7b6   : > { %v4924_v23 = vsel %vm4903_vm13, %v4890_v5, %v12579_v37  ;;  %v6516_v5 = vpack.c.bf16 %v4996_v52, %v4995_v29 }
 0x7b7   : > { %5070 = vmatprep.mubr.f32.mxu1 %v4924_v23  ;;  %v5218_v23 = vld [vmem:[%s12738_s7 + $0x8] sm:$0xff] }
 0x7b8   : > { %5071 = vmatmul.mubr.f32.vlgmr.msra.gmra.mrb[112].mxu1 %v4889_v2  ;;  %v5217_v2 = vld [vmem:[%s12738_s7] sm:$0xff] }
 0x7b9   : > { %6480 = vmatpush3.bf16.msra.mxu1 %v6479_v33  ;;  %v4902_v26 = vpop.permute.xlu1 %4901  ;;  %v6519_v50 = vpack.c.bf16 %v5218_v23, %v5217_v2 }
 0x7ba   : > { %6482 = vmatprep.subr.bf16.mxu1 %v6481_v57  ;;  %v4904_v51 = vsel %vm4903_vm13, %v12579_v37, %v4902_v26  ;;  %v5219_v57 = vld [vmem:[%s12738_s7 + $0x10] sm:$0xff] }
 0x7bb   : > { %v6522_v9 = vpack.c.bf16 %v5220_v41, %v5219_v57 }
 0x7bd   : > { %6484 = vmatpush3.bf16.msra.mxu1 %v6483_v20  ;;  %v5222_v20 = vld [vmem:[%s12738_s7 + $0x28] sm:$0xff] }
 0x7be   : > { %6486 = vmatprep.subr.bf16.mxu1 %v6485_v17  ;;  %v6525_v17 = vpack.c.bf16 %v5222_v20, %v5221_v21 }
 0x7bf   : > { %v7431_v44 = vpop.permute.xlu0 %7430 }
 0x7c0   : > { %v7433_v7 = vunpack.i.h.bf16 %v7431_v44  ;;  %v7432_v6 = vunpack.i.l.bf16 %v7431_v44  ;;  %v4921_v37 = vpop.permute.xlu1 %4920 }
 0x7c1   : > { %6488 = vmatpush3.bf16.msra.mxu1 %v6487_v10  ;;  %v5535_v10 = vld [vmem:[%s12737_s6] ss:$0 sm:$0xff] }
 0x7c2   : > { %6490 = vmatprep.subr.bf16.mxu1 %v6489_v55  ;;  %v4913_v53 = vsel %vm2863_vm8, %v7432_v6, %v7433_v7  ;;  %v4925_v18 = vsel %vm2863_vm8, %v4904_v51, %v7432_v6 }
 0x7c3   : > { %v4919_v42 = vpop.permute.xlu0 %4918 }
 0x7c4   : > { %v4926_v14 = vsel %vm1315_vm4, %v4913_v53, %v4919_v42  ;;  %v4922_v33 = vsel %vm1315_vm4, %v4919_v42, %v4921_v37  ;;  %v5537_v53 = vld [vmem:[%s12739_s8] ss:$0 sm:$0xff] }
 0x7c5   : > { %6492 = vmatpush3.bf16.msra.mxu1 %v6491_v31  ;;  %5140 = vmatprep.mubr.f32.mxu1 %v4926_v14 }
 0x7c6   : > { %6494 = vmatprep.subr.bf16.mxu1 %v6493_v54 }
 0x7c9   : > { %6496 = vmatpush3.bf16.msra.mxu1 %v6495_v19 }
 0x7ca   : > { %6498 = vmatprep.subr.bf16.mxu1 %v6497_v36 }
 0x7cd   : > { %6500 = vmatpush3.bf16.msra.mxu1 %v6499_v1 }
 0x7ce   : > { %6502 = vmatprep.subr.bf16.mxu1 %v6501_v58 }
 0x7d1   : > { %6504 = vmatpush3.bf16.msra.mxu1 %v6503_v27 }
 0x7d2   : > { %6506 = vmatprep.subr.bf16.mxu1 %v6505_v40 }
 0x7d5   : > { %6508 = vmatpush3.bf16.msra.mxu1 %v6507_v3 }
 0x7d6   : > { %6509 = vmatprep.subr.bf16.mxu1 %v7470_v8 }
 0x7d8   : > { %5141 = vmatmul.mubr.f32.vlgmr.msra.gmra.mrb[114].mxu1 %v4925_v18 }
 0x7d9   : > { %6511 = vmatpush3.bf16.msra.mxu1 %v6510_v25  ;;  %5639 = vmatprep.mubr.msk.f32.mxu1 %vm7471_vm14, %v7472_v45 }
 0x7da   : > { %6512 = vmatprep.subr.bf16.mxu1 %v7470_v8 }
 0x7dd   : > { %6514 = vmatpush3.bf16.msra.mxu1 %v6513_v12 }
 0x7de   : > { %6515 = vmatprep.subr.bf16.mxu1 %v7470_v8 }
 0x7e1   : > { %6517 = vmatpush3.bf16.msra.mxu1 %v6516_v5 }
 0x7e2   : > { %6518 = vmatprep.subr.bf16.mxu1 %v7470_v8 }
 0x7e4   : > { %5640 = vmatmul.mubr.msk.f32.vlgmr.msra.gmra.mrb[116].mxu1 %vm3121_vm10, %v4922_v33 }
 0x7e5   : > { %5656 = vmatprep.mubr.msk.f32.mxu1 %vm7471_vm14, %v7472_v45  ;;  %6520 = vmatpush3.bf16.msra.mxu1 %v6519_v50 }
 0x7e6   : > { %6521 = vmatprep.subr.bf16.mxu1 %v7470_v8 }
 0x7e9   : > { %6523 = vmatpush3.bf16.msra.mxu1 %v6522_v9 }
 0x7ea   : > { %6524 = vmatprep.subr.bf16.mxu1 %v7470_v8 }
 0x7ed   : > { %6526 = vmatpush3.bf16.msra.mxu1 %v6525_v17 }
 0x7ee   : > { %5654 = vmatprep.subr.mxu1 %v7472_v45 }
 0x7f1   : > { %5655 = vmatpush3.msk.msra.mxu1 %vm5235_vm15, %v5223_v63 }
 0x88b   : > { %v5574_v38 = vpop.f32.mrb[112].mxu1 }
 0x88c   : > { %v5575_v60 = vpop.f32.mrb[113].mxu1 }
 0x88d   : > { %v5576_v4 = vadd.f32 %v5575_v60, %v5574_v38 }
 0x88f   : > { %v5073_v56 = vadd.f32 %v5576_v4, %v5535_v10 }
 0x8ab   : > { %v5609_v55 = vpop.f32.mrb[114].mxu1 }
 0x8ac   : > { %v5610_v15 = vpop.f32.mrb[115].mxu1 }
 0x8ad   : > { %v5611_v44 = vadd.f32 %v5610_v15, %v5609_v55 }
 0x8af   : > { %v5143_v13 = vadd.f32 %v5611_v44, %v5073_v56 }
 0x8b7   : > { %v5212_v28 = vpop.f32.mrb[116].mxu1 }
 0x8b8   : > { %v5213_v7 = vadd.f32 %v5212_v28, %v5143_v13  ;;  %v5641_v6 = vpop.f32.mrb[117].mxu1 }
 0x8ba   : > { %v5216_v31 = vmax.f32 %v5213_v7, 0.0 }
 0x8bc   : > { %5657 = vmatmul.mubr.msk.f32.vlgmr.msra.gmra.mrb[118].mxu1 %vm5231_vm0, %v5216_v31 }
 0x98f   : > { %v5305_v54 = vpop.f32.mrb[118].mxu1 }
 0x990   : > { %v5306_v24 = vadd.f32 %v5537_v53, %v5305_v54  ;;  %v5658_v43 = vpop.f32.mrb[119].mxu1 }
 0x992   : > { %5310 = vst.msk [vmem:[%s472_s29] sm:$0xff] %vm5309_vm1, %v5306_v24 }
 0x993 PF: > { %p16_p9 = scmp.ge.s32.totalorder %s7540_s13, 4   ;;  %s13058_s30 = smov %s7452_s10 }
 0x994   : > { %s13059_s10 = smov %s7549_s16  ;;  %s13060_s11 = smov %s7540_s13 }
 0x995   :  { %18 = sbr.rel (!%p16_p9) target bundleno = 2 (0x2), region = 133 }

</bundles_post_ra>
